<compile_context>
chip_gen: v5e
topology: v5e:2x2
jax: 0.10.0
libtpu: 0.0.40
codegen_flags: <defaults>
</compile_context>

<pallas_src>
import functools

import numpy as np

import jax
import jax.numpy as jnp
from jax.experimental import pallas as pl
from jax.experimental.pallas import tpu as pltpu

EPS = 1e-5
LANE = 128


def _round_up(v, m):
    return (v + m - 1) // m * m


def _cdiv(a, b):
    return -(-a // b)


# ----------------------------- Pallas kernels ------------------------------

def _conv1_convsc_kernel(x_ref, w1_ref, ws_ref, mask_ref,
                         y1_ref, ysc_ref, st_ref, *,
                         stride, wq, R, wo, ho, acc_len):
    """conv1 (3x3, stride) + 1x1 shortcut conv + bn1/bn_sc batch statistics.

    x_ref   : (s*s, NIN, Cin_p)   bf16  flattened padded input phases
    w1_ref  : (9, Cin_p, Cout_p)  bf16  conv1 taps (kh*3+kw major)
    ws_ref  : (Cin_p, Cout_p)     bf16  1x1 shortcut weights
    mask_ref: (acc_len, 1)        f32   1.0 on valid output columns
    y1_ref  : (NPAD1, Cout_p)     bf16  conv1 output (flat plane, stride R);
                                        border rows left uninitialized — pass 2
                                        re-zeroes them with a select
    ysc_ref : (MROW, Cout_p)      bf16  shortcut output (flat plane, stride R)
    st_ref  : (4, Cout_p)         f32   [sum y1, sum y1^2, sum sc, sum sc^2]
    """
    cout_p = w1_ref.shape[-1]
    acc = jnp.zeros((acc_len, cout_p), jnp.float32)
    for t in range(9):
        kh, kw = divmod(t, 3)
        phase = (kh % stride) * stride + (kw % stride)
        off = (kh // stride) * wq + (kw // stride)
        acc = acc + jnp.dot(x_ref[phase, off:off + acc_len, :], w1_ref[t],
                            preferred_element_type=jnp.float32)
    phase_sc = (1 % stride) * stride + (1 % stride)
    off_sc = (1 // stride) * wq + (1 // stride)
    acc_sc = jnp.dot(x_ref[phase_sc, off_sc:off_sc + acc_len, :], ws_ref[...],
                     preferred_element_type=jnp.float32)

    # Mask once, reuse the masked plane for both moments and the store.
    mask = mask_ref[...]
    acc_m = acc * mask
    sc_m = acc_sc * mask
    st_ref[0:1, :] = jnp.sum(acc_m, axis=0, keepdims=True)
    st_ref[1:2, :] = jnp.sum(acc_m * acc_m, axis=0, keepdims=True)
    st_ref[2:3, :] = jnp.sum(sc_m, axis=0, keepdims=True)
    st_ref[3:4, :] = jnp.sum(sc_m * sc_m, axis=0, keepdims=True)

    acc_b = acc_m.astype(jnp.bfloat16)
    sc_b = sc_m.astype(jnp.bfloat16)
    if R == wq:
        # Row stride of the accumulator equals the shared plane stride R:
        # one contiguous store each (valid pixel (i,j) lands at (i+1)*R+(j+1)
        # in y1 and at i*R+j in ysc); masked border/garbage handled downstream.
        y1_ref[R + 1:R + 1 + acc_len, :] = acc_b
        ysc_ref[0:acc_len, :] = sc_b
    else:
        # Rare fallback (stride >= 3): per-row placement.
        for i in range(ho):
            y1_ref[(i + 1) * R + 1:(i + 1) * R + 1 + wo, :] = \
                acc_b[i * wq:i * wq + wo, :]
            ysc_ref[i * R:i * R + wo, :] = sc_b[i * wq:i * wq + wo, :]


def _conv1_kernel(x_ref, w1_ref, mask_ref, y1_ref, st_ref, *,
                  stride, wq, R, wo, ho, acc_len):
    """Identity-shortcut variant of pass 1: conv1 + bn1 statistics only."""
    cout_p = w1_ref.shape[-1]
    acc = jnp.zeros((acc_len, cout_p), jnp.float32)
    for t in range(9):
        kh, kw = divmod(t, 3)
        phase = (kh % stride) * stride + (kw % stride)
        off = (kh // stride) * wq + (kw // stride)
        acc = acc + jnp.dot(x_ref[phase, off:off + acc_len, :], w1_ref[t],
                            preferred_element_type=jnp.float32)
    acc_m = acc * mask_ref[...]
    st_ref[0:1, :] = jnp.sum(acc_m, axis=0, keepdims=True)
    st_ref[1:2, :] = jnp.sum(acc_m * acc_m, axis=0, keepdims=True)
    acc_b = acc_m.astype(jnp.bfloat16)
    if R == wq:
        y1_ref[R + 1:R + 1 + acc_len, :] = acc_b
    else:
        for i in range(ho):
            y1_ref[(i + 1) * R + 1:(i + 1) * R + 1 + wo, :] = \
                acc_b[i * wq:i * wq + wo, :]


def _bn1_relu_conv2_kernel(y1_ref, w2_ref, aff1_ref, mpad_ref,
                           y2_ref, st_ref, h_scr, *, R, mrow):
    """bn1 (scale/shift) + relu applied on the fly, conv2 (3x3, s=1), bn2 stats.

    The conv1 plane border was never written in pass 1, so the border is
    re-zeroed with a NaN-safe select (not a multiply). The bn1+relu result is
    staged in a VMEM scratch ref and sliced per tap (ref views, not value
    copies).
    """
    cout_p = w2_ref.shape[-1]
    h = jnp.maximum(y1_ref[...].astype(jnp.float32) * aff1_ref[0:1, :]
                    + aff1_ref[1:2, :], 0.0)
    h_scr[...] = jnp.where(mpad_ref[...] > 0.5, h, 0.0).astype(jnp.bfloat16)

    acc = jnp.zeros((mrow, cout_p), jnp.float32)
    for t in range(9):
        kh, kw = divmod(t, 3)
        off = kh * R + kw
        acc = acc + jnp.dot(h_scr[off:off + mrow, :], w2_ref[t],
                            preferred_element_type=jnp.float32)
    # Valid-row mask of the output plane == interior mask shifted by R+1.
    acc_m = acc * mpad_ref[R + 1:R + 1 + mrow, :]
    st_ref[0:1, :] = jnp.sum(acc_m, axis=0, keepdims=True)
    st_ref[1:2, :] = jnp.sum(acc_m * acc_m, axis=0, keepdims=True)
    y2_ref[...] = acc_m.astype(jnp.bfloat16)


def _bn2_scbn_add_relu_kernel(y2_ref, ysc_ref, aff_ref, out_ref):
    """out = relu(bn2(y2) + bn_sc(ysc)); precomputed per-channel affines."""
    out = (y2_ref[...].astype(jnp.float32) * aff_ref[0:1, :] + aff_ref[1:2, :]
           + ysc_ref[...].astype(jnp.float32) * aff_ref[2:3, :]
           + aff_ref[3:4, :])
    out_ref[...] = jnp.maximum(out, 0.0).astype(out_ref.dtype)


def _bn2_idres_add_relu_kernel(y2_ref, x_ref, aff_ref, out_ref, *, R, mrow):
    """Identity-shortcut variant: out = relu(bn2(y2) + x) (x read in place)."""
    res = x_ref[0, R + 1:R + 1 + mrow, :].astype(jnp.float32)
    out = (y2_ref[...].astype(jnp.float32) * aff_ref[0:1, :]
           + aff_ref[1:2, :] + res)
    out_ref[...] = jnp.maximum(out, 0.0).astype(out_ref.dtype)


# ------------------------------- wrapper ------------------------------------

def _pad_channels(v, cp):
    v = jnp.asarray(v, jnp.float32).reshape(-1)
    return jnp.pad(v, (0, cp - v.shape[0]))


def prepare_params(params, stride):
    """Pack / channel-pad / bf16-cast weights once, outside the jitted forward."""
    s = int(stride)
    cout, cin = int(params["w1"].shape[0]), int(params["w1"].shape[1])
    has_conv_sc = (s != 1) or (cin != cout)
    cin_p, cout_p = _round_up(cin, LANE), _round_up(cout, LANE)

    w1 = jnp.transpose(params["w1"].astype(jnp.float32), (2, 3, 1, 0))
    w1 = w1.reshape(9, cin, cout)
    w1p = jnp.zeros((9, cin_p, cout_p), jnp.float32).at[:, :cin, :cout].set(w1)
    w2 = jnp.transpose(params["w2"].astype(jnp.float32), (2, 3, 1, 0))
    w2 = w2.reshape(9, cout, cout)
    w2p = jnp.zeros((9, cout_p, cout_p), jnp.float32).at[:, :cout, :cout].set(w2)

    packed = {
        "w1p": w1p.astype(jnp.bfloat16),
        "w2p": w2p.astype(jnp.bfloat16),
        "g1": _pad_channels(params["g1"], cout_p),
        "b1": _pad_channels(params["b1"], cout_p),
        "g2": _pad_channels(params["g2"], cout_p),
        "b2": _pad_channels(params["b2"], cout_p),
    }
    if has_conv_sc:
        ws = params["ws"].astype(jnp.float32).reshape(cout, cin).T
        wsp = jnp.zeros((cin_p, cout_p), jnp.float32).at[:cin, :cout].set(ws)
        packed["wsp"] = wsp.astype(jnp.bfloat16)
        packed["gs"] = _pad_channels(params["gs"], cout_p)
        packed["bs"] = _pad_channels(params["bs"], cout_p)
    return packed


@functools.partial(jax.jit, static_argnames=("stride", "cout"))
def residual_block_forward(x_nchw, packed, *, stride, cout):
    s = int(stride)
    N, cin, H, W = x_nchw.shape
    has_conv_sc = (s != 1) or (cin != cout)
    assert has_conv_sc == ("wsp" in packed)

    cin_p = packed["w1p"].shape[1]
    cout_p = packed["w1p"].shape[2]

    ho = (H - 1) // s + 1              # conv 3x3, pad 1
    wo = (W - 1) // s + 1
    hp, wp = H + 2, W + 2              # spatially padded input
    hq, wq = _cdiv(hp, s), _cdiv(wp, s)
    # Shared flat row stride for every intermediate plane. For stride 1/2 it
    # equals wq, so conv1 / shortcut results are placed with ONE contiguous
    # store per image; the single masked position between consecutive rows
    # doubles as right+left zero padding for conv2.
    R = wq if wq >= wo + 1 else wo + 1
    acc_len = (ho - 1) * wq + wo       # rows produced by the conv1 accumulator
    mrow = ho * R                      # rows of y2 / ysc / out planes
    npad1 = (ho + 2) * R + 2           # rows of the padded conv1 output plane
    nphase = s * s
    max_off = (2 // s) * wq + (2 // s)
    nin = max(hq * wq, max_off + acc_len)

    # ---- input layout prep (plain JAX: NCHW -> flat padded bf16 phases) ----
    # TODO(synk): in a fused pipeline activations would stay NHWC/bf16 between
    # blocks and this transpose/relayout would disappear.
    x = jnp.transpose(x_nchw, (0, 2, 3, 1)).astype(jnp.bfloat16)
    xpad = jnp.pad(x, ((0, 0), (1, 1), (1, 1), (0, cin_p - cin)))
    if s == 1:
        phases = xpad[:, None]
    else:
        xpad = jnp.pad(xpad, ((0, 0), (0, hq * s - hp), (0, wq * s - wp), (0, 0)))
        phases = xpad.reshape(N, hq, s, wq, s, cin_p).transpose(0, 2, 4, 1, 3, 5)
        phases = phases.reshape(N, nphase, hq, wq, cin_p)
    xflat = phases.reshape(N, nphase, hq * wq, cin_p)
    if nin > hq * wq:
        xflat = jnp.pad(xflat, ((0, 0), (0, 0), (0, nin - hq * wq), (0, 0)))

    # Tiny constant-index masks (valid columns / interior of the padded plane).
    mask1 = jnp.asarray(((np.arange(acc_len) % wq) < wo)
                        .astype(np.float32)[:, None])
    rr = np.arange(npad1)
    mpad = jnp.asarray((((rr // R) >= 1) & ((rr // R) <= ho)
                        & ((rr % R) >= 1) & ((rr % R) <= wo))
                       .astype(np.float32)[:, None])

    cparams = pltpu.CompilerParams(
        dimension_semantics=("parallel",),
        vmem_limit_bytes=32 * 1024 * 1024,
    )

    # ---- pass 1: conv1 [+ shortcut conv] + bn1 [+ bn_sc] statistics --------
    if has_conv_sc:
        k1 = functools.partial(_conv1_convsc_kernel, stride=s, wq=wq, R=R,
                               wo=wo, ho=ho, acc_len=acc_len)
        y1pad, ysc, st1 = pl.pallas_call(
            k1,
            grid=(N,),
            in_specs=[
                pl.BlockSpec((None, nphase, nin, cin_p), lambda n: (n, 0, 0, 0)),
                pl.BlockSpec((9, cin_p, cout_p), lambda n: (0, 0, 0)),
                pl.BlockSpec((cin_p, cout_p), lambda n: (0, 0)),
                pl.BlockSpec((acc_len, 1), lambda n: (0, 0)),
            ],
            out_specs=[
                pl.BlockSpec((None, npad1, cout_p), lambda n: (n, 0, 0)),
                pl.BlockSpec((None, mrow, cout_p), lambda n: (n, 0, 0)),
                pl.BlockSpec((None, 4, cout_p), lambda n: (n, 0, 0)),
            ],
            out_shape=[
                jax.ShapeDtypeStruct((N, npad1, cout_p), jnp.bfloat16),
                jax.ShapeDtypeStruct((N, mrow, cout_p), jnp.bfloat16),
                jax.ShapeDtypeStruct((N, 4, cout_p), jnp.float32),
            ],
            compiler_params=cparams,
        )(xflat, packed["w1p"], packed["wsp"], mask1)
    else:
        k1 = functools.partial(_conv1_kernel, stride=s, wq=wq, R=R,
                               wo=wo, ho=ho, acc_len=acc_len)
        y1pad, st1 = pl.pallas_call(
            k1,
            grid=(N,),
            in_specs=[
                pl.BlockSpec((None, nphase, nin, cin_p), lambda n: (n, 0, 0, 0)),
                pl.BlockSpec((9, cin_p, cout_p), lambda n: (0, 0, 0)),
                pl.BlockSpec((acc_len, 1), lambda n: (0, 0)),
            ],
            out_specs=[
                pl.BlockSpec((None, npad1, cout_p), lambda n: (n, 0, 0)),
                pl.BlockSpec((None, 2, cout_p), lambda n: (n, 0, 0)),
            ],
            out_shape=[
                jax.ShapeDtypeStruct((N, npad1, cout_p), jnp.bfloat16),
                jax.ShapeDtypeStruct((N, 2, cout_p), jnp.float32),
            ],
            compiler_params=cparams,
        )(xflat, packed["w1p"], mask1)

    # ---- bn1 (and bn_sc) scale/shift from exact global batch statistics ----
    cnt = float(N * ho * wo)
    st = jnp.sum(st1, axis=0)
    # TODO(synk): E[x^2]-E[x]^2 in f32 can cancel for extreme means over very
    # large counts; a shifted / two-pass accumulation would be more robust.
    mean1 = st[0] / cnt
    var1 = jnp.maximum(st[1] / cnt - mean1 * mean1, 0.0)
    scale1 = packed["g1"] * jax.lax.rsqrt(var1 + EPS)
    shift1 = packed["b1"] - mean1 * scale1
    aff1 = jnp.stack([scale1, shift1])                        # (2, cout_p)

    # ---- pass 2: bn1 + relu + conv2 + bn2 statistics ------------------------
    k2 = functools.partial(_bn1_relu_conv2_kernel, R=R, mrow=mrow)
    y2, st2 = pl.pallas_call(
        k2,
        grid=(N,),
        in_specs=[
            pl.BlockSpec((None, npad1, cout_p), lambda n: (n, 0, 0)),
            pl.BlockSpec((9, cout_p, cout_p), lambda n: (0, 0, 0)),
            pl.BlockSpec((2, cout_p), lambda n: (0, 0)),
            pl.BlockSpec((npad1, 1), lambda n: (0, 0)),
        ],
        out_specs=[
            pl.BlockSpec((None, mrow, cout_p), lambda n: (n, 0, 0)),
            pl.BlockSpec((None, 2, cout_p), lambda n: (n, 0, 0)),
        ],
        out_shape=[
            jax.ShapeDtypeStruct((N, mrow, cout_p), jnp.bfloat16),
            jax.ShapeDtypeStruct((N, 2, cout_p), jnp.float32),
        ],
        scratch_shapes=[pltpu.VMEM((npad1, cout_p), jnp.bfloat16)],
        compiler_params=cparams,
    )(y1pad, packed["w2p"], aff1, mpad)

    st2s = jnp.sum(st2, axis=0)
    mean2 = st2s[0] / cnt
    var2 = jnp.maximum(st2s[1] / cnt - mean2 * mean2, 0.0)
    scale2 = packed["g2"] * jax.lax.rsqrt(var2 + EPS)
    shift2 = packed["b2"] - mean2 * scale2

    # ---- pass 3: bn2 apply [+ shortcut-bn apply] + residual add + relu -----
    if has_conv_sc:
        mean_s = st[2] / cnt
        var_s = jnp.maximum(st[3] / cnt - mean_s * mean_s, 0.0)
        scale_sc = packed["gs"] * jax.lax.rsqrt(var_s + EPS)
        shift_sc = packed["bs"] - mean_s * scale_sc
        aff2 = jnp.stack([scale2, shift2, scale_sc, shift_sc])  # (4, cout_p)
        out_flat = pl.pallas_call(
            _bn2_scbn_add_relu_kernel,
            grid=(N,),
            in_specs=[
                pl.BlockSpec((None, mrow, cout_p), lambda n: (n, 0, 0)),
                pl.BlockSpec((None, mrow, cout_p), lambda n: (n, 0, 0)),
                pl.BlockSpec((4, cout_p), lambda n: (0, 0)),
            ],
            out_specs=pl.BlockSpec((None, mrow, cout_p), lambda n: (n, 0, 0)),
            out_shape=jax.ShapeDtypeStruct((N, mrow, cout_p), jnp.bfloat16),
            compiler_params=cparams,
        )(y2, ysc, aff2)
    else:
        aff2 = jnp.stack([scale2, shift2])                      # (2, cout_p)
        k3 = functools.partial(_bn2_idres_add_relu_kernel, R=R, mrow=mrow)
        out_flat = pl.pallas_call(
            k3,
            grid=(N,),
            in_specs=[
                pl.BlockSpec((None, mrow, cout_p), lambda n: (n, 0, 0)),
                pl.BlockSpec((None, nphase, nin, cin_p), lambda n: (n, 0, 0, 0)),
                pl.BlockSpec((2, cout_p), lambda n: (0, 0)),
            ],
            out_specs=pl.BlockSpec((None, mrow, cout_p), lambda n: (n, 0, 0)),
            out_shape=jax.ShapeDtypeStruct((N, mrow, cout_p), jnp.bfloat16),
            compiler_params=cparams,
        )(y2, xflat, aff2)

    # TODO(synk): in a fused pipeline the block would return NHWC bf16 and this
    # slice/transpose (plus pass 3 itself) would fold into the next block.
    out = out_flat.reshape(N, ho, R, cout_p)[:, :, :wo, :cout]
    return jnp.transpose(out, (0, 3, 1, 2)).astype(jnp.float32)   # -> NCHW f32


# ------------------------- pure-JAX reference (check) -----------------------

def _bn_ref(x_nchw, gamma, beta):
    mean = jnp.mean(x_nchw, axis=(0, 2, 3), keepdims=True)
    var = jnp.mean((x_nchw - mean) ** 2, axis=(0, 2, 3), keepdims=True)
    g = gamma.reshape(1, -1, 1, 1)
    b = beta.reshape(1, -1, 1, 1)
    return (x_nchw - mean) * jax.lax.rsqrt(var + EPS) * g + b


def residual_block_ref(x, params, stride=1):
    conv = lambda a, w, s, pad: jax.lax.conv_general_dilated(
        a, w, (s, s), ((pad, pad), (pad, pad)),
        dimension_numbers=("NCHW", "OIHW", "NCHW"))
    in_c, out_c = x.shape[1], params["w1"].shape[0]
    h = jax.nn.relu(_bn_ref(conv(x, params["w1"], stride, 1),
                            params["g1"], params["b1"]))
    h = _bn_ref(conv(h, params["w2"], 1, 1), params["g2"], params["b2"])
    if stride != 1 or in_c != out_c:
        sc = _bn_ref(conv(x, params["ws"], stride, 0),
                     params["gs"], params["bs"])
    else:
        sc = x
    return jax.nn.relu(h + sc)


# ---------------------------------- main -------------------------------------

if __name__ == "__main__":
    root = jax.random.PRNGKey(0)

    def make_params(key, in_c, out_c, with_sc):
        ks = jax.random.split(key, 9)
        p = {
            "w1": 0.2 * jax.random.normal(ks[0], (out_c, in_c, 3, 3), jnp.float32),
            "g1": 1.0 + 0.1 * jax.random.normal(ks[1], (out_c,), jnp.float32),
            "b1": 0.1 * jax.random.normal(ks[2], (out_c,), jnp.float32),
            "w2": 0.2 * jax.random.normal(ks[3], (out_c, out_c, 3, 3), jnp.float32),
            "g2": 1.0 + 0.1 * jax.random.normal(ks[4], (out_c,), jnp.float32),
            "b2": 0.1 * jax.random.normal(ks[5], (out_c,), jnp.float32),
        }
        if with_sc:
            p["ws"] = 0.2 * jax.random.normal(ks[6], (out_c, in_c, 1, 1),
                                              jnp.float32)
            p["gs"] = 1.0 + 0.1 * jax.random.normal(ks[7], (out_c,), jnp.float32)
            p["bs"] = 0.1 * jax.random.normal(ks[8], (out_c,), jnp.float32)
        return p

    configs = [
        # (name, N, in_c, out_c, H, W, stride)
        ("conv-shortcut stride-1", 2, 4, 8, 16, 16, 1),
        ("identity shortcut",      2, 8, 8, 16, 16, 1),
        ("conv-shortcut stride-2", 2, 4, 8, 16, 16, 2),
    ]
    for name, N, in_c, out_c, H, W, stride in configs:
        root, k_x, k_p = jax.random.split(root, 3)
        x = jax.random.normal(k_x, (N, in_c, H, W), jnp.float32)
        with_sc = (stride != 1) or (in_c != out_c)
        params = make_params(k_p, in_c, out_c, with_sc)

        packed = prepare_params(params, stride)            # one-time weight prep
        out = residual_block_forward(x, packed, stride=stride, cout=out_c)
        out = jax.block_until_ready(out)

        ref = residual_block_ref(x, params, stride=stride)
        assert out.shape == ref.shape, (name, out.shape, ref.shape)
        max_err = float(jnp.max(jnp.abs(out - ref)))
        # bf16 MXU operands / bf16 intermediates & output => loose tolerance.
        assert jnp.allclose(out, ref, atol=5e-2, rtol=5e-2), (name, max_err)

    print("KERNEL_OK")
</pallas_src>

<mosaic_0001>
module attributes {stable_mosaic.version = 11 : i64} {
  func.func @_conv1_convsc_kernel(%arg0: i32, %arg1: memref<1x1x324x128xbf16, #tpu.memory_space<vmem>>, %arg2: memref<9x128x128xbf16, #tpu.memory_space<vmem>>, %arg3: memref<128x128xbf16, #tpu.memory_space<vmem>>, %arg4: memref<286x1xf32, #tpu.memory_space<vmem>>, %arg5: memref<1x326x128xbf16, #tpu.memory_space<vmem>>, %arg6: memref<1x288x128xbf16, #tpu.memory_space<vmem>>, %arg7: memref<1x4x128xf32, #tpu.memory_space<vmem>>) attributes {dimension_semantics = [#tpu.dimension_semantics<parallel>], iteration_bounds = array<i64: 2>, scalar_prefetch = 0 : i64, scratch_operands = 0 : i64, tpu.core_type = #tpu.core_type<tc>, window_params = [{transform_indices = @transform_0, window_bounds = array<i64: 1, 1, 324, 128>}, {pipeline_mode = #tpu.pipeline_mode<synchronous>, transform_indices = @transform_1, window_bounds = array<i64: 9, 128, 128>}, {pipeline_mode = #tpu.pipeline_mode<synchronous>, transform_indices = @transform_2, window_bounds = array<i64: 128, 128>}, {pipeline_mode = #tpu.pipeline_mode<synchronous>, transform_indices = @transform_3, window_bounds = array<i64: 286, 1>}, {transform_indices = @transform_4, window_bounds = array<i64: 1, 326, 128>}, {transform_indices = @transform_5, window_bounds = array<i64: 1, 288, 128>}, {transform_indices = @transform_6, window_bounds = array<i64: 1, 4, 128>}]} {
    %cst = arith.constant 0.000000e+00 : f32
    %0 = vector.broadcast %cst : f32 to vector<286x128xf32>
    %c0 = arith.constant 0 : index
    %c0_0 = arith.constant 0 : index
    %c0_1 = arith.constant 0 : index
    %c0_2 = arith.constant 0 : index
    %1 = vector.load %arg1[%c0, %c0_0, %c0_1, %c0_2] : memref<1x1x324x128xbf16, #tpu.memory_space<vmem>>, vector<1x1x286x128xbf16>
    %2 = vector.shape_cast %1 : vector<1x1x286x128xbf16> to vector<286x128xbf16>
    %c0_3 = arith.constant 0 : index
    %c0_4 = arith.constant 0 : index
    %c0_5 = arith.constant 0 : index
    %3 = vector.load %arg2[%c0_3, %c0_4, %c0_5] : memref<9x128x128xbf16, #tpu.memory_space<vmem>>, vector<1x128x128xbf16>
    %4 = vector.shape_cast %3 : vector<1x128x128xbf16> to vector<128x128xbf16>
    %cst_6 = arith.constant dense<0.000000e+00> : vector<286x128xf32>
    %5 = tpu.matmul %2, %4, %cst_6 {dimension_numbers = #tpu.dot_dimension_numbers<[1], [0], [0], [1], [0, 0, 1, 1], [], []>} : vector<286x128xbf16>, vector<128x128xbf16>, vector<286x128xf32> -> vector<286x128xf32>
    %6 = arith.addf %0, %5 : vector<286x128xf32>
    %c0_7 = arith.constant 0 : index
    %c0_8 = arith.constant 0 : index
    %c1 = arith.constant 1 : index
    %c0_9 = arith.constant 0 : index
    %7 = vector.load %arg1[%c0_7, %c0_8, %c1, %c0_9] : memref<1x1x324x128xbf16, #tpu.memory_space<vmem>>, vector<1x1x286x128xbf16>
    %8 = vector.shape_cast %7 : vector<1x1x286x128xbf16> to vector<286x128xbf16>
    %c1_10 = arith.constant 1 : index
    %c0_11 = arith.constant 0 : index
    %c0_12 = arith.constant 0 : index
    %9 = vector.load %arg2[%c1_10, %c0_11, %c0_12] : memref<9x128x128xbf16, #tpu.memory_space<vmem>>, vector<1x128x128xbf16>
    %10 = vector.shape_cast %9 : vector<1x128x128xbf16> to vector<128x128xbf16>
    %cst_13 = arith.constant dense<0.000000e+00> : vector<286x128xf32>
    %11 = tpu.matmul %8, %10, %cst_13 {dimension_numbers = #tpu.dot_dimension_numbers<[1], [0], [0], [1], [0, 0, 1, 1], [], []>} : vector<286x128xbf16>, vector<128x128xbf16>, vector<286x128xf32> -> vector<286x128xf32>
    %12 = arith.addf %6, %11 : vector<286x128xf32>
    %c0_14 = arith.constant 0 : index
    %c0_15 = arith.constant 0 : index
    %c2 = arith.constant 2 : index
    %c0_16 = arith.constant 0 : index
    %13 = vector.load %arg1[%c0_14, %c0_15, %c2, %c0_16] : memref<1x1x324x128xbf16, #tpu.memory_space<vmem>>, vector<1x1x286x128xbf16>
    %14 = vector.shape_cast %13 : vector<1x1x286x128xbf16> to vector<286x128xbf16>
    %c2_17 = arith.constant 2 : index
    %c0_18 = arith.constant 0 : index
    %c0_19 = arith.constant 0 : index
    %15 = vector.load %arg2[%c2_17, %c0_18, %c0_19] : memref<9x128x128xbf16, #tpu.memory_space<vmem>>, vector<1x128x128xbf16>
    %16 = vector.shape_cast %15 : vector<1x128x128xbf16> to vector<128x128xbf16>
    %cst_20 = arith.constant dense<0.000000e+00> : vector<286x128xf32>
    %17 = tpu.matmul %14, %16, %cst_20 {dimension_numbers = #tpu.dot_dimension_numbers<[1], [0], [0], [1], [0, 0, 1, 1], [], []>} : vector<286x128xbf16>, vector<128x128xbf16>, vector<286x128xf32> -> vector<286x128xf32>
    %18 = arith.addf %12, %17 : vector<286x128xf32>
    %c0_21 = arith.constant 0 : index
    %c0_22 = arith.constant 0 : index
    %c18 = arith.constant 18 : index
    %c0_23 = arith.constant 0 : index
    %19 = vector.load %arg1[%c0_21, %c0_22, %c18, %c0_23] : memref<1x1x324x128xbf16, #tpu.memory_space<vmem>>, vector<1x1x286x128xbf16>
    %20 = vector.shape_cast %19 : vector<1x1x286x128xbf16> to vector<286x128xbf16>
    %c3 = arith.constant 3 : index
    %c0_24 = arith.constant 0 : index
    %c0_25 = arith.constant 0 : index
    %21 = vector.load %arg2[%c3, %c0_24, %c0_25] : memref<9x128x128xbf16, #tpu.memory_space<vmem>>, vector<1x128x128xbf16>
    %22 = vector.shape_cast %21 : vector<1x128x128xbf16> to vector<128x128xbf16>
    %cst_26 = arith.constant dense<0.000000e+00> : vector<286x128xf32>
    %23 = tpu.matmul %20, %22, %cst_26 {dimension_numbers = #tpu.dot_dimension_numbers<[1], [0], [0], [1], [0, 0, 1, 1], [], []>} : vector<286x128xbf16>, vector<128x128xbf16>, vector<286x128xf32> -> vector<286x128xf32>
    %24 = arith.addf %18, %23 : vector<286x128xf32>
    %c0_27 = arith.constant 0 : index
    %c0_28 = arith.constant 0 : index
    %c19 = arith.constant 19 : index
    %c0_29 = arith.constant 0 : index
    %25 = vector.load %arg1[%c0_27, %c0_28, %c19, %c0_29] : memref<1x1x324x128xbf16, #tpu.memory_space<vmem>>, vector<1x1x286x128xbf16>
    %26 = vector.shape_cast %25 : vector<1x1x286x128xbf16> to vector<286x128xbf16>
    %c4 = arith.constant 4 : index
    %c0_30 = arith.constant 0 : index
    %c0_31 = arith.constant 0 : index
    %27 = vector.load %arg2[%c4, %c0_30, %c0_31] : memref<9x128x128xbf16, #tpu.memory_space<vmem>>, vector<1x128x128xbf16>
    %28 = vector.shape_cast %27 : vector<1x128x128xbf16> to vector<128x128xbf16>
    %cst_32 = arith.constant dense<0.000000e+00> : vector<286x128xf32>
    %29 = tpu.matmul %26, %28, %cst_32 {dimension_numbers = #tpu.dot_dimension_numbers<[1], [0], [0], [1], [0, 0, 1, 1], [], []>} : vector<286x128xbf16>, vector<128x128xbf16>, vector<286x128xf32> -> vector<286x128xf32>
    %30 = arith.addf %24, %29 : vector<286x128xf32>
    %c0_33 = arith.constant 0 : index
    %c0_34 = arith.constant 0 : index
    %c20 = arith.constant 20 : index
    %c0_35 = arith.constant 0 : index
    %31 = vector.load %arg1[%c0_33, %c0_34, %c20, %c0_35] : memref<1x1x324x128xbf16, #tpu.memory_space<vmem>>, vector<1x1x286x128xbf16>
    %32 = vector.shape_cast %31 : vector<1x1x286x128xbf16> to vector<286x128xbf16>
    %c5 = arith.constant 5 : index
    %c0_36 = arith.constant 0 : index
    %c0_37 = arith.constant 0 : index
    %33 = vector.load %arg2[%c5, %c0_36, %c0_37] : memref<9x128x128xbf16, #tpu.memory_space<vmem>>, vector<1x128x128xbf16>
    %34 = vector.shape_cast %33 : vector<1x128x128xbf16> to vector<128x128xbf16>
    %cst_38 = arith.constant dense<0.000000e+00> : vector<286x128xf32>
    %35 = tpu.matmul %32, %34, %cst_38 {dimension_numbers = #tpu.dot_dimension_numbers<[1], [0], [0], [1], [0, 0, 1, 1], [], []>} : vector<286x128xbf16>, vector<128x128xbf16>, vector<286x128xf32> -> vector<286x128xf32>
    %36 = arith.addf %30, %35 : vector<286x128xf32>
    %c0_39 = arith.constant 0 : index
    %c0_40 = arith.constant 0 : index
    %c36 = arith.constant 36 : index
    %c0_41 = arith.constant 0 : index
    %37 = vector.load %arg1[%c0_39, %c0_40, %c36, %c0_41] : memref<1x1x324x128xbf16, #tpu.memory_space<vmem>>, vector<1x1x286x128xbf16>
    %38 = vector.shape_cast %37 : vector<1x1x286x128xbf16> to vector<286x128xbf16>
    %c6 = arith.constant 6 : index
    %c0_42 = arith.constant 0 : index
    %c0_43 = arith.constant 0 : index
    %39 = vector.load %arg2[%c6, %c0_42, %c0_43] : memref<9x128x128xbf16, #tpu.memory_space<vmem>>, vector<1x128x128xbf16>
    %40 = vector.shape_cast %39 : vector<1x128x128xbf16> to vector<128x128xbf16>
    %cst_44 = arith.constant dense<0.000000e+00> : vector<286x128xf32>
    %41 = tpu.matmul %38, %40, %cst_44 {dimension_numbers = #tpu.dot_dimension_numbers<[1], [0], [0], [1], [0, 0, 1, 1], [], []>} : vector<286x128xbf16>, vector<128x128xbf16>, vector<286x128xf32> -> vector<286x128xf32>
    %42 = arith.addf %36, %41 : vector<286x128xf32>
    %c0_45 = arith.constant 0 : index
    %c0_46 = arith.constant 0 : index
    %c37 = arith.constant 37 : index
    %c0_47 = arith.constant 0 : index
    %43 = vector.load %arg1[%c0_45, %c0_46, %c37, %c0_47] : memref<1x1x324x128xbf16, #tpu.memory_space<vmem>>, vector<1x1x286x128xbf16>
    %44 = vector.shape_cast %43 : vector<1x1x286x128xbf16> to vector<286x128xbf16>
    %c7 = arith.constant 7 : index
    %c0_48 = arith.constant 0 : index
    %c0_49 = arith.constant 0 : index
    %45 = vector.load %arg2[%c7, %c0_48, %c0_49] : memref<9x128x128xbf16, #tpu.memory_space<vmem>>, vector<1x128x128xbf16>
    %46 = vector.shape_cast %45 : vector<1x128x128xbf16> to vector<128x128xbf16>
    %cst_50 = arith.constant dense<0.000000e+00> : vector<286x128xf32>
    %47 = tpu.matmul %44, %46, %cst_50 {dimension_numbers = #tpu.dot_dimension_numbers<[1], [0], [0], [1], [0, 0, 1, 1], [], []>} : vector<286x128xbf16>, vector<128x128xbf16>, vector<286x128xf32> -> vector<286x128xf32>
    %48 = arith.addf %42, %47 : vector<286x128xf32>
    %c0_51 = arith.constant 0 : index
    %c0_52 = arith.constant 0 : index
    %c38 = arith.constant 38 : index
    %c0_53 = arith.constant 0 : index
    %49 = vector.load %arg1[%c0_51, %c0_52, %c38, %c0_53] : memref<1x1x324x128xbf16, #tpu.memory_space<vmem>>, vector<1x1x286x128xbf16>
    %50 = vector.shape_cast %49 : vector<1x1x286x128xbf16> to vector<286x128xbf16>
    %c8 = arith.constant 8 : index
    %c0_54 = arith.constant 0 : index
    %c0_55 = arith.constant 0 : index
    %51 = vector.load %arg2[%c8, %c0_54, %c0_55] : memref<9x128x128xbf16, #tpu.memory_space<vmem>>, vector<1x128x128xbf16>
    %52 = vector.shape_cast %51 : vector<1x128x128xbf16> to vector<128x128xbf16>
    %cst_56 = arith.constant dense<0.000000e+00> : vector<286x128xf32>
    %53 = tpu.matmul %50, %52, %cst_56 {dimension_numbers = #tpu.dot_dimension_numbers<[1], [0], [0], [1], [0, 0, 1, 1], [], []>} : vector<286x128xbf16>, vector<128x128xbf16>, vector<286x128xf32> -> vector<286x128xf32>
    %54 = arith.addf %48, %53 : vector<286x128xf32>
    %c0_57 = arith.constant 0 : index
    %c0_58 = arith.constant 0 : index
    %c19_59 = arith.constant 19 : index
    %c0_60 = arith.constant 0 : index
    %55 = vector.load %arg1[%c0_57, %c0_58, %c19_59, %c0_60] : memref<1x1x324x128xbf16, #tpu.memory_space<vmem>>, vector<1x1x286x128xbf16>
    %56 = vector.shape_cast %55 : vector<1x1x286x128xbf16> to vector<286x128xbf16>
    %c0_61 = arith.constant 0 : index
    %c0_62 = arith.constant 0 : index
    %57 = vector.load %arg3[%c0_61, %c0_62] : memref<128x128xbf16, #tpu.memory_space<vmem>>, vector<128x128xbf16>
    %cst_63 = arith.constant dense<0.000000e+00> : vector<286x128xf32>
    %58 = tpu.matmul %56, %57, %cst_63 {dimension_numbers = #tpu.dot_dimension_numbers<[1], [0], [0], [1], [0, 0, 1, 1], [], []>} : vector<286x128xbf16>, vector<128x128xbf16>, vector<286x128xf32> -> vector<286x128xf32>
    %c0_64 = arith.constant 0 : index
    %c0_65 = arith.constant 0 : index
    %59 = vector.load %arg4[%c0_64, %c0_65] : memref<286x1xf32, #tpu.memory_space<vmem>>, vector<286x1xf32>
    %60 = vector.broadcast %59 : vector<286x1xf32> to vector<286x128xf32>
    %61 = arith.mulf %54, %60 : vector<286x128xf32>
    %62 = vector.broadcast %59 : vector<286x1xf32> to vector<286x128xf32>
    %63 = arith.mulf %58, %62 : vector<286x128xf32>
    %cst_66 = arith.constant dense<0.000000e+00> : vector<128xf32>
    %64 = vector.multi_reduction <add>, %61, %cst_66 [0] : vector<286x128xf32> to vector<128xf32>
    %65 = vector.shape_cast %64 : vector<128xf32> to vector<1x128xf32>
    %c0_67 = arith.constant 0 : index
    %c0_68 = arith.constant 0 : index
    %c0_69 = arith.constant 0 : index
    %66 = vector.load %arg7[%c0_67, %c0_68, %c0_69] : memref<1x4x128xf32, #tpu.memory_space<vmem>>, vector<1x1x128xf32>
    %67 = vector.shape_cast %66 : vector<1x1x128xf32> to vector<1x128xf32>
    %68 = vector.shape_cast %65 : vector<1x128xf32> to vector<1x1x128xf32>
    tpu.vector_store %arg7[%c0_67, %c0_68, %c0_69], %68 {strides = array<i32>} : memref<1x4x128xf32, #tpu.memory_space<vmem>>, vector<1x1x128xf32>,
    %69 = arith.mulf %61, %61 : vector<286x128xf32>
    %cst_70 = arith.constant dense<0.000000e+00> : vector<128xf32>
    %70 = vector.multi_reduction <add>, %69, %cst_70 [0] : vector<286x128xf32> to vector<128xf32>
    %71 = vector.shape_cast %70 : vector<128xf32> to vector<1x128xf32>
    %c0_71 = arith.constant 0 : index
    %c1_72 = arith.constant 1 : index
    %c0_73 = arith.constant 0 : index
    %72 = vector.load %arg7[%c0_71, %c1_72, %c0_73] : memref<1x4x128xf32, #tpu.memory_space<vmem>>, vector<1x1x128xf32>
    %73 = vector.shape_cast %72 : vector<1x1x128xf32> to vector<1x128xf32>
    %74 = vector.shape_cast %71 : vector<1x128xf32> to vector<1x1x128xf32>
    tpu.vector_store %arg7[%c0_71, %c1_72, %c0_73], %74 {strides = array<i32>} : memref<1x4x128xf32, #tpu.memory_space<vmem>>, vector<1x1x128xf32>,
    %cst_74 = arith.constant dense<0.000000e+00> : vector<128xf32>
    %75 = vector.multi_reduction <add>, %63, %cst_74 [0] : vector<286x128xf32> to vector<128xf32>
    %76 = vector.shape_cast %75 : vector<128xf32> to vector<1x128xf32>
    %c0_75 = arith.constant 0 : index
    %c2_76 = arith.constant 2 : index
    %c0_77 = arith.constant 0 : index
    %77 = vector.load %arg7[%c0_75, %c2_76, %c0_77] : memref<1x4x128xf32, #tpu.memory_space<vmem>>, vector<1x1x128xf32>
    %78 = vector.shape_cast %77 : vector<1x1x128xf32> to vector<1x128xf32>
    %79 = vector.shape_cast %76 : vector<1x128xf32> to vector<1x1x128xf32>
    tpu.vector_store %arg7[%c0_75, %c2_76, %c0_77], %79 {strides = array<i32>} : memref<1x4x128xf32, #tpu.memory_space<vmem>>, vector<1x1x128xf32>,
    %80 = arith.mulf %63, %63 : vector<286x128xf32>
    %cst_78 = arith.constant dense<0.000000e+00> : vector<128xf32>
    %81 = vector.multi_reduction <add>, %80, %cst_78 [0] : vector<286x128xf32> to vector<128xf32>
    %82 = vector.shape_cast %81 : vector<128xf32> to vector<1x128xf32>
    %c0_79 = arith.constant 0 : index
    %c3_80 = arith.constant 3 : index
    %c0_81 = arith.constant 0 : index
    %83 = vector.load %arg7[%c0_79, %c3_80, %c0_81] : memref<1x4x128xf32, #tpu.memory_space<vmem>>, vector<1x1x128xf32>
    %84 = vector.shape_cast %83 : vector<1x1x128xf32> to vector<1x128xf32>
    %85 = vector.shape_cast %82 : vector<1x128xf32> to vector<1x1x128xf32>
    tpu.vector_store %arg7[%c0_79, %c3_80, %c0_81], %85 {strides = array<i32>} : memref<1x4x128xf32, #tpu.memory_space<vmem>>, vector<1x1x128xf32>,
    %86 = arith.truncf %61 : vector<286x128xf32> to vector<286x128xbf16>
    %87 = arith.truncf %63 : vector<286x128xf32> to vector<286x128xbf16>
    %c0_82 = arith.constant 0 : index
    %c19_83 = arith.constant 19 : index
    %c0_84 = arith.constant 0 : index
    %88 = vector.load %arg5[%c0_82, %c19_83, %c0_84] : memref<1x326x128xbf16, #tpu.memory_space<vmem>>, vector<1x286x128xbf16>
    %89 = vector.shape_cast %88 : vector<1x286x128xbf16> to vector<286x128xbf16>
    %90 = vector.shape_cast %86 : vector<286x128xbf16> to vector<1x286x128xbf16>
    tpu.vector_store %arg5[%c0_82, %c19_83, %c0_84], %90 {strides = array<i32>} : memref<1x326x128xbf16, #tpu.memory_space<vmem>>, vector<1x286x128xbf16>,
    %c0_85 = arith.constant 0 : index
    %c0_86 = arith.constant 0 : index
    %c0_87 = arith.constant 0 : index
    %91 = vector.load %arg6[%c0_85, %c0_86, %c0_87] : memref<1x288x128xbf16, #tpu.memory_space<vmem>>, vector<1x286x128xbf16>
    %92 = vector.shape_cast %91 : vector<1x286x128xbf16> to vector<286x128xbf16>
    %93 = vector.shape_cast %87 : vector<286x128xbf16> to vector<1x286x128xbf16>
    tpu.vector_store %arg6[%c0_85, %c0_86, %c0_87], %93 {strides = array<i32>} : memref<1x288x128xbf16, #tpu.memory_space<vmem>>, vector<1x286x128xbf16>,
    return
  }
  func.func @transform_0(%arg0: i32) -> (i32, i32, i32, i32) {
    %c0_i32 = arith.constant 0 : i32
    %c0_i32_0 = arith.constant 0 : i32
    %c0_i32_1 = arith.constant 0 : i32
    %c0_i32_2 = arith.constant 0 : i32
    return %arg0, %c0_i32, %c0_i32_0, %c0_i32_1 : i32, i32, i32, i32
  }
  func.func @transform_1(%arg0: i32) -> (i32, i32, i32) {
    %c0_i32 = arith.constant 0 : i32
    %c0_i32_0 = arith.constant 0 : i32
    %c0_i32_1 = arith.constant 0 : i32
    %c0_i32_2 = arith.constant 0 : i32
    return %c0_i32, %c0_i32_0, %c0_i32_1 : i32, i32, i32
  }
  func.func @transform_2(%arg0: i32) -> (i32, i32) {
    %c0_i32 = arith.constant 0 : i32
    %c0_i32_0 = arith.constant 0 : i32
    %c0_i32_1 = arith.constant 0 : i32
    return %c0_i32, %c0_i32_0 : i32, i32
  }
  func.func @transform_3(%arg0: i32) -> (i32, i32) {
    %c0_i32 = arith.constant 0 : i32
    %c0_i32_0 = arith.constant 0 : i32
    %c0_i32_1 = arith.constant 0 : i32
    return %c0_i32, %c0_i32_0 : i32, i32
  }
  func.func @transform_4(%arg0: i32) -> (i32, i32, i32) {
    %c0_i32 = arith.constant 0 : i32
    %c0_i32_0 = arith.constant 0 : i32
    %c0_i32_1 = arith.constant 0 : i32
    return %arg0, %c0_i32, %c0_i32_0 : i32, i32, i32
  }
  func.func @transform_5(%arg0: i32) -> (i32, i32, i32) {
    %c0_i32 = arith.constant 0 : i32
    %c0_i32_0 = arith.constant 0 : i32
    %c0_i32_1 = arith.constant 0 : i32
    return %arg0, %c0_i32, %c0_i32_0 : i32, i32, i32
  }
  func.func @transform_6(%arg0: i32) -> (i32, i32, i32) {
    %c0_i32 = arith.constant 0 : i32
    %c0_i32_0 = arith.constant 0 : i32
    %c0_i32_1 = arith.constant 0 : i32
    return %arg0, %c0_i32, %c0_i32_0 : i32, i32, i32
  }
}

module attributes {stable_mosaic.version = 11 : i64} {
  func.func @_bn1_relu_conv2_kernel(%arg0: i32, %arg1: memref<1x326x128xbf16, #tpu.memory_space<vmem>>, %arg2: memref<9x128x128xbf16, #tpu.memory_space<vmem>>, %arg3: memref<2x128xf32, #tpu.memory_space<vmem>>, %arg4: memref<326x1xf32, #tpu.memory_space<vmem>>, %arg5: memref<1x288x128xbf16, #tpu.memory_space<vmem>>, %arg6: memref<1x2x128xf32, #tpu.memory_space<vmem>>, %arg7: memref<326x128xbf16, #tpu.memory_space<vmem>>) attributes {dimension_semantics = [#tpu.dimension_semantics<parallel>], iteration_bounds = array<i64: 2>, scalar_prefetch = 0 : i64, scratch_operands = 1 : i64, tpu.core_type = #tpu.core_type<tc>, window_params = [{transform_indices = @transform_0, window_bounds = array<i64: 1, 326, 128>}, {pipeline_mode = #tpu.pipeline_mode<synchronous>, transform_indices = @transform_1, window_bounds = array<i64: 9, 128, 128>}, {pipeline_mode = #tpu.pipeline_mode<synchronous>, transform_indices = @transform_2, window_bounds = array<i64: 2, 128>}, {pipeline_mode = #tpu.pipeline_mode<synchronous>, transform_indices = @transform_3, window_bounds = array<i64: 326, 1>}, {transform_indices = @transform_4, window_bounds = array<i64: 1, 288, 128>}, {transform_indices = @transform_5, window_bounds = array<i64: 1, 2, 128>}]} {
    %c0 = arith.constant 0 : index
    %c0_0 = arith.constant 0 : index
    %c0_1 = arith.constant 0 : index
    %0 = vector.load %arg1[%c0, %c0_0, %c0_1] : memref<1x326x128xbf16, #tpu.memory_space<vmem>>, vector<1x326x128xbf16>
    %1 = vector.shape_cast %0 : vector<1x326x128xbf16> to vector<326x128xbf16>
    %2 = arith.extf %1 : vector<326x128xbf16> to vector<326x128xf32>
    %c0_2 = arith.constant 0 : index
    %c0_3 = arith.constant 0 : index
    %3 = vector.load %arg3[%c0_2, %c0_3] : memref<2x128xf32, #tpu.memory_space<vmem>>, vector<1x128xf32>
    %4 = vector.broadcast %3 : vector<1x128xf32> to vector<326x128xf32>
    %5 = arith.mulf %2, %4 : vector<326x128xf32>
    %c1 = arith.constant 1 : index
    %c0_4 = arith.constant 0 : index
    %6 = vector.load %arg3[%c1, %c0_4] : memref<2x128xf32, #tpu.memory_space<vmem>>, vector<1x128xf32>
    %7 = vector.broadcast %6 : vector<1x128xf32> to vector<326x128xf32>
    %8 = arith.addf %5, %7 : vector<326x128xf32>
    %cst = arith.constant 0.000000e+00 : f32
    %9 = vector.broadcast %cst : f32 to vector<326x128xf32>
    %10 = arith.maximumf %8, %9 : vector<326x128xf32>
    %c0_5 = arith.constant 0 : index
    %c0_6 = arith.constant 0 : index
    %11 = vector.load %arg4[%c0_5, %c0_6] : memref<326x1xf32, #tpu.memory_space<vmem>>, vector<326x1xf32>
    %cst_7 = arith.constant 5.000000e-01 : f32
    %12 = vector.broadcast %cst_7 : f32 to vector<326x1xf32>
    %13 = arith.cmpf ogt, %11, %12 : vector<326x1xf32>
    %cst_8 = arith.constant 0.000000e+00 : f32
    %14 = vector.shape_cast %13 : vector<326x1xi1> to vector<326x1xi1>
    %15 = vector.broadcast %14 : vector<326x1xi1> to vector<326x128xi1>
    %16 = vector.broadcast %cst_8 : f32 to vector<326x128xf32>
    %17 = arith.select %15, %10, %16 : vector<326x128xi1>, vector<326x128xf32>
    %18 = arith.truncf %17 : vector<326x128xf32> to vector<326x128xbf16>
    %c0_9 = arith.constant 0 : index
    %c0_10 = arith.constant 0 : index
    %19 = vector.load %arg7[%c0_9, %c0_10] : memref<326x128xbf16, #tpu.memory_space<vmem>>, vector<326x128xbf16>
    tpu.vector_store %arg7[%c0_9, %c0_10], %18 {strides = array<i32>} : memref<326x128xbf16, #tpu.memory_space<vmem>>, vector<326x128xbf16>,
    %cst_11 = arith.constant 0.000000e+00 : f32
    %20 = vector.broadcast %cst_11 : f32 to vector<288x128xf32>
    %c0_12 = arith.constant 0 : index
    %c0_13 = arith.constant 0 : index
    %21 = vector.load %arg7[%c0_12, %c0_13] : memref<326x128xbf16, #tpu.memory_space<vmem>>, vector<288x128xbf16>
    %c0_14 = arith.constant 0 : index
    %c0_15 = arith.constant 0 : index
    %c0_16 = arith.constant 0 : index
    %22 = vector.load %arg2[%c0_14, %c0_15, %c0_16] : memref<9x128x128xbf16, #tpu.memory_space<vmem>>, vector<1x128x128xbf16>
    %23 = vector.shape_cast %22 : vector<1x128x128xbf16> to vector<128x128xbf16>
    %cst_17 = arith.constant dense<0.000000e+00> : vector<288x128xf32>
    %24 = tpu.matmul %21, %23, %cst_17 {dimension_numbers = #tpu.dot_dimension_numbers<[1], [0], [0], [1], [0, 0, 1, 1], [], []>} : vector<288x128xbf16>, vector<128x128xbf16>, vector<288x128xf32> -> vector<288x128xf32>
    %25 = arith.addf %20, %24 : vector<288x128xf32>
    %c1_18 = arith.constant 1 : index
    %c0_19 = arith.constant 0 : index
    %26 = vector.load %arg7[%c1_18, %c0_19] : memref<326x128xbf16, #tpu.memory_space<vmem>>, vector<288x128xbf16>
    %c1_20 = arith.constant 1 : index
    %c0_21 = arith.constant 0 : index
    %c0_22 = arith.constant 0 : index
    %27 = vector.load %arg2[%c1_20, %c0_21, %c0_22] : memref<9x128x128xbf16, #tpu.memory_space<vmem>>, vector<1x128x128xbf16>
    %28 = vector.shape_cast %27 : vector<1x128x128xbf16> to vector<128x128xbf16>
    %cst_23 = arith.constant dense<0.000000e+00> : vector<288x128xf32>
    %29 = tpu.matmul %26, %28, %cst_23 {dimension_numbers = #tpu.dot_dimension_numbers<[1], [0], [0], [1], [0, 0, 1, 1], [], []>} : vector<288x128xbf16>, vector<128x128xbf16>, vector<288x128xf32> -> vector<288x128xf32>
    %30 = arith.addf %25, %29 : vector<288x128xf32>
    %c2 = arith.constant 2 : index
    %c0_24 = arith.constant 0 : index
    %31 = vector.load %arg7[%c2, %c0_24] : memref<326x128xbf16, #tpu.memory_space<vmem>>, vector<288x128xbf16>
    %c2_25 = arith.constant 2 : index
    %c0_26 = arith.constant 0 : index
    %c0_27 = arith.constant 0 : index
    %32 = vector.load %arg2[%c2_25, %c0_26, %c0_27] : memref<9x128x128xbf16, #tpu.memory_space<vmem>>, vector<1x128x128xbf16>
    %33 = vector.shape_cast %32 : vector<1x128x128xbf16> to vector<128x128xbf16>
    %cst_28 = arith.constant dense<0.000000e+00> : vector<288x128xf32>
    %34 = tpu.matmul %31, %33, %cst_28 {dimension_numbers = #tpu.dot_dimension_numbers<[1], [0], [0], [1], [0, 0, 1, 1], [], []>} : vector<288x128xbf16>, vector<128x128xbf16>, vector<288x128xf32> -> vector<288x128xf32>
    %35 = arith.addf %30, %34 : vector<288x128xf32>
    %c18 = arith.constant 18 : index
    %c0_29 = arith.constant 0 : index
    %36 = vector.load %arg7[%c18, %c0_29] : memref<326x128xbf16, #tpu.memory_space<vmem>>, vector<288x128xbf16>
    %c3 = arith.constant 3 : index
    %c0_30 = arith.constant 0 : index
    %c0_31 = arith.constant 0 : index
    %37 = vector.load %arg2[%c3, %c0_30, %c0_31] : memref<9x128x128xbf16, #tpu.memory_space<vmem>>, vector<1x128x128xbf16>
    %38 = vector.shape_cast %37 : vector<1x128x128xbf16> to vector<128x128xbf16>
    %cst_32 = arith.constant dense<0.000000e+00> : vector<288x128xf32>
    %39 = tpu.matmul %36, %38, %cst_32 {dimension_numbers = #tpu.dot_dimension_numbers<[1], [0], [0], [1], [0, 0, 1, 1], [], []>} : vector<288x128xbf16>, vector<128x128xbf16>, vector<288x128xf32> -> vector<288x128xf32>
    %40 = arith.addf %35, %39 : vector<288x128xf32>
    %c19 = arith.constant 19 : index
    %c0_33 = arith.constant 0 : index
    %41 = vector.load %arg7[%c19, %c0_33] : memref<326x128xbf16, #tpu.memory_space<vmem>>, vector<288x128xbf16>
    %c4 = arith.constant 4 : index
    %c0_34 = arith.constant 0 : index
    %c0_35 = arith.constant 0 : index
    %42 = vector.load %arg2[%c4, %c0_34, %c0_35] : memref<9x128x128xbf16, #tpu.memory_space<vmem>>, vector<1x128x128xbf16>
    %43 = vector.shape_cast %42 : vector<1x128x128xbf16> to vector<128x128xbf16>
    %cst_36 = arith.constant dense<0.000000e+00> : vector<288x128xf32>
    %44 = tpu.matmul %41, %43, %cst_36 {dimension_numbers = #tpu.dot_dimension_numbers<[1], [0], [0], [1], [0, 0, 1, 1], [], []>} : vector<288x128xbf16>, vector<128x128xbf16>, vector<288x128xf32> -> vector<288x128xf32>
    %45 = arith.addf %40, %44 : vector<288x128xf32>
    %c20 = arith.constant 20 : index
    %c0_37 = arith.constant 0 : index
    %46 = vector.load %arg7[%c20, %c0_37] : memref<326x128xbf16, #tpu.memory_space<vmem>>, vector<288x128xbf16>
    %c5 = arith.constant 5 : index
    %c0_38 = arith.constant 0 : index
    %c0_39 = arith.constant 0 : index
    %47 = vector.load %arg2[%c5, %c0_38, %c0_39] : memref<9x128x128xbf16, #tpu.memory_space<vmem>>, vector<1x128x128xbf16>
    %48 = vector.shape_cast %47 : vector<1x128x128xbf16> to vector<128x128xbf16>
    %cst_40 = arith.constant dense<0.000000e+00> : vector<288x128xf32>
    %49 = tpu.matmul %46, %48, %cst_40 {dimension_numbers = #tpu.dot_dimension_numbers<[1], [0], [0], [1], [0, 0, 1, 1], [], []>} : vector<288x128xbf16>, vector<128x128xbf16>, vector<288x128xf32> -> vector<288x128xf32>
    %50 = arith.addf %45, %49 : vector<288x128xf32>
    %c36 = arith.constant 36 : index
    %c0_41 = arith.constant 0 : index
    %51 = vector.load %arg7[%c36, %c0_41] : memref<326x128xbf16, #tpu.memory_space<vmem>>, vector<288x128xbf16>
    %c6 = arith.constant 6 : index
    %c0_42 = arith.constant 0 : index
    %c0_43 = arith.constant 0 : index
    %52 = vector.load %arg2[%c6, %c0_42, %c0_43] : memref<9x128x128xbf16, #tpu.memory_space<vmem>>, vector<1x128x128xbf16>
    %53 = vector.shape_cast %52 : vector<1x128x128xbf16> to vector<128x128xbf16>
    %cst_44 = arith.constant dense<0.000000e+00> : vector<288x128xf32>
    %54 = tpu.matmul %51, %53, %cst_44 {dimension_numbers = #tpu.dot_dimension_numbers<[1], [0], [0], [1], [0, 0, 1, 1], [], []>} : vector<288x128xbf16>, vector<128x128xbf16>, vector<288x128xf32> -> vector<288x128xf32>
    %55 = arith.addf %50, %54 : vector<288x128xf32>
    %c37 = arith.constant 37 : index
    %c0_45 = arith.constant 0 : index
    %56 = vector.load %arg7[%c37, %c0_45] : memref<326x128xbf16, #tpu.memory_space<vmem>>, vector<288x128xbf16>
    %c7 = arith.constant 7 : index
    %c0_46 = arith.constant 0 : index
    %c0_47 = arith.constant 0 : index
    %57 = vector.load %arg2[%c7, %c0_46, %c0_47] : memref<9x128x128xbf16, #tpu.memory_space<vmem>>, vector<1x128x128xbf16>
    %58 = vector.shape_cast %57 : vector<1x128x128xbf16> to vector<128x128xbf16>
    %cst_48 = arith.constant dense<0.000000e+00> : vector<288x128xf32>
    %59 = tpu.matmul %56, %58, %cst_48 {dimension_numbers = #tpu.dot_dimension_numbers<[1], [0], [0], [1], [0, 0, 1, 1], [], []>} : vector<288x128xbf16>, vector<128x128xbf16>, vector<288x128xf32> -> vector<288x128xf32>
    %60 = arith.addf %55, %59 : vector<288x128xf32>
    %c38 = arith.constant 38 : index
    %c0_49 = arith.constant 0 : index
    %61 = vector.load %arg7[%c38, %c0_49] : memref<326x128xbf16, #tpu.memory_space<vmem>>, vector<288x128xbf16>
    %c8 = arith.constant 8 : index
    %c0_50 = arith.constant 0 : index
    %c0_51 = arith.constant 0 : index
    %62 = vector.load %arg2[%c8, %c0_50, %c0_51] : memref<9x128x128xbf16, #tpu.memory_space<vmem>>, vector<1x128x128xbf16>
    %63 = vector.shape_cast %62 : vector<1x128x128xbf16> to vector<128x128xbf16>
    %cst_52 = arith.constant dense<0.000000e+00> : vector<288x128xf32>
    %64 = tpu.matmul %61, %63, %cst_52 {dimension_numbers = #tpu.dot_dimension_numbers<[1], [0], [0], [1], [0, 0, 1, 1], [], []>} : vector<288x128xbf16>, vector<128x128xbf16>, vector<288x128xf32> -> vector<288x128xf32>
    %65 = arith.addf %60, %64 : vector<288x128xf32>
    %c19_53 = arith.constant 19 : index
    %c0_54 = arith.constant 0 : index
    %66 = vector.load %arg4[%c19_53, %c0_54] : memref<326x1xf32, #tpu.memory_space<vmem>>, vector<288x1xf32>
    %67 = vector.broadcast %66 : vector<288x1xf32> to vector<288x128xf32>
    %68 = arith.mulf %65, %67 : vector<288x128xf32>
    %cst_55 = arith.constant dense<0.000000e+00> : vector<128xf32>
    %69 = vector.multi_reduction <add>, %68, %cst_55 [0] : vector<288x128xf32> to vector<128xf32>
    %70 = vector.shape_cast %69 : vector<128xf32> to vector<1x128xf32>
    %c0_56 = arith.constant 0 : index
    %c0_57 = arith.constant 0 : index
    %c0_58 = arith.constant 0 : index
    %71 = vector.load %arg6[%c0_56, %c0_57, %c0_58] : memref<1x2x128xf32, #tpu.memory_space<vmem>>, vector<1x1x128xf32>
    %72 = vector.shape_cast %71 : vector<1x1x128xf32> to vector<1x128xf32>
    %73 = vector.shape_cast %70 : vector<1x128xf32> to vector<1x1x128xf32>
    tpu.vector_store %arg6[%c0_56, %c0_57, %c0_58], %73 {strides = array<i32>} : memref<1x2x128xf32, #tpu.memory_space<vmem>>, vector<1x1x128xf32>,
    %74 = arith.mulf %68, %68 : vector<288x128xf32>
    %cst_59 = arith.constant dense<0.000000e+00> : vector<128xf32>
    %75 = vector.multi_reduction <add>, %74, %cst_59 [0] : vector<288x128xf32> to vector<128xf32>
    %76 = vector.shape_cast %75 : vector<128xf32> to vector<1x128xf32>
    %c0_60 = arith.constant 0 : index
    %c1_61 = arith.constant 1 : index
    %c0_62 = arith.constant 0 : index
    %77 = vector.load %arg6[%c0_60, %c1_61, %c0_62] : memref<1x2x128xf32, #tpu.memory_space<vmem>>, vector<1x1x128xf32>
    %78 = vector.shape_cast %77 : vector<1x1x128xf32> to vector<1x128xf32>
    %79 = vector.shape_cast %76 : vector<1x128xf32> to vector<1x1x128xf32>
    tpu.vector_store %arg6[%c0_60, %c1_61, %c0_62], %79 {strides = array<i32>} : memref<1x2x128xf32, #tpu.memory_space<vmem>>, vector<1x1x128xf32>,
    %80 = arith.truncf %68 : vector<288x128xf32> to vector<288x128xbf16>
    %c0_63 = arith.constant 0 : index
    %c0_64 = arith.constant 0 : index
    %c0_65 = arith.constant 0 : index
    %81 = vector.load %arg5[%c0_63, %c0_64, %c0_65] : memref<1x288x128xbf16, #tpu.memory_space<vmem>>, vector<1x288x128xbf16>
    %82 = vector.shape_cast %81 : vector<1x288x128xbf16> to vector<288x128xbf16>
    %83 = vector.shape_cast %80 : vector<288x128xbf16> to vector<1x288x128xbf16>
    tpu.vector_store %arg5[%c0_63, %c0_64, %c0_65], %83 {strides = array<i32>} : memref<1x288x128xbf16, #tpu.memory_space<vmem>>, vector<1x288x128xbf16>,
    return
  }
  func.func @transform_0(%arg0: i32) -> (i32, i32, i32) {
    %c0_i32 = arith.constant 0 : i32
    %c0_i32_0 = arith.constant 0 : i32
    %c0_i32_1 = arith.constant 0 : i32
    return %arg0, %c0_i32, %c0_i32_0 : i32, i32, i32
  }
  func.func @transform_1(%arg0: i32) -> (i32, i32, i32) {
    %c0_i32 = arith.constant 0 : i32
    %c0_i32_0 = arith.constant 0 : i32
    %c0_i32_1 = arith.constant 0 : i32
    %c0_i32_2 = arith.constant 0 : i32
    return %c0_i32, %c0_i32_0, %c0_i32_1 : i32, i32, i32
  }
  func.func @transform_2(%arg0: i32) -> (i32, i32) {
    %c0_i32 = arith.constant 0 : i32
    %c0_i32_0 = arith.constant 0 : i32
    %c0_i32_1 = arith.constant 0 : i32
    return %c0_i32, %c0_i32_0 : i32, i32
  }
  func.func @transform_3(%arg0: i32) -> (i32, i32) {
    %c0_i32 = arith.constant 0 : i32
    %c0_i32_0 = arith.constant 0 : i32
    %c0_i32_1 = arith.constant 0 : i32
    return %c0_i32, %c0_i32_0 : i32, i32
  }
  func.func @transform_4(%arg0: i32) -> (i32, i32, i32) {
    %c0_i32 = arith.constant 0 : i32
    %c0_i32_0 = arith.constant 0 : i32
    %c0_i32_1 = arith.constant 0 : i32
    return %arg0, %c0_i32, %c0_i32_0 : i32, i32, i32
  }
  func.func @transform_5(%arg0: i32) -> (i32, i32, i32) {
    %c0_i32 = arith.constant 0 : i32
    %c0_i32_0 = arith.constant 0 : i32
    %c0_i32_1 = arith.constant 0 : i32
    return %arg0, %c0_i32, %c0_i32_0 : i32, i32, i32
  }
}

module attributes {stable_mosaic.version = 11 : i64} {
  func.func @_bn2_scbn_add_relu_kernel(%arg0: i32, %arg1: memref<1x288x128xbf16, #tpu.memory_space<vmem>>, %arg2: memref<1x288x128xbf16, #tpu.memory_space<vmem>>, %arg3: memref<4x128xf32, #tpu.memory_space<vmem>>, %arg4: memref<1x288x128xbf16, #tpu.memory_space<vmem>>) attributes {dimension_semantics = [#tpu.dimension_semantics<parallel>], iteration_bounds = array<i64: 2>, scalar_prefetch = 0 : i64, scratch_operands = 0 : i64, tpu.core_type = #tpu.core_type<tc>, window_params = [{transform_indices = @transform_0, window_bounds = array<i64: 1, 288, 128>}, {transform_indices = @transform_1, window_bounds = array<i64: 1, 288, 128>}, {pipeline_mode = #tpu.pipeline_mode<synchronous>, transform_indices = @transform_2, window_bounds = array<i64: 4, 128>}, {transform_indices = @transform_3, window_bounds = array<i64: 1, 288, 128>}]} {
    %c0 = arith.constant 0 : index
    %c0_0 = arith.constant 0 : index
    %c0_1 = arith.constant 0 : index
    %0 = vector.load %arg1[%c0, %c0_0, %c0_1] : memref<1x288x128xbf16, #tpu.memory_space<vmem>>, vector<1x288x128xbf16>
    %1 = vector.shape_cast %0 : vector<1x288x128xbf16> to vector<288x128xbf16>
    %2 = arith.extf %1 : vector<288x128xbf16> to vector<288x128xf32>
    %c0_2 = arith.constant 0 : index
    %c0_3 = arith.constant 0 : index
    %3 = vector.load %arg3[%c0_2, %c0_3] : memref<4x128xf32, #tpu.memory_space<vmem>>, vector<1x128xf32>
    %4 = vector.broadcast %3 : vector<1x128xf32> to vector<288x128xf32>
    %5 = arith.mulf %2, %4 : vector<288x128xf32>
    %c1 = arith.constant 1 : index
    %c0_4 = arith.constant 0 : index
    %6 = vector.load %arg3[%c1, %c0_4] : memref<4x128xf32, #tpu.memory_space<vmem>>, vector<1x128xf32>
    %7 = vector.broadcast %6 : vector<1x128xf32> to vector<288x128xf32>
    %8 = arith.addf %5, %7 : vector<288x128xf32>
    %c0_5 = arith.constant 0 : index
    %c0_6 = arith.constant 0 : index
    %c0_7 = arith.constant 0 : index
    %9 = vector.load %arg2[%c0_5, %c0_6, %c0_7] : memref<1x288x128xbf16, #tpu.memory_space<vmem>>, vector<1x288x128xbf16>
    %10 = vector.shape_cast %9 : vector<1x288x128xbf16> to vector<288x128xbf16>
    %11 = arith.extf %10 : vector<288x128xbf16> to vector<288x128xf32>
    %c2 = arith.constant 2 : index
    %c0_8 = arith.constant 0 : index
    %12 = vector.load %arg3[%c2, %c0_8] : memref<4x128xf32, #tpu.memory_space<vmem>>, vector<1x128xf32>
    %13 = vector.broadcast %12 : vector<1x128xf32> to vector<288x128xf32>
    %14 = arith.mulf %11, %13 : vector<288x128xf32>
    %15 = arith.addf %8, %14 : vector<288x128xf32>
    %c3 = arith.constant 3 : index
    %c0_9 = arith.constant 0 : index
    %16 = vector.load %arg3[%c3, %c0_9] : memref<4x128xf32, #tpu.memory_space<vmem>>, vector<1x128xf32>
    %17 = vector.broadcast %16 : vector<1x128xf32> to vector<288x128xf32>
    %18 = arith.addf %15, %17 : vector<288x128xf32>
    %cst = arith.constant 0.000000e+00 : f32
    %19 = vector.broadcast %cst : f32 to vector<288x128xf32>
    %20 = arith.maximumf %18, %19 : vector<288x128xf32>
    %21 = arith.truncf %20 : vector<288x128xf32> to vector<288x128xbf16>
    %c0_10 = arith.constant 0 : index
    %c0_11 = arith.constant 0 : index
    %c0_12 = arith.constant 0 : index
    %22 = vector.load %arg4[%c0_10, %c0_11, %c0_12] : memref<1x288x128xbf16, #tpu.memory_space<vmem>>, vector<1x288x128xbf16>
    %23 = vector.shape_cast %22 : vector<1x288x128xbf16> to vector<288x128xbf16>
    %24 = vector.shape_cast %21 : vector<288x128xbf16> to vector<1x288x128xbf16>
    tpu.vector_store %arg4[%c0_10, %c0_11, %c0_12], %24 {strides = array<i32>} : memref<1x288x128xbf16, #tpu.memory_space<vmem>>, vector<1x288x128xbf16>,
    return
  }
  func.func @transform_0(%arg0: i32) -> (i32, i32, i32) {
    %c0_i32 = arith.constant 0 : i32
    %c0_i32_0 = arith.constant 0 : i32
    %c0_i32_1 = arith.constant 0 : i32
    return %arg0, %c0_i32, %c0_i32_0 : i32, i32, i32
  }
  func.func @transform_1(%arg0: i32) -> (i32, i32, i32) {
    %c0_i32 = arith.constant 0 : i32
    %c0_i32_0 = arith.constant 0 : i32
    %c0_i32_1 = arith.constant 0 : i32
    return %arg0, %c0_i32, %c0_i32_0 : i32, i32, i32
  }
  func.func @transform_2(%arg0: i32) -> (i32, i32) {
    %c0_i32 = arith.constant 0 : i32
    %c0_i32_0 = arith.constant 0 : i32
    %c0_i32_1 = arith.constant 0 : i32
    return %c0_i32, %c0_i32_0 : i32, i32
  }
  func.func @transform_3(%arg0: i32) -> (i32, i32, i32) {
    %c0_i32 = arith.constant 0 : i32
    %c0_i32_0 = arith.constant 0 : i32
    %c0_i32_1 = arith.constant 0 : i32
    return %arg0, %c0_i32, %c0_i32_0 : i32, i32, i32
  }
}

</mosaic_0001>

<bundles_post_ra>
// kernel: residual_block_forward.5
= control target key start
LH: loop header
LB: loop body
LE: loop exit
PB: predicated region body
PF: predicated region fallthrough
CT: control target
= control target key end

     0   :  { %s1034_s12 = smov 0   ;;  %s1283_s0 = inlined_call_operand.vmem [shape: bf16[2,288,128], index: 0, kind: input, shape index: {}]   ;;  %s1284_s1 = inlined_call_operand.vmem [shape: bf16[2,288,128], index: 1, kind: input, shape index: {}]   ;;  %s1285_s2 = inlined_call_operand.vmem [shape: f32[4,128], index: 2, kind: input, shape index: {}]   ;;  %s1286_s3 = inlined_call_operand.vmem [shape: bf16[2,288,128], index: 3, kind: output, shape index: {}]  }
   0x1 LB: > { %s698_s13 = sadd.s32 4294967295, %s1012_s12   ;;  %p702_p0 = scmp.ge.s32.totalorder %s1012_s12, 1  ;;  %s1012_s12 = sphi %s1034_s12, %s13_s12  }
   0x2   : > { %p147_p1 = scmp.lt.s32.totalorder %s1012_s12, 3 }
   0x4   : > { %p148_p2 = pnand %p702_p0, %p147_p1 }
   0x5   : > { %p176_p3 = scmp.lt.s32.totalorder (!%p148_p2), %s698_s13, 1 }
   0x6   : > { %151 = sbr.rel (%p148_p2) target bundleno = 101 (0x65), region = 32 }
   0xb   : > { %s1288_s13 = smov (!%p176_p3, %s698_s13), 1  ;;  %v1059_v0 = vld [vmem:[%s1285_s2] ss:$0 sm:$0xff]  ;;  %v1064_v1 = vld [vmem:[%s1285_s2 + $0x2] ss:$0 sm:$0xff] }
   0xc   : > { %s1042_s14 = smul.u32 144, %s1288_s13  ;;  %v1072_v7 = vld [vmem:[%s1285_s2 + $0x1] ss:$0 sm:$0xff]  ;;  %v1090_v27 = vld [vmem:[%s1285_s2 + $0x3] ss:$0 sm:$0xff] }
   0xe   : > { %s1048_s17 = scalar_lea.vmem %s1283_s0, %s1042_s14  ;;  %s1054_s20 = scalar_lea.vmem %s1284_s1, %s1042_s14 }
   0xf   : > { %v709_v2 = vld [vmem:[%s1048_s17] sm:$0xff]   ;;  %v942_v4 = vld [vmem:[%s1048_s17 + $0x8] sm:$0xff]   ;;  %v943_v15 = vld [vmem:[%s1048_s17 + $0x10] sm:$0xff]   ;;  %s1110_s4 = scalar_lea.vmem %s1286_s3, %s1042_s14 }
  0x10   : > { %v781_v3 = vld [vmem:[%s1054_s20] sm:$0xff]   ;;  %v710_v5 = vunpack.c.l.bf16 %v709_v2  ;;  %v711_v6 = vunpack.c.h.bf16 %v709_v2  ;;  %v959_v10 = vld [vmem:[%s1054_s20 + $0x8] sm:$0xff]   ;;  %v714_v11 = vunpack.c.l.bf16 %v942_v4  ;;  %v715_v12 = vunpack.c.h.bf16 %v942_v4  ;;  %v960_v20 = vld [vmem:[%s1054_s20 + $0x10] sm:$0xff]  }
  0x11   : > { %v782_v8 = vunpack.c.l.bf16 %v781_v3  ;;  %v783_v9 = vunpack.c.h.bf16 %v781_v3  ;;  %v786_v13 = vunpack.c.l.bf16 %v959_v10  ;;  %v787_v14 = vunpack.c.h.bf16 %v959_v10  ;;  %v944_v38 = vld [vmem:[%s1048_s17 + $0x18] sm:$0xff]   ;;  %v945_v60 = vld [vmem:[%s1048_s17 + $0x20] sm:$0xff]  }
  0x12   : > { %v265_v16 = vmul.f32 %v1059_v0, %v710_v5  ;;  %v266_v17 = vmul.f32 %v1059_v0, %v711_v6  ;;  %v267_v21 = vmul.f32 %v1059_v0, %v714_v11  ;;  %v268_v22 = vmul.f32 %v1059_v0, %v715_v12  ;;  %v961_v51 = vld [vmem:[%s1054_s20 + $0x18] sm:$0xff]   ;;  %v962_v3 = vld [vmem:[%s1054_s20 + $0x20] sm:$0xff]  }
  0x13   : > { %v413_v18 = vmul.f32 %v1064_v1, %v782_v8  ;;  %v414_v19 = vmul.f32 %v1064_v1, %v783_v9  ;;  %v415_v23 = vmul.f32 %v1064_v1, %v786_v13  ;;  %v416_v24 = vmul.f32 %v1064_v1, %v787_v14  ;;  %v946_v9 = vld [vmem:[%s1048_s17 + $0x28] sm:$0xff]  }
  0x14   : > { %v303_v25 = vadd.f32 %v1072_v7, %v265_v16  ;;  %v304_v26 = vadd.f32 %v1072_v7, %v266_v17  ;;  %v718_v28 = vunpack.c.l.bf16 %v943_v15  ;;  %v719_v29 = vunpack.c.h.bf16 %v943_v15 }
  0x15   : > { %v305_v30 = vadd.f32 %v1072_v7, %v267_v21  ;;  %v306_v31 = vadd.f32 %v1072_v7, %v268_v22  ;;  %v790_v32 = vunpack.c.l.bf16 %v960_v20  ;;  %v791_v33 = vunpack.c.h.bf16 %v960_v20  ;;  %v963_v22 = vld [vmem:[%s1054_s20 + $0x28] sm:$0xff]  }
  0x16   : > { %v449_v34 = vadd.f32 %v413_v18, %v303_v25  ;;  %v450_v35 = vadd.f32 %v414_v19, %v304_v26  ;;  %v269_v36 = vmul.f32 %v1059_v0, %v718_v28  ;;  %v270_v37 = vmul.f32 %v1059_v0, %v719_v29 }
  0x17   : > { %v451_v39 = vadd.f32 %v415_v23, %v305_v30  ;;  %v452_v40 = vadd.f32 %v416_v24, %v306_v31  ;;  %v417_v41 = vmul.f32 %v1064_v1, %v790_v32  ;;  %v418_v42 = vmul.f32 %v1064_v1, %v791_v33 }
  0x18   : > { %v487_v43 = vadd.f32 %v1090_v27, %v449_v34  ;;  %v488_v44 = vadd.f32 %v1090_v27, %v450_v35  ;;  %v307_v45 = vadd.f32 %v1072_v7, %v269_v36  ;;  %v308_v46 = vadd.f32 %v1072_v7, %v270_v37  ;;  %v947_v36 = vld [vmem:[%s1048_s17 + $0x30] sm:$0xff]  }
  0x19   : > { %v489_v47 = vadd.f32 %v1090_v27, %v451_v39  ;;  %v490_v48 = vadd.f32 %v1090_v27, %v452_v40  ;;  %v722_v49 = vunpack.c.l.bf16 %v944_v38  ;;  %v723_v50 = vunpack.c.h.bf16 %v944_v38 }
  0x1a   : > { %v523_v52 = vmax.f32 %v487_v43, 0.0  ;;  %v524_v53 = vmax.f32 %v488_v44, 0.0  ;;  %v453_v54 = vadd.f32 %v417_v41, %v307_v45  ;;  %v454_v55 = vadd.f32 %v418_v42, %v308_v46  ;;  %v964_v41 = vld [vmem:[%s1054_s20 + $0x30] sm:$0xff]  }
  0x1b   : > { %v525_v56 = vmax.f32 %v489_v47, 0.0  ;;  %v526_v57 = vmax.f32 %v490_v48, 0.0  ;;  %v271_v58 = vmul.f32 %v1059_v0, %v722_v49  ;;  %v272_v59 = vmul.f32 %v1059_v0, %v723_v50 }
  0x1c   : > { %v855_v61 = vpack.c.bf16 %v524_v53, %v523_v52  ;;  %v491_v62 = vadd.f32 %v1090_v27, %v453_v54  ;;  %v492_v63 = vadd.f32 %v1090_v27, %v454_v55  ;;  %v794_v2 = vunpack.c.l.bf16 %v961_v51  ;;  %v948_v54 = vld [vmem:[%s1048_s17 + $0x38] sm:$0xff]  }
  0x1d   : > { %v860_v4 = vpack.c.bf16 %v526_v57, %v525_v56  ;;  %v309_v5 = vadd.f32 %v1072_v7, %v271_v58  ;;  %v310_v6 = vadd.f32 %v1072_v7, %v272_v59  ;;  %v795_v8 = vunpack.c.h.bf16 %v961_v51 }
  0x1e   : > { %856 = vst [vmem:[%s1110_s4] sm:$0xff] %v855_v61   ;;  %v527_v10 = vmax.f32 %v491_v62, 0.0  ;;  %v528_v11 = vmax.f32 %v492_v63, 0.0  ;;  %v419_v12 = vmul.f32 %v1064_v1, %v794_v2  ;;  %v726_v13 = vunpack.c.l.bf16 %v945_v60  ;;  %v965_v63 = vld [vmem:[%s1054_s20 + $0x38] sm:$0xff]  }
  0x1f   : > { %976 = vst [vmem:[%s1110_s4 + $0x8] sm:$0xff] %v860_v4   ;;  %v420_v14 = vmul.f32 %v1064_v1, %v795_v8  ;;  %v727_v15 = vunpack.c.h.bf16 %v945_v60  ;;  %v798_v16 = vunpack.c.l.bf16 %v962_v3  ;;  %v799_v17 = vunpack.c.h.bf16 %v962_v3 }
  0x20   : > { %v865_v18 = vpack.c.bf16 %v528_v11, %v527_v10  ;;  %v455_v19 = vadd.f32 %v419_v12, %v309_v5  ;;  %v273_v20 = vmul.f32 %v1059_v0, %v726_v13  ;;  %v730_v21 = vunpack.c.l.bf16 %v946_v9 }
  0x21   : > { %v456_v23 = vadd.f32 %v420_v14, %v310_v6  ;;  %v274_v24 = vmul.f32 %v1059_v0, %v727_v15  ;;  %v421_v25 = vmul.f32 %v1064_v1, %v798_v16  ;;  %v422_v26 = vmul.f32 %v1064_v1, %v799_v17  ;;  %v949_v6 = vld [vmem:[%s1048_s17 + $0x40] sm:$0xff]  }
  0x22   : > { %977 = vst [vmem:[%s1110_s4 + $0x10] sm:$0xff] %v865_v18   ;;  %v493_v28 = vadd.f32 %v1090_v27, %v455_v19  ;;  %v311_v29 = vadd.f32 %v1072_v7, %v273_v20  ;;  %v731_v30 = vunpack.c.h.bf16 %v946_v9  ;;  %v275_v31 = vmul.f32 %v1059_v0, %v730_v21  ;;  %v966_v20 = vld [vmem:[%s1054_s20 + $0x40] sm:$0xff]  }
  0x23   : > { %v494_v32 = vadd.f32 %v1090_v27, %v456_v23  ;;  %v312_v33 = vadd.f32 %v1072_v7, %v274_v24  ;;  %v802_v34 = vunpack.c.l.bf16 %v963_v22  ;;  %v803_v35 = vunpack.c.h.bf16 %v963_v22 }
  0x24   : > { %v529_v37 = vmax.f32 %v493_v28, 0.0  ;;  %v457_v38 = vadd.f32 %v421_v25, %v311_v29  ;;  %v276_v39 = vmul.f32 %v1059_v0, %v731_v30  ;;  %v313_v40 = vadd.f32 %v1072_v7, %v275_v31  ;;  %v950_v30 = vld [vmem:[%s1048_s17 + $0x48] sm:$0xff]  }
  0x25   : > { %v530_v42 = vmax.f32 %v494_v32, 0.0  ;;  %v458_v43 = vadd.f32 %v422_v26, %v312_v33  ;;  %v423_v44 = vmul.f32 %v1064_v1, %v802_v34  ;;  %v424_v45 = vmul.f32 %v1064_v1, %v803_v35 }
  0x26   : > { %v495_v46 = vadd.f32 %v1090_v27, %v457_v38  ;;  %v314_v47 = vadd.f32 %v1072_v7, %v276_v39  ;;  %v734_v48 = vunpack.c.l.bf16 %v947_v36  ;;  %v735_v49 = vunpack.c.h.bf16 %v947_v36 }
  0x27   : > { %v870_v50 = vpack.c.bf16 %v530_v42, %v529_v37  ;;  %v496_v51 = vadd.f32 %v1090_v27, %v458_v43  ;;  %v459_v52 = vadd.f32 %v423_v44, %v313_v40  ;;  %v806_v53 = vunpack.c.l.bf16 %v964_v41  ;;  %v967_v43 = vld [vmem:[%s1054_s20 + $0x48] sm:$0xff]  }
  0x28   : > { %v531_v55 = vmax.f32 %v495_v46, 0.0  ;;  %v460_v56 = vadd.f32 %v424_v45, %v314_v47  ;;  %v277_v57 = vmul.f32 %v1059_v0, %v734_v48  ;;  %v278_v58 = vmul.f32 %v1059_v0, %v735_v49  ;;  %v951_v48 = vld [vmem:[%s1048_s17 + $0x50] sm:$0xff]  }
  0x29   : > { %978 = vst [vmem:[%s1110_s4 + $0x18] sm:$0xff] %v870_v50   ;;  %v532_v59 = vmax.f32 %v496_v51, 0.0  ;;  %v497_v60 = vadd.f32 %v1090_v27, %v459_v52  ;;  %v807_v61 = vunpack.c.h.bf16 %v964_v41  ;;  %v425_v62 = vmul.f32 %v1064_v1, %v806_v53 }
  0x2a   : > { %v498_v2 = vadd.f32 %v1090_v27, %v460_v56  ;;  %v315_v3 = vadd.f32 %v1072_v7, %v277_v57  ;;  %v316_v4 = vadd.f32 %v1072_v7, %v278_v58  ;;  %v738_v5 = vunpack.c.l.bf16 %v948_v54 }
  0x2b   : > { %v875_v8 = vpack.c.bf16 %v532_v59, %v531_v55  ;;  %v533_v9 = vmax.f32 %v497_v60, 0.0  ;;  %v426_v10 = vmul.f32 %v1064_v1, %v807_v61  ;;  %v739_v11 = vunpack.c.h.bf16 %v948_v54  ;;  %v968_v61 = vld [vmem:[%s1054_s20 + $0x50] sm:$0xff]  }
  0x2c   : > { %v534_v12 = vmax.f32 %v498_v2, 0.0  ;;  %v461_v13 = vadd.f32 %v425_v62, %v315_v3  ;;  %v279_v14 = vmul.f32 %v1059_v0, %v738_v5  ;;  %v810_v15 = vunpack.c.l.bf16 %v965_v63 }
  0x2d   : > { %979 = vst [vmem:[%s1110_s4 + $0x20] sm:$0xff] %v875_v8   ;;  %v462_v16 = vadd.f32 %v426_v10, %v316_v4  ;;  %v280_v17 = vmul.f32 %v1059_v0, %v739_v11  ;;  %v811_v18 = vunpack.c.h.bf16 %v965_v63  ;;  %v742_v19 = vunpack.c.l.bf16 %v949_v6  ;;  %v952_v4 = vld [vmem:[%s1048_s17 + $0x58] sm:$0xff]  }
  0x2e   : > { %v880_v21 = vpack.c.bf16 %v534_v12, %v533_v9  ;;  %v499_v22 = vadd.f32 %v1090_v27, %v461_v13  ;;  %v317_v23 = vadd.f32 %v1072_v7, %v279_v14  ;;  %v427_v24 = vmul.f32 %v1064_v1, %v810_v15 }
  0x2f   : > { %v500_v25 = vadd.f32 %v1090_v27, %v462_v16  ;;  %v318_v26 = vadd.f32 %v1072_v7, %v280_v17  ;;  %v428_v28 = vmul.f32 %v1064_v1, %v811_v18  ;;  %v743_v29 = vunpack.c.h.bf16 %v949_v6  ;;  %v969_v18 = vld [vmem:[%s1054_s20 + $0x58] sm:$0xff]  }
  0x30   : > { %980 = vst [vmem:[%s1110_s4 + $0x28] sm:$0xff] %v880_v21   ;;  %v535_v31 = vmax.f32 %v499_v22, 0.0  ;;  %v463_v32 = vadd.f32 %v427_v24, %v317_v23  ;;  %v281_v33 = vmul.f32 %v1059_v0, %v742_v19  ;;  %v814_v34 = vunpack.c.l.bf16 %v966_v20 }
  0x31   : > { %v536_v35 = vmax.f32 %v500_v25, 0.0  ;;  %v464_v36 = vadd.f32 %v428_v28, %v318_v26  ;;  %v282_v37 = vmul.f32 %v1059_v0, %v743_v29  ;;  %v815_v38 = vunpack.c.h.bf16 %v966_v20  ;;  %v953_v28 = vld [vmem:[%s1048_s17 + $0x60] sm:$0xff]  }
  0x32   : > { %v501_v39 = vadd.f32 %v1090_v27, %v463_v32  ;;  %v319_v40 = vadd.f32 %v1072_v7, %v281_v33  ;;  %v429_v41 = vmul.f32 %v1064_v1, %v814_v34  ;;  %v746_v42 = vunpack.c.l.bf16 %v950_v30 }
  0x33   : > { %v885_v44 = vpack.c.bf16 %v536_v35, %v535_v31  ;;  %v502_v45 = vadd.f32 %v1090_v27, %v464_v36  ;;  %v320_v46 = vadd.f32 %v1072_v7, %v282_v37  ;;  %v430_v47 = vmul.f32 %v1064_v1, %v815_v38  ;;  %v970_v37 = vld [vmem:[%s1054_s20 + $0x60] sm:$0xff]  }
  0x34   : > { %v537_v49 = vmax.f32 %v501_v39, 0.0  ;;  %v465_v50 = vadd.f32 %v429_v41, %v319_v40  ;;  %v747_v51 = vunpack.c.h.bf16 %v950_v30  ;;  %v283_v52 = vmul.f32 %v1059_v0, %v746_v42 }
  0x35   : > { %981 = vst [vmem:[%s1110_s4 + $0x30] sm:$0xff] %v885_v44   ;;  %v538_v53 = vmax.f32 %v502_v45, 0.0  ;;  %v466_v54 = vadd.f32 %v430_v47, %v320_v46  ;;  %v818_v55 = vunpack.c.l.bf16 %v967_v43  ;;  %v819_v56 = vunpack.c.h.bf16 %v967_v43  ;;  %v954_v46 = vld [vmem:[%s1048_s17 + $0x68] sm:$0xff]  }
  0x36   : > { %v503_v57 = vadd.f32 %v1090_v27, %v465_v50  ;;  %v284_v58 = vmul.f32 %v1059_v0, %v747_v51  ;;  %v321_v59 = vadd.f32 %v1072_v7, %v283_v52  ;;  %v750_v60 = vunpack.c.l.bf16 %v951_v48 }
  0x37   : > { %v890_v62 = vpack.c.bf16 %v538_v53, %v537_v49  ;;  %v504_v63 = vadd.f32 %v1090_v27, %v466_v54  ;;  %v431_v2 = vmul.f32 %v1064_v1, %v818_v55  ;;  %v432_v3 = vmul.f32 %v1064_v1, %v819_v56 }
  0x38   : > { %v539_v5 = vmax.f32 %v503_v57, 0.0  ;;  %v322_v6 = vadd.f32 %v1072_v7, %v284_v58  ;;  %v751_v8 = vunpack.c.h.bf16 %v951_v48  ;;  %v285_v9 = vmul.f32 %v1059_v0, %v750_v60 }
  0x39   : > { %982 = vst [vmem:[%s1110_s4 + $0x38] sm:$0xff] %v890_v62   ;;  %v540_v10 = vmax.f32 %v504_v63, 0.0  ;;  %v467_v11 = vadd.f32 %v431_v2, %v321_v59  ;;  %v822_v12 = vunpack.c.l.bf16 %v968_v61  ;;  %v823_v13 = vunpack.c.h.bf16 %v968_v61  ;;  %v971_v59 = vld [vmem:[%s1054_s20 + $0x68] sm:$0xff]   ;;  %v955_v2 = vld [vmem:[%s1048_s17 + $0x70] sm:$0xff]  }
  0x3a   : > { %v468_v14 = vadd.f32 %v432_v3, %v322_v6  ;;  %v286_v15 = vmul.f32 %v1059_v0, %v751_v8  ;;  %v323_v16 = vadd.f32 %v1072_v7, %v285_v9  ;;  %v754_v17 = vunpack.c.l.bf16 %v952_v4 }
  0x3b   : > { %v895_v19 = vpack.c.bf16 %v540_v10, %v539_v5  ;;  %v505_v20 = vadd.f32 %v1090_v27, %v467_v11  ;;  %v433_v21 = vmul.f32 %v1064_v1, %v822_v12  ;;  %v434_v22 = vmul.f32 %v1064_v1, %v823_v13 }
  0x3c   : > { %v506_v23 = vadd.f32 %v1090_v27, %v468_v14  ;;  %v324_v24 = vadd.f32 %v1072_v7, %v286_v15  ;;  %v755_v25 = vunpack.c.h.bf16 %v952_v4  ;;  %v287_v26 = vmul.f32 %v1059_v0, %v754_v17 }
  0x3d   : > { %983 = vst [vmem:[%s1110_s4 + $0x40] sm:$0xff] %v895_v19   ;;  %v541_v29 = vmax.f32 %v505_v20, 0.0  ;;  %v469_v30 = vadd.f32 %v433_v21, %v323_v16  ;;  %v826_v31 = vunpack.c.l.bf16 %v969_v18  ;;  %v827_v32 = vunpack.c.h.bf16 %v969_v18  ;;  %v972_v16 = vld [vmem:[%s1054_s20 + $0x70] sm:$0xff]   ;;  %v956_v21 = vld [vmem:[%s1048_s17 + $0x78] sm:$0xff]  }
  0x3e   : > { %v542_v33 = vmax.f32 %v506_v23, 0.0  ;;  %v470_v34 = vadd.f32 %v434_v22, %v324_v24  ;;  %v288_v35 = vmul.f32 %v1059_v0, %v755_v25  ;;  %v325_v36 = vadd.f32 %v1072_v7, %v287_v26 }
  0x3f   : > { %v507_v38 = vadd.f32 %v1090_v27, %v469_v30  ;;  %v435_v39 = vmul.f32 %v1064_v1, %v826_v31  ;;  %v436_v40 = vmul.f32 %v1064_v1, %v827_v32  ;;  %v758_v41 = vunpack.c.l.bf16 %v953_v28 }
  0x40   : > { %v900_v42 = vpack.c.bf16 %v542_v33, %v541_v29  ;;  %v508_v43 = vadd.f32 %v1090_v27, %v470_v34  ;;  %v326_v44 = vadd.f32 %v1072_v7, %v288_v35  ;;  %v759_v45 = vunpack.c.h.bf16 %v953_v28  ;;  %v973_v35 = vld [vmem:[%s1054_s20 + $0x78] sm:$0xff]  }
  0x41   : > { %v543_v47 = vmax.f32 %v507_v38, 0.0  ;;  %v471_v48 = vadd.f32 %v435_v39, %v325_v36  ;;  %v289_v49 = vmul.f32 %v1059_v0, %v758_v41  ;;  %v830_v50 = vunpack.c.l.bf16 %v970_v37 }
  0x42   : > { %984 = vst [vmem:[%s1110_s4 + $0x48] sm:$0xff] %v900_v42   ;;  %v544_v51 = vmax.f32 %v508_v43, 0.0  ;;  %v472_v52 = vadd.f32 %v436_v40, %v326_v44  ;;  %v290_v53 = vmul.f32 %v1059_v0, %v759_v45  ;;  %v831_v54 = vunpack.c.h.bf16 %v970_v37  ;;  %v957_v44 = vld [vmem:[%s1048_s17 + $0x80] sm:$0xff]  }
  0x43   : > { %v509_v55 = vadd.f32 %v1090_v27, %v471_v48  ;;  %v327_v56 = vadd.f32 %v1072_v7, %v289_v49  ;;  %v437_v57 = vmul.f32 %v1064_v1, %v830_v50  ;;  %v762_v58 = vunpack.c.l.bf16 %v954_v46 }
  0x44   : > { %v905_v60 = vpack.c.bf16 %v544_v51, %v543_v47  ;;  %v510_v61 = vadd.f32 %v1090_v27, %v472_v52  ;;  %v328_v62 = vadd.f32 %v1072_v7, %v290_v53  ;;  %v438_v63 = vmul.f32 %v1064_v1, %v831_v54  ;;  %v974_v53 = vld [vmem:[%s1054_s20 + $0x80] sm:$0xff]  }
  0x45   : > { %v545_v3 = vmax.f32 %v509_v55, 0.0  ;;  %v473_v4 = vadd.f32 %v437_v57, %v327_v56  ;;  %v763_v5 = vunpack.c.h.bf16 %v954_v46  ;;  %v291_v6 = vmul.f32 %v1059_v0, %v762_v58 }
  0x46   : > { %985 = vst [vmem:[%s1110_s4 + $0x50] sm:$0xff] %v905_v60   ;;  %v546_v8 = vmax.f32 %v510_v61, 0.0  ;;  %v474_v9 = vadd.f32 %v438_v63, %v328_v62  ;;  %v834_v10 = vunpack.c.l.bf16 %v971_v59  ;;  %v835_v11 = vunpack.c.h.bf16 %v971_v59  ;;  %v958_v62 = vld [vmem:[%s1048_s17 + $0x88] sm:$0xff]  }
  0x47   : > { %v511_v12 = vadd.f32 %v1090_v27, %v473_v4  ;;  %v292_v13 = vmul.f32 %v1059_v0, %v763_v5  ;;  %v329_v14 = vadd.f32 %v1072_v7, %v291_v6  ;;  %v766_v15 = vunpack.c.l.bf16 %v955_v2 }
  0x48   : > { %v910_v17 = vpack.c.bf16 %v546_v8, %v545_v3  ;;  %v512_v18 = vadd.f32 %v1090_v27, %v474_v9  ;;  %v439_v19 = vmul.f32 %v1064_v1, %v834_v10  ;;  %v440_v20 = vmul.f32 %v1064_v1, %v835_v11 }
  0x49   : > { %v547_v22 = vmax.f32 %v511_v12, 0.0  ;;  %v330_v23 = vadd.f32 %v1072_v7, %v292_v13  ;;  %v767_v24 = vunpack.c.h.bf16 %v955_v2  ;;  %v293_v25 = vmul.f32 %v1059_v0, %v766_v15 }
  0x4a   : > { %986 = vst [vmem:[%s1110_s4 + $0x58] sm:$0xff] %v910_v17   ;;  %v548_v26 = vmax.f32 %v512_v18, 0.0  ;;  %v475_v28 = vadd.f32 %v439_v19, %v329_v14  ;;  %v838_v29 = vunpack.c.l.bf16 %v972_v16  ;;  %v839_v30 = vunpack.c.h.bf16 %v972_v16  ;;  %v975_v14 = vld [vmem:[%s1054_s20 + $0x88] sm:$0xff]  }
  0x4b   : > { %v476_v31 = vadd.f32 %v440_v20, %v330_v23  ;;  %v294_v32 = vmul.f32 %v1059_v0, %v767_v24  ;;  %v331_v33 = vadd.f32 %v1072_v7, %v293_v25  ;;  %v770_v34 = vunpack.c.l.bf16 %v956_v21 }
  0x4c   : > { %v915_v36 = vpack.c.bf16 %v548_v26, %v547_v22  ;;  %v513_v37 = vadd.f32 %v1090_v27, %v475_v28  ;;  %v441_v38 = vmul.f32 %v1064_v1, %v838_v29  ;;  %v442_v39 = vmul.f32 %v1064_v1, %v839_v30 }
  0x4d   : > { %v514_v40 = vadd.f32 %v1090_v27, %v476_v31  ;;  %v332_v41 = vadd.f32 %v1072_v7, %v294_v32  ;;  %v771_v42 = vunpack.c.h.bf16 %v956_v21  ;;  %v295_v43 = vmul.f32 %v1059_v0, %v770_v34 }
  0x4e   : > { %987 = vst [vmem:[%s1110_s4 + $0x60] sm:$0xff] %v915_v36   ;;  %v549_v45 = vmax.f32 %v513_v37, 0.0  ;;  %v477_v46 = vadd.f32 %v441_v38, %v331_v33  ;;  %v842_v47 = vunpack.c.l.bf16 %v973_v35  ;;  %v843_v48 = vunpack.c.h.bf16 %v973_v35 }
  0x4f   : > { %v550_v49 = vmax.f32 %v514_v40, 0.0  ;;  %v478_v50 = vadd.f32 %v442_v39, %v332_v41  ;;  %v296_v51 = vmul.f32 %v1059_v0, %v771_v42  ;;  %v333_v52 = vadd.f32 %v1072_v7, %v295_v43 }
  0x50   : > { %v515_v54 = vadd.f32 %v1090_v27, %v477_v46  ;;  %v443_v55 = vmul.f32 %v1064_v1, %v842_v47  ;;  %v444_v56 = vmul.f32 %v1064_v1, %v843_v48  ;;  %v774_v57 = vunpack.c.l.bf16 %v957_v44 }
  0x51   : > { %v920_v58 = vpack.c.bf16 %v550_v49, %v549_v45  ;;  %v516_v59 = vadd.f32 %v1090_v27, %v478_v50  ;;  %v334_v60 = vadd.f32 %v1072_v7, %v296_v51  ;;  %v775_v61 = vunpack.c.h.bf16 %v957_v44 }
  0x52   : > { %v551_v63 = vmax.f32 %v515_v54, 0.0  ;;  %v479_v2 = vadd.f32 %v443_v55, %v333_v52  ;;  %v297_v3 = vmul.f32 %v1059_v0, %v774_v57  ;;  %v846_v4 = vunpack.c.l.bf16 %v974_v53 }
  0x53   : > { %988 = vst [vmem:[%s1110_s4 + $0x68] sm:$0xff] %v920_v58   ;;  %v552_v5 = vmax.f32 %v516_v59, 0.0  ;;  %v480_v6 = vadd.f32 %v444_v56, %v334_v60  ;;  %v298_v8 = vmul.f32 %v1059_v0, %v775_v61  ;;  %v847_v9 = vunpack.c.h.bf16 %v974_v53 }
  0x54   : > { %v517_v10 = vadd.f32 %v1090_v27, %v479_v2  ;;  %v335_v11 = vadd.f32 %v1072_v7, %v297_v3  ;;  %v445_v12 = vmul.f32 %v1064_v1, %v846_v4  ;;  %v778_v13 = vunpack.c.l.bf16 %v958_v62 }
  0x55   : > { %v925_v15 = vpack.c.bf16 %v552_v5, %v551_v63  ;;  %v518_v16 = vadd.f32 %v1090_v27, %v480_v6  ;;  %v336_v17 = vadd.f32 %v1072_v7, %v298_v8  ;;  %v446_v18 = vmul.f32 %v1064_v1, %v847_v9 }
  0x56   : > { %v553_v19 = vmax.f32 %v517_v10, 0.0  ;;  %v481_v20 = vadd.f32 %v445_v12, %v335_v11  ;;  %v779_v21 = vunpack.c.h.bf16 %v958_v62  ;;  %v299_v22 = vmul.f32 %v1059_v0, %v778_v13 }
  0x57   : > { %989 = vst [vmem:[%s1110_s4 + $0x70] sm:$0xff] %v925_v15   ;;  %v554_v23 = vmax.f32 %v518_v16, 0.0  ;;  %v482_v24 = vadd.f32 %v446_v18, %v336_v17  ;;  %v850_v25 = vunpack.c.l.bf16 %v975_v14  ;;  %v851_v26 = vunpack.c.h.bf16 %v975_v14 }
  0x58   : > { %v519_v28 = vadd.f32 %v1090_v27, %v481_v20  ;;  %v300_v29 = vmul.f32 %v1059_v0, %v779_v21  ;;  %v337_v30 = vadd.f32 %v1072_v7, %v299_v22 }
  0x59   : > { %v930_v31 = vpack.c.bf16 %v554_v23, %v553_v19  ;;  %v520_v32 = vadd.f32 %v1090_v27, %v482_v24  ;;  %v447_v33 = vmul.f32 %v1064_v1, %v850_v25  ;;  %v448_v34 = vmul.f32 %v1064_v1, %v851_v26 }
  0x5a   : > { %v555_v35 = vmax.f32 %v519_v28, 0.0  ;;  %v338_v36 = vadd.f32 %v1072_v7, %v300_v29 }
  0x5b   : > { %990 = vst [vmem:[%s1110_s4 + $0x78] sm:$0xff] %v930_v31   ;;  %v556_v37 = vmax.f32 %v520_v32, 0.0  ;;  %v483_v38 = vadd.f32 %v447_v33, %v337_v30 }
  0x5c   : > { %v484_v39 = vadd.f32 %v448_v34, %v338_v36 }
  0x5d   : > { %v935_v40 = vpack.c.bf16 %v556_v37, %v555_v35  ;;  %v521_v0 = vadd.f32 %v1090_v27, %v483_v38 }
  0x5e   : > { %v522_v41 = vadd.f32 %v1090_v27, %v484_v39 }
  0x5f   : > { %991 = vst [vmem:[%s1110_s4 + $0x80] sm:$0xff] %v935_v40   ;;  %v557_v42 = vmax.f32 %v521_v0, 0.0 }
  0x60   : > { %v558_v43 = vmax.f32 %v522_v41, 0.0 }
  0x62   : > { %v940_v44 = vpack.c.bf16 %v558_v43, %v557_v42 }
  0x64   : > { %992 = vst [vmem:[%s1110_s4 + $0x88] sm:$0xff] %v940_v44  }
  0x65 PF: > { %s13_s12 = sadd.s32 1, %s1012_s12  }
  0x66   : > { %p10_p4 = scmp.ge.s32.totalorder %s13_s12, 4  }
  0x68   :  { %12 = sbr.rel (!%p10_p4) target bundleno = 1 (0x1), region = 65 }

// kernel: residual_block_forward.3
= control target key start
LH: loop header
LB: loop body
LE: loop exit
PB: predicated region body
PF: predicated region fallthrough
CT: control target
= control target key end

     0   :  { %12 = vsyncpa [#allocation3], 0  ;;  %s5886_s21 = smov 0   ;;  %s7308_s0 = inlined_call_operand.vmem [shape: bf16[2,1,324,128], index: 0, kind: input, shape index: {}]   ;;  %s7309_s1 = inlined_call_operand.vmem [shape: bf16[9,128,128], index: 1, kind: input, shape index: {}]   ;;  %s7310_s2 = inlined_call_operand.vmem [shape: bf16[128,128], index: 2, kind: input, shape index: {}]   ;;  %s7311_s3 = inlined_call_operand.hbm [shape: f32[286,1], index: 3, kind: input, shape index: {}]   ;;  %s7312_s4 = inlined_call_operand.vmem [shape: bf16[2,326,128], index: 4, kind: output, shape index: {0}]   ;;  %s7313_s5 = inlined_call_operand.vmem [shape: bf16[2,288,128], index: 5, kind: output, shape index: {1}]   ;;  %s7314_s6 = inlined_call_operand.vmem [shape: f32[2,4,128], index: 6, kind: output, shape index: {2}]  }
   0x1 LB: > { %s207_s24 = sshll.u32 %s7311_s3, 4  ;;  %s4760_s25 = sadd.s32 4294967295, %s5845_s21   ;;  %s5845_s21 = sphi %s5886_s21, %s18_s21   ;;  %s208_s24 = int_to_ptr.hbm [resolvable:$true] %s207_s24 }
   0x2   : > { %p4762_p0 = scmp.ge.s32.totalorder %s5845_s21, 1  ;;  %p190_p1 = scmp.lt.s32.totalorder %s5845_s21, 3 }
   0x3   : > { %p5775_p2 = scmp.eq.s32.totalorder %s4760_s25, 0  ;;  %s5847_s26 = smov [#allocation2]  }
   0x4   : > { %p191_p3 = pnand %p4762_p0, %p190_p1  ;;  %s209_s27 = sshll.u32 %s5847_s26, 4  ;;  %s210_s27 = int_to_ptr.vmem [resolvable:$true] %s209_s27 }
   0x5   : > { %s5848_s28 = smov 128   ;;  %s5849_s29 = smov 8  }
   0x6   : > { %p5771_p4 = pneg %p191_p3  ;;  %233 = sbr.rel (%p191_p3) target bundleno = 915 (0x393), region = 36 }
   0x8   : > { %p5772_p5 = pnand %p5775_p2, %p5771_p4 }
   0xa   : > { %5774 = dma.hbm_to_vmem [thread:$0]  (!%p5772_p5), %s208_s24, 4608, %s210_s27, [#allocation3], %s5848_s28, %s5848_s28, %s5849_s29  }
   0xb   : > { %5839 = dma.done.wait (%p5775_p2), [#allocation3], 4608  }
   0xc   : > { %5841 = vsyncadd (%p5775_p2), [#allocation3], 4294962688  ;;  %p273_p6 = scmp.lt.s32.totalorder %s4760_s25, 1  ;;  %v5524_v0 = vld [vmem:[%s7309_s1 + $0x78] sm:$0xff]  ;;  %v5523_v2 = vld [vmem:[%s7309_s1 + $0x70] sm:$0xff]  ;;  %vm950_vm1 = vcmask 1046528  }
   0xd   : > { %v5516_v1 = vld [vmem:[%s7309_s1 + $0x38] sm:$0xff]  ;;  %5749 = vmatpush.bf16.msra.mxu2 %v5524_v0  ;;  %v5515_v3 = vld [vmem:[%s7309_s1 + $0x30] sm:$0xff]  ;;  %662 = vmatpush.bf16.msra.mxu0 %v5524_v0  ;;  %v5522_v4 = vld [vmem:[%s7309_s1 + $0x68] sm:$0xff]  ;;  %vm452_vm0 = vsmask.f32 7424  ;;  %vm2102_vm2 = vcmask 1045504  }
   0xe   : > { %830 = vmatpush.bf16.msra.mxu1 %v5516_v1  ;;  %5757 = vmatpush.bf16.msra.mxu3 %v5516_v1  ;;  %s7382_s25 = smov (!%p273_p6, %s4760_s25), 1  ;;  %v5514_v5 = vld [vmem:[%s7309_s1 + $0x28] sm:$0xff]  ;;  %v5521_v6 = vld [vmem:[%s7309_s1 + $0x60] sm:$0xff]  ;;  %v5520_v8 = vld [vmem:[%s7309_s1 + $0x58] sm:$0xff]  ;;  %vm1713_vm3 = vsmask.f32 6400 }
   0xf   : > { %s5765_s18 = smul.u32 164, %s7382_s25  ;;  %v5513_v7 = vld [vmem:[%s7309_s1 + $0x20] sm:$0xff]  ;;  %v5512_v9 = vld [vmem:[%s7309_s1 + $0x18] sm:$0xff]  ;;  %v5519_v12 = vld [vmem:[%s7309_s1 + $0x50] sm:$0xff]  ;;  %vm2747_vm4 = vsmask.f32 5376 }
  0x10   : > { %v5511_v13 = vld [vmem:[%s7309_s1 + $0x10] sm:$0xff]  ;;  %v5518_v18 = vld [vmem:[%s7309_s1 + $0x48] sm:$0xff]  ;;  %v5517_v26 = vld [vmem:[%s7309_s1 + $0x40] sm:$0xff]  ;;  %vm3140_vm5 = vcmask 1044480   ;;  %s5766_s8 = smul.u32 144, %s7382_s25  ;;  %vm4546_vm6 = vcmask 1043457  }
  0x11   : > { %5750 = vmatpush.bf16.msra.mxu2 %v5523_v2  ;;  %663 = vmatpush.bf16.msra.mxu0 %v5523_v2  ;;  %s5929_s27 = scalar_lea.vmem %s7308_s0, %s5765_s18  ;;  %v5510_v19 = vld [vmem:[%s7309_s1 + $0x8] sm:$0xff]  ;;  %v5509_v27 = vld [vmem:[%s7309_s1] sm:$0xff]  ;;  %v5532_v32 = vld [vmem:[%s7309_s1 + $0xb8] sm:$0xff]  ;;  %vm4547_vm7 = vsmask.f32 7942  ;;  %s6830_s14 = scalar_lea.vmem %s7312_s4, %s5765_s18  ;;  %vm4587_vm12 = vcmask 1040384  }
  0x12   : > { %831 = vmatpush.bf16.msra.mxu1 %v5515_v3  ;;  %5758 = vmatpush.bf16.msra.mxu3 %v5515_v3  ;;  %v5501_v10 = vld [vmem:[%s5929_s27 + $0x48] sm:$0xff]  ;;  %v5642_v11 = vld [vmem:[%s5929_s27] sm:$0xff]   ;;  %v5946_v14 = vld [vmem:[%s5929_s27 + $0x50] sm:$0xff]  ;;  %s6804_s11 = scalar_lea.vmem %s7313_s5, %s5766_s8  ;;  %vm4147_vm9 = vsmask.f32 1280  ;;  %s4770_s18 = sshll.u32 %s7382_s25, 2 }
  0x13   : > { %v525_v15 = vshll.u32 %v5501_v10, 16  ;;  %v456_v16 = vshll.u32 %v5642_v11, 16  ;;  %v5949_v17 = vld [vmem:[%s5929_s27 + $0x8] sm:$0xff]  ;;  %v529_v21 = vshrl.u32 %v5501_v10, 16  ;;  %v533_v22 = vshll.u32 %v5946_v14, 16  ;;  %v5558_v33 = vld [vmem:[%s7309_s1 + $0xf8] sm:$0xff]  ;;  %vm6838_vm8 = vmand %vm4546_vm6, %vm4547_vm7  ;;  %s7288_s16 = scalar_lea.vmem %s7314_s6, %s4770_s18 }
  0x14   : > { %v454_v23 = vshrl.u32 %v5642_v11, 16  ;;  %v461_v25 = vshll.u32 %v5949_v17, 16  ;;  %v5583_v36 = vld [vmem:[%s7309_s1 + $0x138] sm:$0xff]  ;;  %v5531_v38 = vld [vmem:[%s7309_s1 + $0xb0] sm:$0xff]  ;;  %v5530_v44 = vld [vmem:[%s7309_s1 + $0xa8] sm:$0xff]  ;;  %v537_v46 = vshrl.u32 %v5946_v14, 16 }
  0x15   : > { %5751 = vmatpush.bf16.msra.mxu2 %v5522_v4  ;;  %664 = vmatpush.bf16.msra.mxu0 %v5522_v4  ;;  %v5957_v20 = vrot.slane %v525_v15, 1  ;;  %v458_v24 = vrot.slane %v456_v16, 1  ;;  %v535_v29 = vrot.slane %v533_v22, 1  ;;  %v5591_v37 = vld [vmem:[%s7309_s1 + $0x178] sm:$0xff]  ;;  %v5557_v39 = vld [vmem:[%s7309_s1 + $0xf0] sm:$0xff]  ;;  %v5556_v45 = vld [vmem:[%s7309_s1 + $0xe8] sm:$0xff] }
  0x16   : > { %832 = vmatpush.bf16.msra.mxu1 %v5514_v5  ;;  %5759 = vmatpush.bf16.msra.mxu3 %v5514_v5  ;;  %v463_v31 = vrot.slane %v461_v25, 1  ;;  %v5503_v40 = vld [vmem:[%s5929_s27 + $0x58] sm:$0xff]  ;;  %v5990_v41 = vld [vmem:[%s5929_s27 + $0x10] sm:$0xff]  ;;  %v465_v48 = vshrl.u32 %v5949_v17, 16  ;;  %v5581_v50 = vld [vmem:[%s7309_s1 + $0x128] sm:$0xff] }
  0x17   : > { %v531_v28 = vor.u32 %v529_v21, %v5957_v20  ;;  %v459_v30 = vor.u32 %v458_v24, %v454_v23  ;;  %v5582_v42 = vld [vmem:[%s7309_s1 + $0x130] sm:$0xff]  ;;  %v541_v47 = vshll.u32 %v5503_v40, 16  ;;  %v469_v49 = vshll.u32 %v5990_v41, 16  ;;  %v5504_v57 = vld [vmem:[%s5929_s27 + $0x60] sm:$0xff]  ;;  %v5589_v58 = vld [vmem:[%s7309_s1 + $0x168] sm:$0xff] }
  0x18   : > { %v5590_v43 = vld [vmem:[%s7309_s1 + $0x170] sm:$0xff]  ;;  %v539_v51 = vor.u32 %v537_v46, %v535_v29  ;;  %v467_v53 = vor.u32 %v465_v48, %v463_v31  ;;  %v5529_v59 = vld [vmem:[%s7309_s1 + $0xa0] sm:$0xff]  ;;  %v6025_v61 = vld [vmem:[%s5929_s27 + $0x18] sm:$0xff]  ;;  %v545_v62 = vshrl.u32 %v5503_v40, 16  ;;  %v549_v63 = vshll.u32 %v5504_v57, 16 }
  0x19   : > { %5752 = vmatpush.bf16.msra.mxu2 %v5521_v6  ;;  %665 = vmatpush.bf16.msra.mxu0 %v5521_v6  ;;  %v536_v34 = vsel %vm452_vm0, %v531_v28, %v535_v29  ;;  %v464_v35 = vsel %vm452_vm0, %v459_v30, %v463_v31  ;;  %v543_v52 = vrot.slane %v541_v47, 1  ;;  %v471_v54 = vrot.slane %v469_v49, 1  ;;  %v5555_v60 = vld [vmem:[%s7309_s1 + $0xe0] sm:$0xff]  ;;  %v5587_v28 = vld [vmem:[%s7309_s1 + $0x158] sm:$0xff]  ;;  %v5527_v29 = vld [vmem:[%s7309_s1 + $0x90] sm:$0xff] }
  0x1a   : > { %833 = vmatpush.bf16.msra.mxu1 %v5513_v7  ;;  %5760 = vmatpush.bf16.msra.mxu3 %v5513_v7  ;;  %v473_v0 = vshrl.u32 %v5990_v41, 16  ;;  %v477_v1 = vshll.u32 %v6025_v61, 16  ;;  %v551_v3 = vrot.slane %v549_v63, 1  ;;  %v481_v16 = vshrl.u32 %v6025_v61, 16  ;;  %v6064_v30 = vld [vmem:[%s5929_s27 + $0x28] sm:$0xff]  ;;  %v5553_v31 = vld [vmem:[%s7309_s1 + $0xd0] sm:$0xff] }
  0x1b   : > { %v544_v55 = vsel %vm452_vm0, %v539_v51, %v543_v52  ;;  %v472_v56 = vsel %vm452_vm0, %v467_v53, %v471_v54  ;;  %v547_v2 = vor.u32 %v545_v62, %v543_v52  ;;  %v5526_v46 = vld [vmem:[%s7309_s1 + $0x88] sm:$0xff]  ;;  %v6085_v47 = vld [vmem:[%s5929_s27 + $0x30] sm:$0xff]  ;;  %v497_v51 = vshrl.u32 %v6064_v30, 16  ;;  %v6103_v63 = vld [vmem:[%s5929_s27 + $0x38] sm:$0xff] }
  0x1c   : > { %v475_v4 = vor.u32 %v473_v0, %v471_v54  ;;  %v479_v5 = vrot.slane %v477_v1, 1  ;;  %v5552_v48 = vld [vmem:[%s7309_s1 + $0xc8] sm:$0xff]  ;;  %v501_v52 = vshll.u32 %v6085_v47, 16  ;;  %vm4148_vm10 = vsmask.f32 5392 }
  0x1d   : > { %5753 = vmatpush.bf16.msra.mxu2 %v5520_v8  ;;  %666 = vmatpush.bf16.msra.mxu0 %v5520_v8  ;;  %v552_v6 = vsel %vm452_vm0, %v547_v2, %v551_v3  ;;  %v5505_v8 = vld [vmem:[%s5929_s27 + $0x68] sm:$0xff]  ;;  %v505_v2 = vshrl.u32 %v6085_v47, 16  ;;  %vm6856_vm11 = vmor %vm4147_vm9, %vm4148_vm10  ;;  %vm4588_vm13 = vsmask.f32 256 }
  0x1e   : > { %834 = vmatpush.bf16.msra.mxu1 %v5512_v9  ;;  %5761 = vmatpush.bf16.msra.mxu3 %v5512_v9  ;;  %v480_v7 = vsel %vm452_vm0, %v475_v4, %v479_v5  ;;  %v5580_v9 = vld [vmem:[%s7309_s1 + $0x120] sm:$0xff]  ;;  %v557_v15 = vshll.u32 %v5505_v8, 16  ;;  %v483_v22 = vor.u32 %v481_v16, %v479_v5  ;;  %v5585_v62 = vld [vmem:[%s7309_s1 + $0x148] sm:$0xff]  ;;  %vm4589_vm14 = vmand %vm4587_vm12, %vm4588_vm13 }
  0x20   : > { %v559_v21 = vrot.slane %v557_v15, 1  ;;  %v6121_v15 = vld [vmem:[%s5929_s27 + $0x40] sm:$0xff] }
  0x21   : > { %5754 = vmatpush.bf16.msra.mxu2 %v5519_v12  ;;  %667 = vmatpush.bf16.msra.mxu0 %v5519_v12  ;;  %v6043_v12 = vld [vmem:[%s5929_s27 + $0x20] sm:$0xff] }
  0x22   : > { %835 = vmatpush.bf16.msra.mxu1 %v5511_v13  ;;  %5762 = vmatpush.bf16.msra.mxu3 %v5511_v13  ;;  %v5554_v13 = vld [vmem:[%s7309_s1 + $0xd8] sm:$0xff] }
  0x25   : > { %5755 = vmatpush.bf16.msra.mxu2 %v5518_v18  ;;  %668 = vmatpush.bf16.msra.mxu0 %v5518_v18  ;;  %v485_v18 = vshll.u32 %v6043_v12, 16 }
  0x26   : > { %836 = vmatpush.bf16.msra.mxu1 %v5510_v19  ;;  %5763 = vmatpush.bf16.msra.mxu3 %v5510_v19 }
  0x27   : > { %v487_v23 = vrot.slane %v485_v18, 1 }
  0x29   : > { %5756 = vmatpush.bf16.msra.mxu2 %v5517_v26  ;;  %669 = vmatpush.bf16.msra.mxu0 %v5517_v26  ;;  %v488_v25 = vsel %vm452_vm0, %v483_v22, %v487_v23  ;;  %v5506_v26 = vld [vmem:[%s5929_s27 + $0x70] sm:$0xff]  ;;  %v5576_v22 = vld [vmem:[%s7309_s1 + $0x100] sm:$0xff] }
  0x2a   : > { %837 = vmatpush.bf16.msra.mxu1 %v5509_v27  ;;  %5764 = vmatpush.bf16.msra.mxu3 %v5509_v27  ;;  %v5579_v27 = vld [vmem:[%s7309_s1 + $0x118] sm:$0xff]  ;;  %v569_v49 = vshrl.u32 %v5506_v26, 16 }
  0x2c   : > { %715 = vmatmul.bf16.vlgmr.msra.gmra.mxu2 %v536_v34  ;;  %670 = vmatmul.bf16.vlgmr.msra.gmra.mxu0 %v464_v35  ;;  %v489_v34 = vshrl.u32 %v6043_v12, 16  ;;  %v493_v35 = vshll.u32 %v6064_v30, 16 }
  0x2d   : > { %1052 = vmatpush.bf16.msrb.mxu2 %v5532_v32  ;;  %838 = vmatmul.bf16.vlgmr.msra.gmra.mxu1 %v5642_v11  ;;  %v5528_v11 = vld [vmem:[%s7309_s1 + $0x98] sm:$0xff]  ;;  %v561_v32 = vshrl.u32 %v5505_v8, 16 }
  0x2e   : > { %1431 = vmatpush.bf16.msrb.mxu3 %v5558_v33  ;;  %1946 = vmatpush.bf16.msrb.mxu0 %v5583_v36  ;;  %v565_v33 = vshll.u32 %v5506_v26, 16 }
  0x2f   : > { %883 = vmatmul.bf16.vlgmr.msra.gmra.mxu3 %v5501_v10  ;;  %2206 = vmatpush.bf16.msrb.mxu1 %v5591_v37  ;;  %v5588_v10 = vld [vmem:[%s7309_s1 + $0x160] sm:$0xff]  ;;  %v563_v36 = vor.u32 %v561_v32, %v559_v21  ;;  %v5624_v32 = vld [vmem:[%s7309_s1 + $0x1f8] sm:$0xff] }
  0x30   : > { %v567_v37 = vrot.slane %v565_v33, 1  ;;  %v5842_v33 = vld [vmem:[%s5929_s27 + $0x88] sm:$0x70] }
  0x31   : > { %1053 = vmatpush.bf16.msrb.mxu2 %v5531_v38  ;;  %v491_v38 = vor.u32 %v489_v34, %v487_v23  ;;  %v5584_v23 = vld [vmem:[%s7309_s1 + $0x140] sm:$0xff]  ;;  %v521_v34 = vshrl.u32 %v6121_v15, 16 }
  0x32   : > { %1432 = vmatpush.bf16.msrb.mxu3 %v5557_v39  ;;  %1947 = vmatpush.bf16.msrb.mxu0 %v5582_v42  ;;  %v495_v39 = vrot.slane %v493_v35, 1  ;;  %v571_v53 = vor.u32 %v569_v49, %v567_v37  ;;  %v1567_v35 = vld [vmem:[%s5929_s27 + $0xc] sm:$0xf] }
  0x33   : > { %2207 = vmatpush.bf16.msrb.mxu1 %v5590_v43  ;;  %v5507_v43 = vld [vmem:[%s5929_s27 + $0x78] sm:$0xff] }
  0x34   : > { %v496_v42 = vsel %vm452_vm0, %v491_v38, %v495_v39  ;;  %v577_v0 = vshrl.u32 %v5507_v43, 16 }
  0x35   : > { %1054 = vmatpush.bf16.msrb.mxu2 %v5530_v44  ;;  %v5578_v44 = vld [vmem:[%s7309_s1 + $0x110] sm:$0xff] }
  0x36   : > { %1433 = vmatpush.bf16.msrb.mxu3 %v5556_v45  ;;  %1948 = vmatpush.bf16.msrb.mxu0 %v5581_v50  ;;  %v5586_v45 = vld [vmem:[%s7309_s1 + $0x150] sm:$0xff]  ;;  %v573_v50 = vshll.u32 %v5507_v43, 16 }
  0x37   : > { %2208 = vmatpush.bf16.msrb.mxu1 %v5589_v58 }
  0x38   : > { %v575_v54 = vrot.slane %v573_v50, 1  ;;  %v6155_v50 = vld [vmem:[%s5929_s27 + $0x10] sm:$0xff] }
  0x39   : > { %1055 = vmatpush.bf16.msrb.mxu2 %v5529_v59  ;;  %v5508_v59 = vld [vmem:[%s5929_s27 + $0x80] sm:$0xff] }
  0x3a   : > { %1434 = vmatpush.bf16.msrb.mxu3 %v5555_v60  ;;  %1949 = vmatpush.bf16.msrb.mxu0 %v5580_v9  ;;  %v5577_v60 = vld [vmem:[%s7309_s1 + $0x108] sm:$0xff]  ;;  %v581_v1 = vshll.u32 %v5508_v59, 16  ;;  %v579_v4 = vor.u32 %v577_v0, %v575_v54  ;;  %v585_v16 = vshrl.u32 %v5508_v59, 16 }
  0x3b   : > { %2209 = vmatpush.bf16.msrb.mxu1 %v5588_v10  ;;  %v5802_v9 = vld [vmem:[%s5929_s27 + $0x88] sm:$0xf]  }
  0x3c   : > { %720 = vmatmul.bf16.gmra.mxu2 %v544_v55  ;;  %675 = vmatmul.bf16.gmra.mxu0 %v472_v56  ;;  %v499_v55 = vor.u32 %v497_v51, %v495_v39  ;;  %v503_v56 = vrot.slane %v501_v52, 1  ;;  %v583_v5 = vrot.slane %v581_v1, 1  ;;  %v2081_v51 = vld [vmem:[%s5929_s27 + $0x8] sm:$0xc] }
  0x3d   : > { %843 = vmatmul.bf16.gmra.mxu1 %v5949_v17  ;;  %1056 = vmatpush.bf16.msrb.mxu2 %v5528_v11  ;;  %v5525_v11 = vld [vmem:[%s7309_s1 + $0x80] sm:$0xff] }
  0x3e   : > { %1435 = vmatpush.bf16.msrb.mxu3 %v5554_v13  ;;  %1950 = vmatpush.bf16.msrb.mxu0 %v5579_v27  ;;  %v504_v58 = vsel %vm452_vm0, %v499_v55, %v503_v56  ;;  %v584_v10 = vsel %vm452_vm0, %v579_v4, %v583_v5  ;;  %v5731_v55 = vld [vmem:[%s5929_s27] sm:$0xe] }
  0x3f   : > { %888 = vmatmul.bf16.gmra.mxu3 %v5946_v14  ;;  %v553_v14 = vshrl.u32 %v5504_v57, 16  ;;  %2210 = vmatpush.bf16.msrb.mxu1 %v5587_v28 }
  0x41   : > { %v555_v19 = vor.u32 %v553_v14, %v551_v3  ;;  %1057 = vmatpush.bf16.msrb.mxu2 %v5527_v29  ;;  %v509_v3 = vshll.u32 %v6103_v63, 16  ;;  %v5551_v14 = vld [vmem:[%s7309_s1 + $0xc0] sm:$0xff] }
  0x42   : > { %1436 = vmatpush.bf16.msrb.mxu3 %v5553_v31  ;;  %1951 = vmatpush.bf16.msrb.mxu0 %v5578_v44  ;;  %v5616_v31 = vld [vmem:[%s7309_s1 + $0x1b8] sm:$0xff] }
  0x43   : > { %v560_v24 = vsel %vm452_vm0, %v555_v19, %v559_v21  ;;  %2211 = vmatpush.bf16.msrb.mxu1 %v5586_v45  ;;  %v513_v19 = vshrl.u32 %v6103_v63, 16  ;;  %v517_v21 = vshll.u32 %v6121_v15, 16  ;;  %v5803_v45 = vor.u32 %v5842_v33, %v5802_v9 }
  0x45   : > { %1058 = vmatpush.bf16.msrb.mxu2 %v5526_v46  ;;  %v519_v27 = vrot.slane %v517_v21, 1  ;;  %v5640_v46 = vld [vmem:[%s7310_s2 + $0x38] sm:$0xff] }
  0x46   : > { %1437 = vmatpush.bf16.msrb.mxu3 %v5552_v48  ;;  %1952 = vmatpush.bf16.msrb.mxu0 %v5577_v60  ;;  %v1723_v60 = vshrl.u32 %v6155_v50, 16 }
  0x47   : > { %2212 = vmatpush.bf16.msrb.mxu1 %v5585_v62  ;;  %v523_v39 = vor.u32 %v521_v34, %v519_v27  ;;  %v1726_v62 = vshll.u32 %v6155_v50, 16 }
  0x49   : > { %1059 = vmatpush.bf16.msrb.mxu2 %v5525_v11  ;;  %v528_v49 = vsel %vm452_vm0, %v523_v39, %v5957_v20 }
  0x4a   : > { %1438 = vmatpush.bf16.msrb.mxu3 %v5551_v14  ;;  %1953 = vmatpush.bf16.msrb.mxu0 %v5576_v22  ;;  %v1728_v14 = vrot.slane %v1726_v62, 2 }
  0x4b   : > { %2213 = vmatpush.bf16.msrb.mxu1 %v5584_v23  ;;  %v2104_v23 = vrot.slane %v6155_v50, 2 }
  0x4c   : > { %725 = vmatmul.bf16.gmra.mxu2 %v552_v6  ;;  %680 = vmatmul.bf16.gmra.mxu0 %v480_v7  ;;  %v507_v6 = vor.u32 %v505_v2, %v503_v56  ;;  %v511_v7 = vrot.slane %v509_v3, 1  ;;  %v4981_v56 = vld [vmem:[%s5929_s27 + $0x8] sm:$0xe] }
  0x4d   : > { %848 = vmatmul.bf16.gmra.mxu1 %v5990_v41  ;;  %2591 = vmatpush.bf16.msra.mxu2 %v5616_v31 }
  0x4e   : > { %v512_v13 = vsel %vm452_vm0, %v507_v6, %v511_v7  ;;  %2984 = vmatpush.bf16.msra.mxu3 %v5624_v32 }
  0x4f   : > { %893 = vmatmul.bf16.gmra.mxu3 %v5503_v40  ;;  %v568_v40 = vsel %vm452_vm0, %v563_v36, %v567_v37  ;;  %v1566_v36 = vld [vmem:[%s5929_s27 + $0x8] sm:$0xe]  ;;  %v5632_v37 = vld [vmem:[%s7309_s1 + $0x238] sm:$0xff]  ;;  %3443 = vmatpush.bf16.msra.mxu1 %v5640_v46  ;;  %v5623_v46 = vld [vmem:[%s7309_s1 + $0x1f0] sm:$0xff] }
  0x50   : > { %3244 = vmatpush.bf16.msra.mxu0 %v5632_v37 }
  0x52   : > { %2985 = vmatpush.bf16.msra.mxu3 %v5623_v46 }
  0x5c   : > { %730 = vmatmul.bf16.gmra.mxu2 %v560_v24  ;;  %685 = vmatmul.bf16.gmra.mxu0 %v488_v25  ;;  %v587_v24 = vor.u32 %v585_v16, %v583_v5  ;;  %v6170_v5 = vld [vmem:[%s5929_s27 + $0x10] sm:$0xff] }
  0x5d   : > { %853 = vmatmul.bf16.gmra.mxu1 %v6025_v61  ;;  %v1331_v21 = vrot.slane %v6170_v5, 1  ;;  %v6218_v5 = vld [vmem:[%s5929_s27 + $0x20] sm:$0xff] }
  0x5f   : > { %898 = vmatmul.bf16.gmra.mxu3 %v5504_v57  ;;  %v576_v57 = vsel %vm452_vm0, %v571_v53, %v575_v54  ;;  %v5730_v54 = vld [vmem:[%s5929_s27] sm:$0xf0] }
  0x60   : > { %v5732_v2 = vor.u32 %v5731_v55, %v5730_v54  ;;  %v954_v54 = vrot.slane %v5990_v41, 1 }
  0x6c   : > { %735 = vmatmul.bf16.gmra.mxu2 %v568_v40  ;;  %690 = vmatmul.bf16.gmra.mxu0 %v496_v42  ;;  %v1658_v40 = vunpack.c.l.b16 %v1567_v35  ;;  %v1657_v42 = vunpack.c.l.b16 %v1566_v36  ;;  %v6186_v36 = vld [vmem:[%s5929_s27 + $0x18] sm:$0xff] }
  0x6d   : > { %858 = vmatmul.bf16.gmra.mxu1 %v6043_v12  ;;  %v1735_v39 = vshll.u32 %v6186_v36, 16  ;;  %v2106_v55 = vrot.slane %v6186_v36, 2 }
  0x6e   : > { %v1694_v52 = vpack.c.b16 %v1658_v40, %v1657_v42 }
  0x6f   : > { %903 = vmatmul.bf16.gmra.mxu3 %v5505_v8  ;;  %v6108_v8 = vld [vmem:[%s5929_s27 + $0x88] sm:$0xff]  }
  0x70   : > { %v589_v18 = vshll.u32 %v6108_v8, 16  ;;  %v593_v38 = vshrl.u32 %v6108_v8, 16  ;;  %v1718_v20 = vshll.u32 %v1694_v52, 16 }
  0x72   : > { %v591_v25 = vrot.slane %v589_v18, 1  ;;  %v1720_v11 = vrot.slane %v1718_v20, 2  ;;  %v951_v18 = vrot.slane %v5732_v2, 1 }
  0x74   : > { %v592_v28 = vsel %vm452_vm0, %v587_v24, %v591_v25 }
  0x7c   : > { %740 = vmatmul.bf16.gmra.mxu2 %v576_v57  ;;  %695 = vmatmul.bf16.gmra.mxu0 %v504_v58  ;;  %v2100_v57 = vunpack.c.l.b16 %v2081_v51  ;;  %v5533_v58 = vld [vmem:[%s5929_s27 + $0x8] sm:$0xf0]  ;;  %v1737_v51 = vrot.slane %v1735_v39, 2 }
  0x7d   : > { %863 = vmatmul.bf16.gmra.mxu1 %v6064_v30  ;;  %v4982_v6 = vor.u32 %v5533_v58, %v4981_v56 }
  0x7f   : > { %908 = vmatmul.bf16.gmra.mxu3 %v5506_v26  ;;  %v515_v26 = vor.u32 %v513_v19, %v511_v7  ;;  %v2101_v7 = vpack.c.b16 %v1658_v40, %v2100_v57  ;;  %v952_v19 = vrot.slane %v5949_v17, 1  ;;  %v1330_v24 = vrot.slane %v4982_v6, 1 }
  0x81   : > { %v520_v29 = vsel %vm452_vm0, %v515_v26, %v519_v27  ;;  %v2103_v22 = vrot.slane %v2101_v7, 2  ;;  %v953_v32 = vsel %vm950_vm1, %v951_v18, %v952_v19  ;;  %v1332_v34 = vsel %vm950_vm1, %v1330_v24, %v1331_v21  ;;  %v5639_v7 = vld [vmem:[%s7310_s2 + $0x30] sm:$0xff] }
  0x82   : > { %v955_v62 = vsel %vm950_vm1, %v952_v19, %v954_v54  ;;  %3444 = vmatpush.bf16.msra.mxu1 %v5639_v7 }
  0x83   : > { %v2105_v17 = vsel %vm2102_vm2, %v2103_v22, %v2104_v23 }
  0x8c   : > { %745 = vmatmul.bf16.gmra.mxu2 %v584_v10  ;;  %700 = vmatmul.bf16.gmra.mxu0 %v512_v13  ;;  %v1725_v13 = vrot.slane %v1723_v60, 1 }
  0x8d   : > { %868 = vmatmul.bf16.gmra.mxu1 %v6085_v47 }
  0x8e   : > { %v1729_v26 = vor.u32 %v1728_v14, %v1725_v13 }
  0x8f   : > { %913 = vmatmul.bf16.gmra.mxu3 %v5507_v43  ;;  %v595_v43 = vor.u32 %v593_v38, %v591_v25  ;;  %v1732_v38 = vshrl.u32 %v6186_v36, 16 }
  0x91   : > { %v1734_v50 = vrot.slane %v1732_v38, 1 }
  0x93   : > { %v1738_v57 = vor.u32 %v1737_v51, %v1734_v50 }
  0x9c   : > { %750 = vmatmul.bf16.gmra.mxu2 %v592_v28  ;;  %705 = vmatmul.bf16.gmra.mxu0 %v520_v29 }
  0x9d   : > { %873 = vmatmul.bf16.gmra.mxu1 %v6103_v63 }
  0x9f   : > { %918 = vmatmul.bf16.gmra.mxu3 %v5508_v59  ;;  %v1715_v59 = vshrl.u32 %v1694_v52, 16 }
  0xa1   : > { %v1717_v10 = vrot.slane %v1715_v59, 1 }
  0xa3   : > { %v1721_v25 = vor.u32 %v1720_v11, %v1717_v10  ;;  %v1744_v10 = vshll.u32 %v6218_v5, 16 }
  0xa5   : > { %v6183_v35 = vsel %vm1713_vm3, %v1721_v25, %v1729_v26  ;;  %v956_v25 = vrot.slane %v6025_v61, 1  ;;  %v6244_v61 = vld [vmem:[%s5929_s27 + $0x28] sm:$0xff] }
  0xa9   : > { %v671_v48 = vpop.f32.mrf.mxu0 }
  0xaa   : > { %v839_v44 = vpop.f32.mrf.mxu1 }
  0xab   : > { %v6158_v53 = vadd.f32 %v839_v44, %v671_v48 }
  0xac   : > { %755 = vmatmul.bf16.gmra.mxu2 %v595_v43  ;;  %710 = vmatmul.bf16.gmra.mxu0 %v528_v49  ;;  %v5535_v49 = vld [vmem:[%s5929_s27 + $0x18] sm:$0xff] }
  0xad   : > { %878 = vmatmul.bf16.gmra.mxu1 %v6121_v15  ;;  %v1333_v56 = vrot.slane %v5535_v49, 1 }
  0xaf   : > { %923 = vmatmul.bf16.gmra.mxu3 %v5803_v45  ;;  %v716_v0 = vpop.f32.mrf.mxu2  ;;  %v5615_v45 = vld [vmem:[%s7309_s1 + $0x1b0] sm:$0xff]  ;;  %v1334_v41 = vsel %vm950_vm1, %v1331_v21, %v1333_v56  ;;  %v5536_v21 = vld [vmem:[%s5929_s27 + $0x20] sm:$0xff] }
  0xb0   : > { %2592 = vmatpush.bf16.msra.mxu2 %v5615_v45  ;;  %v1753_v45 = vshll.u32 %v6244_v61, 16 }
  0xb1   : > { %v673_v9 = vpop.f32.mrf.mxu0 }
  0xb2   : > { %v884_v1 = vpop.f32.mrf.mxu3  ;;  %v841_v4 = vpop.f32.mrf.mxu1 }
  0xb3   : > { %v6167_v3 = vadd.f32 %v884_v1, %v716_v0  ;;  %v6172_v16 = vadd.f32 %v841_v4, %v673_v9  ;;  %v2107_v0 = vsel %vm2102_vm2, %v2104_v23, %v2106_v55  ;;  %v5631_v1 = vld [vmem:[%s7309_s1 + $0x230] sm:$0xff]  ;;  %v6215_v4 = vsel %vm1713_vm3, %v1729_v26, %v1738_v57 }
  0xb4   : > { %3245 = vmatpush.bf16.msra.mxu0 %v5631_v1  ;;  %v1741_v9 = vshrl.u32 %v6218_v5, 16  ;;  %v1746_v23 = vrot.slane %v1744_v10, 2  ;;  %v2108_v26 = vrot.slane %v6218_v5, 2 }
  0xb6   : > { %v1743_v22 = vrot.slane %v1741_v9, 1  ;;  %v2109_v36 = vsel %vm2102_vm2, %v2106_v55, %v2108_v26 }
  0xb7   : > { %v718_v27 = vpop.f32.mrf.mxu2 }
  0xb9   : > { %v676_v33 = vpop.f32.mrf.mxu0 }
  0xba   : > { %v886_v28 = vpop.f32.mrf.mxu3  ;;  %v844_v31 = vpop.f32.mrf.mxu1 }
  0xbb   : > { %v6177_v29 = vadd.f32 %v886_v28, %v718_v27  ;;  %v6188_v37 = vadd.f32 %v844_v31, %v676_v33  ;;  %v1335_v27 = vrot.slane %v5536_v21, 1  ;;  %v1747_v28 = vor.u32 %v1746_v23, %v1743_v22  ;;  %v5630_v21 = vld [vmem:[%s7309_s1 + $0x228] sm:$0xff] }
  0xbc   : > { %1060 = vmatmul.bf16.vlgmr.msrb.gmra.mxu2 %v953_v32  ;;  %1954 = vmatmul.bf16.vlgmr.msrb.gmra.mxu0 %v6183_v35 }
  0xbd   : > { %2214 = vmatmul.bf16.vlgmr.msrb.gmra.mxu1 %v2105_v17  ;;  %v1336_v39 = vsel %vm950_vm1, %v1333_v56, %v1335_v27  ;;  %v1755_v56 = vrot.slane %v1753_v45, 2  ;;  %3246 = vmatpush.bf16.msra.mxu0 %v5630_v21  ;;  %v962_v21 = vrot.slane %v6085_v47, 1  ;;  %v5621_v47 = vld [vmem:[%s7309_s1 + $0x1e0] sm:$0xff] }
  0xbf   : > { %1439 = vmatmul.bf16.vlgmr.msrb.gmra.mxu3 %v1332_v34  ;;  %v721_v40 = vpop.f32.mrf.mxu2  ;;  %v957_v34 = vsel %vm950_vm1, %v954_v54, %v956_v25  ;;  %v5537_v54 = vld [vmem:[%s5929_s27 + $0x28] sm:$0xff] }
  0xc1   : > { %v678_v48 = vpop.f32.mrf.mxu0 }
  0xc2   : > { %v889_v42 = vpop.f32.mrf.mxu3  ;;  %v846_v44 = vpop.f32.mrf.mxu1 }
  0xc3   : > { %v6193_v43 = vadd.f32 %v889_v42, %v721_v40  ;;  %v6202_v52 = vadd.f32 %v846_v44, %v678_v48  ;;  %v6241_v40 = vsel %vm1713_vm3, %v1738_v57, %v1747_v28  ;;  %v1750_v44 = vshrl.u32 %v6244_v61, 16 }
  0xc5   : > { %v1752_v55 = vrot.slane %v1750_v44, 1 }
  0xc7   : > { %v723_v58 = vpop.f32.mrf.mxu2  ;;  %v1756_v1 = vor.u32 %v1755_v56, %v1752_v55 }
  0xc9   : > { %v681_v2 = vpop.f32.mrf.mxu0 }
  0xca   : > { %v891_v59 = vpop.f32.mrf.mxu3  ;;  %v849_v60 = vpop.f32.mrf.mxu1 }
  0xcb   : > { %v6206_v20 = vadd.f32 %v891_v59, %v723_v58  ;;  %v6220_v6 = vadd.f32 %v849_v60, %v681_v2  ;;  %v5614_v58 = vld [vmem:[%s7309_s1 + $0x1a8] sm:$0xff]  ;;  %v958_v60 = vrot.slane %v6043_v12, 1  ;;  %v6270_v12 = vsel %vm1713_vm3, %v1747_v28, %v1756_v1 }
  0xcc   : > { %1065 = vmatmul.bf16.gmra.mxu2 %v955_v62  ;;  %1959 = vmatmul.bf16.gmra.mxu0 %v6215_v4  ;;  %v5622_v59 = vld [vmem:[%s7309_s1 + $0x1e8] sm:$0xff]  ;;  %v2110_v62 = vrot.slane %v6244_v61, 2 }
  0xcd   : > { %2219 = vmatmul.bf16.gmra.mxu1 %v2107_v0  ;;  %2593 = vmatpush.bf16.msra.mxu2 %v5614_v58  ;;  %v1337_v0 = vrot.slane %v5537_v54, 1  ;;  %v959_v9 = vsel %vm950_vm1, %v956_v25, %v958_v60 }
  0xce   : > { %2986 = vmatpush.bf16.msra.mxu3 %v5622_v59  ;;  %v2111_v10 = vsel %vm2102_vm2, %v2108_v26, %v2110_v62 }
  0xcf   : > { %1444 = vmatmul.bf16.gmra.mxu3 %v1334_v41  ;;  %v726_v11 = vpop.f32.mrf.mxu2 }
  0xd1   : > { %v683_v19 = vpop.f32.mrf.mxu0 }
  0xd2   : > { %v894_v13 = vpop.f32.mrf.mxu3  ;;  %v851_v18 = vpop.f32.mrf.mxu1  ;;  %2987 = vmatpush.bf16.msra.mxu3 %v5621_v47 }
  0xd3   : > { %v6228_v14 = vadd.f32 %v894_v13, %v726_v11  ;;  %v6231_v24 = vadd.f32 %v851_v18, %v683_v19  ;;  %v1338_v13 = vsel %vm950_vm1, %v1335_v27, %v1337_v0  ;;  %v5563_v18 = vld [vmem:[%s5929_s27 + $0x30] sm:$0xff] }
  0xd4   : > { %v1759_v22 = vshrl.u32 %v5563_v18, 16  ;;  %v1762_v23 = vshll.u32 %v5563_v18, 16  ;;  %v2112_v61 = vrot.slane %v5563_v18, 2 }
  0xd6   : > { %v2113_v55 = vsel %vm2102_vm2, %v2110_v62, %v2112_v61 }
  0xd7   : > { %v728_v31 = vpop.f32.mrf.mxu2 }
  0xd9   : > { %v686_v38 = vpop.f32.mrf.mxu0 }
  0xda   : > { %v896_v32 = vpop.f32.mrf.mxu3  ;;  %v854_v33 = vpop.f32.mrf.mxu1 }
  0xdb   : > { %v6235_v17 = vadd.f32 %v896_v32, %v728_v31  ;;  %v6246_v42 = vadd.f32 %v854_v33, %v686_v38  ;;  %v5638_v31 = vld [vmem:[%s7310_s2 + $0x28] sm:$0xff]  ;;  %v5538_v33 = vld [vmem:[%s5929_s27 + $0x30] sm:$0xff] }
  0xdc   : > { %1070 = vmatmul.bf16.gmra.mxu2 %v957_v34  ;;  %1964 = vmatmul.bf16.gmra.mxu0 %v6241_v40  ;;  %v1761_v34 = vrot.slane %v1759_v22, 1  ;;  %v1339_v44 = vrot.slane %v5538_v33, 1 }
  0xdd   : > { %2224 = vmatmul.bf16.gmra.mxu1 %v2109_v36  ;;  %v1764_v36 = vrot.slane %v1762_v23, 2 }
  0xde   : > { %3445 = vmatpush.bf16.msra.mxu1 %v5638_v31  ;;  %v1340_v58 = vsel %vm950_vm1, %v1337_v0, %v1339_v44 }
  0xdf   : > { %1449 = vmatmul.bf16.gmra.mxu3 %v1336_v39  ;;  %v731_v46 = vpop.f32.mrf.mxu2  ;;  %v960_v39 = vrot.slane %v6064_v30, 1  ;;  %v1765_v45 = vor.u32 %v1764_v36, %v1761_v34  ;;  %v6297_v30 = vld [vmem:[%s5929_s27 + $0x38] sm:$0xff]  ;;  %v5613_v36 = vld [vmem:[%s7309_s1 + $0x1a0] sm:$0xff] }
  0xe0   : > { %v1771_v62 = vshll.u32 %v6297_v30, 16  ;;  %v2114_v22 = vrot.slane %v6297_v30, 2  ;;  %2594 = vmatpush.bf16.msra.mxu2 %v5613_v36 }
  0xe1   : > { %v688_v51 = vpop.f32.mrf.mxu0  ;;  %v961_v54 = vsel %vm950_vm1, %v958_v60, %v960_v39  ;;  %v6294_v59 = vsel %vm1713_vm3, %v1756_v1, %v1765_v45  ;;  %v1768_v60 = vshrl.u32 %v6297_v30, 16  ;;  %v963_v33 = vsel %vm950_vm1, %v960_v39, %v962_v21  ;;  %v5629_v30 = vld [vmem:[%s7309_s1 + $0x220] sm:$0xff] }
  0xe2   : > { %v899_v48 = vpop.f32.mrf.mxu3  ;;  %v856_v50 = vpop.f32.mrf.mxu1  ;;  %v2115_v34 = vsel %vm2102_vm2, %v2112_v61, %v2114_v22  ;;  %3247 = vmatpush.bf16.msra.mxu0 %v5629_v30 }
  0xe3   : > { %v6251_v49 = vadd.f32 %v899_v48, %v731_v46  ;;  %v6254_v57 = vadd.f32 %v856_v50, %v688_v51 }
  0xe7   : > { %v733_v2 = vpop.f32.mrf.mxu2 }
  0xe9   : > { %v691_v11 = vpop.f32.mrf.mxu0 }
  0xea   : > { %v901_v41 = vpop.f32.mrf.mxu3  ;;  %v859_v7 = vpop.f32.mrf.mxu1 }
  0xeb   : > { %v6264_v5 = vadd.f32 %v901_v41, %v733_v2  ;;  %v6273_v19 = vadd.f32 %v859_v7, %v691_v11  ;;  %v1770_v11 = vrot.slane %v1768_v60, 1 }
  0xec   : > { %1075 = vmatmul.bf16.gmra.mxu2 %v959_v9  ;;  %1969 = vmatmul.bf16.gmra.mxu0 %v6270_v12 }
  0xed   : > { %2229 = vmatmul.bf16.gmra.mxu1 %v2111_v10  ;;  %v5539_v10 = vld [vmem:[%s5929_s27 + $0x38] sm:$0xff] }
  0xee   : > { %v1341_v23 = vrot.slane %v5539_v10, 1  ;;  %v964_v10 = vrot.slane %v6103_v63, 1 }
  0xef   : > { %1454 = vmatmul.bf16.gmra.mxu3 %v1338_v13  ;;  %v736_v25 = vpop.f32.mrf.mxu2  ;;  %v1773_v13 = vrot.slane %v1771_v62, 2  ;;  %v5540_v62 = vld [vmem:[%s5929_s27 + $0x40] sm:$0xff] }
  0xf0   : > { %v965_v36 = vsel %vm950_vm1, %v962_v21, %v964_v10 }
  0xf1   : > { %v693_v32 = vpop.f32.mrf.mxu0 }
  0xf2   : > { %v904_v26 = vpop.f32.mrf.mxu3  ;;  %v861_v28 = vpop.f32.mrf.mxu1 }
  0xf3   : > { %v6279_v27 = vadd.f32 %v904_v26, %v736_v25  ;;  %v6285_v38 = vadd.f32 %v861_v28, %v693_v32  ;;  %v1774_v25 = vor.u32 %v1773_v13, %v1770_v11  ;;  %v1343_v13 = vrot.slane %v5540_v62, 1 }
  0xf7   : > { %v738_v46 = vpop.f32.mrf.mxu2 }
  0xf9   : > { %v696_v56 = vpop.f32.mrf.mxu0 }
  0xfa   : > { %v906_v48 = vpop.f32.mrf.mxu3  ;;  %v864_v51 = vpop.f32.mrf.mxu1 }
  0xfb   : > { %v6288_v50 = vadd.f32 %v906_v48, %v738_v46  ;;  %v6299_v2 = vadd.f32 %v864_v51, %v696_v56  ;;  %v1342_v48 = vsel %vm950_vm1, %v1339_v44, %v1341_v23  ;;  %v6323_v51 = vsel %vm1713_vm3, %v1765_v45, %v1774_v25 }
  0xfc   : > { %1080 = vmatmul.bf16.gmra.mxu2 %v961_v54  ;;  %1974 = vmatmul.bf16.gmra.mxu0 %v6294_v59  ;;  %v6326_v54 = vld [vmem:[%s5929_s27 + $0x40] sm:$0xff] }
  0xfd   : > { %2234 = vmatmul.bf16.gmra.mxu1 %v2113_v55  ;;  %v1777_v61 = vshrl.u32 %v6326_v54, 16  ;;  %v1780_v55 = vshll.u32 %v6326_v54, 16  ;;  %v2116_v11 = vrot.slane %v6326_v54, 2  ;;  %v6355_v54 = vld [vmem:[%s5929_s27 + $0x48] sm:$0xff] }
  0xfe   : > { %v1786_v21 = vshrl.u32 %v6355_v54, 16 }
  0xff   : > { %1459 = vmatmul.bf16.gmra.mxu3 %v1340_v58  ;;  %v741_v41 = vpop.f32.mrf.mxu2  ;;  %v2117_v47 = vsel %vm2102_vm2, %v2114_v22, %v2116_v11  ;;  %v1789_v22 = vshll.u32 %v6355_v54, 16 }
 0x100   : > { %v1788_v30 = vrot.slane %v1786_v21, 1 }
 0x101   : > { %v698_v1 = vpop.f32.mrf.mxu0 }
 0x102   : > { %v909_v7 = vpop.f32.mrf.mxu3  ;;  %v866_v0 = vpop.f32.mrf.mxu1 }
 0x103   : > { %v6304_v9 = vadd.f32 %v909_v7, %v741_v41  ;;  %v6307_v18 = vadd.f32 %v866_v0, %v698_v1  ;;  %v1779_v41 = vrot.slane %v1777_v61, 1  ;;  %v1782_v7 = vrot.slane %v1780_v55, 2  ;;  %v5637_v1 = vld [vmem:[%s7310_s2 + $0x20] sm:$0xff] }
 0x104   : > { %3446 = vmatpush.bf16.msra.mxu1 %v5637_v1 }
 0x107   : > { %v743_v26 = vpop.f32.mrf.mxu2 }
 0x109   : > { %v701_v46 = vpop.f32.mrf.mxu0 }
 0x10a   : > { %v911_v28 = vpop.f32.mrf.mxu3  ;;  %v869_v32 = vpop.f32.mrf.mxu1 }
 0x10b   : > { %v6311_v31 = vadd.f32 %v911_v28, %v743_v26  ;;  %v6328_v39 = vadd.f32 %v869_v32, %v701_v46  ;;  %v1783_v26 = vor.u32 %v1782_v7, %v1779_v41  ;;  %v966_v41 = vrot.slane %v6121_v15, 1  ;;  %v6378_v15 = vld [vmem:[%s5929_s27 + $0x50] sm:$0xff] }
 0x10c   : > { %1085 = vmatmul.bf16.gmra.mxu2 %v963_v33  ;;  %1979 = vmatmul.bf16.gmra.mxu0 %v6323_v51  ;;  %v2118_v7 = vrot.slane %v6355_v54, 2 }
 0x10d   : > { %2239 = vmatmul.bf16.gmra.mxu1 %v2115_v34  ;;  %v6352_v63 = vsel %vm1713_vm3, %v1774_v25, %v1783_v26 }
 0x10e   : > { %7331 = vst [vmem:[#allocation7_spill] sm:$0xff] %v6352_v63 }
 0x10f   : > { %1464 = vmatmul.bf16.gmra.mxu3 %v1342_v48  ;;  %v746_v44 = vpop.f32.mrf.mxu2  ;;  %v1344_v48 = vsel %vm950_vm1, %v1341_v23, %v1343_v13 }
 0x111   : > { %v703_v60 = vpop.f32.mrf.mxu0 }
 0x112   : > { %v914_v56 = vpop.f32.mrf.mxu3  ;;  %v871_v58 = vpop.f32.mrf.mxu1 }
 0x113   : > { %v6333_v45 = vadd.f32 %v914_v56, %v746_v44  ;;  %v6339_v0 = vadd.f32 %v871_v58, %v703_v60  ;;  %v5541_v58 = vld [vmem:[%s5929_s27 + $0x48] sm:$0xff]  ;;  %v1791_v60 = vrot.slane %v1789_v22, 2 }
 0x114   : > { %v1345_v1 = vrot.slane %v5541_v58, 1 }
 0x115   : > { %7329 = vst [vmem:[#allocation5_spill] sm:$0xff] %v6333_v45 }
 0x116   : > { %v1346_v22 = vsel %vm950_vm1, %v1343_v13, %v1345_v1  ;;  %v1795_v13 = vshrl.u32 %v6378_v15, 16 }
 0x117   : > { %v748_v28 = vpop.f32.mrf.mxu2 }
 0x119   : > { %v706_v46 = vpop.f32.mrf.mxu0 }
 0x11a   : > { %v916_v32 = vpop.f32.mrf.mxu3  ;;  %v874_v34 = vpop.f32.mrf.mxu1 }
 0x11b   : > { %v6346_v33 = vadd.f32 %v916_v32, %v748_v28  ;;  %v6357_v61 = vadd.f32 %v874_v34, %v706_v46  ;;  %v1792_v28 = vor.u32 %v1791_v60, %v1788_v30  ;;  %v967_v46 = vsel %vm950_vm1, %v964_v10, %v966_v41  ;;  %v5612_v10 = vld [vmem:[%s7309_s1 + $0x198] sm:$0xff]  ;;  %v5542_v60 = vld [vmem:[%s5929_s27 + $0x50] sm:$0xff] }
 0x11c   : > { %1090 = vmatmul.bf16.gmra.mxu2 %v965_v36  ;;  %1984 = vmatmul.bf16.gmra.mxu0 %v6352_v63 }
 0x11d   : > { %7330 = vst [vmem:[#allocation6_spill] sm:$0xff] %v6346_v33  ;;  %2244 = vmatmul.bf16.gmra.mxu1 %v2117_v47  ;;  %2595 = vmatpush.bf16.msra.mxu2 %v5612_v10  ;;  %v1347_v10 = vrot.slane %v5542_v60, 1  ;;  %v5636_v60 = vld [vmem:[%s7310_s2 + $0x18] sm:$0xff] }
 0x11e   : > { %3447 = vmatpush.bf16.msra.mxu1 %v5636_v60 }
 0x11f   : > { %1469 = vmatmul.bf16.gmra.mxu3 %v1344_v48  ;;  %v751_v55 = vpop.f32.mrf.mxu2  ;;  %v2119_v48 = vsel %vm2102_vm2, %v2116_v11, %v2118_v7  ;;  %v5620_v11 = vld [vmem:[%s7309_s1 + $0x1d8] sm:$0xff] }
 0x120   : > { %2988 = vmatpush.bf16.msra.mxu3 %v5620_v11 }
 0x121   : > { %v708_v25 = vpop.f32.mrf.mxu0 }
 0x122   : > { %v919_v44 = vpop.f32.mrf.mxu3  ;;  %v876_v23 = vpop.f32.mrf.mxu1 }
 0x123   : > { %v6362_v56 = vadd.f32 %v919_v44, %v751_v55  ;;  %v6365_v62 = vadd.f32 %v876_v23, %v708_v25  ;;  %v6375_v55 = vsel %vm1713_vm3, %v1783_v26, %v1792_v28  ;;  %v1798_v26 = vshll.u32 %v6378_v15, 16 }
 0x124   : > { %7334 = vst [vmem:[#allocation10_spill] sm:$0xff] %v6375_v55 }
 0x125   : > { %7332 = vst [vmem:[#allocation8_spill] sm:$0xff] %v6362_v56 }
 0x127   : > { %v753_v32 = vpop.f32.mrf.mxu2 }
 0x129   : > { %v711_v21 = vpop.f32.mrf.mxu0 }
 0x12a   : > { %v921_v34 = vpop.f32.mrf.mxu3  ;;  %v879_v47 = vpop.f32.mrf.mxu1 }
 0x12b   : > { %v6369_v36 = vadd.f32 %v921_v34, %v753_v32  ;;  %v6380_v54 = vadd.f32 %v879_v47, %v711_v21  ;;  %v1797_v32 = vrot.slane %v1795_v13, 1  ;;  %v1800_v34 = vrot.slane %v1798_v26, 2 }
 0x12c   : > { %1095 = vmatmul.bf16.gmra.mxu2 %v967_v46  ;;  %1989 = vmatmul.bf16.gmra.mxu0 %v6375_v55  ;;  %v5628_v46 = vld [vmem:[%s7309_s1 + $0x218] sm:$0xff]  ;;  %v1348_v55 = vsel %vm950_vm1, %v1345_v1, %v1347_v10 }
 0x12d   : > { %7333 = vst [vmem:[#allocation9_spill] sm:$0xff] %v6369_v36  ;;  %2249 = vmatmul.bf16.gmra.mxu1 %v2119_v48  ;;  %v5792_v48 = vld [vmem:[%s5929_s27 + $0x48] sm:$0xff]  ;;  %v1801_v11 = vor.u32 %v1800_v34, %v1797_v32  ;;  %3248 = vmatpush.bf16.msra.mxu0 %v5628_v46 }
 0x12e   : > { %v968_v21 = vrot.slane %v5792_v48, 1 }
 0x12f   : > { %1474 = vmatmul.bf16.gmra.mxu3 %v1346_v22  ;;  %v756_v44 = vpop.f32.mrf.mxu2  ;;  %v2120_v22 = vrot.slane %v6378_v15, 2  ;;  %v6407_v36 = vsel %vm1713_vm3, %v1792_v28, %v1801_v11  ;;  %v6410_v15 = vld [vmem:[%s5929_s27 + $0x58] sm:$0xff] }
 0x130   : > { %v969_v26 = vsel %vm950_vm1, %v966_v41, %v968_v21  ;;  %7337 = vst [vmem:[#allocation13_spill] sm:$0xff] %v6407_v36  ;;  %v1804_v41 = vshrl.u32 %v6410_v15, 16 }
 0x131   : > { %v713_v30 = vpop.f32.mrf.mxu0 }
 0x132   : > { %v924_v23 = vpop.f32.mrf.mxu3  ;;  %v881_v58 = vpop.f32.mrf.mxu1 }
 0x133   : > { %v6391_v25 = vadd.f32 %v924_v23, %v756_v44  ;;  %v6394_v47 = vadd.f32 %v881_v58, %v713_v30  ;;  %v2121_v58 = vsel %vm2102_vm2, %v2118_v7, %v2120_v22  ;;  %v1807_v7 = vshll.u32 %v6410_v15, 16 }
 0x135   : > { %7335 = vst [vmem:[#allocation11_spill] sm:$0xff] %v6391_v25 }
 0x137   : > { %v758_v44 = vpop.f32.mrf.mxu2 }
 0x139   : > { %v1955_v30 = vpop.f32.mrf.mxu0 }
 0x13a   : > { %v926_v23 = vpop.f32.mrf.mxu3  ;;  %v2215_v13 = vpop.f32.mrf.mxu1 }
 0x13b   : > { %v6401_v25 = vadd.f32 %v926_v23, %v758_v44  ;;  %v5543_v44 = vld [vmem:[%s5929_s27 + $0x58] sm:$0xff]  ;;  %v1806_v23 = vrot.slane %v1804_v41, 1 }
 0x13c   : > { %1100 = vmatmul.bf16.gmra.mxu2 %v969_v26  ;;  %1994 = vmatmul.bf16.gmra.mxu0 %v6407_v36  ;;  %v1809_v26 = vrot.slane %v1807_v7, 2  ;;  %v2122_v36 = vrot.slane %v6410_v15, 2  ;;  %v1349_v56 = vrot.slane %v5543_v44, 1  ;;  %v6432_v15 = vld [vmem:[%s5929_s27 + $0x60] sm:$0xff] }
 0x13d   : > { %7336 = vst [vmem:[#allocation12_spill] sm:$0xff] %v6401_v25  ;;  %2254 = vmatmul.bf16.gmra.mxu1 %v2121_v58  ;;  %v5793_v25 = vld [vmem:[%s5929_s27 + $0x50] sm:$0xff] }
 0x13e   : > { %v1810_v63 = vor.u32 %v1809_v26, %v1806_v23  ;;  %v2123_v41 = vsel %vm2102_vm2, %v2120_v22, %v2122_v36 }
 0x13f   : > { %1479 = vmatmul.bf16.gmra.mxu3 %v1348_v55  ;;  %v1061_v1 = vpop.f32.mrf.mxu2  ;;  %v970_v55 = vrot.slane %v5793_v25, 1 }
 0x140   : > { %v1151_v28 = vadd.f32 %v1061_v1, %v6158_v53  ;;  %v6429_v25 = vsel %vm1713_vm3, %v1801_v11, %v1810_v63 }
 0x141   : > { %v1957_v48 = vpop.f32.mrf.mxu0 }
 0x142   : > { %v1440_v32 = vpop.f32.mrf.mxu3  ;;  %v2217_v34 = vpop.f32.mrf.mxu1 }
 0x143   : > { %v1530_v46 = vadd.f32 %v1440_v32, %v1151_v28  ;;  %v971_v28 = vsel %vm950_vm1, %v968_v21, %v970_v55  ;;  %v1350_v32 = vsel %vm950_vm1, %v1347_v10, %v1349_v56  ;;  %v1816_v21 = vshll.u32 %v6432_v15, 16 }
 0x145   : > { %v2045_v58 = vadd.f32 %v1955_v30, %v1530_v46 }
 0x147   : > { %v6422_v33 = vadd.f32 %v2215_v13, %v2045_v58  ;;  %v1063_v60 = vpop.f32.mrf.mxu2 }
 0x148   : > { %v1152_v53 = vadd.f32 %v1063_v60, %v6172_v16  ;;  %v1813_v16 = vshrl.u32 %v6432_v15, 16  ;;  %v1818_v60 = vrot.slane %v1816_v21, 2 }
 0x149   : > { %v1960_v30 = vpop.f32.mrf.mxu0 }
 0x14a   : > { %v1442_v1 = vpop.f32.mrf.mxu3  ;;  %v2220_v45 = vpop.f32.mrf.mxu1  ;;  %v1815_v58 = vrot.slane %v1813_v16, 1 }
 0x14b   : > { %v1531_v7 = vadd.f32 %v1442_v1, %v1152_v53  ;;  %v5611_v1 = vld [vmem:[%s7309_s1 + $0x190] sm:$0xff] }
 0x14c   : > { %1105 = vmatmul.bf16.gmra.mxu2 %v971_v28  ;;  %1999 = vmatmul.bf16.gmra.mxu0 %v6429_v25  ;;  %v5794_v28 = vld [vmem:[%s5929_s27 + $0x58] sm:$0xff] }
 0x14d   : > { %v2046_v13 = vadd.f32 %v1957_v48, %v1531_v7  ;;  %2259 = vmatmul.bf16.gmra.mxu1 %v2123_v41  ;;  %v6441_v48 = vld [vmem:[%s5929_s27 + $0x60] sm:$0xff]  ;;  %v972_v41 = vrot.slane %v5794_v28, 1  ;;  %2596 = vmatpush.bf16.msra.mxu2 %v5611_v1 }
 0x14e   : > { %v1351_v7 = vrot.slane %v6441_v48, 1 }
 0x14f   : > { %1484 = vmatmul.bf16.gmra.mxu3 %v1350_v32  ;;  %v6437_v22 = vadd.f32 %v2217_v34, %v2046_v13  ;;  %v1066_v10 = vpop.f32.mrf.mxu2  ;;  %v5619_v34 = vld [vmem:[%s7309_s1 + $0x1d0] sm:$0xff]  ;;  %v1819_v32 = vor.u32 %v1818_v60, %v1815_v58  ;;  %v6462_v58 = vld [vmem:[%s5929_s27 + $0x68] sm:$0xff] }
 0x150   : > { %v1153_v11 = vadd.f32 %v1066_v10, %v6188_v37  ;;  %v2124_v37 = vrot.slane %v6432_v15, 2  ;;  %2989 = vmatpush.bf16.msra.mxu3 %v5619_v34  ;;  %v1352_v15 = vsel %vm950_vm1, %v1349_v56, %v1351_v7  ;;  %v5635_v56 = vld [vmem:[%s7310_s2 + $0x10] sm:$0xff] }
 0x151   : > { %v1962_v26 = vpop.f32.mrf.mxu0  ;;  %v6459_v48 = vsel %vm1713_vm3, %v1810_v63, %v1819_v32  ;;  %v1822_v63 = vshrl.u32 %v6462_v58, 16  ;;  %3448 = vmatpush.bf16.msra.mxu1 %v5635_v56 }
 0x152   : > { %v1445_v46 = vpop.f32.mrf.mxu3  ;;  %v2222_v44 = vpop.f32.mrf.mxu1  ;;  %7338 = vst [vmem:[#allocation14_spill] sm:$0xff] %v6459_v48 }
 0x153   : > { %v1532_v23 = vadd.f32 %v1445_v46, %v1153_v11  ;;  %v973_v11 = vsel %vm950_vm1, %v970_v55, %v972_v41  ;;  %v2125_v46 = vsel %vm2102_vm2, %v2122_v36, %v2124_v37  ;;  %v1825_v36 = vshll.u32 %v6462_v58, 16 }
 0x155   : > { %v2047_v53 = vadd.f32 %v1960_v30, %v1532_v23 }
 0x157   : > { %v6452_v13 = vadd.f32 %v2220_v45, %v2047_v53  ;;  %v1068_v30 = vpop.f32.mrf.mxu2 }
 0x158   : > { %v1154_v16 = vadd.f32 %v1068_v30, %v6202_v52  ;;  %v5627_v52 = vld [vmem:[%s7309_s1 + $0x210] sm:$0xff] }
 0x159   : > { %v1965_v28 = vpop.f32.mrf.mxu0  ;;  %3249 = vmatpush.bf16.msra.mxu0 %v5627_v52 }
 0x15a   : > { %v1447_v21 = vpop.f32.mrf.mxu3  ;;  %v2225_v10 = vpop.f32.mrf.mxu1 }
 0x15b   : > { %v1533_v23 = vadd.f32 %v1447_v21, %v1154_v16  ;;  %v5545_v16 = vld [vmem:[%s5929_s27 + $0x68] sm:$0xff]  ;;  %v1824_v21 = vrot.slane %v1822_v63, 1 }
 0x15c   : > { %1110 = vmatmul.bf16.gmra.mxu2 %v973_v11  ;;  %2004 = vmatmul.bf16.gmra.mxu0 %v6459_v48  ;;  %v1827_v11 = vrot.slane %v1825_v36, 2  ;;  %v2126_v48 = vrot.slane %v6462_v58, 2  ;;  %v1353_v52 = vrot.slane %v5545_v16, 1  ;;  %v6489_v58 = vld [vmem:[%s5929_s27 + $0x70] sm:$0xff] }
 0x15d   : > { %v2048_v45 = vadd.f32 %v1962_v26, %v1533_v23  ;;  %2264 = vmatmul.bf16.gmra.mxu1 %v2125_v46  ;;  %v5795_v23 = vld [vmem:[%s5929_s27 + $0x60] sm:$0xff] }
 0x15e   : > { %v2127_v63 = vsel %vm2102_vm2, %v2124_v37, %v2126_v48 }
 0x15f   : > { %1489 = vmatmul.bf16.gmra.mxu3 %v1352_v15  ;;  %v6473_v55 = vadd.f32 %v2222_v44, %v2048_v45  ;;  %v1071_v26 = vpop.f32.mrf.mxu2  ;;  %v974_v15 = vrot.slane %v5795_v23, 1  ;;  %v1828_v44 = vor.u32 %v1827_v11, %v1824_v21 }
 0x160   : > { %v1155_v60 = vadd.f32 %v1071_v26, %v6220_v6 }
 0x161   : > { %7339 = vst [vmem:[#allocation15_spill] sm:$0xff] %v6473_v55  ;;  %v1967_v30 = vpop.f32.mrf.mxu0 }
 0x162   : > { %v1450_v53 = vpop.f32.mrf.mxu3  ;;  %v2227_v1 = vpop.f32.mrf.mxu1 }
 0x163   : > { %v1534_v34 = vadd.f32 %v1450_v53, %v1155_v60  ;;  %v975_v60 = vsel %vm950_vm1, %v972_v41, %v974_v15  ;;  %v1354_v53 = vsel %vm950_vm1, %v1351_v7, %v1353_v52  ;;  %v1834_v41 = vshll.u32 %v6489_v58, 16 }
 0x165   : > { %v2049_v46 = vadd.f32 %v1965_v28, %v1534_v34  ;;  %v6486_v34 = vsel %vm1713_vm3, %v1819_v32, %v1828_v44 }
 0x167   : > { %v6479_v45 = vadd.f32 %v2225_v10, %v2049_v46  ;;  %v1073_v56 = vpop.f32.mrf.mxu2 }
 0x168   : > { %v1156_v6 = vadd.f32 %v1073_v56, %v6231_v24  ;;  %v1831_v24 = vshrl.u32 %v6489_v58, 16  ;;  %v1836_v56 = vrot.slane %v1834_v41, 2 }
 0x169   : > { %v1970_v28 = vpop.f32.mrf.mxu0 }
 0x16a   : > { %v1452_v26 = vpop.f32.mrf.mxu3  ;;  %v2230_v55 = vpop.f32.mrf.mxu1  ;;  %v1833_v23 = vrot.slane %v1831_v24, 1 }
 0x16b   : > { %v1535_v36 = vadd.f32 %v1452_v26, %v1156_v6  ;;  %v5610_v26 = vld [vmem:[%s7309_s1 + $0x188] sm:$0xff] }
 0x16c   : > { %1115 = vmatmul.bf16.gmra.mxu2 %v975_v60  ;;  %2009 = vmatmul.bf16.gmra.mxu0 %v6486_v34  ;;  %v5796_v60 = vld [vmem:[%s5929_s27 + $0x68] sm:$0xff] }
 0x16d   : > { %v2050_v10 = vadd.f32 %v1967_v30, %v1535_v36  ;;  %2269 = vmatmul.bf16.gmra.mxu1 %v2127_v63  ;;  %v6498_v30 = vld [vmem:[%s5929_s27 + $0x70] sm:$0xff]  ;;  %v976_v63 = vrot.slane %v5796_v60, 1  ;;  %2597 = vmatpush.bf16.msra.mxu2 %v5610_v26 }
 0x16e   : > { %v1355_v36 = vrot.slane %v6498_v30, 1 }
 0x16f   : > { %1494 = vmatmul.bf16.gmra.mxu3 %v1354_v53  ;;  %v6494_v37 = vadd.f32 %v2227_v1, %v2050_v10  ;;  %v1076_v7 = vpop.f32.mrf.mxu2  ;;  %v5618_v1 = vld [vmem:[%s7309_s1 + $0x1c8] sm:$0xff]  ;;  %v1837_v53 = vor.u32 %v1836_v56, %v1833_v23  ;;  %v6519_v23 = vld [vmem:[%s5929_s27 + $0x78] sm:$0xff] }
 0x170   : > { %v1157_v32 = vadd.f32 %v1076_v7, %v6246_v42  ;;  %v2128_v42 = vrot.slane %v6489_v58, 2  ;;  %2990 = vmatpush.bf16.msra.mxu3 %v5618_v1  ;;  %v1356_v58 = vsel %vm950_vm1, %v1353_v52, %v1355_v36 }
 0x171   : > { %v1972_v46 = vpop.f32.mrf.mxu0  ;;  %v6516_v30 = vsel %vm1713_vm3, %v1828_v44, %v1837_v53 }
 0x172   : > { %v1455_v16 = vpop.f32.mrf.mxu3  ;;  %v2232_v21 = vpop.f32.mrf.mxu1  ;;  %7340 = vst [vmem:[#allocation16_spill] sm:$0xff] %v6516_v30 }
 0x173   : > { %v1536_v11 = vadd.f32 %v1455_v16, %v1157_v32  ;;  %v977_v32 = vsel %vm950_vm1, %v974_v15, %v976_v63  ;;  %v2129_v16 = vsel %vm2102_vm2, %v2126_v48, %v2128_v42  ;;  %v1840_v48 = vshrl.u32 %v6519_v23, 16 }
 0x174   : > { %v1843_v15 = vshll.u32 %v6519_v23, 16 }
 0x175   : > { %v2051_v6 = vadd.f32 %v1970_v28, %v1536_v11 }
 0x177   : > { %v6509_v10 = vadd.f32 %v2230_v55, %v2051_v6  ;;  %v1078_v28 = vpop.f32.mrf.mxu2 }
 0x178   : > { %v1158_v24 = vadd.f32 %v1078_v28, %v6254_v57  ;;  %v5626_v57 = vld [vmem:[%s7309_s1 + $0x208] sm:$0xff]  ;;  %v5547_v28 = vld [vmem:[%s5929_s27 + $0x78] sm:$0xff] }
 0x179   : > { %v1975_v60 = vpop.f32.mrf.mxu0  ;;  %3250 = vmatpush.bf16.msra.mxu0 %v5626_v57 }
 0x17a   : > { %v1457_v41 = vpop.f32.mrf.mxu3  ;;  %v2235_v7 = vpop.f32.mrf.mxu1 }
 0x17b   : > { %v1537_v11 = vadd.f32 %v1457_v41, %v1158_v24  ;;  %v1842_v24 = vrot.slane %v1840_v48, 1  ;;  %v1845_v41 = vrot.slane %v1843_v15, 2 }
 0x17c   : > { %1120 = vmatmul.bf16.gmra.mxu2 %v977_v32  ;;  %2014 = vmatmul.bf16.gmra.mxu0 %v6516_v30 }
 0x17d   : > { %v2052_v55 = vadd.f32 %v1972_v46, %v1537_v11  ;;  %2274 = vmatmul.bf16.gmra.mxu1 %v2129_v16  ;;  %v5634_v16 = vld [vmem:[%s7310_s2 + $0x8] sm:$0xff]  ;;  %v5797_v11 = vld [vmem:[%s5929_s27 + $0x70] sm:$0xff]  ;;  %v1846_v57 = vor.u32 %v1845_v41, %v1842_v24 }
 0x17e   : > { %3449 = vmatpush.bf16.msra.mxu1 %v5634_v16 }
 0x17f   : > { %1499 = vmatmul.bf16.gmra.mxu3 %v1356_v58  ;;  %v6527_v52 = vadd.f32 %v2232_v21, %v2052_v55  ;;  %v1081_v44 = vpop.f32.mrf.mxu2  ;;  %v978_v58 = vrot.slane %v5797_v11, 1  ;;  %v2130_v21 = vrot.slane %v6519_v23, 2  ;;  %v1357_v55 = vrot.slane %v5547_v28, 1  ;;  %v6546_v28 = vld [vmem:[%s5929_s27 + $0x80] sm:$0xff] }
 0x180   : > { %v1159_v46 = vadd.f32 %v1081_v44, %v6273_v19  ;;  %v6543_v23 = vsel %vm1713_vm3, %v1837_v53, %v1846_v57 }
 0x181   : > { %v1977_v1 = vpop.f32.mrf.mxu0  ;;  %v1358_v11 = vsel %vm950_vm1, %v1355_v36, %v1357_v55  ;;  %7341 = vst [vmem:[#allocation17_spill] sm:$0xff] %v6543_v23 }
 0x182   : > { %v1460_v56 = vpop.f32.mrf.mxu3  ;;  %v2237_v6 = vpop.f32.mrf.mxu1 }
 0x183   : > { %v1538_v26 = vadd.f32 %v1460_v56, %v1159_v46  ;;  %v2131_v56 = vsel %vm2102_vm2, %v2128_v42, %v2130_v21 }
 0x185   : > { %v2053_v32 = vadd.f32 %v1975_v60, %v1538_v26  ;;  %v979_v60 = vsel %vm950_vm1, %v976_v63, %v978_v58  ;;  %v1852_v63 = vshll.u32 %v6546_v28, 16 }
 0x187   : > { %v6536_v19 = vadd.f32 %v2235_v7, %v2053_v32  ;;  %v1083_v44 = vpop.f32.mrf.mxu2 }
 0x188   : > { %v1160_v46 = vadd.f32 %v1083_v44, %v6285_v38  ;;  %v1849_v38 = vshrl.u32 %v6546_v28, 16 }
 0x189   : > { %v1980_v30 = vpop.f32.mrf.mxu0 }
 0x18a   : > { %v1462_v48 = vpop.f32.mrf.mxu3  ;;  %v2240_v15 = vpop.f32.mrf.mxu1  ;;  %v1851_v44 = vrot.slane %v1849_v38, 1 }
 0x18b   : > { %v1539_v26 = vadd.f32 %v1462_v48, %v1160_v46  ;;  %v1854_v46 = vrot.slane %v1852_v63, 2 }
 0x18c   : > { %1125 = vmatmul.bf16.gmra.mxu2 %v979_v60  ;;  %2019 = vmatmul.bf16.gmra.mxu0 %v6543_v23  ;;  %v5798_v60 = vld [vmem:[%s5929_s27 + $0x78] sm:$0xff] }
 0x18d   : > { %v2054_v7 = vadd.f32 %v1977_v1, %v1539_v26  ;;  %2279 = vmatmul.bf16.gmra.mxu1 %v2131_v56  ;;  %v6555_v1 = vld [vmem:[%s5929_s27 + $0x80] sm:$0xff]  ;;  %v980_v56 = vrot.slane %v5798_v60, 1  ;;  %v2132_v26 = vrot.slane %v6546_v28, 2 }
 0x18f   : > { %1504 = vmatmul.bf16.gmra.mxu3 %v1358_v11  ;;  %v6551_v42 = vadd.f32 %v2237_v6, %v2054_v7  ;;  %v1086_v36 = vpop.f32.mrf.mxu2  ;;  %v1359_v6 = vrot.slane %v6555_v1, 1  ;;  %v1855_v11 = vor.u32 %v1854_v46, %v1851_v44  ;;  %v981_v23 = vsel %vm950_vm1, %v978_v58, %v980_v56  ;;  %v6570_v1 = vld [vmem:[%s5929_s27 + $0x88] sm:$0xff]  ;;  %v5617_v58 = vld [vmem:[%s7309_s1 + $0x1c0] sm:$0xff] }
 0x190   : > { %v1161_v53 = vadd.f32 %v1086_v36, %v6299_v2  ;;  %v2133_v38 = vsel %vm2102_vm2, %v2130_v21, %v2132_v26  ;;  %v1858_v21 = vshrl.u32 %v6570_v1, 16  ;;  %2991 = vmatpush.bf16.msra.mxu3 %v5617_v58 }
 0x191   : > { %v1982_v16 = vpop.f32.mrf.mxu0  ;;  %v6567_v28 = vsel %vm1713_vm3, %v1846_v57, %v1855_v11 }
 0x192   : > { %v1465_v24 = vpop.f32.mrf.mxu3  ;;  %v2242_v41 = vpop.f32.mrf.mxu1  ;;  %7342 = vst [vmem:[#allocation18_spill] sm:$0xff] %v6567_v28 }
 0x193   : > { %v1540_v32 = vadd.f32 %v1465_v24, %v1161_v53 }
 0x195   : > { %v2055_v48 = vadd.f32 %v1980_v30, %v1540_v32  ;;  %v1360_v32 = vsel %vm950_vm1, %v1357_v55, %v1359_v6  ;;  %v1861_v55 = vshll.u32 %v6570_v1, 16 }
 0x197   : > { %v6560_v7 = vadd.f32 %v2240_v15, %v2055_v48  ;;  %v1088_v2 = vpop.f32.mrf.mxu2 }
 0x198   : > { %v1162_v36 = vadd.f32 %v1088_v2, %v6307_v18  ;;  %v5609_v18 = vld [vmem:[%s7309_s1 + $0x180] sm:$0xff]  ;;  %v5549_v2 = vld [vmem:[%s5929_s27 + $0x88] sm:$0xff] }
 0x199   : > { %v1985_v63 = vpop.f32.mrf.mxu0  ;;  %2598 = vmatpush.bf16.msra.mxu2 %v5609_v18  ;;  %v1361_v18 = vrot.slane %v5549_v2, 1 }
 0x19a   : > { %v1467_v53 = vpop.f32.mrf.mxu3  ;;  %v2245_v24 = vpop.f32.mrf.mxu1 }
 0x19b   : > { %v1541_v30 = vadd.f32 %v1467_v53, %v1162_v36  ;;  %v1860_v36 = vrot.slane %v1858_v21, 1  ;;  %v1863_v53 = vrot.slane %v1861_v55, 2 }
 0x19c   : > { %1130 = vmatmul.bf16.gmra.mxu2 %v981_v23  ;;  %2024 = vmatmul.bf16.gmra.mxu0 %v6567_v28 }
 0x19d   : > { %v2056_v15 = vadd.f32 %v1982_v16, %v1541_v30  ;;  %2284 = vmatmul.bf16.gmra.mxu1 %v2133_v38  ;;  %v5625_v30 = vld [vmem:[%s7309_s1 + $0x200] sm:$0xff]  ;;  %v1864_v58 = vor.u32 %v1863_v53, %v1860_v36  ;;  %v6603_v36 = vld [vmem:[%s5929_s27 + $0x90] sm:$0xff] }
 0x19e   : > { %3251 = vmatpush.bf16.msra.mxu0 %v5625_v30 }
 0x19f   : > { %1509 = vmatmul.bf16.gmra.mxu3 %v1360_v32  ;;  %v6581_v57 = vadd.f32 %v2242_v41, %v2056_v15  ;;  %v1091_v23 = vpop.f32.mrf.mxu2  ;;  %v5633_v41 = vld [vmem:[%s7310_s2] sm:$0xff]  ;;  %v6600_v2 = vsel %vm1713_vm3, %v1855_v11, %v1864_v58 }
 0x1a0   : > { %v1163_v16 = vadd.f32 %v1091_v23, %v6328_v39  ;;  %v5799_v32 = vld [vmem:[%s5929_s27 + $0x80] sm:$0xff]  ;;  %v2134_v39 = vrot.slane %v6570_v1, 2  ;;  %3450 = vmatpush.bf16.msra.mxu1 %v5633_v41  ;;  %v1362_v1 = vsel %vm950_vm1, %v1359_v6, %v1361_v18  ;;  %7343 = vst [vmem:[#allocation19_spill] sm:$0xff] %v6600_v2 }
 0x1a1   : > { %v1987_v60 = vpop.f32.mrf.mxu0  ;;  %v982_v15 = vrot.slane %v5799_v32, 1 }
 0x1a2   : > { %v1470_v44 = vpop.f32.mrf.mxu3  ;;  %v2247_v46 = vpop.f32.mrf.mxu1 }
 0x1a3   : > { %v1542_v48 = vadd.f32 %v1470_v44, %v1163_v16  ;;  %v983_v44 = vsel %vm950_vm1, %v980_v56, %v982_v15  ;;  %v1870_v56 = vshll.u32 %v6603_v36, 16 }
 0x1a5   : > { %v2057_v38 = vadd.f32 %v1985_v63, %v1542_v48  ;;  %v2135_v48 = vsel %vm2102_vm2, %v2132_v26, %v2134_v39 }
 0x1a7   : > { %v6593_v21 = vadd.f32 %v2245_v24, %v2057_v38  ;;  %v1093_v63 = vpop.f32.mrf.mxu2 }
 0x1a8   : > { %v1164_v55 = vadd.f32 %v1093_v63, %v6339_v0  ;;  %v1867_v0 = vshrl.u32 %v6603_v36, 16  ;;  %v1872_v63 = vrot.slane %v1870_v56, 2 }
 0x1a9   : > { %v1990_v32 = vpop.f32.mrf.mxu0 }
 0x1aa   : > { %v1472_v23 = vpop.f32.mrf.mxu3  ;;  %v2250_v16 = vpop.f32.mrf.mxu1 }
 0x1ab   : > { %v1543_v28 = vadd.f32 %v1472_v23, %v1164_v55  ;;  %v984_v23 = vrot.slane %v6108_v8, 1 }
 0x1ac   : > { %1135 = vmatmul.bf16.gmra.mxu2 %v983_v44  ;;  %2029 = vmatmul.bf16.gmra.mxu0 %v6600_v2  ;;  %v2136_v44 = vrot.slane %v6603_v36, 2 }
 0x1ad   : > { %v2058_v24 = vadd.f32 %v1987_v60, %v1543_v28  ;;  %2289 = vmatmul.bf16.gmra.mxu1 %v2135_v48  ;;  %v5550_v28 = vld [vmem:[%s5929_s27 + $0x90] sm:$0xff]  ;;  %v1869_v60 = vrot.slane %v1867_v0, 1 }
 0x1ae   : > { %v1363_v48 = vrot.slane %v5550_v28, 1  ;;  %v2137_v0 = vsel %vm2102_vm2, %v2134_v39, %v2136_v44 }
 0x1af   : > { %1514 = vmatmul.bf16.gmra.mxu3 %v1362_v1  ;;  %v6608_v26 = vadd.f32 %v2247_v46, %v2058_v24  ;;  %v1096_v6 = vpop.f32.mrf.mxu2  ;;  %v1873_v1 = vor.u32 %v1872_v63, %v1869_v60  ;;  %v1602_v24 = vld [vmem:[%s5929_s27 + $0x98] sm:$0x1] }
 0x1b0   : > { %v1165_v11 = vadd.f32 %v1096_v6, %v6357_v61  ;;  %v1364_v8 = vsel %vm950_vm1, %v1361_v18, %v1363_v48 }
 0x1b1   : > { %7344 = vst [vmem:[#allocation20_spill] sm:$0xff] %v6608_v26  ;;  %v1992_v41 = vpop.f32.mrf.mxu0  ;;  %v6622_v36 = vsel %vm1713_vm3, %v1864_v58, %v1873_v1 }
 0x1b2   : > { %v1475_v53 = vpop.f32.mrf.mxu3  ;;  %v2252_v38 = vpop.f32.mrf.mxu1  ;;  %7345 = vst [vmem:[#allocation21_spill] sm:$0xff] %v6622_v36 }
 0x1b3   : > { %v1544_v30 = vadd.f32 %v1475_v53, %v1165_v11  ;;  %v985_v11 = vsel %vm950_vm1, %v982_v15, %v984_v23  ;;  %v1693_v53 = vunpack.c.l.b16 %v1602_v24 }
 0x1b5   : > { %v2059_v55 = vadd.f32 %v1990_v32, %v1544_v30 }
 0x1b7   : > { %v1098_v46 = vpop.f32.mrf.mxu2  ;;  %v6615_v2 = vadd.f32 %v2250_v16, %v2059_v55  ;;  %v2341_v55 = vld [vmem:[%s5929_s27 + $0x10] sm:$0xc] }
 0x1b8   : > { %v1166_v61 = vadd.f32 %v1098_v46, %v6365_v62  ;;  %v1712_v62 = vpack.c.b16 %v1693_v53, %v1693_v53  ;;  %v2342_v46 = vld [vmem:[%s5929_s27 + $0x14] sm:$0xf] }
 0x1b9   : > { %v1995_v32 = vpop.f32.mrf.mxu0 }
 0x1ba   : > { %v1477_v6 = vpop.f32.mrf.mxu3  ;;  %v2255_v26 = vpop.f32.mrf.mxu1  ;;  %v1876_v63 = vshll.u32 %v1712_v62, 16  ;;  %v2138_v24 = vrot.slane %v1712_v62, 2  ;;  %v3119_v62 = vld [vmem:[%s5929_s27 + $0x10] sm:$0x8] }
 0x1bb   : > { %v1545_v56 = vadd.f32 %v1477_v6, %v1166_v61  ;;  %v2432_v61 = vunpack.c.l.b16 %v2341_v55  ;;  %v2433_v6 = vunpack.c.l.b16 %v2342_v46  ;;  %v3138_v46 = vunpack.c.l.b16 %v3119_v62 }
 0x1bc   : > { %1140 = vmatmul.bf16.gmra.mxu2 %v985_v11  ;;  %2034 = vmatmul.bf16.gmra.mxu0 %v6622_v36  ;;  %v1878_v11 = vrot.slane %v1876_v63, 2  ;;  %v2139_v53 = vsel %vm2102_vm2, %v2136_v44, %v2138_v24  ;;  %v3544_v36 = vld [vmem:[#allocation2 + $0x10] sm:$0xff] }
 0x1bd   : > { %v2060_v16 = vadd.f32 %v1992_v41, %v1545_v56  ;;  %2294 = vmatmul.bf16.gmra.mxu1 %v2137_v0 }
 0x1bf   : > { %1519 = vmatmul.bf16.gmra.mxu3 %v1364_v8  ;;  %v6625_v15 = vadd.f32 %v2252_v38, %v2060_v16  ;;  %v1101_v39 = vpop.f32.mrf.mxu2  ;;  %v2469_v16 = vpack.c.b16 %v2433_v6, %v2432_v61 }
 0x1c0   : > { %v1167_v30 = vadd.f32 %v1101_v39, %v6380_v54 }
 0x1c1   : > { %v1997_v58 = vpop.f32.mrf.mxu0  ;;  %v2752_v44 = vshll.u32 %v2469_v16, 16  ;;  %v2488_v62 = vrot.slane %v2469_v16, 2 }
 0x1c2   : > { %v1480_v28 = vpop.f32.mrf.mxu3  ;;  %v2257_v18 = vpop.f32.mrf.mxu1 }
 0x1c3   : > { %v1546_v60 = vadd.f32 %v1480_v28, %v1167_v30  ;;  %v6635_v28 = vsel %vm1713_vm3, %v1873_v1, %v1878_v11 }
 0x1c4   : > { %7347 = vst [vmem:[#allocation23_spill] sm:$0xff] %v6635_v28 }
 0x1c5   : > { %v2061_v41 = vadd.f32 %v1995_v32, %v1546_v60  ;;  %v6638_v32 = vld [vmem:[%s5929_s27 + $0x18] sm:$0xff]  ;;  %v5850_v60 = vmov 0  }
 0x1c6   : > { %5789 = vset.pattern.permute.xlu0 %v5850_v60  ;;  %5790 = vset.pattern.permute.xlu1 %v5850_v60  ;;  %v2757_v55 = vshrl.u32 %v6638_v32, 16  ;;  %v2760_v1 = vshll.u32 %v6638_v32, 16 }
 0x1c7   : > { %v6630_v0 = vadd.f32 %v2255_v26, %v2061_v41  ;;  %v1103_v38 = vpop.f32.mrf.mxu2  ;;  %v3542_v26 = vld [vmem:[#allocation2] sm:$0xff]  ;;  %5791 = vset.pattern.permute.xlu2 %v5850_v60  ;;  %v2489_v60 = vrot.slane %v6638_v32, 2  ;;  %3590 = vperm.xlu1 %5790, %v3544_v36  }
 0x1c8   : > { %v1168_v56 = vadd.f32 %v1103_v38, %v6394_v47  ;;  %v2749_v47 = vshrl.u32 %v2469_v16, 16  ;;  %3580 = vperm.xlu0 %5789, %v3542_v26  }
 0x1c9   : > { %7346 = vst [vmem:[#allocation22_spill] sm:$0xff] %v6630_v0  ;;  %v2000_v30 = vpop.f32.mrf.mxu0  ;;  %v2490_v16 = vsel %vm2102_vm2, %v2488_v62, %v2489_v60 }
 0x1ca   : > { %v1482_v54 = vpop.f32.mrf.mxu3  ;;  %v2260_v8 = vpop.f32.mrf.mxu1  ;;  %v2751_v11 = vrot.slane %v2749_v47, 2 }
 0x1cb   : > { %v1547_v39 = vadd.f32 %v1482_v54, %v1168_v56  ;;  %v2759_v54 = vrot.slane %v2757_v55, 2 }
 0x1cc   : > { %1145 = vmatmul.bf16.gmra.mxu2 %v984_v23  ;;  %2039 = vmatmul.bf16.gmra.mxu0 %v6635_v28  ;;  %v3543_v28 = vld [vmem:[#allocation2 + $0x8] sm:$0xff] }
 0x1cd   : > { %v2062_v63 = vadd.f32 %v1997_v58, %v1547_v39  ;;  %2299 = vmatmul.bf16.gmra.mxu1 %v2139_v53  ;;  %v2762_v53 = vrot.slane %v2760_v1, 3  ;;  %v3139_v39 = vpack.c.b16 %v2433_v6, %v3138_v46 }
 0x1cf   : > { %1524 = vmatmul.bf16.gmra.mxu3 %v1363_v48  ;;  %v6644_v41 = vadd.f32 %v2257_v18, %v2062_v63  ;;  %v1106_v24 = vpop.f32.mrf.mxu2  ;;  %v2754_v48 = vrot.slane %v2752_v44, 3  ;;  %v2763_v26 = vor.u32 %v2762_v53, %v2759_v54  ;;  %v3142_v63 = vrot.slane %v6638_v32, 3 }
 0x1d0   : > { %v1169_v61 = vadd.f32 %v1106_v24, %v6167_v3  ;;  %v3141_v3 = vrot.slane %v3139_v39, 3  ;;  %3585 = vperm.xlu0 %5789, %v3543_v28  }
 0x1d1   : > { %v2002_v56 = vpop.f32.mrf.mxu0  ;;  %v2755_v18 = vor.u32 %v2754_v48, %v2751_v11 }
 0x1d2   : > { %v1485_v58 = vpop.f32.mrf.mxu3  ;;  %v2262_v23 = vpop.f32.mrf.mxu1  ;;  %v3143_v24 = vsel %vm3140_vm5, %v3141_v3, %v3142_v63 }
 0x1d3   : > { %v1548_v38 = vadd.f32 %v1485_v58, %v1169_v61  ;;  %v2764_v36 = vsel %vm2747_vm4, %v2755_v18, %v2763_v26  ;;  %v6656_v61 = vld [vmem:[%s5929_s27 + $0x20] sm:$0xff] }
 0x1d4   : > { %v2491_v62 = vrot.slane %v6656_v61, 2  ;;  %v3144_v3 = vrot.slane %v6656_v61, 3 }
 0x1d5   : > { %v2063_v0 = vadd.f32 %v2000_v30, %v1548_v38 }
 0x1d7   : > { %v6649_v47 = vadd.f32 %v2260_v8, %v2063_v0  ;;  %v1108_v44 = vpop.f32.mrf.mxu2  ;;  %v3545_v0 = vld [vmem:[#allocation2 + $0x18] sm:$0xff]  ;;  %v2769_v8 = vshll.u32 %v6656_v61, 16 }
 0x1d8   : > { %v1170_v6 = vadd.f32 %v1108_v44, %v6177_v29  ;;  %v2766_v29 = vshrl.u32 %v6656_v61, 16  ;;  %3595 = vperm.xlu1 %5790, %v3545_v0  }
 0x1d9   : > { %v2005_v46 = vpop.f32.mrf.mxu0 }
 0x1da   : > { %v1487_v30 = vpop.f32.mrf.mxu3  ;;  %v2265_v55 = vpop.f32.mrf.mxu1  ;;  %v2768_v53 = vrot.slane %v2766_v29, 2 }
 0x1db   : > { %v1549_v1 = vadd.f32 %v1487_v30, %v1170_v6 }
 0x1dc   : > { %2599 = vmatmul.bf16.vlgmr.msra.gmra.mxu2 %v2490_v16  ;;  %3252 = vmatmul.bf16.vlgmr.msra.gmra.mxu0 %v3143_v24  ;;  %v2492_v16 = vsel %vm2102_vm2, %v2489_v60, %v2491_v62 }
 0x1dd   : > { %v2064_v28 = vadd.f32 %v2002_v56, %v1549_v1  ;;  %3451 = vmatmul.bf16.vlgmr.msra.gmra.mxu1 %v6183_v35  ;;  %v2771_v35 = vrot.slane %v2769_v8, 3 }
 0x1df   : > { %2992 = vmatmul.bf16.vlgmr.msra.gmra.mxu3 %v2764_v36  ;;  %v6661_v32 = vadd.f32 %v2262_v23, %v2064_v28  ;;  %v1111_v58 = vpop.f32.mrf.mxu2  ;;  %v2772_v18 = vor.u32 %v2771_v35, %v2768_v53  ;;  %v6673_v28 = vld [vmem:[%s5929_s27 + $0x28] sm:$0xff] }
 0x1e0   : > { %v1171_v11 = vadd.f32 %v1111_v58, %v6193_v43  ;;  %v3146_v35 = vrot.slane %v6673_v28, 3 }
 0x1e1   : > { %v2007_v56 = vpop.f32.mrf.mxu0  ;;  %v2773_v24 = vsel %vm2747_vm4, %v2763_v26, %v2772_v18 }
 0x1e2   : > { %v1490_v48 = vpop.f32.mrf.mxu3  ;;  %v2267_v38 = vpop.f32.mrf.mxu1 }
 0x1e3   : > { %v1550_v54 = vadd.f32 %v1490_v48, %v1171_v11 }
 0x1e5   : > { %v2065_v39 = vadd.f32 %v2005_v46, %v1550_v54  ;;  %v3145_v46 = vsel %vm3140_vm5, %v3142_v63, %v3144_v3 }
 0x1e7   : > { %v6666_v44 = vadd.f32 %v2265_v55, %v2065_v39  ;;  %v1113_v23 = vpop.f32.mrf.mxu2  ;;  %v2778_v55 = vshll.u32 %v6673_v28, 16 }
 0x1e8   : > { %v1172_v6 = vadd.f32 %v1113_v23, %v6206_v20  ;;  %v2775_v20 = vshrl.u32 %v6673_v28, 16 }
 0x1e9   : > { %v2010_v36 = vpop.f32.mrf.mxu0  ;;  %v2780_v48 = vrot.slane %v2778_v55, 3 }
 0x1ea   : > { %v1492_v30 = vpop.f32.mrf.mxu3  ;;  %v2270_v43 = vpop.f32.mrf.mxu1  ;;  %v2777_v11 = vrot.slane %v2775_v20, 2 }
 0x1eb   : > { %v1551_v1 = vadd.f32 %v1492_v30, %v1172_v6 }
 0x1ec   : > { %2604 = vmatmul.bf16.gmra.mxu2 %v2492_v16  ;;  %3257 = vmatmul.bf16.gmra.mxu0 %v3145_v46  ;;  %v2781_v53 = vor.u32 %v2780_v48, %v2777_v11  ;;  %v6690_v46 = vld [vmem:[%s5929_s27 + $0x30] sm:$0xff]  ;;  %v3547_v11 = vld [vmem:[#allocation2 + $0x28] sm:$0xff] }
 0x1ed   : > { %v2066_v0 = vadd.f32 %v2007_v56, %v1551_v1  ;;  %3456 = vmatmul.bf16.gmra.mxu1 %v6215_v4  ;;  %v3548_v4 = vld [vmem:[#allocation2 + $0x30] sm:$0xff]  ;;  %v2493_v56 = vrot.slane %v6673_v28, 2  ;;  %v2784_v28 = vshrl.u32 %v6690_v46, 16  ;;  %v2495_v48 = vrot.slane %v6690_v46, 2 }
 0x1ee   : > { %3610 = vperm.xlu0 %5789, %v3548_v4   ;;  %v3148_v4 = vrot.slane %v6690_v46, 3 }
 0x1ef   : > { %2997 = vmatmul.bf16.gmra.mxu3 %v2773_v24  ;;  %v6678_v61 = vadd.f32 %v2267_v38, %v2066_v0  ;;  %v1116_v60 = vpop.f32.mrf.mxu2  ;;  %v2494_v30 = vsel %vm2102_vm2, %v2491_v62, %v2493_v56  ;;  %v3147_v24 = vsel %vm3140_vm5, %v3144_v3, %v3146_v35  ;;  %v2787_v62 = vshll.u32 %v6690_v46, 16 }
 0x1f0   : > { %v1173_v29 = vadd.f32 %v1116_v60, %v6228_v14 }
 0x1f1   : > { %v2012_v58 = vpop.f32.mrf.mxu0 }
 0x1f2   : > { %v1495_v26 = vpop.f32.mrf.mxu3  ;;  %v2272_v8 = vpop.f32.mrf.mxu1 }
 0x1f3   : > { %v1552_v63 = vadd.f32 %v1495_v26, %v1173_v29 }
 0x1f5   : > { %v2067_v54 = vadd.f32 %v2010_v36, %v1552_v63  ;;  %v2782_v36 = vsel %vm2747_vm4, %v2772_v18, %v2781_v53  ;;  %v2789_v63 = vrot.slane %v2787_v62, 3 }
 0x1f7   : > { %v6683_v38 = vadd.f32 %v2270_v43, %v2067_v54  ;;  %v1118_v39 = vpop.f32.mrf.mxu2  ;;  %v3546_v43 = vld [vmem:[#allocation2 + $0x20] sm:$0xff] }
 0x1f8   : > { %v1174_v14 = vadd.f32 %v1118_v39, %v6235_v17  ;;  %v3549_v17 = vld [vmem:[#allocation2 + $0x38] sm:$0xff]  ;;  %3600 = vperm.xlu2 %5791, %v3546_v43  }
 0x1f9   : > { %v2015_v1 = vpop.f32.mrf.mxu0  ;;  %3615 = vperm.xlu1 %5790, %v3549_v17  }
 0x1fa   : > { %v1497_v23 = vpop.f32.mrf.mxu3  ;;  %v2275_v6 = vpop.f32.mrf.mxu1 }
 0x1fb   : > { %v1553_v16 = vadd.f32 %v1497_v23, %v1174_v14 }
 0x1fc   : > { %2609 = vmatmul.bf16.gmra.mxu2 %v2494_v30  ;;  %3262 = vmatmul.bf16.gmra.mxu0 %v3147_v24  ;;  %v2496_v30 = vsel %vm2102_vm2, %v2493_v56, %v2495_v48  ;;  %v3149_v24 = vsel %vm3140_vm5, %v3146_v35, %v3148_v4 }
 0x1fd   : > { %v2068_v0 = vadd.f32 %v2012_v58, %v1553_v16  ;;  %3461 = vmatmul.bf16.gmra.mxu1 %v6241_v40  ;;  %v2786_v40 = vrot.slane %v2784_v28, 2 }
 0x1ff   : > { %3002 = vmatmul.bf16.gmra.mxu3 %v2782_v36  ;;  %v6695_v20 = vadd.f32 %v2272_v8, %v2068_v0  ;;  %v1121_v18 = vpop.f32.mrf.mxu2  ;;  %v2790_v54 = vor.u32 %v2789_v63, %v2786_v40  ;;  %v6707_v0 = vld [vmem:[%s5929_s27 + $0x38] sm:$0xff] }
 0x200   : > { %v1175_v3 = vadd.f32 %v1121_v18, %v6251_v49  ;;  %3605 = vperm.xlu2 %5791, %v3547_v11   ;;  %v2796_v46 = vshll.u32 %v6707_v0, 16  ;;  %v3150_v63 = vrot.slane %v6707_v0, 3 }
 0x201   : > { %v2017_v26 = vpop.f32.mrf.mxu0 }
 0x202   : > { %v1500_v55 = vpop.f32.mrf.mxu3  ;;  %v2277_v60 = vpop.f32.mrf.mxu1 }
 0x203   : > { %v1554_v29 = vadd.f32 %v1500_v55, %v1175_v3  ;;  %v2798_v55 = vrot.slane %v2796_v46, 3 }
 0x205   : > { %v2069_v58 = vadd.f32 %v2015_v1, %v1554_v29  ;;  %v2791_v1 = vsel %vm2747_vm4, %v2781_v53, %v2790_v54  ;;  %v3552_v29 = vld [vmem:[#allocation2 + $0x50] sm:$0xff] }
 0x206   : > { %3630 = vperm.xlu1 %5790, %v3552_v29  }
 0x207   : > { %v6700_v8 = vadd.f32 %v2275_v6, %v2069_v58  ;;  %v1123_v39 = vpop.f32.mrf.mxu2  ;;  %v3551_v6 = vld [vmem:[#allocation2 + $0x48] sm:$0xff] }
 0x208   : > { %v1176_v49 = vadd.f32 %v1123_v39, %v6264_v5  ;;  %v2793_v5 = vshrl.u32 %v6707_v0, 16  ;;  %3625 = vperm.xlu0 %5789, %v3551_v6  }
 0x209   : > { %v2020_v36 = vpop.f32.mrf.mxu0 }
 0x20a   : > { %v1502_v14 = vpop.f32.mrf.mxu3  ;;  %v2280_v23 = vpop.f32.mrf.mxu1  ;;  %v2795_v3 = vrot.slane %v2793_v5, 2 }
 0x20b   : > { %v1555_v16 = vadd.f32 %v1502_v14, %v1176_v49 }
 0x20c   : > { %2614 = vmatmul.bf16.gmra.mxu2 %v2496_v30  ;;  %3267 = vmatmul.bf16.gmra.mxu0 %v3149_v24  ;;  %v2799_v40 = vor.u32 %v2798_v55, %v2795_v3 }
 0x20d   : > { %v2070_v43 = vadd.f32 %v2017_v26, %v1555_v16  ;;  %3466 = vmatmul.bf16.gmra.mxu1 %v6270_v12  ;;  %v2497_v26 = vrot.slane %v6707_v0, 2 }
 0x20e   : > { %v2800_v16 = vsel %vm2747_vm4, %v2790_v54, %v2799_v40 }
 0x20f   : > { %3007 = vmatmul.bf16.gmra.mxu3 %v2791_v1  ;;  %v6712_v56 = vadd.f32 %v2277_v60, %v2070_v43  ;;  %v1126_v17 = vpop.f32.mrf.mxu2  ;;  %v2498_v49 = vsel %vm2102_vm2, %v2495_v48, %v2497_v26  ;;  %v6724_v1 = vld [vmem:[%s5929_s27 + $0x40] sm:$0xff] }
 0x210   : > { %v1177_v53 = vadd.f32 %v1126_v17, %v6279_v27  ;;  %v2805_v0 = vshll.u32 %v6724_v1, 16  ;;  %v3152_v3 = vrot.slane %v6724_v1, 3 }
 0x211   : > { %v2022_v18 = vpop.f32.mrf.mxu0 }
 0x212   : > { %v1505_v35 = vpop.f32.mrf.mxu3  ;;  %v2282_v28 = vpop.f32.mrf.mxu1 }
 0x213   : > { %v1556_v62 = vadd.f32 %v1505_v35, %v1177_v53  ;;  %v2807_v53 = vrot.slane %v2805_v0, 3  ;;  %v3554_v35 = vld [vmem:[#allocation2 + $0x60] sm:$0xff] }
 0x214   : > { %3640 = vperm.xlu0 %5789, %v3554_v35  }
 0x215   : > { %v2071_v12 = vadd.f32 %v2020_v36, %v1556_v62  ;;  %v3151_v36 = vsel %vm3140_vm5, %v3148_v4, %v3150_v63  ;;  %v2499_v62 = vrot.slane %v6724_v1, 2 }
 0x217   : > { %v6717_v60 = vadd.f32 %v2280_v23, %v2071_v12  ;;  %v1128_v58 = vpop.f32.mrf.mxu2  ;;  %v3550_v23 = vld [vmem:[#allocation2 + $0x40] sm:$0xff] }
 0x218   : > { %v1178_v27 = vadd.f32 %v1128_v58, %v6288_v50  ;;  %v2802_v50 = vshrl.u32 %v6724_v1, 16  ;;  %3620 = vperm.xlu2 %5791, %v3550_v23   ;;  %v2500_v58 = vsel %vm2102_vm2, %v2497_v26, %v2499_v62 }
 0x219   : > { %v2025_v30 = vpop.f32.mrf.mxu0 }
 0x21a   : > { %v1507_v11 = vpop.f32.mrf.mxu3  ;;  %v2285_v39 = vpop.f32.mrf.mxu1  ;;  %v2804_v17 = vrot.slane %v2802_v50, 2 }
 0x21b   : > { %v1557_v14 = vadd.f32 %v1507_v11, %v1178_v27 }
 0x21c   : > { %2619 = vmatmul.bf16.gmra.mxu2 %v2498_v49  ;;  %3272 = vmatmul.bf16.gmra.mxu0 %v3151_v36 }
 0x21d   : > { %v2072_v24 = vadd.f32 %v2022_v18, %v1557_v14  ;;  %3471 = vmatmul.bf16.gmra.mxu1 %v6294_v59  ;;  %v2808_v18 = vor.u32 %v2807_v53, %v2804_v17  ;;  %v3153_v14 = vsel %vm3140_vm5, %v3150_v63, %v3152_v3 }
 0x21f   : > { %3012 = vmatmul.bf16.gmra.mxu3 %v2800_v16  ;;  %v6729_v48 = vadd.f32 %v2282_v28, %v2072_v24  ;;  %v1131_v43 = vpop.f32.mrf.mxu2  ;;  %v2809_v49 = vsel %vm2747_vm4, %v2799_v40, %v2808_v18  ;;  %v7348_v40 = vld [vmem:[#allocation5_spill] sm:$0xff] }
 0x220   : > { %v1179_v54 = vadd.f32 %v1131_v43, %v6304_v9 }
 0x221   : > { %v2027_v46 = vpop.f32.mrf.mxu0 }
 0x222   : > { %v1510_v4 = vpop.f32.mrf.mxu3  ;;  %v2287_v6 = vpop.f32.mrf.mxu1 }
 0x223   : > { %v1558_v5 = vadd.f32 %v1510_v4, %v1179_v54  ;;  %v3553_v4 = vld [vmem:[#allocation2 + $0x58] sm:$0xff] }
 0x224   : > { %3635 = vperm.xlu2 %5791, %v3553_v4  }
 0x225   : > { %v2073_v59 = vadd.f32 %v2025_v30, %v1558_v5  ;;  %v6741_v30 = vld [vmem:[%s5929_s27 + $0x48] sm:$0xff] }
 0x226   : > { %v2814_v36 = vshll.u32 %v6741_v30, 16  ;;  %v2501_v5 = vrot.slane %v6741_v30, 2  ;;  %v3154_v17 = vrot.slane %v6741_v30, 3 }
 0x227   : > { %v6734_v28 = vadd.f32 %v2285_v39, %v2073_v59  ;;  %v1133_v55 = vpop.f32.mrf.mxu2  ;;  %v3555_v39 = vld [vmem:[#allocation2 + $0x68] sm:$0xff] }
 0x228   : > { %v1180_v9 = vadd.f32 %v1133_v55, %v6311_v31  ;;  %v2811_v31 = vshrl.u32 %v6741_v30, 16  ;;  %3645 = vperm.xlu1 %5790, %v3555_v39   ;;  %v2816_v54 = vrot.slane %v2814_v36, 3  ;;  %v7349_v59 = vld [vmem:[#allocation6_spill] sm:$0xff]  ;;  %v7350_v30 = vld [vmem:[#allocation7_spill] sm:$0xff] }
 0x229   : > { %v2030_v11 = vpop.f32.mrf.mxu0 }
 0x22a   : > { %v1512_v12 = vpop.f32.mrf.mxu3  ;;  %v2290_v29 = vpop.f32.mrf.mxu1  ;;  %v2813_v43 = vrot.slane %v2811_v31, 2 }
 0x22b   : > { %v1559_v27 = vadd.f32 %v1512_v12, %v1180_v9  ;;  %v2502_v12 = vsel %vm2102_vm2, %v2499_v62, %v2501_v5 }
 0x22c   : > { %2624 = vmatmul.bf16.gmra.mxu2 %v2500_v58  ;;  %3277 = vmatmul.bf16.gmra.mxu0 %v3153_v14  ;;  %v6758_v14 = vld [vmem:[%s5929_s27 + $0x50] sm:$0xff] }
 0x22d   : > { %v2074_v16 = vadd.f32 %v2027_v46, %v1559_v27  ;;  %3476 = vmatmul.bf16.gmra.mxu1 %v6323_v51  ;;  %v2817_v46 = vor.u32 %v2816_v54, %v2813_v43  ;;  %v2820_v39 = vshrl.u32 %v6758_v14, 16  ;;  %v2823_v31 = vshll.u32 %v6758_v14, 16 }
 0x22e   : > { %v2503_v54 = vrot.slane %v6758_v14, 2  ;;  %v3156_v4 = vrot.slane %v6758_v14, 3 }
 0x22f   : > { %3017 = vmatmul.bf16.gmra.mxu3 %v2809_v49  ;;  %v6746_v26 = vadd.f32 %v2287_v6, %v2074_v16  ;;  %v1136_v1 = vpop.f32.mrf.mxu2  ;;  %v3155_v49 = vsel %vm3140_vm5, %v3152_v3, %v3154_v17 }
 0x230   : > { %v1181_v24 = vadd.f32 %v1136_v1, %v7348_v40 }
 0x231   : > { %v2032_v0 = vpop.f32.mrf.mxu0 }
 0x232   : > { %v1515_v63 = vpop.f32.mrf.mxu3  ;;  %v2292_v23 = vpop.f32.mrf.mxu1 }
 0x233   : > { %v1560_v50 = vadd.f32 %v1515_v63, %v1181_v24 }
 0x235   : > { %v2075_v51 = vadd.f32 %v2030_v11, %v1560_v50  ;;  %v2818_v11 = vsel %vm2747_vm4, %v2808_v18, %v2817_v46  ;;  %v7351_v18 = vld [vmem:[#allocation8_spill] sm:$0xff]  ;;  %v2822_v50 = vrot.slane %v2820_v39, 2 }
 0x237   : > { %v6751_v6 = vadd.f32 %v2290_v29, %v2075_v51  ;;  %v1138_v53 = vpop.f32.mrf.mxu2  ;;  %v3557_v29 = vld [vmem:[#allocation2 + $0x78] sm:$0xff] }
 0x238   : > { %v1182_v35 = vadd.f32 %v1138_v53, %v7349_v59  ;;  %3655 = vperm.xlu0 %5789, %v3557_v29   ;;  %v3558_v59 = vld [vmem:[#allocation2 + $0x80] sm:$0xff]  ;;  %v6775_v29 = vld [vmem:[%s5929_s27 + $0x58] sm:$0xff] }
 0x239   : > { %v2035_v27 = vpop.f32.mrf.mxu0  ;;  %3660 = vperm.xlu1 %5790, %v3558_v59   ;;  %v2829_v39 = vshrl.u32 %v6775_v29, 16 }
 0x23a   : > { %v1517_v55 = vpop.f32.mrf.mxu3  ;;  %v2295_v9 = vpop.f32.mrf.mxu1 }
 0x23b   : > { %v1561_v58 = vadd.f32 %v1517_v55, %v1182_v35  ;;  %v7352_v35 = vld [vmem:[#allocation9_spill] sm:$0xff]  ;;  %v3581_v59 = vpop.permute.xlu0 %3580 }
 0x23c   : > { %2629 = vmatmul.bf16.gmra.mxu2 %v2502_v12  ;;  %3282 = vmatmul.bf16.gmra.mxu0 %v3155_v49 }
 0x23d   : > { %v2076_v16 = vadd.f32 %v2032_v0, %v1561_v58  ;;  %3481 = vmatmul.bf16.gmra.mxu1 %v7350_v30  ;;  %v2825_v0 = vrot.slane %v2823_v31, 3  ;;  %v3157_v30 = vsel %vm3140_vm5, %v3154_v17, %v3156_v4  ;;  %v2832_v31 = vshll.u32 %v6775_v29, 16 }
 0x23f   : > { %3022 = vmatmul.bf16.gmra.mxu3 %v2818_v11  ;;  %v6763_v62 = vadd.f32 %v2292_v23, %v2076_v16  ;;  %v1141_v36 = vpop.f32.mrf.mxu2  ;;  %v2826_v51 = vor.u32 %v2825_v0, %v2822_v50  ;;  %v2504_v11 = vsel %vm2102_vm2, %v2501_v5, %v2503_v54  ;;  %v2831_v50 = vrot.slane %v2829_v39, 2 }
 0x240   : > { %v1183_v1 = vadd.f32 %v1141_v36, %v7351_v18  ;;  %v3556_v18 = vld [vmem:[#allocation2 + $0x70] sm:$0xff]  ;;  %v2834_v0 = vrot.slane %v2832_v31, 3 }
 0x241   : > { %v2037_v63 = vpop.f32.mrf.mxu0  ;;  %3650 = vperm.xlu2 %5791, %v3556_v18   ;;  %v7358_v18 = vld [vmem:[#allocation13_spill] sm:$0xff] }
 0x242   : > { %v1520_v3 = vpop.f32.mrf.mxu3  ;;  %v2297_v40 = vpop.f32.mrf.mxu1 }
 0x243   : > { %v1562_v24 = vadd.f32 %v1520_v3, %v1183_v1  ;;  %v7355_v1 = vld [vmem:[#allocation11_spill] sm:$0xff] }
 0x245   : > { %v2077_v43 = vadd.f32 %v2035_v27, %v1562_v24  ;;  %v2827_v27 = vsel %vm2747_vm4, %v2817_v46, %v2826_v51 }
 0x247   : > { %v6768_v53 = vadd.f32 %v2295_v9, %v2077_v43  ;;  %v1143_v23 = vpop.f32.mrf.mxu2  ;;  %v7353_v9 = vld [vmem:[#allocation10_spill] sm:$0xff] }
 0x248   : > { %v1184_v55 = vadd.f32 %v1143_v23, %v7352_v35  ;;  %v2505_v23 = vrot.slane %v6775_v29, 2  ;;  %v2835_v35 = vor.u32 %v2834_v0, %v2831_v50  ;;  %v3586_v50 = vpop.permute.xlu0 %3585 }
 0x249   : > { %v2040_v16 = vpop.f32.mrf.mxu0 }
 0x24a   : > { %v1522_v12 = vpop.f32.mrf.mxu3  ;;  %v2300_v58 = vpop.f32.mrf.mxu1  ;;  %v2836_v31 = vsel %vm2747_vm4, %v2826_v51, %v2835_v35 }
 0x24b   : > { %v1563_v49 = vadd.f32 %v1522_v12, %v1184_v55 }
 0x24c   : > { %2634 = vmatmul.bf16.gmra.mxu2 %v2504_v11  ;;  %3287 = vmatmul.bf16.gmra.mxu0 %v3157_v30  ;;  %v7357_v11 = vld [vmem:[#allocation12_spill] sm:$0xff]  ;;  %v3560_v30 = vld [vmem:[#allocation2 + $0x90] sm:$0xff] }
 0x24d   : > { %v2078_v14 = vadd.f32 %v2037_v63, %v1563_v49  ;;  %3486 = vmatmul.bf16.gmra.mxu1 %v7353_v9  ;;  %v2506_v9 = vsel %vm2102_vm2, %v2503_v54, %v2505_v23  ;;  %3670 = vperm.xlu0 %5789, %v3560_v30  }
 0x24f   : > { %3027 = vmatmul.bf16.gmra.mxu3 %v2827_v27  ;;  %v6780_v36 = vadd.f32 %v2297_v40, %v2078_v14  ;;  %v1146_v5 = vpop.f32.mrf.mxu2  ;;  %v3158_v40 = vrot.slane %v6775_v29, 3 }
 0x250   : > { %v1185_v46 = vadd.f32 %v1146_v5, %v7355_v1  ;;  %v6790_v5 = vld [vmem:[%s5929_s27 + $0x60] sm:$0xff] }
 0x251   : > { %7354 = vst [vmem:[#allocation5_spill] sm:$0xff] %v6780_v36  ;;  %v2042_v63 = vpop.f32.mrf.mxu0  ;;  %v3159_v29 = vsel %vm3140_vm5, %v3156_v4, %v3158_v40  ;;  %v2838_v1 = vshrl.u32 %v6790_v5, 16  ;;  %v2841_v54 = vshll.u32 %v6790_v5, 16  ;;  %v3561_v4 = vld [vmem:[#allocation2 + $0x98] sm:$0xff] }
 0x252   : > { %v1525_v3 = vpop.f32.mrf.mxu3  ;;  %v2302_v17 = vpop.f32.mrf.mxu1  ;;  %3675 = vperm.xlu1 %5790, %v3561_v4   ;;  %v3559_v4 = vld [vmem:[#allocation2 + $0x88] sm:$0xff] }
 0x253   : > { %v1564_v24 = vadd.f32 %v1525_v3, %v1185_v46  ;;  %3665 = vperm.xlu2 %5791, %v3559_v4  }
 0x255   : > { %v2079_v43 = vadd.f32 %v2040_v16, %v1564_v24 }
 0x257   : > { %v6785_v55 = vadd.f32 %v2300_v58, %v2079_v43  ;;  %v1148_v12 = vpop.f32.mrf.mxu2  ;;  %v2840_v43 = vrot.slane %v2838_v1, 2 }
 0x258   : > { %v1186_v49 = vadd.f32 %v1148_v12, %v7357_v11  ;;  %v2843_v12 = vrot.slane %v2841_v54, 3 }
 0x259   : > { %7356 = vst [vmem:[#allocation6_spill] sm:$0xff] %v6785_v55  ;;  %v3253_v39 = vpop.f32.mrf.mxu0 }
 0x25a   : > { %v1527_v27 = vpop.f32.mrf.mxu3  ;;  %v3452_v14 = vpop.f32.mrf.mxu1 }
 0x25b   : > { %v1565_v16 = vadd.f32 %v1527_v27, %v1186_v49  ;;  %v3794_v46 = vmul.f32 %v3581_v59, %v3452_v14 }
 0x25c   : > { %2639 = vmatmul.bf16.gmra.mxu2 %v2506_v9  ;;  %3292 = vmatmul.bf16.gmra.mxu0 %v3159_v29  ;;  %v6809_v29 = vor.u32 %v2843_v12, %v2840_v43 }
 0x25d   : > { %v2080_v58 = vadd.f32 %v2042_v63, %v1565_v16  ;;  %3491 = vmatmul.bf16.gmra.mxu1 %v7358_v18  ;;  %v3996_v11 = vmul.f32 %v3794_v46, %v3794_v46 }
 0x25f   : > { %3032 = vmatmul.bf16.gmra.mxu3 %v2836_v31  ;;  %v6797_v3 = vadd.f32 %v2302_v17, %v2080_v58  ;;  %v2600_v24 = vpop.f32.mrf.mxu2  ;;  %v7326_v17 = vrot.slane %v6790_v5, 2  ;;  %v6807_v31 = vpop.permute.xlu1 %3590  ;;  %v7325_v58 = vrot.slane %v6790_v5, 3 }
 0x260   : > { %v2690_v51 = vadd.f32 %v2600_v24, %v6422_v33  ;;  %v6814_v24 = vld [vmem:[%s5929_s27 + $0x68] sm:$0xff] }
 0x261   : > { %7359 = vst [vmem:[#allocation7_spill] sm:$0xff] %v6797_v3  ;;  %v3255_v27 = vpop.f32.mrf.mxu0  ;;  %v3161_v43 = vsel %vm3140_vm5, %v3158_v40, %v7325_v58  ;;  %v3563_v3 = vld [vmem:[#allocation2 + $0xa8] sm:$0xff] }
 0x262   : > { %v2993_v0 = vpop.f32.mrf.mxu3  ;;  %v3454_v63 = vpop.f32.mrf.mxu1  ;;  %3685 = vperm.xlu0 %5789, %v3563_v3  }
 0x263   : > { %v3083_v49 = vadd.f32 %v2993_v0, %v2690_v51  ;;  %v3795_v30 = vmul.f32 %v3586_v50, %v3454_v63 }
 0x265   : > { %v3343_v33 = vadd.f32 %v3253_v39, %v3083_v49  ;;  %v3953_v14 = vadd.f32 %v3795_v30, %v3794_v46  ;;  %v3997_v9 = vmul.f32 %v3795_v30, %v3795_v30  ;;  %v5648_v16 = vpack.c.bf16 %v3795_v30, %v3794_v46 }
 0x266   : > { %v2508_v46 = vsel %vm2102_vm2, %v2505_v23, %v7326_v17  ;;  %v2850_v30 = vshll.u32 %v6814_v24, 16 }
 0x267   : > { %v3758_v18 = vmul.f32 %v3581_v59, %v3343_v33  ;;  %v4032_v1 = vadd.f32 %v3997_v9, %v3996_v11  ;;  %5649 = vst [vmem:[%s6804_s11] sm:$0xff] %v5648_v16   ;;  %v2602_v54 = vpop.f32.mrf.mxu2  ;;  %v2845_v59 = vsel %vm2747_vm4, %v2835_v35, %v6809_v29  ;;  %v2847_v35 = vshrl.u32 %v6814_v24, 16 }
 0x268   : > { %v2691_v0 = vadd.f32 %v2602_v54, %v6437_v22 }
 0x269   : > { %v4075_v51 = vpack.c.bf16 %v3758_v18, %v3758_v18  ;;  %v3258_v49 = vpop.f32.mrf.mxu0 }
 0x26a   : > { %v2995_v39 = vpop.f32.mrf.mxu3  ;;  %v3457_v63 = vpop.f32.mrf.mxu1 }
 0x26b   : > { %v4151_v22 = vshrl.u32 %v4075_v51, 16  ;;  %v4154_v23 = vshll.u32 %v4075_v51, 16  ;;  %v3084_v12 = vadd.f32 %v2995_v39, %v2691_v0  ;;  %v3796_v11 = vmul.f32 %v6807_v31, %v3457_v63  ;;  %v4549_v51 = vld [vmem:[%s6830_s14 + $0x8] sm:$0xe] }
 0x26c   : > { %2644 = vmatmul.bf16.gmra.mxu2 %v2508_v46  ;;  %3297 = vmatmul.bf16.gmra.mxu0 %v3161_v43  ;;  %v2852_v46 = vrot.slane %v2850_v30, 3 }
 0x26d   : > { %v4153_v33 = vrot.slane %v4151_v22, 6  ;;  %v4156_v40 = vrot.slane %v4154_v23, 7  ;;  %v3344_v9 = vadd.f32 %v3255_v27, %v3084_v12  ;;  %v3954_v16 = vadd.f32 %v3953_v14, %v3796_v11  ;;  %3496 = vmatmul.bf16.gmra.mxu1 %v6429_v25  ;;  %v6843_v27 = vpop.permute.xlu1 %3595 }
 0x26e   : > { %v3998_v0 = vmul.f32 %v3796_v11, %v3796_v11  ;;  %v2849_v14 = vrot.slane %v2847_v35, 2  ;;  %v3874_v25 = vmul.f32 %v3758_v18, %v3758_v18 }
 0x26f   : > { %3037 = vmatmul.bf16.gmra.mxu3 %v2845_v59  ;;  %v4157_v39 = vor.u32 %v4156_v40, %v4153_v33  ;;  %v3759_v4 = vmul.f32 %v3586_v50, %v3344_v9  ;;  %v2605_v22 = vpop.f32.mrf.mxu2  ;;  %v3564_v9 = vld [vmem:[#allocation2 + $0xb0] sm:$0xff] }
 0x270   : > { %v4033_v63 = vadd.f32 %v4032_v1, %v3998_v0  ;;  %v2692_v59 = vadd.f32 %v2605_v22, %v6452_v13  ;;  %v6851_v13 = vor.u32 %v2852_v46, %v2849_v14  ;;  %3690 = vperm.xlu1 %5790, %v3564_v9   ;;  %v7328_v22 = vrot.slane %v6814_v24, 3 }
 0x271   : > { %v4550_v23 = vsel %vm6838_vm8, %v4157_v39, %v4549_v51  ;;  %v3830_v12 = vadd.f32 %v3759_v4, %v3758_v18  ;;  %v3875_v58 = vmul.f32 %v3759_v4, %v3759_v4  ;;  %v4076_v55 = vpack.c.bf16 %v3759_v4, %v3759_v4  ;;  %v3260_v35 = vpop.f32.mrf.mxu0 }
 0x272   : > { %v2998_v17 = vpop.f32.mrf.mxu3  ;;  %4551 = vst [vmem:[%s6830_s14 + $0x8] sm:$0xe] %v4550_v23  ;;  %v3459_v43 = vpop.f32.mrf.mxu1  ;;  %v7327_v18 = vrot.slane %v6814_v24, 2  ;;  %v6865_v23 = vld [vmem:[%s5929_s27 + $0x70] sm:$0xff]  ;;  %v7366_v9 = vrot.slane %v6790_v5, 3 }
 0x273   : > { %v3910_v50 = vadd.f32 %v3875_v58, %v3874_v25  ;;  %v3797_v1 = vmul.f32 %v6843_v27, %v3459_v43  ;;  %v4160_v30 = vshrl.u32 %v4076_v55, 16  ;;  %v4163_v33 = vshll.u32 %v4076_v55, 16 }
 0x274   : > { %v3085_v40 = vadd.f32 %v2998_v17, %v2692_v59 }
 0x275   : > { %v3955_v54 = vadd.f32 %v3954_v16, %v3797_v1  ;;  %v3999_v51 = vmul.f32 %v3797_v1, %v3797_v1  ;;  %v5653_v0 = vpack.c.bf16 %v3797_v1, %v3796_v11  ;;  %v4162_v3 = vrot.slane %v4160_v30, 6  ;;  %v6861_v16 = vpop.permute.xlu2 %3600 }
 0x276   : > { %v4165_v58 = vrot.slane %v4163_v33, 7  ;;  %v3345_v4 = vadd.f32 %v3258_v49, %v3085_v40  ;;  %v4158_v11 = vrot.slane %v4157_v39, 4  ;;  %v7364_v49 = vld [vmem:[#allocation15_spill] sm:$0xff]  ;;  %v7365_v1 = vrot.slane %v6790_v5, 2 }
 0x277   : > { %v4034_v17 = vadd.f32 %v4033_v63, %v3999_v51  ;;  %5733 = vst [vmem:[%s6804_s11 + $0x8] sm:$0xff] %v5653_v0   ;;  %v2607_v25 = vpop.f32.mrf.mxu2  ;;  %v2854_v30 = vsel %vm2747_vm4, %v6809_v29, %v6851_v13  ;;  %v3163_v51 = vsel %vm3140_vm5, %v7366_v9, %v7328_v22  ;;  %v3566_v0 = vld [vmem:[#allocation2 + $0xc0] sm:$0xff] }
 0x278   : > { %v4166_v14 = vor.u32 %v4165_v58, %v4162_v3  ;;  %v3760_v46 = vmul.f32 %v6807_v31, %v3345_v4  ;;  %v2693_v59 = vadd.f32 %v2607_v25, %v7364_v49  ;;  %v2510_v63 = vsel %vm2102_vm2, %v7365_v1, %v7327_v18  ;;  %3700 = vperm.xlu0 %5789, %v3566_v0   ;;  %v3567_v49 = vld [vmem:[#allocation2 + $0xc8] sm:$0xff] }
 0x279   : > { %v3263_v29 = vpop.f32.mrf.mxu0  ;;  %3705 = vperm.xlu1 %5790, %v3567_v49  }
 0x27a   : > { %v3000_v43 = vpop.f32.mrf.mxu3  ;;  %v4167_v39 = vsel %vm6856_vm11, %v4158_v11, %v4166_v14  ;;  %v3831_v31 = vadd.f32 %v3830_v12, %v3760_v46  ;;  %v3876_v33 = vmul.f32 %v3760_v46, %v3760_v46  ;;  %v3462_v40 = vpop.f32.mrf.mxu1  ;;  %v4077_v3 = vpack.c.bf16 %v3760_v46, %v3760_v46 }
 0x27b   : > { %4552 = vst [vmem:[%s6830_s14 + $0xc] sm:$0xf] %v4167_v39  ;;  %v3086_v58 = vadd.f32 %v3000_v43, %v2693_v59  ;;  %v6885_v4 = vmul.f32 %v6861_v16, %v3462_v40  ;;  %v2856_v12 = vshrl.u32 %v6865_v23, 16  ;;  %v2859_v11 = vshll.u32 %v6865_v23, 16  ;;  %v7367_v39 = vld [vmem:[#allocation14_spill] sm:$0xff] }
 0x27c   : > { %v3911_v25 = vadd.f32 %v3910_v50, %v3876_v33  ;;  %v4170_v1 = vshrl.u32 %v4077_v3, 16  ;;  %v4173_v18 = vshll.u32 %v4077_v3, 16  ;;  %2649 = vmatmul.bf16.gmra.mxu2 %v2510_v63  ;;  %3302 = vmatmul.bf16.gmra.mxu0 %v3163_v51  ;;  %v4168_v33 = vrot.slane %v4166_v14, 4 }
 0x27d   : > { %v3346_v5 = vadd.f32 %v3260_v35, %v3086_v58  ;;  %v3956_v9 = vadd.f32 %v3955_v54, %v6885_v4  ;;  %3501 = vmatmul.bf16.gmra.mxu1 %v7367_v39  ;;  %v4000_v46 = vmul.f32 %v6885_v4, %v6885_v4  ;;  %v2858_v3 = vrot.slane %v2856_v12, 2  ;;  %v6894_v36 = vpop.permute.xlu2 %3605 }
 0x27e   : > { %v4172_v59 = vrot.slane %v4170_v1, 6  ;;  %v4175_v50 = vrot.slane %v4173_v18, 7  ;;  %v2861_v35 = vrot.slane %v2859_v11, 3 }
 0x27f   : > { %3042 = vmatmul.bf16.gmra.mxu3 %v2854_v30  ;;  %v3761_v43 = vmul.f32 %v6843_v27, %v3346_v5  ;;  %v4035_v40 = vadd.f32 %v4034_v17, %v4000_v46  ;;  %v2610_v0 = vpop.f32.mrf.mxu2  ;;  %v3562_v30 = vld [vmem:[#allocation2 + $0xa0] sm:$0xff]  ;;  %v3569_v27 = vld [vmem:[#allocation2 + $0xd8] sm:$0xff] }
 0x280   : > { %v4176_v58 = vor.u32 %v4175_v50, %v4172_v59  ;;  %v2694_v51 = vadd.f32 %v2610_v0, %v6479_v45  ;;  %3680 = vperm.xlu2 %5791, %v3562_v30   ;;  %3715 = vperm.xlu0 %5789, %v3569_v27   ;;  %v3570_v5 = vld [vmem:[#allocation2 + $0xe0] sm:$0xff]  ;;  %v2511_v45 = vrot.slane %v6865_v23, 2  ;;  %v6902_v59 = vor.u32 %v2861_v35, %v2858_v3  ;;  %v6907_v27 = vpop.permute.xlu0 %3610  ;;  %v6910_v3 = vld [vmem:[%s5929_s27 + $0x78] sm:$0xff] }
 0x281   : > { %v3832_v54 = vadd.f32 %v3831_v31, %v3761_v43  ;;  %v3877_v63 = vmul.f32 %v3761_v43, %v3761_v43  ;;  %v4078_v39 = vpack.c.bf16 %v3761_v43, %v3761_v43  ;;  %v3265_v11 = vpop.f32.mrf.mxu0  ;;  %v3164_v50 = vrot.slane %v6865_v23, 3  ;;  %3720 = vperm.xlu1 %5790, %v3570_v5  }
 0x282   : > { %v3003_v22 = vpop.f32.mrf.mxu3  ;;  %v3464_v18 = vpop.f32.mrf.mxu1  ;;  %v4177_v17 = vsel %vm6856_vm11, %v4168_v33, %v4176_v58 }
 0x283   : > { %v3912_v14 = vadd.f32 %v3911_v25, %v3877_v63  ;;  %v4180_v12 = vshrl.u32 %v4078_v39, 16  ;;  %4553 = vst [vmem:[%s6830_s14 + $0x10] sm:$0xf] %v4177_v17  ;;  %v4183_v31 = vshll.u32 %v4078_v39, 16  ;;  %v3087_v49 = vadd.f32 %v3003_v22, %v2694_v51 }
 0x284   : > { %v3799_v1 = vmul.f32 %v6894_v36, %v3464_v18  ;;  %v4178_v22 = vrot.slane %v4176_v58, 4 }
 0x285   : > { %v4182_v46 = vrot.slane %v4180_v12, 6  ;;  %v4185_v43 = vrot.slane %v4183_v31, 7  ;;  %v3347_v25 = vadd.f32 %v3263_v29, %v3087_v49  ;;  %v3572_v49 = vld [vmem:[#allocation2 + $0xf0] sm:$0xff] }
 0x286   : > { %v3957_v33 = vadd.f32 %v3956_v9, %v3799_v1  ;;  %v4001_v0 = vmul.f32 %v3799_v1, %v3799_v1  ;;  %v5658_v63 = vpack.c.bf16 %v3799_v1, %v6885_v4  ;;  %v7368_v4 = vrot.slane %v6814_v24, 2 }
 0x287   : > { %v4186_v39 = vor.u32 %v4185_v43, %v4182_v46  ;;  %v3762_v30 = vmul.f32 %v6861_v16, %v3347_v25  ;;  %v2612_v18 = vpop.f32.mrf.mxu2  ;;  %v2863_v16 = vsel %vm2747_vm4, %v6851_v13, %v6902_v59  ;;  %v2868_v25 = vshll.u32 %v6910_v3, 16 }
 0x288   : > { %v4036_v51 = vadd.f32 %v4035_v40, %v4001_v0  ;;  %5734 = vst [vmem:[%s6804_s11 + $0x10] sm:$0xff] %v5658_v63   ;;  %v2695_v35 = vadd.f32 %v2612_v18, %v6494_v37  ;;  %v2512_v9 = vsel %vm2102_vm2, %v7368_v4, %v2511_v45  ;;  %v7369_v37 = vrot.slane %v6814_v24, 3  ;;  %3730 = vperm.xlu0 %5789, %v3572_v49   ;;  %v3573_v0 = vld [vmem:[#allocation2 + $0xf8] sm:$0xff] }
 0x289   : > { %v4187_v40 = vsel %vm6856_vm11, %v4178_v22, %v4186_v39  ;;  %v3833_v58 = vadd.f32 %v3832_v54, %v3762_v30  ;;  %v3878_v17 = vmul.f32 %v3762_v30, %v3762_v30  ;;  %v4079_v1 = vpack.c.bf16 %v3762_v30, %v3762_v30  ;;  %v3268_v13 = vpop.f32.mrf.mxu0  ;;  %v3565_v30 = vld [vmem:[#allocation2 + $0xb8] sm:$0xff]  ;;  %3735 = vperm.xlu1 %5790, %v3573_v0  }
 0x28a   : > { %v3005_v29 = vpop.f32.mrf.mxu3  ;;  %v3467_v12 = vpop.f32.mrf.mxu1  ;;  %v3165_v31 = vsel %vm3140_vm5, %v7369_v37, %v3164_v50  ;;  %4554 = vst [vmem:[%s6830_s14 + $0x14] sm:$0xf] %v4187_v40  ;;  %v2865_v54 = vshrl.u32 %v6910_v3, 16  ;;  %3695 = vperm.xlu2 %5791, %v3565_v30   ;;  %v4188_v40 = vrot.slane %v4186_v39, 4  ;;  %v2513_v30 = vrot.slane %v6910_v3, 2 }
 0x28b   : > { %v3088_v5 = vadd.f32 %v3005_v29, %v2695_v35  ;;  %v6931_v46 = vmul.f32 %v6907_v27, %v3467_v12  ;;  %v3913_v43 = vadd.f32 %v3912_v14, %v3878_v17  ;;  %v4190_v63 = vshrl.u32 %v4079_v1, 16 }
 0x28c   : > { %v4193_v22 = vshll.u32 %v4079_v1, 16  ;;  %2654 = vmatmul.bf16.gmra.mxu2 %v2512_v9  ;;  %3307 = vmatmul.bf16.gmra.mxu0 %v3165_v31  ;;  %v2867_v12 = vrot.slane %v2865_v54, 2 }
 0x28d   : > { %v3348_v24 = vadd.f32 %v3265_v11, %v3088_v5  ;;  %v3958_v18 = vadd.f32 %v3957_v33, %v6931_v46  ;;  %3506 = vmatmul.bf16.gmra.mxu1 %v6486_v34  ;;  %v4002_v35 = vmul.f32 %v6931_v46, %v6931_v46  ;;  %v4192_v14 = vrot.slane %v4190_v63, 6  ;;  %v6940_v5 = vpop.permute.xlu1 %3615  ;;  %v3575_v63 = vld [vmem:[#allocation2 + $0x108] sm:$0xff] }
 0x28e   : > { %v4195_v29 = vrot.slane %v4193_v22, 7  ;;  %v2870_v33 = vrot.slane %v2868_v25, 3  ;;  %v3576_v22 = vld [vmem:[#allocation2 + $0x110] sm:$0xff] }
 0x28f   : > { %3047 = vmatmul.bf16.gmra.mxu3 %v2863_v16  ;;  %v3763_v4 = vmul.f32 %v6894_v36, %v3348_v24  ;;  %v4037_v17 = vadd.f32 %v4036_v51, %v4002_v35  ;;  %v2615_v11 = vpop.f32.mrf.mxu2 }
 0x290   : > { %v4196_v9 = vor.u32 %v4195_v29, %v4192_v14  ;;  %v2696_v16 = vadd.f32 %v2615_v11, %v6509_v10  ;;  %3745 = vperm.xlu0 %5789, %v3575_v63   ;;  %v6948_v35 = vor.u32 %v2870_v33, %v2867_v12  ;;  %v3568_v10 = vld [vmem:[#allocation2 + $0xd0] sm:$0xff]  ;;  %v3166_v11 = vrot.slane %v6910_v3, 3 }
 0x291   : > { %v3834_v34 = vadd.f32 %v3833_v58, %v3763_v4  ;;  %v3879_v37 = vmul.f32 %v3763_v4, %v3763_v4  ;;  %v4080_v49 = vpack.c.bf16 %v3763_v4, %v3763_v4  ;;  %v3270_v0 = vpop.f32.mrf.mxu0  ;;  %3750 = vperm.xlu1 %5790, %v3576_v22  }
 0x292   : > { %v3008_v1 = vpop.f32.mrf.mxu3  ;;  %v3469_v31 = vpop.f32.mrf.mxu1  ;;  %v4197_v36 = vsel %vm6856_vm11, %v4188_v40, %v4196_v9  ;;  %3710 = vperm.xlu2 %5791, %v3568_v10  }
 0x293   : > { %v3914_v39 = vadd.f32 %v3913_v43, %v3879_v37  ;;  %v4200_v51 = vshrl.u32 %v4080_v49, 16  ;;  %4555 = vst [vmem:[%s6830_s14 + $0x18] sm:$0xf] %v4197_v36  ;;  %v4203_v54 = vshll.u32 %v4080_v49, 16  ;;  %v3089_v25 = vadd.f32 %v3008_v1, %v2696_v16  ;;  %v6953_v16 = vpop.permute.xlu2 %3620 }
 0x294   : > { %v3801_v58 = vmul.f32 %v6940_v5, %v3469_v31  ;;  %v4198_v37 = vrot.slane %v4196_v9, 4  ;;  %v6956_v31 = vld [vmem:[%s5929_s27 + $0x80] sm:$0xff]  ;;  %v2872_v36 = vsel %vm2747_vm4, %v6902_v59, %v6948_v35 }
 0x295   : > { %v4202_v24 = vrot.slane %v4200_v51, 6  ;;  %v4205_v14 = vrot.slane %v4203_v54, 7  ;;  %v3349_v29 = vadd.f32 %v3268_v13, %v3089_v25  ;;  %v2877_v22 = vshll.u32 %v6956_v31, 16 }
 0x296   : > { %v3959_v43 = vadd.f32 %v3958_v18, %v3801_v58  ;;  %v4003_v4 = vmul.f32 %v3801_v58, %v3801_v58  ;;  %v5663_v40 = vpack.c.bf16 %v3801_v58, %v6931_v46  ;;  %v2514_v46 = vsel %vm2102_vm2, %v2511_v45, %v2513_v30 }
 0x297   : > { %v4206_v49 = vor.u32 %v4205_v14, %v4202_v24  ;;  %v3764_v1 = vmul.f32 %v6907_v27, %v3349_v29  ;;  %v2617_v33 = vpop.f32.mrf.mxu2  ;;  %v3167_v45 = vsel %vm3140_vm5, %v3164_v50, %v3166_v11  ;;  %v7370_v29 = vld [vmem:[#allocation16_spill] sm:$0xff] }
 0x298   : > { %v4038_v12 = vadd.f32 %v4037_v17, %v4003_v4  ;;  %5735 = vst [vmem:[%s6804_s11 + $0x18] sm:$0xff] %v5663_v40   ;;  %v2697_v13 = vadd.f32 %v2617_v33, %v6527_v52  ;;  %v3571_v4 = vld [vmem:[#allocation2 + $0xe8] sm:$0xff] }
 0x299   : > { %v4207_v9 = vsel %vm6856_vm11, %v4198_v37, %v4206_v49  ;;  %v3835_v27 = vadd.f32 %v3834_v34, %v3764_v1  ;;  %v3880_v17 = vmul.f32 %v3764_v1, %v3764_v1  ;;  %v4081_v51 = vpack.c.bf16 %v3764_v1, %v3764_v1  ;;  %v3273_v25 = vpop.f32.mrf.mxu0 }
 0x29a   : > { %v3010_v18 = vpop.f32.mrf.mxu3  ;;  %v3472_v63 = vpop.f32.mrf.mxu1  ;;  %4556 = vst [vmem:[%s6830_s14 + $0x1c] sm:$0xf] %v4207_v9  ;;  %v2874_v34 = vshrl.u32 %v6956_v31, 16  ;;  %3725 = vperm.xlu2 %5791, %v3571_v4  }
 0x29b   : > { %v3090_v52 = vadd.f32 %v3010_v18, %v2697_v13  ;;  %v3802_v54 = vmul.f32 %v6953_v16, %v3472_v63  ;;  %v3915_v58 = vadd.f32 %v3914_v39, %v3880_v17  ;;  %v4210_v24 = vshrl.u32 %v4081_v51, 16  ;;  %v3626_v63 = vpop.permute.xlu0 %3625 }
 0x29c   : > { %v4213_v10 = vshll.u32 %v4081_v51, 16  ;;  %2659 = vmatmul.bf16.gmra.mxu2 %v2514_v46  ;;  %3312 = vmatmul.bf16.gmra.mxu0 %v3167_v45  ;;  %v4208_v39 = vrot.slane %v4206_v49, 4  ;;  %v2876_v13 = vrot.slane %v2874_v34, 2  ;;  %v2879_v18 = vrot.slane %v2877_v22, 3 }
 0x29d   : > { %v3350_v59 = vadd.f32 %v3270_v0, %v3090_v52  ;;  %v3960_v14 = vadd.f32 %v3959_v43, %v3802_v54  ;;  %3511 = vmatmul.bf16.gmra.mxu1 %v7370_v29  ;;  %v4004_v40 = vmul.f32 %v3802_v54, %v3802_v54  ;;  %v4212_v37 = vrot.slane %v4210_v24, 6 }
 0x29e   : > { %v4215_v23 = vrot.slane %v4213_v10, 7  ;;  %v6986_v10 = vor.u32 %v2879_v18, %v2876_v13  ;;  %v6993_v13 = vld [vmem:[%s5929_s27 + $0x88] sm:$0xff] }
 0x29f   : > { %3052 = vmatmul.bf16.gmra.mxu3 %v2872_v36  ;;  %v3765_v50 = vmul.f32 %v6940_v5, %v3350_v59  ;;  %v4039_v1 = vadd.f32 %v4038_v12, %v4004_v40  ;;  %v2620_v33 = vpop.f32.mrf.mxu2  ;;  %v3574_v59 = vld [vmem:[#allocation2 + $0x100] sm:$0xff] }
 0x2a0   : > { %v4216_v0 = vor.u32 %v4215_v23, %v4212_v37  ;;  %v2698_v36 = vadd.f32 %v2620_v33, %v6536_v19 }
 0x2a1   : > { %v3836_v43 = vadd.f32 %v3835_v27, %v3765_v50  ;;  %v3881_v46 = vmul.f32 %v3765_v50, %v3765_v50  ;;  %v4082_v9 = vpack.c.bf16 %v3765_v50, %v3765_v50  ;;  %v3275_v49 = vpop.f32.mrf.mxu0  ;;  %v2515_v27 = vrot.slane %v6956_v31, 2 }
 0x2a2   : > { %v3013_v17 = vpop.f32.mrf.mxu3  ;;  %v3474_v51 = vpop.f32.mrf.mxu1  ;;  %v4217_v52 = vsel %vm6856_vm11, %v4208_v39, %v4216_v0  ;;  %3740 = vperm.xlu2 %5791, %v3574_v59   ;;  %v4218_v23 = vrot.slane %v4216_v0, 4  ;;  %v7371_v59 = vld [vmem:[#allocation17_spill] sm:$0xff] }
 0x2a3   : > { %v3916_v5 = vadd.f32 %v3915_v58, %v3881_v46  ;;  %v4220_v45 = vshrl.u32 %v4082_v9, 16  ;;  %4557 = vst [vmem:[%s6830_s14 + $0x20] sm:$0xf] %v4217_v52  ;;  %v4223_v12 = vshll.u32 %v4082_v9, 16  ;;  %v3091_v24 = vadd.f32 %v3013_v17, %v2698_v36  ;;  %v6990_v9 = vpop.permute.xlu1 %3630 }
 0x2a4   : > { %v3803_v34 = vmul.f32 %v3626_v63, %v3474_v51  ;;  %v3168_v58 = vrot.slane %v6956_v31, 3  ;;  %v2881_v17 = vsel %vm2747_vm4, %v6948_v35, %v6986_v10 }
 0x2a5   : > { %v4222_v22 = vrot.slane %v4220_v45, 6  ;;  %v4225_v19 = vrot.slane %v4223_v12, 7  ;;  %v3351_v29 = vadd.f32 %v3273_v25, %v3091_v24  ;;  %v2886_v12 = vshll.u32 %v6993_v13, 16 }
 0x2a6   : > { %v3961_v4 = vadd.f32 %v3960_v14, %v3803_v34  ;;  %v4005_v40 = vmul.f32 %v3803_v34, %v3803_v34  ;;  %v5668_v37 = vpack.c.bf16 %v3803_v34, %v3802_v54  ;;  %v2516_v54 = vsel %vm2102_vm2, %v2513_v30, %v2515_v27 }
 0x2a7   : > { %v4226_v50 = vor.u32 %v4225_v19, %v4222_v22  ;;  %v3766_v39 = vmul.f32 %v6953_v16, %v3351_v29  ;;  %v2622_v46 = vpop.f32.mrf.mxu2  ;;  %v3169_v30 = vsel %vm3140_vm5, %v3166_v11, %v3168_v58  ;;  %v3577_v19 = vld [vmem:[#allocation2 + $0x118] sm:$0x3f] }
 0x2a8   : > { %v4040_v33 = vadd.f32 %v4039_v1, %v4005_v40  ;;  %5736 = vst [vmem:[%s6804_s11 + $0x20] sm:$0xff] %v5668_v37   ;;  %v2699_v25 = vadd.f32 %v2622_v46, %v6551_v42  ;;  %v2888_v46 = vrot.slane %v2886_v12, 3 }
 0x2a9   : > { %v4227_v18 = vsel %vm6856_vm11, %v4218_v23, %v4226_v50  ;;  %v3837_v16 = vadd.f32 %v3836_v43, %v3766_v39  ;;  %v3882_v1 = vmul.f32 %v3766_v39, %v3766_v39  ;;  %v4083_v36 = vpack.c.bf16 %v3766_v39, %v3766_v39  ;;  %v3278_v52 = vpop.f32.mrf.mxu0 }
 0x2aa   : > { %v3015_v14 = vpop.f32.mrf.mxu3  ;;  %v3477_v0 = vpop.f32.mrf.mxu1  ;;  %4558 = vst [vmem:[%s6830_s14 + $0x24] sm:$0xf] %v4227_v18  ;;  %v2883_v43 = vshrl.u32 %v6993_v13, 16  ;;  %3755 = vperm.xlu2 %5791, %v3577_v19   ;;  %v4228_v11 = vrot.slane %v4226_v50, 4 }
 0x2ab   : > { %v3092_v42 = vadd.f32 %v3015_v14, %v2699_v25  ;;  %v3804_v51 = vmul.f32 %v6990_v9, %v3477_v0  ;;  %v3917_v45 = vadd.f32 %v3916_v5, %v3882_v1  ;;  %v4230_v24 = vshrl.u32 %v4083_v36, 16  ;;  %v3636_v18 = vpop.permute.xlu2 %3635 }
 0x2ac   : > { %v4233_v34 = vshll.u32 %v4083_v36, 16  ;;  %2664 = vmatmul.bf16.gmra.mxu2 %v2516_v54  ;;  %3317 = vmatmul.bf16.gmra.mxu0 %v3169_v30  ;;  %v2885_v39 = vrot.slane %v2883_v43, 2 }
 0x2ad   : > { %v3352_v35 = vadd.f32 %v3275_v49, %v3092_v42  ;;  %v3962_v22 = vadd.f32 %v3961_v4, %v3804_v51  ;;  %3516 = vmatmul.bf16.gmra.mxu1 %v7371_v59  ;;  %v4006_v29 = vmul.f32 %v3804_v51, %v3804_v51  ;;  %v4232_v40 = vrot.slane %v4230_v24, 6 }
 0x2ae   : > { %v4235_v3 = vrot.slane %v4233_v34, 7  ;;  %v7022_v12 = vor.u32 %v2888_v46, %v2885_v39 }
 0x2af   : > { %3057 = vmatmul.bf16.gmra.mxu3 %v2881_v17  ;;  %v3767_v37 = vmul.f32 %v3626_v63, %v3352_v35  ;;  %v4041_v5 = vadd.f32 %v4040_v33, %v4006_v29  ;;  %v2625_v23 = vpop.f32.mrf.mxu2 }
 0x2b0   : > { %v4236_v25 = vor.u32 %v4235_v3, %v4232_v40  ;;  %v2700_v1 = vadd.f32 %v2625_v23, %v6560_v7  ;;  %v7029_v23 = vld [vmem:[%s5929_s27 + $0x90] sm:$0xff] }
 0x2b1   : > { %v3838_v49 = vadd.f32 %v3837_v16, %v3767_v37  ;;  %v3883_v4 = vmul.f32 %v3767_v37, %v3767_v37  ;;  %v4084_v14 = vpack.c.bf16 %v3767_v37, %v3767_v37  ;;  %v3280_v50 = vpop.f32.mrf.mxu0  ;;  %v2517_v16 = vrot.slane %v6993_v13, 2 }
 0x2b2   : > { %v3018_v54 = vpop.f32.mrf.mxu3  ;;  %v3479_v0 = vpop.f32.mrf.mxu1  ;;  %v4237_v17 = vsel %vm6856_vm11, %v4228_v11, %v4236_v25  ;;  %v4238_v19 = vrot.slane %v4236_v25, 4  ;;  %v2890_v25 = vsel %vm2747_vm4, %v6986_v10, %v7022_v12 }
 0x2b3   : > { %v3918_v63 = vadd.f32 %v3917_v45, %v3883_v4  ;;  %v4240_v36 = vshrl.u32 %v4084_v14, 16  ;;  %4559 = vst [vmem:[%s6830_s14 + $0x28] sm:$0xf] %v4237_v17  ;;  %v4243_v33 = vshll.u32 %v4084_v14, 16  ;;  %v3093_v42 = vadd.f32 %v3018_v54, %v2700_v1  ;;  %v7026_v11 = vpop.permute.xlu0 %3640 }
 0x2b4   : > { %v3805_v30 = vmul.f32 %v3636_v18, %v3479_v0  ;;  %v3170_v45 = vrot.slane %v6993_v13, 3  ;;  %v2895_v0 = vshll.u32 %v7029_v23, 16 }
 0x2b5   : > { %v4242_v43 = vrot.slane %v4240_v36, 6  ;;  %v4245_v24 = vrot.slane %v4243_v33, 7  ;;  %v3353_v7 = vadd.f32 %v3278_v52, %v3093_v42  ;;  %v7372_v42 = vld [vmem:[#allocation18_spill] sm:$0xff] }
 0x2b6   : > { %v3963_v34 = vadd.f32 %v3962_v22, %v3805_v30  ;;  %v4007_v35 = vmul.f32 %v3805_v30, %v3805_v30  ;;  %v5673_v59 = vpack.c.bf16 %v3805_v30, %v3804_v51  ;;  %v2518_v51 = vsel %vm2102_vm2, %v2515_v27, %v2517_v16 }
 0x2b7   : > { %v4246_v29 = vor.u32 %v4245_v24, %v4242_v43  ;;  %v3768_v40 = vmul.f32 %v6990_v9, %v3353_v7  ;;  %v2627_v37 = vpop.f32.mrf.mxu2  ;;  %v3171_v27 = vsel %vm3140_vm5, %v3168_v58, %v3170_v45 }
 0x2b8   : > { %v4042_v3 = vadd.f32 %v4041_v5, %v4007_v35  ;;  %5737 = vst [vmem:[%s6804_s11 + $0x28] sm:$0xff] %v5673_v59   ;;  %v2701_v39 = vadd.f32 %v2627_v37, %v6581_v57  ;;  %v2897_v59 = vrot.slane %v2895_v0, 3 }
 0x2b9   : > { %v4247_v22 = vsel %vm6856_vm11, %v4238_v19, %v4246_v29  ;;  %v3839_v9 = vadd.f32 %v3838_v49, %v3768_v40  ;;  %v3884_v5 = vmul.f32 %v3768_v40, %v3768_v40  ;;  %v4085_v4 = vpack.c.bf16 %v3768_v40, %v3768_v40  ;;  %v3283_v54 = vpop.f32.mrf.mxu0 }
 0x2ba   : > { %v3020_v52 = vpop.f32.mrf.mxu3  ;;  %v3482_v46 = vpop.f32.mrf.mxu1  ;;  %4560 = vst [vmem:[%s6830_s14 + $0x2c] sm:$0xf] %v4247_v22  ;;  %v2892_v49 = vshrl.u32 %v7029_v23, 16  ;;  %v4248_v7 = vrot.slane %v4246_v29, 4 }
 0x2bb   : > { %v3094_v57 = vadd.f32 %v3020_v52, %v2701_v39  ;;  %v3806_v14 = vmul.f32 %v7026_v11, %v3482_v46  ;;  %v3919_v1 = vadd.f32 %v3918_v63, %v3884_v5  ;;  %v4250_v17 = vshrl.u32 %v4085_v4, 16  ;;  %v3646_v39 = vpop.permute.xlu1 %3645 }
 0x2bc   : > { %v4253_v36 = vshll.u32 %v4085_v4, 16  ;;  %2669 = vmatmul.bf16.gmra.mxu2 %v2518_v51  ;;  %3322 = vmatmul.bf16.gmra.mxu0 %v3171_v27  ;;  %v2894_v35 = vrot.slane %v2892_v49, 2 }
 0x2bd   : > { %v3354_v10 = vadd.f32 %v3280_v50, %v3094_v57  ;;  %v3964_v33 = vadd.f32 %v3963_v34, %v3806_v14  ;;  %3521 = vmatmul.bf16.gmra.mxu1 %v7372_v42  ;;  %v4008_v30 = vmul.f32 %v3806_v14, %v3806_v14  ;;  %v4252_v43 = vrot.slane %v4250_v17, 6 }
 0x2be   : > { %v4255_v24 = vrot.slane %v4253_v36, 7  ;;  %v7058_v57 = vor.u32 %v2897_v59, %v2894_v35 }
 0x2bf   : > { %3062 = vmatmul.bf16.gmra.mxu3 %v2890_v25  ;;  %v3769_v31 = vmul.f32 %v3636_v18, %v3354_v10  ;;  %v4043_v58 = vadd.f32 %v4042_v3, %v4008_v30  ;;  %v2630_v63 = vpop.f32.mrf.mxu2 }
 0x2c0   : > { %v4256_v19 = vor.u32 %v4255_v24, %v4252_v43  ;;  %v2702_v52 = vadd.f32 %v2630_v63, %v6593_v21  ;;  %v7062_v24 = vpop.permute.xlu2 %3650  ;;  %v2899_v59 = vsel %vm2747_vm4, %v7022_v12, %v7058_v57 }
 0x2c1   : > { %v3840_v40 = vadd.f32 %v3839_v9, %v3769_v31  ;;  %v3885_v37 = vmul.f32 %v3769_v31, %v3769_v31  ;;  %v4086_v50 = vpack.c.bf16 %v3769_v31, %v3769_v31  ;;  %v3285_v29 = vpop.f32.mrf.mxu0  ;;  %v2519_v9 = vrot.slane %v7029_v23, 2  ;;  %v7065_v31 = vld [vmem:[%s5929_s27 + $0x98] sm:$0xff] }
 0x2c2   : > { %v3023_v34 = vpop.f32.mrf.mxu3  ;;  %v3484_v51 = vpop.f32.mrf.mxu1  ;;  %v4257_v22 = vsel %vm6856_vm11, %v4248_v7, %v4256_v19  ;;  %v4258_v36 = vrot.slane %v4256_v19, 4  ;;  %v7373_v7 = vld [vmem:[#allocation20_spill] sm:$0xff] }
 0x2c3   : > { %v3920_v5 = vadd.f32 %v3919_v1, %v3885_v37  ;;  %v4260_v18 = vshrl.u32 %v4086_v50, 16  ;;  %4561 = vst [vmem:[%s6830_s14 + $0x30] sm:$0xf] %v4257_v22  ;;  %v4263_v3 = vshll.u32 %v4086_v50, 16  ;;  %v3095_v46 = vadd.f32 %v3023_v34, %v2702_v52 }
 0x2c4   : > { %v3807_v25 = vmul.f32 %v3646_v39, %v3484_v51  ;;  %v3172_v1 = vrot.slane %v7029_v23, 3  ;;  %v2904_v51 = vshll.u32 %v7065_v31, 16  ;;  %v7375_v23 = vld [vmem:[#allocation21_spill] sm:$0xff] }
 0x2c5   : > { %v4262_v4 = vrot.slane %v4260_v18, 6  ;;  %v4265_v27 = vrot.slane %v4263_v3, 7  ;;  %v3355_v21 = vadd.f32 %v3283_v54, %v3095_v46  ;;  %v7374_v46 = vld [vmem:[#allocation19_spill] sm:$0xff] }
 0x2c6   : > { %v3965_v49 = vadd.f32 %v3964_v33, %v3807_v25  ;;  %v4009_v0 = vmul.f32 %v3807_v25, %v3807_v25  ;;  %v5678_v17 = vpack.c.bf16 %v3807_v25, %v3806_v14  ;;  %v2520_v14 = vsel %vm2102_vm2, %v2517_v16, %v2519_v9 }
 0x2c7   : > { %v4266_v10 = vor.u32 %v4265_v27, %v4262_v4  ;;  %v3770_v42 = vmul.f32 %v7026_v11, %v3355_v21  ;;  %v2632_v43 = vpop.f32.mrf.mxu2  ;;  %v3173_v16 = vsel %vm3140_vm5, %v3170_v45, %v3172_v1 }
 0x2c8   : > { %v4044_v30 = vadd.f32 %v4043_v58, %v4009_v0  ;;  %5738 = vst [vmem:[%s6804_s11 + $0x30] sm:$0xff] %v5678_v17   ;;  %v2703_v63 = vadd.f32 %v2632_v43, %v7373_v7  ;;  %v2906_v17 = vrot.slane %v2904_v51, 3 }
 0x2c9   : > { %v4267_v33 = vsel %vm6856_vm11, %v4258_v36, %v4266_v10  ;;  %v3841_v11 = vadd.f32 %v3840_v40, %v3770_v42  ;;  %v3886_v58 = vmul.f32 %v3770_v42, %v3770_v42  ;;  %v4087_v19 = vpack.c.bf16 %v3770_v42, %v3770_v42  ;;  %v3288_v34 = vpop.f32.mrf.mxu0  ;;  %v2726_v36 = vld [vmem:[%s5929_s27 + $0xa0] sm:$0x3] }
 0x2ca   : > { %v3025_v54 = vpop.f32.mrf.mxu3  ;;  %v3487_v35 = vpop.f32.mrf.mxu1  ;;  %4562 = vst [vmem:[%s6830_s14 + $0x34] sm:$0xf] %v4267_v33  ;;  %v2901_v40 = vshrl.u32 %v7065_v31, 16  ;;  %v4268_v45 = vrot.slane %v4266_v10, 4 }
 0x2cb   : > { %v3096_v37 = vadd.f32 %v3025_v54, %v2703_v63  ;;  %v3808_v50 = vmul.f32 %v7062_v24, %v3487_v35  ;;  %v3921_v52 = vadd.f32 %v3920_v5, %v3886_v58  ;;  %v4270_v22 = vshrl.u32 %v4087_v19, 16  ;;  %v3656_v63 = vpop.permute.xlu0 %3655 }
 0x2cc   : > { %v4273_v18 = vshll.u32 %v4087_v19, 16  ;;  %2674 = vmatmul.bf16.gmra.mxu2 %v2520_v14  ;;  %3327 = vmatmul.bf16.gmra.mxu0 %v3173_v16  ;;  %v2903_v0 = vrot.slane %v2901_v40, 2  ;;  %v2745_v58 = vunpack.c.l.b16 %v2726_v36 }
 0x2cd   : > { %v3356_v12 = vadd.f32 %v3285_v29, %v3096_v37  ;;  %v3966_v3 = vadd.f32 %v3965_v49, %v3808_v50  ;;  %3526 = vmatmul.bf16.gmra.mxu1 %v7374_v46  ;;  %v4010_v25 = vmul.f32 %v3808_v50, %v3808_v50  ;;  %v4272_v4 = vrot.slane %v4270_v22, 6 }
 0x2ce   : > { %v4275_v13 = vrot.slane %v4273_v18, 7  ;;  %v7095_v16 = vor.u32 %v2906_v17, %v2903_v0 }
 0x2cf   : > { %3067 = vmatmul.bf16.gmra.mxu3 %v2899_v59  ;;  %v3771_v27 = vmul.f32 %v3646_v39, %v3356_v12  ;;  %v4045_v5 = vadd.f32 %v4044_v30, %v4010_v25  ;;  %v2635_v21 = vpop.f32.mrf.mxu2  ;;  %v7098_v12 = vpack.c.b16 %v2745_v58, %v2745_v58 }
 0x2d0   : > { %v4276_v42 = vor.u32 %v4275_v13, %v4272_v4  ;;  %v2704_v54 = vadd.f32 %v2635_v21, %v6615_v2  ;;  %v3174_v2 = vrot.slane %v7065_v31, 3  ;;  %v2377_v21 = vld [vmem:[%s5929_s27 + $0xa0] sm:$0x1] }
 0x2d1   : > { %v3842_v43 = vadd.f32 %v3841_v11, %v3771_v27  ;;  %v3887_v29 = vmul.f32 %v3771_v27, %v3771_v27  ;;  %v4088_v49 = vpack.c.bf16 %v3771_v27, %v3771_v27  ;;  %v3290_v30 = vpop.f32.mrf.mxu0  ;;  %v2521_v11 = vrot.slane %v7065_v31, 2 }
 0x2d2   : > { %v3028_v7 = vpop.f32.mrf.mxu3  ;;  %v3489_v14 = vpop.f32.mrf.mxu1  ;;  %v4277_v33 = vsel %vm6856_vm11, %v4268_v45, %v4276_v42  ;;  %v4278_v46 = vrot.slane %v4276_v42, 4 }
 0x2d3   : > { %v3922_v39 = vadd.f32 %v3921_v52, %v3887_v29  ;;  %v4280_v10 = vshrl.u32 %v4088_v49, 16  ;;  %4563 = vst [vmem:[%s6830_s14 + $0x38] sm:$0xf] %v4277_v33  ;;  %v4283_v35 = vshll.u32 %v4088_v49, 16  ;;  %v3097_v59 = vadd.f32 %v3028_v7, %v2704_v54  ;;  %v7101_v45 = vpop.permute.xlu1 %3660 }
 0x2d4   : > { %v3809_v19 = vmul.f32 %v3656_v63, %v3489_v14  ;;  %v2468_v7 = vunpack.c.l.b16 %v2377_v21  ;;  %v2910_v54 = vshrl.u32 %v7098_v12, 16  ;;  %v3666_v21 = vpop.permute.xlu2 %3665 }
 0x2d5   : > { %v4282_v37 = vrot.slane %v4280_v10, 6  ;;  %v4285_v40 = vrot.slane %v4283_v35, 7  ;;  %v3357_v51 = vadd.f32 %v3288_v34, %v3097_v59  ;;  %v2908_v34 = vsel %vm2747_vm4, %v7058_v57, %v7095_v16 }
 0x2d6   : > { %v3967_v22 = vadd.f32 %v3966_v3, %v3809_v19  ;;  %v4011_v52 = vmul.f32 %v3809_v19, %v3809_v19  ;;  %v5683_v18 = vpack.c.bf16 %v3809_v19, %v3808_v50  ;;  %v2522_v50 = vsel %vm2102_vm2, %v2519_v9, %v2521_v11 }
 0x2d7   : > { %v4286_v25 = vor.u32 %v4285_v40, %v4282_v37  ;;  %v3772_v4 = vmul.f32 %v7062_v24, %v3357_v51  ;;  %v2637_v27 = vpop.f32.mrf.mxu2  ;;  %v2487_v37 = vpack.c.b16 %v2468_v7, %v2468_v7 }
 0x2d8   : > { %v4046_v13 = vadd.f32 %v4045_v5, %v4011_v52  ;;  %5739 = vst [vmem:[%s6804_s11 + $0x38] sm:$0xff] %v5683_v18   ;;  %v2705_v0 = vadd.f32 %v2637_v27, %v6625_v15  ;;  %v3175_v15 = vsel %vm3140_vm5, %v3172_v1, %v3174_v2  ;;  %v2912_v52 = vrot.slane %v2910_v54, 2 }
 0x2d9   : > { %v4287_v24 = vsel %vm6856_vm11, %v4278_v46, %v4286_v25  ;;  %v3843_v3 = vadd.f32 %v3842_v43, %v3772_v4  ;;  %v3888_v5 = vmul.f32 %v3772_v4, %v3772_v4  ;;  %v4089_v42 = vpack.c.bf16 %v3772_v4, %v3772_v4  ;;  %v3293_v49 = vpop.f32.mrf.mxu0 }
 0x2da   : > { %v3030_v17 = vpop.f32.mrf.mxu3  ;;  %v3492_v36 = vpop.f32.mrf.mxu1  ;;  %4564 = vst [vmem:[%s6830_s14 + $0x3c] sm:$0xf] %v4287_v24  ;;  %v2913_v43 = vshll.u32 %v7098_v12, 16  ;;  %v4288_v40 = vrot.slane %v4286_v25, 4 }
 0x2db   : > { %v3098_v29 = vadd.f32 %v3030_v17, %v2705_v0  ;;  %v3810_v9 = vmul.f32 %v7101_v45, %v3492_v36  ;;  %v3923_v57 = vadd.f32 %v3922_v39, %v3888_v5  ;;  %v4290_v14 = vshrl.u32 %v4089_v42, 16  ;;  %v7376_v0 = vld [vmem:[#allocation22_spill] sm:$0xff] }
 0x2dc   : > { %v4293_v33 = vshll.u32 %v4089_v42, 16  ;;  %2679 = vmatmul.bf16.gmra.mxu2 %v2522_v50  ;;  %3332 = vmatmul.bf16.gmra.mxu0 %v3175_v15  ;;  %v2915_v18 = vrot.slane %v2913_v43, 3 }
 0x2dd   : > { %v3358_v10 = vadd.f32 %v3290_v30, %v3098_v29  ;;  %v3968_v58 = vadd.f32 %v3967_v22, %v3810_v9  ;;  %3531 = vmatmul.bf16.gmra.mxu1 %v7375_v23  ;;  %v4012_v1 = vmul.f32 %v3810_v9, %v3810_v9  ;;  %v4292_v35 = vrot.slane %v4290_v14, 6 }
 0x2de   : > { %v4295_v59 = vrot.slane %v4293_v33, 7  ;;  %v2916_v42 = vor.u32 %v2915_v18, %v2912_v52  ;;  %v3176_v33 = vrot.slane %v7098_v12, 3 }
 0x2df   : > { %3072 = vmatmul.bf16.gmra.mxu3 %v2908_v34  ;;  %v3773_v19 = vmul.f32 %v3656_v63, %v3358_v10  ;;  %v4047_v39 = vadd.f32 %v4046_v13, %v4012_v1  ;;  %v2640_v51 = vpop.f32.mrf.mxu2 }
 0x2e0   : > { %v4296_v46 = vor.u32 %v4295_v59, %v4292_v35  ;;  %v2706_v17 = vadd.f32 %v2640_v51, %v7376_v0  ;;  %v3671_v59 = vpop.permute.xlu0 %3670 }
 0x2e1   : > { %v3844_v4 = vadd.f32 %v3843_v3, %v3773_v19  ;;  %v3889_v30 = vmul.f32 %v3773_v19, %v3773_v19  ;;  %v4090_v22 = vpack.c.bf16 %v3773_v19, %v3773_v19  ;;  %v3295_v25 = vpop.f32.mrf.mxu0  ;;  %v2523_v3 = vrot.slane %v2487_v37, 2 }
 0x2e2   : > { %v3033_v27 = vpop.f32.mrf.mxu3  ;;  %v3494_v50 = vpop.f32.mrf.mxu1  ;;  %v4297_v34 = vsel %vm6856_vm11, %v4288_v40, %v4296_v46  ;;  %v4298_v10 = vrot.slane %v4296_v46, 4 }
 0x2e3   : > { %v3924_v63 = vadd.f32 %v3923_v57, %v3889_v30  ;;  %v4300_v24 = vshrl.u32 %v4090_v22, 16  ;;  %4565 = vst [vmem:[%s6830_s14 + $0x40] sm:$0xf] %v4297_v34  ;;  %v4303_v13 = vshll.u32 %v4090_v22, 16  ;;  %v3099_v5 = vadd.f32 %v3033_v27, %v2706_v17 }
 0x2e4   : > { %v3811_v36 = vmul.f32 %v3666_v21, %v3494_v50 }
 0x2e5   : > { %v4302_v15 = vrot.slane %v4300_v24, 6  ;;  %v4305_v29 = vrot.slane %v4303_v13, 7  ;;  %v3359_v7 = vadd.f32 %v3293_v49, %v3099_v5  ;;  %v2524_v49 = vsel %vm2102_vm2, %v2521_v11, %v2523_v3 }
 0x2e6   : > { %v3969_v54 = vadd.f32 %v3968_v58, %v3811_v36  ;;  %v4013_v43 = vmul.f32 %v3811_v36, %v3811_v36  ;;  %v5688_v14 = vpack.c.bf16 %v3811_v36, %v3810_v9 }
 0x2e7   : > { %v4306_v57 = vor.u32 %v4305_v29, %v4302_v15  ;;  %v3774_v23 = vmul.f32 %v7101_v45, %v3359_v7  ;;  %v2642_v35 = vpop.f32.mrf.mxu2  ;;  %v2917_v45 = vsel %vm2747_vm4, %v7095_v16, %v2916_v42 }
 0x2e8   : > { %v4048_v1 = vadd.f32 %v4047_v39, %v4013_v43  ;;  %5740 = vst [vmem:[%s6804_s11 + $0x40] sm:$0xff] %v5688_v14   ;;  %v2707_v19 = vadd.f32 %v2642_v35, %v6644_v41  ;;  %v3177_v41 = vsel %vm3140_vm5, %v3174_v2, %v3176_v33 }
 0x2e9   : > { %v4307_v9 = vsel %vm6856_vm11, %v4298_v10, %v4306_v57  ;;  %v3845_v12 = vadd.f32 %v3844_v4, %v3774_v23  ;;  %v3890_v58 = vmul.f32 %v3774_v23, %v3774_v23  ;;  %v4091_v39 = vpack.c.bf16 %v3774_v23, %v3774_v23  ;;  %v3298_v18 = vpop.f32.mrf.mxu0  ;;  %v7377_v4 = vld [vmem:[#allocation23_spill] sm:$0xff] }
 0x2ea   : > { %v3035_v37 = vpop.f32.mrf.mxu3  ;;  %v3497_v40 = vpop.f32.mrf.mxu1  ;;  %4566 = vst [vmem:[%s6830_s14 + $0x44] sm:$0xf] %v4307_v9  ;;  %v4308_v34 = vrot.slane %v4306_v57, 4 }
 0x2eb   : > { %v3100_v51 = vadd.f32 %v3035_v37, %v2707_v19  ;;  %v3812_v52 = vmul.f32 %v3671_v59, %v3497_v40  ;;  %v3925_v46 = vadd.f32 %v3924_v63, %v3890_v58  ;;  %v4310_v11 = vshrl.u32 %v4091_v39, 16 }
 0x2ec   : > { %v4313_v30 = vshll.u32 %v4091_v39, 16  ;;  %2684 = vmatmul.bf16.gmra.mxu2 %v2524_v49  ;;  %3337 = vmatmul.bf16.gmra.mxu0 %v3177_v41 }
 0x2ed   : > { %v3360_v22 = vadd.f32 %v3295_v25, %v3100_v51  ;;  %v3970_v27 = vadd.f32 %v3969_v54, %v3812_v52  ;;  %3536 = vmatmul.bf16.gmra.mxu1 %v7377_v4  ;;  %v4014_v0 = vmul.f32 %v3812_v52, %v3812_v52  ;;  %v4312_v16 = vrot.slane %v4310_v11, 6  ;;  %v3676_v25 = vpop.permute.xlu1 %3675 }
 0x2ee   : > { %v4315_v17 = vrot.slane %v4313_v30, 7 }
 0x2ef   : > { %3077 = vmatmul.bf16.gmra.mxu3 %v2917_v45  ;;  %v3775_v50 = vmul.f32 %v3666_v21, %v3360_v22  ;;  %v4049_v24 = vadd.f32 %v4048_v1, %v4014_v0  ;;  %v2645_v31 = vpop.f32.mrf.mxu2 }
 0x2f0   : > { %v4316_v13 = vor.u32 %v4315_v17, %v4312_v16  ;;  %v2708_v15 = vadd.f32 %v2645_v31, %v6649_v47 }
 0x2f1   : > { %v3846_v2 = vadd.f32 %v3845_v12, %v3775_v50  ;;  %v3891_v63 = vmul.f32 %v3775_v50, %v3775_v50  ;;  %v4092_v5 = vpack.c.bf16 %v3775_v50, %v3775_v50  ;;  %v3300_v54 = vpop.f32.mrf.mxu0  ;;  %v3681_v12 = vpop.permute.xlu2 %3680 }
 0x2f2   : > { %v3038_v36 = vpop.f32.mrf.mxu3  ;;  %v3499_v3 = vpop.f32.mrf.mxu1  ;;  %v4317_v42 = vsel %vm6856_vm11, %v4308_v34, %v4316_v13  ;;  %v4318_v47 = vrot.slane %v4316_v13, 4 }
 0x2f3   : > { %v3926_v29 = vadd.f32 %v3925_v46, %v3891_v63  ;;  %v4320_v7 = vshrl.u32 %v4092_v5, 16  ;;  %4567 = vst [vmem:[%s6830_s14 + $0x48] sm:$0xf] %v4317_v42  ;;  %v4323_v21 = vshll.u32 %v4092_v5, 16  ;;  %v3101_v43 = vadd.f32 %v3038_v36, %v2708_v15  ;;  %v3686_v36 = vpop.permute.xlu0 %3685 }
 0x2f4   : > { %v3813_v14 = vmul.f32 %v3676_v25, %v3499_v3 }
 0x2f5   : > { %v4322_v33 = vrot.slane %v4320_v7, 6  ;;  %v4325_v10 = vrot.slane %v4323_v21, 7  ;;  %v3361_v57 = vadd.f32 %v3298_v18, %v3101_v43 }
 0x2f6   : > { %v3971_v23 = vadd.f32 %v3970_v27, %v3813_v14  ;;  %v4015_v1 = vmul.f32 %v3813_v14, %v3813_v14  ;;  %v5693_v35 = vpack.c.bf16 %v3813_v14, %v3812_v52 }
 0x2f7   : > { %v4326_v19 = vor.u32 %v4325_v10, %v4322_v33  ;;  %v3776_v37 = vmul.f32 %v3671_v59, %v3361_v57  ;;  %v2647_v9 = vpop.f32.mrf.mxu2 }
 0x2f8   : > { %v4050_v49 = vadd.f32 %v4049_v24, %v4015_v1  ;;  %5741 = vst [vmem:[%s6804_s11 + $0x48] sm:$0xff] %v5693_v35   ;;  %v2709_v58 = vadd.f32 %v2647_v9, %v6661_v32 }
 0x2f9   : > { %v4327_v45 = vsel %vm6856_vm11, %v4318_v47, %v4326_v19  ;;  %v3847_v39 = vadd.f32 %v3846_v2, %v3776_v37  ;;  %v3892_v51 = vmul.f32 %v3776_v37, %v3776_v37  ;;  %v4093_v41 = vpack.c.bf16 %v3776_v37, %v3776_v37  ;;  %v3303_v11 = vpop.f32.mrf.mxu0 }
 0x2fa   : > { %v3040_v40 = vpop.f32.mrf.mxu3  ;;  %v3502_v18 = vpop.f32.mrf.mxu1  ;;  %4568 = vst [vmem:[%s6830_s14 + $0x4c] sm:$0xf] %v4327_v45  ;;  %v4328_v50 = vrot.slane %v4326_v19, 4 }
 0x2fb   : > { %v3102_v46 = vadd.f32 %v3040_v40, %v2709_v58  ;;  %v3814_v52 = vmul.f32 %v3681_v12, %v3502_v18  ;;  %v3927_v30 = vadd.f32 %v3926_v29, %v3892_v51  ;;  %v4330_v59 = vshrl.u32 %v4093_v41, 16 }
 0x2fc   : > { %v4333_v22 = vshll.u32 %v4093_v41, 16 }
 0x2fd   : > { %v3362_v27 = vadd.f32 %v3300_v54, %v3102_v46  ;;  %v3972_v4 = vadd.f32 %v3971_v23, %v3814_v52  ;;  %v4016_v0 = vmul.f32 %v3814_v52, %v3814_v52  ;;  %v4332_v16 = vrot.slane %v4330_v59, 6 }
 0x2fe   : > { %v4335_v32 = vrot.slane %v4333_v22, 7 }
 0x2ff   : > { %v3777_v17 = vmul.f32 %v3676_v25, %v3362_v27  ;;  %v4051_v34 = vadd.f32 %v4050_v49, %v4016_v0  ;;  %v2650_v24 = vpop.f32.mrf.mxu2 }
 0x300   : > { %v4336_v31 = vor.u32 %v4335_v32, %v4332_v16  ;;  %v2710_v15 = vadd.f32 %v2650_v24, %v6666_v44 }
 0x301   : > { %v3848_v13 = vadd.f32 %v3847_v39, %v3777_v17  ;;  %v3893_v2 = vmul.f32 %v3777_v17, %v3777_v17  ;;  %v4094_v63 = vpack.c.bf16 %v3777_v17, %v3777_v17  ;;  %v3305_v54 = vpop.f32.mrf.mxu0  ;;  %v3691_v39 = vpop.permute.xlu1 %3690 }
 0x302   : > { %v3043_v5 = vpop.f32.mrf.mxu3  ;;  %v3504_v3 = vpop.f32.mrf.mxu1  ;;  %v4337_v42 = vsel %vm6856_vm11, %v4328_v50, %v4336_v31  ;;  %v4338_v44 = vrot.slane %v4336_v31, 4 }
 0x303   : > { %v3928_v29 = vadd.f32 %v3927_v30, %v3893_v2  ;;  %v4340_v7 = vshrl.u32 %v4094_v63, 16  ;;  %4569 = vst [vmem:[%s6830_s14 + $0x50] sm:$0xf] %v4337_v42  ;;  %v4343_v25 = vshll.u32 %v4094_v63, 16  ;;  %v3103_v21 = vadd.f32 %v3043_v5, %v2710_v15  ;;  %v3696_v15 = vpop.permute.xlu2 %3695 }
 0x304   : > { %v3815_v43 = vmul.f32 %v3686_v36, %v3504_v3 }
 0x305   : > { %v4342_v14 = vrot.slane %v4340_v7, 6  ;;  %v4345_v33 = vrot.slane %v4343_v25, 7  ;;  %v3363_v10 = vadd.f32 %v3303_v11, %v3103_v21 }
 0x306   : > { %v3973_v57 = vadd.f32 %v3972_v4, %v3815_v43  ;;  %v4017_v23 = vmul.f32 %v3815_v43, %v3815_v43  ;;  %v5698_v1 = vpack.c.bf16 %v3815_v43, %v3814_v52 }
 0x307   : > { %v4346_v35 = vor.u32 %v4345_v33, %v4342_v14  ;;  %v3778_v47 = vmul.f32 %v3681_v12, %v3363_v10  ;;  %v2652_v37 = vpop.f32.mrf.mxu2 }
 0x308   : > { %v4052_v19 = vadd.f32 %v4051_v34, %v4017_v23  ;;  %5742 = vst [vmem:[%s6804_s11 + $0x50] sm:$0xff] %v5698_v1   ;;  %v2711_v49 = vadd.f32 %v2652_v37, %v6678_v61 }
 0x309   : > { %v4347_v58 = vsel %vm6856_vm11, %v4338_v44, %v4346_v35  ;;  %v3849_v40 = vadd.f32 %v3848_v13, %v3778_v47  ;;  %v3894_v45 = vmul.f32 %v3778_v47, %v3778_v47  ;;  %v4095_v18 = vpack.c.bf16 %v3778_v47, %v3778_v47  ;;  %v3308_v52 = vpop.f32.mrf.mxu0 }
 0x30a   : > { %v3045_v9 = vpop.f32.mrf.mxu3  ;;  %v3507_v51 = vpop.f32.mrf.mxu1  ;;  %4570 = vst [vmem:[%s6830_s14 + $0x54] sm:$0xf] %v4347_v58  ;;  %v4348_v16 = vrot.slane %v4346_v35, 4 }
 0x30b   : > { %v3104_v41 = vadd.f32 %v3045_v9, %v2711_v49  ;;  %v3816_v46 = vmul.f32 %v3691_v39, %v3507_v51  ;;  %v3929_v11 = vadd.f32 %v3928_v29, %v3894_v45  ;;  %v4350_v12 = vshrl.u32 %v4095_v18, 16 }
 0x30c   : > { %v4353_v30 = vshll.u32 %v4095_v18, 16 }
 0x30d   : > { %v3364_v59 = vadd.f32 %v3305_v54, %v3104_v41  ;;  %v3974_v22 = vadd.f32 %v3973_v57, %v3816_v46  ;;  %v4018_v27 = vmul.f32 %v3816_v46, %v3816_v46  ;;  %v4352_v61 = vrot.slane %v4350_v12, 6 }
 0x30e   : > { %v4355_v4 = vrot.slane %v4353_v30, 7 }
 0x30f   : > { %v3779_v0 = vmul.f32 %v3686_v36, %v3364_v59  ;;  %v4053_v32 = vadd.f32 %v4052_v19, %v4018_v27  ;;  %v2655_v17 = vpop.f32.mrf.mxu2 }
 0x310   : > { %v4356_v50 = vor.u32 %v4355_v4, %v4352_v61  ;;  %v2712_v2 = vadd.f32 %v2655_v17, %v6683_v38 }
 0x311   : > { %v3850_v34 = vadd.f32 %v3849_v40, %v3779_v0  ;;  %v3895_v24 = vmul.f32 %v3779_v0, %v3779_v0  ;;  %v4096_v31 = vpack.c.bf16 %v3779_v0, %v3779_v0  ;;  %v3310_v29 = vpop.f32.mrf.mxu0 }
 0x312   : > { %v3048_v13 = vpop.f32.mrf.mxu3  ;;  %v3509_v63 = vpop.f32.mrf.mxu1  ;;  %v4357_v5 = vsel %vm6856_vm11, %v4348_v16, %v4356_v50  ;;  %v4358_v10 = vrot.slane %v4356_v50, 4 }
 0x313   : > { %v3930_v3 = vadd.f32 %v3929_v11, %v3895_v24  ;;  %v4360_v42 = vshrl.u32 %v4096_v31, 16  ;;  %4571 = vst [vmem:[%s6830_s14 + $0x58] sm:$0xf] %v4357_v5  ;;  %v4363_v36 = vshll.u32 %v4096_v31, 16  ;;  %v3105_v7 = vadd.f32 %v3048_v13, %v2712_v2  ;;  %v3706_v16 = vpop.permute.xlu1 %3705  ;;  %v3701_v24 = vpop.permute.xlu0 %3700 }
 0x314   : > { %v3817_v54 = vmul.f32 %v3696_v15, %v3509_v63 }
 0x315   : > { %v4362_v25 = vrot.slane %v4360_v42, 6  ;;  %v4365_v21 = vrot.slane %v4363_v36, 7  ;;  %v3365_v43 = vadd.f32 %v3308_v52, %v3105_v7 }
 0x316   : > { %v7168_v14 = vadd.f32 %v3974_v22, %v3817_v54  ;;  %v4019_v38 = vmul.f32 %v3817_v54, %v3817_v54  ;;  %v5703_v33 = vpack.c.bf16 %v3817_v54, %v3816_v46 }
 0x317   : > { %v4366_v57 = vor.u32 %v4365_v21, %v4362_v25  ;;  %v3780_v23 = vmul.f32 %v3691_v39, %v3365_v43  ;;  %v2657_v44 = vpop.f32.mrf.mxu2 }
 0x318   : > { %v7170_v1 = vadd.f32 %v4053_v32, %v4019_v38  ;;  %5743 = vst [vmem:[%s6804_s11 + $0x58] sm:$0xff] %v5703_v33   ;;  %v2713_v35 = vadd.f32 %v2657_v44, %v6695_v20 }
 0x319   : > { %v4367_v19 = vsel %vm6856_vm11, %v4358_v10, %v4366_v57  ;;  %v3851_v37 = vadd.f32 %v3850_v34, %v3780_v23  ;;  %v3896_v49 = vmul.f32 %v3780_v23, %v3780_v23  ;;  %v4097_v58 = vpack.c.bf16 %v3780_v23, %v3780_v23  ;;  %v3313_v45 = vpop.f32.mrf.mxu0 }
 0x31a   : > { %v3050_v47 = vpop.f32.mrf.mxu3  ;;  %v3512_v9 = vpop.f32.mrf.mxu1  ;;  %4572 = vst [vmem:[%s6830_s14 + $0x5c] sm:$0xf] %v4367_v19  ;;  %v4368_v20 = vrot.slane %v4366_v57, 4 }
 0x31b   : > { %v3106_v40 = vadd.f32 %v3050_v47, %v2713_v35  ;;  %v3931_v51 = vadd.f32 %v3930_v3, %v3896_v49  ;;  %v4370_v18 = vshrl.u32 %v4097_v58, 16  ;;  %v4373_v39 = vshll.u32 %v4097_v58, 16 }
 0x31c   : > { %v7183_v5 = vmul.f32 %v3701_v24, %v3512_v9 }
 0x31d   : > { %v3366_v41 = vadd.f32 %v3310_v29, %v3106_v40  ;;  %v4372_v46 = vrot.slane %v4370_v18, 6  ;;  %v4375_v52 = vrot.slane %v4373_v39, 7 }
 0x31f   : > { %v3781_v11 = vmul.f32 %v3696_v15, %v3366_v41  ;;  %v2660_v12 = vpop.f32.mrf.mxu2  ;;  %v4376_v30 = vor.u32 %v4375_v52, %v4372_v46  ;;  %v3716_v52 = vpop.permute.xlu0 %3715 }
 0x320   : > { %v2714_v4 = vadd.f32 %v2660_v12, %v6700_v8 }
 0x321   : > { %v3852_v59 = vadd.f32 %v3851_v37, %v3781_v11  ;;  %v3897_v22 = vmul.f32 %v3781_v11, %v3781_v11  ;;  %v4098_v27 = vpack.c.bf16 %v3781_v11, %v3781_v11  ;;  %v4377_v32 = vsel %vm6856_vm11, %v4368_v20, %v4376_v30  ;;  %v3315_v34 = vpop.f32.mrf.mxu0 }
 0x322   : > { %v3053_v61 = vpop.f32.mrf.mxu3  ;;  %v3514_v0 = vpop.f32.mrf.mxu1  ;;  %4573 = vst [vmem:[%s6830_s14 + $0x60] sm:$0xf] %v4377_v32  ;;  %v4378_v42 = vrot.slane %v4376_v30, 4 }
 0x323   : > { %v3932_v17 = vadd.f32 %v3931_v51, %v3897_v22  ;;  %v4380_v50 = vshrl.u32 %v4098_v27, 16  ;;  %v4383_v31 = vshll.u32 %v4098_v27, 16  ;;  %v3107_v13 = vadd.f32 %v3053_v61, %v2714_v4 }
 0x324   : > { %v7181_v2 = vmul.f32 %v3706_v16, %v3514_v0 }
 0x325   : > { %v4382_v63 = vrot.slane %v4380_v50, 6  ;;  %v4385_v8 = vrot.slane %v4383_v31, 7  ;;  %v3367_v15 = vadd.f32 %v3313_v45, %v3107_v13 }
 0x326   : > { %v5708_v3 = vpack.c.bf16 %v7181_v2, %v7183_v5 }
 0x327   : > { %v4386_v29 = vor.u32 %v4385_v8, %v4382_v63  ;;  %v3782_v36 = vmul.f32 %v3701_v24, %v3367_v15  ;;  %v2662_v7 = vpop.f32.mrf.mxu2 }
 0x328   : > { %5744 = vst [vmem:[%s6804_s11 + $0x60] sm:$0xff] %v5708_v3   ;;  %v2715_v54 = vadd.f32 %v2662_v7, %v6712_v56 }
 0x329   : > { %v4387_v21 = vsel %vm6856_vm11, %v4378_v42, %v4386_v29  ;;  %v3853_v43 = vadd.f32 %v3852_v59, %v3782_v36  ;;  %v3898_v38 = vmul.f32 %v3782_v36, %v3782_v36  ;;  %v4099_v10 = vpack.c.bf16 %v3782_v36, %v3782_v36  ;;  %v3318_v23 = vpop.f32.mrf.mxu0  ;;  %v3711_v59 = vpop.permute.xlu2 %3710 }
 0x32a   : > { %v3055_v25 = vpop.f32.mrf.mxu3  ;;  %v3517_v33 = vpop.f32.mrf.mxu1  ;;  %4574 = vst [vmem:[%s6830_s14 + $0x64] sm:$0xf] %v4387_v21  ;;  %v4388_v56 = vrot.slane %v4386_v29, 4 }
 0x32b   : > { %v3108_v57 = vadd.f32 %v3055_v25, %v2715_v54  ;;  %v3933_v44 = vadd.f32 %v3932_v17, %v3898_v38  ;;  %v4390_v35 = vshrl.u32 %v4099_v10, 16  ;;  %v4393_v47 = vshll.u32 %v4099_v10, 16 }
 0x32c   : > { %v7198_v0 = vmul.f32 %v3711_v59, %v3517_v33 }
 0x32d   : > { %v3368_v19 = vadd.f32 %v3315_v34, %v3108_v57  ;;  %v4392_v37 = vrot.slane %v4390_v35, 6  ;;  %v4395_v49 = vrot.slane %v4393_v47, 7 }
 0x32f   : > { %v3783_v9 = vmul.f32 %v3706_v16, %v3368_v19  ;;  %v2665_v58 = vpop.f32.mrf.mxu2  ;;  %v4396_v40 = vor.u32 %v4395_v49, %v4392_v37 }
 0x330   : > { %v2716_v41 = vadd.f32 %v2665_v58, %v6717_v60 }
 0x331   : > { %v3854_v45 = vadd.f32 %v3853_v43, %v3783_v9  ;;  %v3899_v51 = vmul.f32 %v3783_v9, %v3783_v9  ;;  %v4100_v18 = vpack.c.bf16 %v3783_v9, %v3783_v9  ;;  %v4397_v11 = vsel %vm6856_vm11, %v4388_v56, %v4396_v40  ;;  %v3320_v30 = vpop.f32.mrf.mxu0  ;;  %v3726_v49 = vpop.permute.xlu2 %3725 }
 0x332   : > { %v3058_v39 = vpop.f32.mrf.mxu3  ;;  %v3519_v46 = vpop.f32.mrf.mxu1  ;;  %4575 = vst [vmem:[%s6830_s14 + $0x68] sm:$0xf] %v4397_v11  ;;  %v4398_v17 = vrot.slane %v4396_v40, 4 }
 0x333   : > { %v3934_v20 = vadd.f32 %v3933_v44, %v3899_v51  ;;  %v4400_v12 = vshrl.u32 %v4100_v18, 16  ;;  %v4403_v22 = vshll.u32 %v4100_v18, 16  ;;  %v3109_v27 = vadd.f32 %v3058_v39, %v2716_v41 }
 0x334   : > { %v7196_v61 = vmul.f32 %v3716_v52, %v3519_v46 }
 0x335   : > { %v4402_v4 = vrot.slane %v4400_v12, 6  ;;  %v4405_v60 = vrot.slane %v4403_v22, 7  ;;  %v3369_v16 = vadd.f32 %v3318_v23, %v3109_v27 }
 0x336   : > { %v5713_v32 = vpack.c.bf16 %v7196_v61, %v7198_v0 }
 0x337   : > { %v4406_v50 = vor.u32 %v4405_v60, %v4402_v4  ;;  %v3784_v34 = vmul.f32 %v3711_v59, %v3369_v16  ;;  %v2667_v24 = vpop.f32.mrf.mxu2 }
 0x338   : > { %5745 = vst [vmem:[%s6804_s11 + $0x68] sm:$0xff] %v5713_v32   ;;  %v2717_v31 = vadd.f32 %v2667_v24, %v6729_v48 }
 0x339   : > { %v4407_v63 = vsel %vm6856_vm11, %v4398_v17, %v4406_v50  ;;  %v3855_v8 = vadd.f32 %v3854_v45, %v3784_v34  ;;  %v3900_v15 = vmul.f32 %v3784_v34, %v3784_v34  ;;  %v4101_v42 = vpack.c.bf16 %v3784_v34, %v3784_v34  ;;  %v3323_v36 = vpop.f32.mrf.mxu0  ;;  %v3721_v45 = vpop.permute.xlu1 %3720 }
 0x33a   : > { %v3060_v13 = vpop.f32.mrf.mxu3  ;;  %v3522_v3 = vpop.f32.mrf.mxu1  ;;  %4576 = vst [vmem:[%s6830_s14 + $0x6c] sm:$0xf] %v4407_v63  ;;  %v4408_v48 = vrot.slane %v4406_v50, 4 }
 0x33b   : > { %v3110_v29 = vadd.f32 %v3060_v13, %v2717_v31  ;;  %v3935_v7 = vadd.f32 %v3934_v20, %v3900_v15  ;;  %v4410_v54 = vshrl.u32 %v4101_v42, 16  ;;  %v4413_v25 = vshll.u32 %v4101_v42, 16 }
 0x33c   : > { %v7213_v46 = vmul.f32 %v3721_v45, %v3522_v3 }
 0x33d   : > { %v3370_v21 = vadd.f32 %v3320_v30, %v3110_v29  ;;  %v4412_v43 = vrot.slane %v4410_v54, 6  ;;  %v4415_v38 = vrot.slane %v4413_v25, 7 }
 0x33f   : > { %v3785_v33 = vmul.f32 %v3716_v52, %v3370_v21  ;;  %v2670_v10 = vpop.f32.mrf.mxu2  ;;  %v4416_v57 = vor.u32 %v4415_v38, %v4412_v43 }
 0x340   : > { %v2718_v19 = vadd.f32 %v2670_v10, %v6734_v28 }
 0x341   : > { %v3856_v23 = vadd.f32 %v3855_v8, %v3785_v33  ;;  %v3901_v44 = vmul.f32 %v3785_v33, %v3785_v33  ;;  %v4102_v35 = vpack.c.bf16 %v3785_v33, %v3785_v33  ;;  %v4417_v9 = vsel %vm6856_vm11, %v4408_v48, %v4416_v57  ;;  %v3325_v40 = vpop.f32.mrf.mxu0  ;;  %v3736_v38 = vpop.permute.xlu1 %3735 }
 0x342   : > { %v3063_v47 = vpop.f32.mrf.mxu3  ;;  %v3524_v37 = vpop.f32.mrf.mxu1  ;;  %4577 = vst [vmem:[%s6830_s14 + $0x70] sm:$0xf] %v4417_v9  ;;  %v4418_v20 = vrot.slane %v4416_v57, 4 }
 0x343   : > { %v3936_v56 = vadd.f32 %v3935_v7, %v3901_v44  ;;  %v4420_v58 = vshrl.u32 %v4102_v35, 16  ;;  %v4423_v51 = vshll.u32 %v4102_v35, 16  ;;  %v3111_v18 = vadd.f32 %v3063_v47, %v2718_v19  ;;  %v3731_v57 = vpop.permute.xlu0 %3730 }
 0x344   : > { %v7211_v39 = vmul.f32 %v3726_v49, %v3524_v37 }
 0x345   : > { %v4422_v41 = vrot.slane %v4420_v58, 6  ;;  %v4425_v28 = vrot.slane %v4423_v51, 7  ;;  %v3371_v52 = vadd.f32 %v3323_v36, %v3111_v18 }
 0x346   : > { %v5718_v11 = vpack.c.bf16 %v7211_v39, %v7213_v46 }
 0x347   : > { %v4426_v12 = vor.u32 %v4425_v28, %v4422_v41  ;;  %v3786_v30 = vmul.f32 %v3721_v45, %v3371_v52  ;;  %v2672_v59 = vpop.f32.mrf.mxu2 }
 0x348   : > { %5746 = vst [vmem:[%s6804_s11 + $0x70] sm:$0xff] %v5718_v11   ;;  %v2719_v22 = vadd.f32 %v2672_v59, %v6746_v26 }
 0x349   : > { %v4427_v4 = vsel %vm6856_vm11, %v4418_v20, %v4426_v12  ;;  %v3857_v60 = vadd.f32 %v3856_v23, %v3786_v30  ;;  %v3902_v16 = vmul.f32 %v3786_v30, %v3786_v30  ;;  %v4103_v17 = vpack.c.bf16 %v3786_v30, %v3786_v30  ;;  %v3328_v34 = vpop.f32.mrf.mxu0 }
 0x34a   : > { %v3065_v27 = vpop.f32.mrf.mxu3  ;;  %v3527_v32 = vpop.f32.mrf.mxu1  ;;  %4578 = vst [vmem:[%s6830_s14 + $0x74] sm:$0xf] %v4427_v4  ;;  %v4428_v26 = vrot.slane %v4426_v12, 4  ;;  %v4020_v30 = vmul.f32 %v7183_v5, %v7183_v5 }
 0x34b   : > { %v3112_v50 = vadd.f32 %v3065_v27, %v2719_v22  ;;  %v3937_v24 = vadd.f32 %v3936_v56, %v3902_v16  ;;  %v4430_v31 = vshrl.u32 %v4103_v17, 16  ;;  %v4433_v13 = vshll.u32 %v4103_v17, 16 }
 0x34c   : > { %v7228_v19 = vmul.f32 %v3731_v57, %v3527_v32 }
 0x34d   : > { %v3372_v63 = vadd.f32 %v3325_v40, %v3112_v50  ;;  %v4432_v8 = vrot.slane %v4430_v31, 6  ;;  %v4435_v15 = vrot.slane %v4433_v13, 7  ;;  %v4022_v31 = vmul.f32 %v7198_v0, %v7198_v0 }
 0x34f   : > { %v3787_v3 = vmul.f32 %v3726_v49, %v3372_v63  ;;  %v2675_v42 = vpop.f32.mrf.mxu2  ;;  %v4436_v29 = vor.u32 %v4435_v15, %v4432_v8 }
 0x350   : > { %v2720_v21 = vadd.f32 %v2675_v42, %v6751_v6 }
 0x351   : > { %v3858_v36 = vadd.f32 %v3857_v60, %v3787_v3  ;;  %v3903_v7 = vmul.f32 %v3787_v3, %v3787_v3  ;;  %v4104_v54 = vpack.c.bf16 %v3787_v3, %v3787_v3  ;;  %v4437_v33 = vsel %vm6856_vm11, %v4428_v26, %v4436_v29  ;;  %v3330_v37 = vpop.f32.mrf.mxu0 }
 0x352   : > { %v3068_v25 = vpop.f32.mrf.mxu3  ;;  %v3529_v43 = vpop.f32.mrf.mxu1  ;;  %4579 = vst [vmem:[%s6830_s14 + $0x78] sm:$0xf] %v4437_v33  ;;  %v4438_v56 = vrot.slane %v4436_v29, 4  ;;  %v4021_v60 = vmul.f32 %v7181_v2, %v7181_v2 }
 0x353   : > { %v3938_v48 = vadd.f32 %v3937_v24, %v3903_v7  ;;  %v4440_v10 = vshrl.u32 %v4104_v54, 16  ;;  %v4443_v23 = vshll.u32 %v4104_v54, 16  ;;  %v3113_v44 = vadd.f32 %v3068_v25, %v2720_v21  ;;  %v3741_v21 = vpop.permute.xlu2 %3740 }
 0x354   : > { %v7226_v35 = vmul.f32 %v3736_v38, %v3529_v43 }
 0x355   : > { %v4442_v47 = vrot.slane %v4440_v10, 6  ;;  %v4445_v6 = vrot.slane %v4443_v23, 7  ;;  %v3373_v49 = vadd.f32 %v3328_v34, %v3113_v44  ;;  %v4055_v34 = vadd.f32 %v7170_v1, %v4020_v30  ;;  %v3746_v1 = vpop.permute.xlu0 %3745 }
 0x356   : > { %v5723_v9 = vpack.c.bf16 %v7226_v35, %v7228_v19 }
 0x357   : > { %v4446_v58 = vor.u32 %v4445_v6, %v4442_v47  ;;  %v3788_v40 = vmul.f32 %v3731_v57, %v3373_v49  ;;  %v2677_v45 = vpop.f32.mrf.mxu2  ;;  %v4056_v26 = vadd.f32 %v4055_v34, %v4021_v60  ;;  %v4025_v49 = vmul.f32 %v7211_v39, %v7211_v39 }
 0x358   : > { %5747 = vst [vmem:[%s6804_s11 + $0x78] sm:$0xff] %v5723_v9   ;;  %v2721_v51 = vadd.f32 %v2677_v45, %v6763_v62  ;;  %v3976_v62 = vadd.f32 %v7168_v14, %v7183_v5 }
 0x359   : > { %v4447_v41 = vsel %vm6856_vm11, %v4438_v56, %v4446_v58  ;;  %v3859_v28 = vadd.f32 %v3858_v36, %v3788_v40  ;;  %v3904_v52 = vmul.f32 %v3788_v40, %v3788_v40  ;;  %v4105_v20 = vpack.c.bf16 %v3788_v40, %v3788_v40  ;;  %v3333_v50 = vpop.f32.mrf.mxu0 }
 0x35a   : > { %v3070_v18 = vpop.f32.mrf.mxu3  ;;  %v3532_v11 = vpop.f32.mrf.mxu1  ;;  %4580 = vst [vmem:[%s6830_s14 + $0x7c] sm:$0xf] %v4447_v41  ;;  %v3977_v24 = vadd.f32 %v3976_v62, %v7181_v2  ;;  %v4448_v13 = vrot.slane %v4446_v58, 4  ;;  %v4023_v2 = vmul.f32 %v7196_v61, %v7196_v61  ;;  %v4057_v43 = vadd.f32 %v4056_v26, %v4022_v31 }
 0x35b   : > { %v3114_v12 = vadd.f32 %v3070_v18, %v2721_v51  ;;  %v3939_v59 = vadd.f32 %v3938_v48, %v3904_v52  ;;  %v4450_v22 = vshrl.u32 %v4105_v20, 16  ;;  %v4453_v27 = vshll.u32 %v4105_v20, 16  ;;  %v7378_v18 = vld [vmem:[#allocation5_spill] sm:$0xff]  ;;  %v3751_v52 = vpop.permute.xlu1 %3750 }
 0x35c   : > { %v3978_v42 = vadd.f32 %v3977_v24, %v7198_v0  ;;  %v3826_v57 = vmul.f32 %v3741_v21, %v3532_v11  ;;  %v4058_v47 = vadd.f32 %v4057_v43, %v4023_v2  ;;  %v4027_v62 = vmul.f32 %v7226_v35, %v7226_v35  ;;  %v3756_v43 = vpop.permute.xlu2 %3755 }
 0x35d   : > { %v3374_v4 = vadd.f32 %v3330_v37, %v3114_v12  ;;  %v4452_v16 = vrot.slane %v4450_v22, 6  ;;  %v4455_v32 = vrot.slane %v4453_v27, 7 }
 0x35e   : > { %v3979_v0 = vadd.f32 %v3978_v42, %v7196_v61  ;;  %v4028_v24 = vmul.f32 %v3826_v57, %v3826_v57 }
 0x35f   : > { %v3789_v17 = vmul.f32 %v3736_v38, %v3374_v4  ;;  %v2680_v63 = vpop.f32.mrf.mxu2  ;;  %v4456_v8 = vor.u32 %v4455_v32, %v4452_v16 }
 0x360   : > { %v2722_v29 = vadd.f32 %v2680_v63, %v6768_v53  ;;  %v4024_v53 = vmul.f32 %v7213_v46, %v7213_v46  ;;  %v3980_v37 = vadd.f32 %v3979_v0, %v7213_v46  ;;  %v4026_v46 = vmul.f32 %v7228_v19, %v7228_v19 }
 0x361   : > { %v3860_v15 = vadd.f32 %v3859_v28, %v3789_v17  ;;  %v3905_v14 = vmul.f32 %v3789_v17, %v3789_v17  ;;  %v4106_v5 = vpack.c.bf16 %v3789_v17, %v3789_v17  ;;  %v4457_v7 = vsel %vm6856_vm11, %v4448_v13, %v4456_v8  ;;  %v3335_v51 = vpop.f32.mrf.mxu0 }
 0x362   : > { %v3073_v3 = vpop.f32.mrf.mxu3  ;;  %v3534_v36 = vpop.f32.mrf.mxu1  ;;  %4581 = vst [vmem:[%s6830_s14 + $0x80] sm:$0xf] %v4457_v7  ;;  %v4458_v9 = vrot.slane %v4456_v8, 4  ;;  %v4059_v40 = vadd.f32 %v4058_v47, %v4024_v53  ;;  %v3981_v45 = vadd.f32 %v3980_v37, %v7211_v39 }
 0x363   : > { %v3940_v54 = vadd.f32 %v3939_v59, %v3905_v14  ;;  %v4460_v25 = vshrl.u32 %v4106_v5, 16  ;;  %v4463_v38 = vshll.u32 %v4106_v5, 16  ;;  %v3115_v33 = vadd.f32 %v3073_v3, %v2722_v29 }
 0x364   : > { %v3827_v48 = vmul.f32 %v3746_v1, %v3534_v36  ;;  %v4060_v39 = vadd.f32 %v4059_v40, %v4025_v49  ;;  %v3982_v4 = vadd.f32 %v3981_v45, %v7228_v19 }
 0x365   : > { %v4462_v10 = vrot.slane %v4460_v25, 6  ;;  %v4465_v23 = vrot.slane %v4463_v38, 7  ;;  %v3375_v44 = vadd.f32 %v3333_v50, %v3115_v33 }
 0x366   : > { %v5728_v6 = vpack.c.bf16 %v3827_v48, %v3826_v57  ;;  %v4061_v50 = vadd.f32 %v4060_v39, %v4026_v46  ;;  %v3983_v34 = vadd.f32 %v3982_v4, %v7226_v35  ;;  %v4029_v19 = vmul.f32 %v3827_v48, %v3827_v48  ;;  %v7379_v35 = vld [vmem:[#allocation6_spill] sm:$0xff] }
 0x367   : > { %v4466_v56 = vor.u32 %v4465_v23, %v4462_v10  ;;  %v3790_v58 = vmul.f32 %v3741_v21, %v3375_v44  ;;  %v2682_v61 = vpop.f32.mrf.mxu2 }
 0x368   : > { %5748 = vst [vmem:[%s6804_s11 + $0x80] sm:$0xff] %v5728_v6   ;;  %v2723_v41 = vadd.f32 %v2682_v61, %v7378_v18  ;;  %v3984_v5 = vadd.f32 %v3983_v34, %v3826_v57 }
 0x369   : > { %v4467_v11 = vsel %vm6856_vm11, %v4458_v9, %v4466_v56  ;;  %v3861_v20 = vadd.f32 %v3860_v15, %v3790_v58  ;;  %v3906_v12 = vmul.f32 %v3790_v58, %v3790_v58  ;;  %v4107_v59 = vpack.c.bf16 %v3790_v58, %v3790_v58  ;;  %v3338_v53 = vpop.f32.mrf.mxu0 }
 0x36a   : > { %v3075_v28 = vpop.f32.mrf.mxu3  ;;  %v3537_v30 = vpop.f32.mrf.mxu1  ;;  %4582 = vst [vmem:[%s6830_s14 + $0x84] sm:$0xf] %v4467_v11  ;;  %v4062_v15 = vadd.f32 %v4061_v50, %v4027_v62  ;;  %v4468_v14 = vrot.slane %v4466_v56, 4  ;;  %v7380_v11 = vld [vmem:[#allocation7_spill] sm:$0xff] }
 0x36b   : > { %v3116_v22 = vadd.f32 %v3075_v28, %v2723_v41  ;;  %v3828_v27 = vmul.f32 %v3751_v52, %v3537_v30  ;;  %v3941_v60 = vadd.f32 %v3940_v54, %v3906_v12  ;;  %v4470_v16 = vshrl.u32 %v4107_v59, 16 }
 0x36c   : > { %v4473_v32 = vshll.u32 %v4107_v59, 16  ;;  %v4063_v7 = vadd.f32 %v4062_v15, %v4028_v24  ;;  %v3985_v54 = vadd.f32 %v3984_v5, %v3827_v48 }
 0x36d   : > { %v3376_v17 = vadd.f32 %v3335_v51, %v3116_v22  ;;  %v4145_v31 = vpack.c.bf16 %v3828_v27, %v3828_v27  ;;  %v4472_v13 = vrot.slane %v4470_v16, 6  ;;  %v4030_v0 = vmul.f32 %v3828_v27, %v3828_v27 }
 0x36e   : > { %v4475_v63 = vrot.slane %v4473_v32, 7  ;;  %v4064_v44 = vadd.f32 %v4063_v7, %v4029_v19  ;;  %v3986_v37 = vadd.f32 %v3985_v54, %v3828_v27 }
 0x36f   : > { %v3791_v8 = vmul.f32 %v3746_v1, %v3376_v17  ;;  %4627 = vst [vmem:[%s6804_s11 + $0x88] sm:$0xf] %v4145_v31  ;;  %v2685_v3 = vpop.f32.mrf.mxu2 }
 0x370   : > { %v4476_v26 = vor.u32 %v4475_v63, %v4472_v13  ;;  %v2724_v25 = vadd.f32 %v2685_v3, %v7379_v35  ;;  %v4065_v56 = vadd.f32 %v4064_v44, %v4030_v0 }
 0x371   : > { %v3862_v42 = vadd.f32 %v3861_v20, %v3791_v8  ;;  %v3907_v29 = vmul.f32 %v3791_v8, %v3791_v8  ;;  %v4108_v36 = vpack.c.bf16 %v3791_v8, %v3791_v8  ;;  %v3340_v50 = vpop.f32.mrf.mxu0 }
 0x372   : > { %v3078_v2 = vpop.f32.mrf.mxu3  ;;  %v3539_v21 = vpop.f32.mrf.mxu1  ;;  %v4477_v1 = vsel %vm6856_vm11, %v4468_v14, %v4476_v26  ;;  %v4478_v40 = vrot.slane %v4476_v26, 4 }
 0x373   : > { %v3942_v38 = vadd.f32 %v3941_v60, %v3907_v29  ;;  %v4480_v33 = vshrl.u32 %v4108_v36, 16  ;;  %4583 = vst [vmem:[%s6830_s14 + $0x88] sm:$0xf] %v4477_v1  ;;  %v4483_v10 = vshll.u32 %v4108_v36, 16  ;;  %v3117_v57 = vadd.f32 %v3078_v2, %v2724_v25 }
 0x374   : > { %v3829_v23 = vmul.f32 %v3756_v43, %v3539_v21 }
 0x375   : > { %v4482_v47 = vrot.slane %v4480_v33, 6  ;;  %v4485_v48 = vrot.slane %v4483_v10, 7  ;;  %v3377_v6 = vadd.f32 %v3338_v53, %v3117_v57  ;;  %v4590_v53 = vld [vmem:[%s6830_s14 + $0x98] sm:$0x1] }
 0x376   : > { %v3987_v49 = vsel %vm2102_vm2, %v3829_v23, 0.0  ;;  %v4031_v9 = vmul.f32 %v3829_v23, %v3829_v23  ;;  %v4146_v61 = vpack.c.bf16 %v3829_v23, %v3829_v23 }
 0x377   : > { %v3988_v58 = vadd.f32 %v3987_v49, %v3986_v37  ;;  %v4486_v45 = vor.u32 %v4485_v48, %v4482_v47  ;;  %v3792_v51 = vmul.f32 %v3751_v52, %v3377_v6  ;;  %v2687_v41 = vpop.f32.mrf.mxu2 }
 0x378   : > { %v4066_v18 = vsel %vm2102_vm2, %v4031_v9, 0.0  ;;  %4628 = vst [vmem:[%s6804_s11 + $0x8c] sm:$0x7] %v4146_v61  ;;  %v2725_v20 = vadd.f32 %v2687_v41, %v7380_v11 }
 0x379   : > { %v3989_v28 = vrot.slane %v3988_v58, 4  ;;  %v4067_v46 = vadd.f32 %v4066_v18, %v4065_v56  ;;  %v4487_v12 = vsel %vm6856_vm11, %v4478_v40, %v4486_v45  ;;  %v3863_v30 = vadd.f32 %v3862_v42, %v3792_v51 }
 0x37a   : > { %v3908_v59 = vmul.f32 %v3792_v51, %v3792_v51  ;;  %v3080_v22 = vpop.f32.mrf.mxu3  ;;  %4584 = vst [vmem:[%s6830_s14 + $0x8c] sm:$0xf] %v4487_v12  ;;  %v4109_v27 = vpack.c.bf16 %v3792_v51, %v3792_v51  ;;  %v4488_v15 = vrot.slane %v4486_v45, 4 }
 0x37b   : > { %v3990_v39 = vadd.f32 %v3989_v28, %v3988_v58  ;;  %v4068_v4 = vrot.slane %v4067_v46, 4  ;;  %v3118_v52 = vadd.f32 %v3080_v22, %v2725_v20 }
 0x37c   : > { %v3943_v62 = vadd.f32 %v3942_v38, %v3908_v59  ;;  %v4490_v60 = vshrl.u32 %v4109_v27, 16  ;;  %v4493_v16 = vshll.u32 %v4109_v27, 16 }
 0x37d   : > { %v3991_v32 = vrot.slane %v3990_v39, 2  ;;  %v4069_v17 = vadd.f32 %v4068_v4, %v4067_v46  ;;  %v3378_v34 = vadd.f32 %v3340_v50, %v3118_v52 }
 0x37e   : > { %v4492_v24 = vrot.slane %v4490_v60, 6  ;;  %v4495_v31 = vrot.slane %v4493_v16, 7 }
 0x37f   : > { %v3992_v13 = vadd.f32 %v3991_v32, %v3990_v39  ;;  %v4070_v63 = vrot.slane %v4069_v17, 2  ;;  %v3793_v8 = vmul.f32 %v3756_v43, %v3378_v34 }
 0x380   : > { %v4496_v14 = vor.u32 %v4495_v31, %v4492_v24 }
 0x381   : > { %v3993_v5 = vrot.slane %v3992_v13, 1  ;;  %v4071_v19 = vadd.f32 %v4070_v63, %v4069_v17  ;;  %v3865_v3 = vsel %vm2102_vm2, %v3793_v8, 0.0  ;;  %v3909_v26 = vmul.f32 %v3793_v8, %v3793_v8 }
 0x382   : > { %v4110_v42 = vpack.c.bf16 %v3793_v8, %v3793_v8  ;;  %v4497_v29 = vsel %vm6856_vm11, %v4488_v15, %v4496_v14  ;;  %v3866_v7 = vadd.f32 %v3865_v3, %v3863_v30  ;;  %v4498_v10 = vrot.slane %v4496_v14, 4 }
 0x383   : > { %v3994_v36 = vadd.f32 %v3993_v5, %v3992_v13  ;;  %v4072_v2 = vrot.slane %v4071_v19, 1  ;;  %4585 = vst [vmem:[%s6830_s14 + $0x90] sm:$0xf] %v4497_v29  ;;  %v3944_v54 = vsel %vm2102_vm2, %v3909_v26, 0.0 }
 0x384   : > { %v4500_v35 = vshrl.u32 %v4110_v42, 16  ;;  %v4503_v25 = vshll.u32 %v4110_v42, 16  ;;  %v3945_v43 = vadd.f32 %v3944_v54, %v3943_v62  ;;  %v3867_v1 = vrot.slane %v3866_v7, 4 }
 0x385   : > { %3995 = vst [vmem:[%s7288_s16 + $0x2] sm:$0x1] %v3994_v36  ;;  %v4073_v21 = vadd.f32 %v4072_v2, %v4071_v19 }
 0x386   : > { %v4502_v38 = vrot.slane %v4500_v35, 6  ;;  %v4505_v33 = vrot.slane %v4503_v25, 7  ;;  %v3946_v0 = vrot.slane %v3945_v43, 4  ;;  %v3868_v57 = vadd.f32 %v3867_v1, %v3866_v7 }
 0x387   : > { %4074 = vst [vmem:[%s7288_s16 + $0x3] sm:$0x1] %v4073_v21 }
 0x388   : > { %v4506_v23 = vor.u32 %v4505_v33, %v4502_v38  ;;  %v4508_v44 = vrot.slane %v4502_v38, 4  ;;  %v3947_v47 = vadd.f32 %v3946_v0, %v3945_v43  ;;  %v3869_v37 = vrot.slane %v3868_v57, 2 }
 0x38a   : > { %v4507_v48 = vsel %vm6856_vm11, %v4498_v10, %v4506_v23  ;;  %v4591_v6 = vsel %vm4589_vm14, %v4508_v44, %v4590_v53  ;;  %v3948_v49 = vrot.slane %v3947_v47, 2  ;;  %v3870_v9 = vadd.f32 %v3869_v37, %v3868_v57 }
 0x38b   : > { %4586 = vst [vmem:[%s6830_s14 + $0x94] sm:$0xf] %v4507_v48 }
 0x38c   : > { %4592 = vst [vmem:[%s6830_s14 + $0x98] sm:$0x1] %v4591_v6  ;;  %v3949_v56 = vadd.f32 %v3948_v49, %v3947_v47  ;;  %v3871_v58 = vrot.slane %v3870_v9, 1 }
 0x38e   : > { %v3950_v61 = vrot.slane %v3949_v56, 1  ;;  %v3872_v40 = vadd.f32 %v3871_v58, %v3870_v9 }
 0x390   : > { %v3951_v45 = vadd.f32 %v3950_v61, %v3949_v56  ;;  %3873 = vst [vmem:[%s7288_s16] sm:$0x1] %v3872_v40 }
 0x392   : > { %3952 = vst [vmem:[%s7288_s16 + $0x1] sm:$0x1] %v3951_v45 }
 0x393 PF: > { %s18_s21 = sadd.s32 1, %s5845_s21  }
 0x394   : > { %p15_p7 = scmp.ge.s32.totalorder %s18_s21, 4  }
 0x396   :  { %17 = sbr.rel (!%p15_p7) target bundleno = 1 (0x1), region = 103 }
 0x39b   :  { %4680 = vsyncpa [#allocation3], 1 }
 0x39c   :  { %4682 = vsyncpa [#allocation3 + $0x1], 1 }

// kernel: residual_block_forward.4
= control target key start
LH: loop header
LB: loop body
LE: loop exit
PB: predicated region body
PF: predicated region fallthrough
CT: control target
= control target key end

     0   :  { %s5551_s18 = smov 0   ;;  %s7041_s0 = inlined_call_operand.vmem [shape: bf16[2,326,128], index: 0, kind: input, shape index: {}]   ;;  %s7042_s1 = inlined_call_operand.vmem [shape: bf16[9,128,128], index: 1, kind: input, shape index: {}]   ;;  %s7043_s2 = inlined_call_operand.vmem [shape: f32[2,128], index: 2, kind: input, shape index: {}]   ;;  %s7044_s3 = inlined_call_operand.vmem [shape: f32[326,1], index: 3, kind: input, shape index: {}]   ;;  %s7045_s4 = inlined_call_operand.vmem [shape: bf16[2,288,128], index: 4, kind: output, shape index: {0}]   ;;  %s7046_s5 = inlined_call_operand.vmem [shape: f32[2,2,128], index: 5, kind: output, shape index: {1}]  }
   0x1 LB: > { %s4363_s19 = sadd.s32 4294967295, %s5518_s18   ;;  %p4367_p0 = scmp.ge.s32.totalorder %s5518_s18, 1  ;;  %s5518_s18 = sphi %s5551_s18, %s16_s18  }
   0x2   : > { %p190_p1 = scmp.lt.s32.totalorder %s5518_s18, 3 }
   0x4   : > { %p191_p2 = pnand %p4367_p0, %p190_p1 }
   0x6   : > { %194 = sbr.rel (%p191_p2) target bundleno = 988 (0x3dc), region = 36 }
   0xb   : > { %v467_v0 = vld [vmem:[%s7044_s3 + $0xb0] sm:$0xff]  ;;  %v465_v1 = vld [vmem:[%s7044_s3 + $0xa0] sm:$0xff]  ;;  %v5520_v3 = vmov 0   ;;  %v468_v7 = vld [vmem:[%s7044_s3 + $0xb8] sm:$0xff]  ;;  %p222_p3 = scmp.lt.s32.totalorder %s4363_s19, 1 }
   0xc   : > { %v455_v2 = vld [vmem:[%s7044_s3 + $0x50] sm:$0xff]  ;;  %5485 = vset.pattern.permute.xlu2 %v5520_v3  ;;  %5484 = vset.pattern.permute.xlu1 %v5520_v3  ;;  %vm508_vm0 = vcmp.gt.f32.partialorder %v467_v0, 0.5  ;;  %vm506_vm1 = vcmp.gt.f32.partialorder %v465_v1, 0.5  ;;  %v466_v8 = vld [vmem:[%s7044_s3 + $0xa8] sm:$0xff]  ;;  %v456_v9 = vld [vmem:[%s7044_s3 + $0x58] sm:$0xff]  ;;  %vm509_vm3 = vcmp.gt.f32.partialorder %v468_v7, 0.5 }
   0xd   : > { %vm496_vm2 = vcmp.gt.f32.partialorder %v455_v2, 0.5  ;;  %5483 = vset.pattern.permute.xlu0 %v5520_v3  ;;  %v549_v4 = vsel %vm508_vm0, 1, %v5520_v3  ;;  %v547_v5 = vsel %vm506_vm1, 1, %v5520_v3  ;;  %vm507_vm4 = vcmp.gt.f32.partialorder %v466_v8, 0.5  ;;  %v458_v13 = vld [vmem:[%s7044_s3 + $0x68] sm:$0xff]  ;;  %v457_v14 = vld [vmem:[%s7044_s3 + $0x60] sm:$0xff] }
   0xe   : > { %v537_v6 = vsel %vm496_vm2, 1, %v5520_v3  ;;  %635 = vperm.xlu1 %5484, %v549_v4   ;;  %629 = vperm.xlu0 %5483, %v547_v5   ;;  %vm497_vm5 = vcmp.gt.f32.partialorder %v456_v9, 0.5  ;;  %v550_v10 = vsel %vm509_vm3, 1, %v5520_v3  ;;  %v548_v11 = vsel %vm507_vm4, 1, %v5520_v3  ;;  %v445_v15 = vld [vmem:[%s7044_s3] sm:$0xff]  ;;  %v447_v19 = vld [vmem:[%s7044_s3 + $0x10] sm:$0xff] }
   0xf   : > { %599 = vperm.xlu2 %5485, %v537_v6   ;;  %v538_v12 = vsel %vm497_vm5, 1, %v5520_v3  ;;  %vm499_vm6 = vcmp.gt.f32.partialorder %v458_v13, 0.5  ;;  %vm498_vm7 = vcmp.gt.f32.partialorder %v457_v14, 0.5  ;;  %vm486_vm8 = vcmp.gt.f32.partialorder %v445_v15, 0.5  ;;  %v446_v20 = vld [vmem:[%s7044_s3 + $0x8] sm:$0xff]  ;;  %v448_v21 = vld [vmem:[%s7044_s3 + $0x18] sm:$0xff] }
  0x10   : > { %v540_v16 = vsel %vm499_vm6, 1, %v5520_v3  ;;  %v539_v17 = vsel %vm498_vm7, 1, %v5520_v3  ;;  %v527_v18 = vsel %vm486_vm8, 1, %v5520_v3  ;;  %vm488_vm9 = vcmp.gt.f32.partialorder %v447_v19, 0.5  ;;  %v470_v25 = vld [vmem:[%s7044_s3 + $0xc8] sm:$0xff]  ;;  %v469_v26 = vld [vmem:[%s7044_s3 + $0xc0] sm:$0xff] }
  0x11   : > { %vm487_vm10 = vcmp.gt.f32.partialorder %v446_v20, 0.5  ;;  %vm489_vm11 = vcmp.gt.f32.partialorder %v448_v21, 0.5  ;;  %v529_v22 = vsel %vm488_vm9, 1, %v5520_v3  ;;  %v459_v27 = vld [vmem:[%s7044_s3 + $0x70] sm:$0xff]  ;;  %vm511_vm12 = vcmp.gt.f32.partialorder %v470_v25, 0.5  ;;  %v449_v31 = vld [vmem:[%s7044_s3 + $0x20] sm:$0xff] }
  0x12   : > { %v528_v23 = vsel %vm487_vm10, 1, %v5520_v3  ;;  %v530_v24 = vsel %vm489_vm11, 1, %v5520_v3  ;;  %vm510_vm13 = vcmp.gt.f32.partialorder %v469_v26, 0.5  ;;  %vm500_vm14 = vcmp.gt.f32.partialorder %v459_v27, 0.5  ;;  %v460_v32 = vld [vmem:[%s7044_s3 + $0x78] sm:$0xff]  ;;  %v450_v33 = vld [vmem:[%s7044_s3 + $0x28] sm:$0xff] }
  0x13   : > { %v552_v28 = vsel %vm511_vm12, 1, %v5520_v3  ;;  %v551_v29 = vsel %vm510_vm13, 1, %v5520_v3  ;;  %v541_v30 = vsel %vm500_vm14, 1, %v5520_v3  ;;  %vm490_vm15 = vcmp.gt.f32.partialorder %v449_v31, 0.5  ;;  %v472_v37 = vld [vmem:[%s7044_s3 + $0xd8] sm:$0xff]  ;;  %v471_v38 = vld [vmem:[%s7044_s3 + $0xd0] sm:$0xff] }
  0x14   : > { %vm501_vm0 = vcmp.gt.f32.partialorder %v460_v32, 0.5  ;;  %vm491_vm1 = vcmp.gt.f32.partialorder %v450_v33, 0.5  ;;  %v531_v34 = vsel %vm490_vm15, 1, %v5520_v3  ;;  %v475_v39 = vld [vmem:[%s7044_s3 + $0xf0] sm:$0xff]  ;;  %vm513_vm2 = vcmp.gt.f32.partialorder %v472_v37, 0.5  ;;  %v477_v43 = vld [vmem:[%s7044_s3 + $0x100] sm:$0xff] }
  0x15   : > { %v542_v35 = vsel %vm501_vm0, 1, %v5520_v3  ;;  %v532_v36 = vsel %vm491_vm1, 1, %v5520_v3  ;;  %vm512_vm3 = vcmp.gt.f32.partialorder %v471_v38, 0.5  ;;  %vm516_vm4 = vcmp.gt.f32.partialorder %v475_v39, 0.5  ;;  %v476_v44 = vld [vmem:[%s7044_s3 + $0xf8] sm:$0xff]  ;;  %v478_v45 = vld [vmem:[%s7044_s3 + $0x108] sm:$0xff] }
  0x16   : > { %638 = vperm.xlu1 %5484, %v550_v10   ;;  %632 = vperm.xlu0 %5483, %v548_v11   ;;  %v554_v40 = vsel %vm513_vm2, 1, %v5520_v3  ;;  %v553_v41 = vsel %vm512_vm3, 1, %v5520_v3  ;;  %v557_v42 = vsel %vm516_vm4, 1, %v5520_v3  ;;  %vm518_vm5 = vcmp.gt.f32.partialorder %v477_v43, 0.5  ;;  %v462_v49 = vld [vmem:[%s7044_s3 + $0x88] sm:$0xff]  ;;  %v461_v50 = vld [vmem:[%s7044_s3 + $0x80] sm:$0xff] }
  0x17   : > { %602 = vperm.xlu2 %5485, %v538_v12   ;;  %vm517_vm6 = vcmp.gt.f32.partialorder %v476_v44, 0.5  ;;  %vm519_vm7 = vcmp.gt.f32.partialorder %v478_v45, 0.5  ;;  %v559_v46 = vsel %vm518_vm5, 1, %v5520_v3  ;;  %v451_v51 = vld [vmem:[%s7044_s3 + $0x30] sm:$0xff]  ;;  %vm503_vm8 = vcmp.gt.f32.partialorder %v462_v49, 0.5  ;;  %v473_v55 = vld [vmem:[%s7044_s3 + $0xe0] sm:$0xff] }
  0x18   : > { %v558_v47 = vsel %vm517_vm6, 1, %v5520_v3  ;;  %v560_v48 = vsel %vm519_vm7, 1, %v5520_v3  ;;  %vm502_vm9 = vcmp.gt.f32.partialorder %v461_v50, 0.5  ;;  %vm492_vm10 = vcmp.gt.f32.partialorder %v451_v51, 0.5  ;;  %v452_v56 = vld [vmem:[%s7044_s3 + $0x38] sm:$0xff]  ;;  %v474_v57 = vld [vmem:[%s7044_s3 + $0xe8] sm:$0xff] }
  0x19   : > { %v544_v52 = vsel %vm503_vm8, 1, %v5520_v3  ;;  %v543_v53 = vsel %vm502_vm9, 1, %v5520_v3  ;;  %v533_v54 = vsel %vm492_vm10, 1, %v5520_v3  ;;  %vm514_vm11 = vcmp.gt.f32.partialorder %v473_v55, 0.5  ;;  %v480_v61 = vld [vmem:[%s7044_s3 + $0x118] sm:$0xff]  ;;  %v479_v62 = vld [vmem:[%s7044_s3 + $0x110] sm:$0xff] }
  0x1a   : > { %vm493_vm12 = vcmp.gt.f32.partialorder %v452_v56, 0.5  ;;  %vm515_vm13 = vcmp.gt.f32.partialorder %v474_v57, 0.5  ;;  %v555_v58 = vsel %vm514_vm11, 1, %v5520_v3  ;;  %s7097_s19 = smov (!%p222_p3, %s4363_s19), 1  ;;  %v463_v63 = vld [vmem:[%s7044_s3 + $0x90] sm:$0xff]  ;;  %vm521_vm14 = vcmp.gt.f32.partialorder %v480_v61, 0.5 }
  0x1b   : > { %v534_v59 = vsel %vm493_vm12, 1, %v5520_v3  ;;  %v556_v60 = vsel %vm515_vm13, 1, %v5520_v3  ;;  %vm520_vm15 = vcmp.gt.f32.partialorder %v479_v62, 0.5  ;;  %vm504_vm0 = vcmp.gt.f32.partialorder %v463_v63, 0.5  ;;  %s5472_s15 = smul.u32 164, %s7097_s19  ;;  %v453_v4 = vld [vmem:[%s7044_s3 + $0x40] sm:$0xff] }
  0x1c   : > { %v562_v0 = vsel %vm521_vm14, 1, %v5520_v3  ;;  %v561_v1 = vsel %vm520_vm15, 1, %v5520_v3  ;;  %v545_v2 = vsel %vm504_vm0, 1, %v5520_v3  ;;  %v464_v5 = vld [vmem:[%s7044_s3 + $0x98] sm:$0xff]  ;;  %v454_v7 = vld [vmem:[%s7044_s3 + $0x48] sm:$0xff]  ;;  %vm494_vm1 = vcmp.gt.f32.partialorder %v453_v4, 0.5 }
  0x1d   : > { %s5710_s24 = scalar_lea.vmem %s7041_s0, %s5472_s15  ;;  %v5025_v6 = vld [vmem:[%s7042_s1 + $0x78] sm:$0xff]  ;;  %vm505_vm2 = vcmp.gt.f32.partialorder %v464_v5, 0.5  ;;  %vm495_vm3 = vcmp.gt.f32.partialorder %v454_v7, 0.5  ;;  %v5024_v10 = vld [vmem:[%s7042_s1 + $0x70] sm:$0xff]  ;;  %v535_v11 = vsel %vm494_vm1, 1, %v5520_v3  ;;  %v5023_v19 = vld [vmem:[%s7042_s1 + $0x68] sm:$0xff] }
  0x1e   : > { %608 = vperm.xlu1 %5484, %v540_v16   ;;  %605 = vperm.xlu0 %5483, %v539_v17   ;;  %v5394_v8 = vld [vmem:[%s5710_s24 + $0x28] sm:$0xff]   ;;  %v546_v12 = vsel %vm505_vm2, 1, %v5520_v3  ;;  %v5727_v13 = vld [vmem:[%s7043_s2] ss:$0 sm:$0xff]  ;;  %v536_v15 = vsel %vm495_vm3, 1, %v5520_v3  ;;  %v483_v20 = vld [vmem:[%s7044_s3 + $0x130] sm:$0xff] }
  0x1f   : > { %569 = vperm.xlu2 %5485, %v527_v18   ;;  %5449 = vmatpush.bf16.msra.mxu2 %v5025_v6  ;;  %v5138_v9 = vunpack.c.l.bf16 %v5394_v8  ;;  %v5139_v14 = vunpack.c.h.bf16 %v5394_v8  ;;  %v482_v17 = vld [vmem:[%s7044_s3 + $0x128] sm:$0xff]  ;;  %v481_v18 = vld [vmem:[%s7044_s3 + $0x120] sm:$0xff]  ;;  %vm524_vm6 = vcmp.gt.f32.partialorder %v483_v20, 0.5  ;;  %v484_v32 = vld [vmem:[%s7044_s3 + $0x138] sm:$0xff]  ;;  %vm1018_vm2 = vsmask.f32 7424 }
  0x20   : > { %5448 = vmatpush.bf16.msra.mxu1 %v5025_v6  ;;  %1233 = vmatpush.bf16.msra.mxu0 %v5025_v6  ;;  %v5746_v21 = vld [vmem:[%s7043_s2 + $0x1] ss:$0 sm:$0xff]  ;;  %vm523_vm4 = vcmp.gt.f32.partialorder %v482_v17, 0.5  ;;  %vm522_vm5 = vcmp.gt.f32.partialorder %v481_v18, 0.5  ;;  %v5021_v33 = vld [vmem:[%s7042_s1 + $0x58] sm:$0xff]  ;;  %vm525_vm9 = vcmp.gt.f32.partialorder %v484_v32, 0.5 }
  0x21   : > { %5450 = vmatpush.bf16.msra.mxu3 %v5025_v6  ;;  %v330_v16 = vmul.f32 %v5727_v13, %v5138_v9  ;;  %v5022_v25 = vld [vmem:[%s7042_s1 + $0x60] sm:$0xff]  ;;  %v564_v26 = vsel %vm523_vm4, 1, %v5520_v3  ;;  %v563_v27 = vsel %vm522_vm5, 1, %v5520_v3  ;;  %v5020_v37 = vld [vmem:[%s7042_s1 + $0x50] sm:$0xff]  ;;  %v5019_v43 = vld [vmem:[%s7042_s1 + $0x48] sm:$0xff]  ;;  %s5473_s12 = smul.u32 144, %s7097_s19 }
  0x22   : > { %v485_v31 = vld [vmem:[%s7044_s3 + $0x140] sm:$0x3f]  ;;  %v5399_v44 = vld [vmem:[%s5710_s24 + $0x50] sm:$0xff]   ;;  %v5400_v45 = vld [vmem:[%s5710_s24 + $0x58] sm:$0xff]   ;;  %s4370_s16 = sshll.u32 %s7097_s19, 1 }
  0x23   : > { %5452 = vmatpush.bf16.msra.mxu2 %v5024_v10  ;;  %vm526_vm8 = vcmp.gt.f32.partialorder %v485_v31, 0.5  ;;  %v5163_v49 = vunpack.c.h.bf16 %v5400_v45  ;;  %v5159_v50 = vunpack.c.h.bf16 %v5399_v44  ;;  %v3835_v51 = vld [vmem:[%s7044_s3 + $0x23] sm:$0xff]  ;;  %v5395_v55 = vld [vmem:[%s5710_s24 + $0x30] sm:$0xff]   ;;  %v3838_v6 = vld [vmem:[%s7044_s3 + $0x3b] sm:$0xff]  ;;  %s6909_s15 = scalar_lea.vmem %s7045_s4, %s5473_s12  ;;  %s235_s21 = scalar_lea.vmem %s7046_s5, %s4370_s16 }
  0x24   : > { %5451 = vmatpush.bf16.msra.mxu1 %v5024_v10  ;;  %1234 = vmatpush.bf16.msra.mxu0 %v5024_v10  ;;  %v567_v39 = vsel %vm526_vm8, 1, %v5520_v3  ;;  %v5143_v61 = vunpack.c.h.bf16 %v5395_v55  ;;  %v5142_v62 = vunpack.c.l.bf16 %v5395_v55  ;;  %v5117_v63 = vld [vmem:[%s5710_s24] sm:$0xff]   ;;  %v3837_v7 = vld [vmem:[%s7044_s3 + $0x33] sm:$0xff] }
  0x25   : > { %5453 = vmatpush.bf16.msra.mxu3 %v5024_v10  ;;  %v343_v57 = vmul.f32 %v5727_v13, %v5163_v49  ;;  %v5118_v8 = vunpack.c.l.bf16 %v5117_v63  ;;  %v3839_v9 = vld [vmem:[%s7044_s3 + $0x43] sm:$0xff]  ;;  %v5391_v55 = vld [vmem:[%s5710_s24 + $0x10] sm:$0xff]  }
  0x26   : > { %575 = vperm.xlu1 %5484, %v529_v22   ;;  %572 = vperm.xlu0 %5483, %v528_v23   ;;  %v331_v22 = vmul.f32 %v5727_v13, %v5139_v14  ;;  %v333_v10 = vmul.f32 %v5727_v13, %v5143_v61  ;;  %v3845_v61 = vld [vmem:[%s7044_s3 + $0x73] sm:$0xff] }
  0x27   : > { %578 = vperm.xlu2 %5485, %v530_v24   ;;  %5455 = vmatpush.bf16.msra.mxu2 %v5023_v19  ;;  %v373_v24 = vadd.f32 %v5746_v21, %v330_v16  ;;  %v386_v4 = vadd.f32 %v5746_v21, %v343_v57  ;;  %v320_v18 = vmul.f32 %v5727_v13, %v5118_v8 }
  0x28   : > { %5454 = vmatpush.bf16.msra.mxu1 %v5023_v19  ;;  %1235 = vmatpush.bf16.msra.mxu0 %v5023_v19 }
  0x29   : > { %5456 = vmatpush.bf16.msra.mxu3 %v5023_v19  ;;  %v427_v16 = vmax.f32 %v386_v4, 0.0 }
  0x2b   : > { %5458 = vmatpush.bf16.msra.mxu2 %v5022_v25 }
  0x2c   : > { %5457 = vmatpush.bf16.msra.mxu1 %v5022_v25  ;;  %1236 = vmatpush.bf16.msra.mxu0 %v5022_v25 }
  0x2d   : > { %5459 = vmatpush.bf16.msra.mxu3 %v5022_v25 }
  0x2e   : > { %644 = vperm.xlu1 %5484, %v552_v28   ;;  %641 = vperm.xlu0 %5483, %v551_v29   ;;  %v374_v28 = vadd.f32 %v5746_v21, %v331_v22  ;;  %v565_v29 = vsel %vm524_vm6, 1, %v5520_v3 }
  0x2f   : > { %611 = vperm.xlu2 %5485, %v541_v30   ;;  %v414_v30 = vmax.f32 %v373_v24, 0.0  ;;  %5461 = vmatpush.bf16.msra.mxu2 %v5021_v33 }
  0x30   : > { %5460 = vmatpush.bf16.msra.mxu1 %v5021_v33  ;;  %1237 = vmatpush.bf16.msra.mxu0 %v5021_v33 }
  0x31   : > { %5462 = vmatpush.bf16.msra.mxu3 %v5021_v33 }
  0x33   : > { %5464 = vmatpush.bf16.msra.mxu2 %v5020_v37 }
  0x34   : > { %5463 = vmatpush.bf16.msra.mxu1 %v5020_v37  ;;  %1238 = vmatpush.bf16.msra.mxu0 %v5020_v37 }
  0x35   : > { %5465 = vmatpush.bf16.msra.mxu3 %v5020_v37  ;;  %v3842_v37 = vld [vmem:[%s7044_s3 + $0x5b] sm:$0xff] }
  0x36   : > { %581 = vperm.xlu1 %5484, %v531_v34   ;;  %614 = vperm.xlu0 %5483, %v542_v35   ;;  %v415_v34 = vmax.f32 %v374_v28, 0.0 }
  0x37   : > { %584 = vperm.xlu2 %5485, %v532_v36   ;;  %5467 = vmatpush.bf16.msra.mxu2 %v5019_v43 }
  0x38   : > { %5466 = vmatpush.bf16.msra.mxu1 %v5019_v43  ;;  %1239 = vmatpush.bf16.msra.mxu0 %v5019_v43 }
  0x39   : > { %5468 = vmatpush.bf16.msra.mxu3 %v5019_v43 }
  0x3e   : > { %650 = vperm.xlu1 %5484, %v554_v40   ;;  %647 = vperm.xlu0 %5483, %v553_v41   ;;  %v566_v40 = vsel %vm525_vm9, 1, %v5520_v3 }
  0x3f   : > { %659 = vperm.xlu2 %5485, %v557_v42   ;;  %v3833_v42 = vld [vmem:[%s7044_s3 + $0x13] sm:$0xff] }
  0x46   : > { %665 = vperm.xlu1 %5484, %v559_v46   ;;  %662 = vperm.xlu0 %5483, %v558_v47   ;;  %v5158_v46 = vunpack.c.l.bf16 %v5399_v44  ;;  %v5018_v47 = vld [vmem:[%s7042_s1 + $0x40] sm:$0xff] }
  0x47   : > { %668 = vperm.xlu2 %5485, %v560_v48   ;;  %v5162_v48 = vunpack.c.l.bf16 %v5400_v45  ;;  %5470 = vmatpush.bf16.msra.mxu2 %v5018_v47 }
  0x48   : > { %5469 = vmatpush.bf16.msra.mxu1 %v5018_v47  ;;  %1240 = vmatpush.bf16.msra.mxu0 %v5018_v47 }
  0x49   : > { %5471 = vmatpush.bf16.msra.mxu3 %v5018_v47  ;;  %v342_v56 = vmul.f32 %v5727_v13, %v5162_v48 }
  0x4e   : > { %620 = vperm.xlu1 %5484, %v544_v52   ;;  %617 = vperm.xlu0 %5483, %v543_v53   ;;  %v3834_v52 = vld [vmem:[%s7044_s3 + $0x1b] sm:$0xff]  ;;  %v3836_v53 = vld [vmem:[%s7044_s3 + $0x2b] sm:$0xff] }
  0x4f   : > { %587 = vperm.xlu2 %5485, %v533_v54   ;;  %v340_v54 = vmul.f32 %v5727_v13, %v5158_v46 }
  0x56   : > { %653 = vperm.xlu1 %5484, %v555_v58   ;;  %590 = vperm.xlu0 %5483, %v534_v59   ;;  %v341_v58 = vmul.f32 %v5727_v13, %v5159_v50 }
  0x57   : > { %656 = vperm.xlu2 %5485, %v556_v60  }
  0x58   : > { %v384_v5 = vadd.f32 %v5746_v21, %v341_v58 }
  0x5a   : > { %v425_v17 = vmax.f32 %v384_v5, 0.0 }
  0x5e   : > { %674 = vperm.xlu1 %5484, %v562_v0   ;;  %671 = vperm.xlu0 %5483, %v561_v1   ;;  %v385_v1 = vadd.f32 %v5746_v21, %v342_v56 }
  0x5f   : > { %623 = vperm.xlu2 %5485, %v545_v2   ;;  %v383_v2 = vadd.f32 %v5746_v21, %v340_v54 }
  0x60   : > { %v426_v14 = vmax.f32 %v385_v1, 0.0 }
  0x66   : > { %593 = vperm.xlu1 %5484, %v535_v11   ;;  %626 = vperm.xlu0 %5483, %v546_v12   ;;  %v332_v11 = vmul.f32 %v5727_v13, %v5142_v62  ;;  %v5390_v12 = vld [vmem:[%s5710_s24 + $0x8] sm:$0xff]  }
  0x67   : > { %596 = vperm.xlu2 %5485, %v536_v15   ;;  %v424_v15 = vmax.f32 %v383_v2, 0.0  ;;  %v5123_v19 = vunpack.c.h.bf16 %v5390_v12  ;;  %v5122_v25 = vunpack.c.l.bf16 %v5390_v12 }
  0x68   : > { %v375_v24 = vadd.f32 %v5746_v21, %v332_v11 }
  0x69   : > { %v600_v23 = vpop.permute.xlu2 %599  ;;  %v322_v43 = vmul.f32 %v5727_v13, %v5122_v25 }
  0x6a   : > { %vm701_vm7 = vcmp.eq.s32.totalorder %v600_v23, 1  ;;  %v376_v23 = vadd.f32 %v5746_v21, %v333_v10 }
  0x6b   : > { %v742_v35 = vsel %vm701_vm7, %v414_v30, 0.0  ;;  %v365_v56 = vadd.f32 %v5746_v21, %v322_v43 }
  0x6d   : > { %v406_v10 = vmax.f32 %v365_v56, 0.0 }
  0x6e   : > { %680 = vperm.xlu1 %5484, %v564_v26   ;;  %677 = vperm.xlu0 %5483, %v563_v27   ;;  %v5119_v26 = vunpack.c.h.bf16 %v5117_v63 }
  0x6f   : > { %683 = vperm.xlu2 %5485, %v565_v29  }
  0x70   : > { %v321_v44 = vmul.f32 %v5727_v13, %v5119_v26 }
  0x71   : > { %v603_v36 = vpop.permute.xlu2 %602 }
  0x72   : > { %vm702_vm10 = vcmp.eq.s32.totalorder %v603_v36, 1  ;;  %v5829_v36 = vadd.f32 %v5746_v21, %v320_v18  ;;  %v5849_v57 = vadd.f32 %v5746_v21, %v321_v44 }
  0x73   : > { %v743_v38 = vsel %vm702_vm10, %v415_v34, 0.0  ;;  %v3841_v34 = vld [vmem:[%s7044_s3 + $0x53] sm:$0xff] }
  0x74   : > { %v5224_v41 = vpack.c.bf16 %v743_v38, %v742_v35  ;;  %v3840_v35 = vld [vmem:[%s7044_s3 + $0x4b] sm:$0xff]  ;;  %v323_v38 = vmul.f32 %v5727_v13, %v5123_v19  ;;  %v404_v45 = vmax.f32 %v5829_v36, 0.0  ;;  %v405_v11 = vmax.f32 %v5849_v57, 0.0 }
  0x75   : > { %v5073_v36 = vld [vmem:[%s7042_s1 + $0x170] sm:$0xff] }
  0x76   : > { %5413 = vst [vmem:[#allocation2 + $0x28] sm:$0xff] %v5224_v41   ;;  %689 = vperm.xlu1 %5484, %v567_v39   ;;  %686 = vperm.xlu0 %5483, %v566_v40   ;;  %v5401_v39 = vld [vmem:[%s5710_s24 + $0x60] sm:$0xff]   ;;  %v5837_v40 = vld [vmem:[%s5710_s24 + $0x38] sm:$0xff]   ;;  %v417_v41 = vmax.f32 %v376_v23, 0.0  ;;  %v5126_v23 = vunpack.c.l.bf16 %v5391_v55 }
  0x77   : > { %3871 = vperm.xlu2 %5485, %v3833_v42   ;;  %v416_v42 = vmax.f32 %v375_v24, 0.0  ;;  %v5167_v48 = vunpack.c.h.bf16 %v5401_v39  ;;  %v5166_v49 = vunpack.c.l.bf16 %v5401_v39 }
  0x79   : > { %v5779_v3 = vpop.permute.xlu2 %569  ;;  %v345_v63 = vmul.f32 %v5727_v13, %v5167_v48  ;;  %v344_v1 = vmul.f32 %v5727_v13, %v5166_v49  ;;  %v5017_v48 = vld [vmem:[%s7042_s1 + $0x38] sm:$0xff] }
  0x7a   : > { %vm691_vm1 = vcmp.eq.s32.totalorder %v5779_v3, 1  ;;  %1398 = vmatpush.bf16.msrb.mxu1 %v5017_v48 }
  0x7b   : > { %v388_v19 = vadd.f32 %v5746_v21, %v345_v63 }
  0x7d   : > { %v5842_v50 = vld [vmem:[#allocation2 + $0x28] sm:$0xff]  ;;  %v429_v43 = vmax.f32 %v388_v19, 0.0 }
  0x7e   : > { %3881 = vperm.xlu1 %5484, %v3835_v51   ;;  %3876 = vperm.xlu0 %5483, %v3834_v52   ;;  %v366_v51 = vadd.f32 %v5746_v21, %v323_v38  ;;  %v5146_v52 = vunpack.c.l.bf16 %v5837_v40  ;;  %v1059_v2 = vshll.u32 %v5842_v50, 16 }
  0x7f   : > { %3886 = vperm.xlu2 %5485, %v3836_v53  }
  0x80   : > { %v636_v59 = vpop.permute.xlu1 %635  ;;  %v630_v60 = vpop.permute.xlu0 %629  ;;  %v407_v4 = vmax.f32 %v366_v51, 0.0  ;;  %v334_v5 = vmul.f32 %v5727_v13, %v5146_v52 }
  0x81   : > { %v5799_v0 = vpop.permute.xlu2 %578  ;;  %vm713_vm11 = vcmp.eq.s32.totalorder %v636_v59, 1  ;;  %vm711_vm12 = vcmp.eq.s32.totalorder %v630_v60, 1  ;;  %v3844_v59 = vld [vmem:[%s7044_s3 + $0x6b] sm:$0xff]  ;;  %v3843_v60 = vld [vmem:[%s7044_s3 + $0x63] sm:$0xff] }
  0x82   : > { %v754_v27 = vsel %vm713_vm11, %v426_v14, 0.0  ;;  %v752_v28 = vsel %vm711_vm12, %v424_v15, 0.0  ;;  %vm694_vm3 = vcmp.eq.s32.totalorder %v5799_v0, 1  ;;  %v1063_v15 = vshrl.u32 %v5842_v50, 16  ;;  %v3846_v0 = vld [vmem:[%s7044_s3 + $0x7b] sm:$0xff] }
  0x83   : > { %v735_v26 = vsel %vm694_vm3, %v407_v4, 0.0  ;;  %v377_v49 = vadd.f32 %v5746_v21, %v334_v5  ;;  %v5936_v5 = vld [vmem:[%s5710_s24 + $0x78] sm:$0xff]  }
  0x84   : > { %v5179_v48 = vunpack.c.h.bf16 %v5936_v5 }
  0x85   : > { %v418_v4 = vmax.f32 %v377_v49, 0.0 }
  0x86   : > { %3896 = vperm.xlu1 %5484, %v3838_v6   ;;  %3891 = vperm.xlu0 %5483, %v3837_v7   ;;  %v5127_v7 = vunpack.c.h.bf16 %v5391_v55 }
  0x87   : > { %3901 = vperm.xlu2 %5485, %v3839_v9   ;;  %v732_v9 = vsel %vm691_vm1, %v404_v45, 0.0 }
  0x88   : > { %v639_v20 = vpop.permute.xlu1 %638  ;;  %v633_v22 = vpop.permute.xlu0 %632  ;;  %v325_v39 = vmul.f32 %v5727_v13, %v5127_v7 }
  0x89   : > { %vm714_vm13 = vcmp.eq.s32.totalorder %v639_v20, 1  ;;  %vm712_vm14 = vcmp.eq.s32.totalorder %v633_v22, 1  ;;  %v5820_v33 = vpop.permute.xlu2 %611  ;;  %v387_v20 = vadd.f32 %v5746_v21, %v344_v1  ;;  %v5884_v22 = vrot.slane %v1059_v2, 1 }
  0x8a   : > { %v755_v29 = vsel %vm714_vm13, %v427_v16, 0.0  ;;  %v753_v30 = vsel %vm712_vm14, %v425_v17, 0.0  ;;  %v5033_v16 = vld [vmem:[%s7042_s1 + $0xb8] sm:$0xff]  ;;  %vm705_vm8 = vcmp.eq.s32.totalorder %v5820_v33, 1 }
  0x8b   : > { %v5254_v31 = vpack.c.bf16 %v755_v29, %v754_v27  ;;  %v5249_v32 = vpack.c.bf16 %v753_v30, %v752_v28  ;;  %1622 = vmatpush.bf16.msrb.mxu2 %v5033_v16  ;;  %v5147_v29 = vunpack.c.h.bf16 %v5837_v40  ;;  %v428_v44 = vmax.f32 %v387_v20, 0.0 }
  0x8c   : > { %v1065_v51 = vor.u32 %v1063_v15, %v5884_v22 }
  0x8d   : > { %5419 = vst [vmem:[#allocation2 + $0x58] sm:$0xff] %v5254_v31  }
  0x8e   : > { %5418 = vst [vmem:[#allocation2 + $0x50] sm:$0xff] %v5249_v32   ;;  %3911 = vperm.xlu1 %5484, %v3841_v34   ;;  %3906 = vperm.xlu0 %5483, %v3840_v35   ;;  %v3847_v32 = vld [vmem:[%s7044_s3 + $0x83] sm:$0xff] }
  0x8f   : > { %3916 = vperm.xlu2 %5485, %v3842_v37   ;;  %v3848_v37 = vld [vmem:[%s7044_s3 + $0x8b] sm:$0xff] }
  0x90   : > { %v609_v46 = vpop.permute.xlu1 %608  ;;  %v606_v47 = vpop.permute.xlu0 %605 }
  0x91   : > { %vm704_vm15 = vcmp.eq.s32.totalorder %v609_v46, 1  ;;  %vm703_vm0 = vcmp.eq.s32.totalorder %v606_v47, 1  ;;  %v5867_v6 = vpop.permute.xlu2 %584  ;;  %v335_v47 = vmul.f32 %v5727_v13, %v5147_v29 }
  0x92   : > { %v745_v53 = vsel %vm704_vm15, %v417_v41, 0.0  ;;  %v744_v54 = vsel %vm703_vm0, %v416_v42, 0.0  ;;  %v324_v41 = vmul.f32 %v5727_v13, %v5126_v23  ;;  %v5402_v42 = vld [vmem:[%s5710_s24 + $0x68] sm:$0xff]   ;;  %v5032_v23 = vld [vmem:[%s7042_s1 + $0xb0] sm:$0xff]  ;;  %vm696_vm9 = vcmp.eq.s32.totalorder %v5867_v6, 1 }
  0x93   : > { %v5229_v58 = vpack.c.bf16 %v745_v53, %v744_v54  ;;  %v5171_v56 = vunpack.c.h.bf16 %v5402_v42  ;;  %v378_v2 = vadd.f32 %v5746_v21, %v335_v47  ;;  %1623 = vmatpush.bf16.msrb.mxu2 %v5032_v23  ;;  %v3853_v6 = vld [vmem:[%s7044_s3 + $0xb3] sm:$0xff] }
  0x94   : > { %v5861_v62 = vld [vmem:[#allocation2 + $0x58] sm:$0xff] }
  0x95   : > { %5414 = vst [vmem:[#allocation2 + $0x30] sm:$0xff] %v5229_v58   ;;  %v5002_v8 = vld [vmem:[#allocation2 + $0x50] sm:$0xff]  ;;  %v1107_v14 = vshll.u32 %v5861_v62, 16  ;;  %v5170_v58 = vunpack.c.l.bf16 %v5402_v42  ;;  %v347_v16 = vmul.f32 %v5727_v13, %v5171_v56  ;;  %v3854_v56 = vld [vmem:[%s7044_s3 + $0xbb] sm:$0xff] }
  0x96   : > { %3926 = vperm.xlu1 %5484, %v3844_v59   ;;  %3921 = vperm.xlu0 %5483, %v3843_v60   ;;  %v1099_v12 = vshll.u32 %v5002_v8, 16  ;;  %v1103_v25 = vshrl.u32 %v5002_v8, 16  ;;  %v368_v59 = vadd.f32 %v5746_v21, %v325_v39  ;;  %v367_v60 = vadd.f32 %v5746_v21, %v324_v41  ;;  %v3850_v8 = vld [vmem:[%s7044_s3 + $0x9b] sm:$0xff] }
  0x97   : > { %3931 = vperm.xlu2 %5485, %v3845_v61   ;;  %v5905_v35 = vrot.slane %v1107_v14, 1  ;;  %v390_v41 = vadd.f32 %v5746_v21, %v347_v16 }
  0x98   : > { %v576_v17 = vpop.permute.xlu1 %575  ;;  %v5880_v18 = vpop.permute.xlu0 %572  ;;  %v5887_v24 = vrot.slane %v1099_v12, 1  ;;  %v3851_v12 = vld [vmem:[%s7044_s3 + $0xa3] sm:$0xff]  ;;  %v409_v19 = vmax.f32 %v368_v59, 0.0  ;;  %v408_v20 = vmax.f32 %v367_v60, 0.0  ;;  %v5994_v60 = vld [vmem:[%s5710_s24 + $0x18] sm:$0xff]  }
  0x99   : > { %vm693_vm4 = vcmp.eq.s32.totalorder %v576_v17, 1  ;;  %vm692_vm5 = vcmp.eq.s32.totalorder %v5880_v18, 1  ;;  %v5924_v50 = vpop.permute.xlu2 %659  ;;  %v346_v17 = vmul.f32 %v5727_v13, %v5170_v58  ;;  %v5397_v59 = vld [vmem:[%s5710_s24 + $0x40] sm:$0xff]   ;;  %v5130_v23 = vunpack.c.l.bf16 %v5994_v60 }
  0x9a   : > { %v734_v27 = vsel %vm693_vm4, %v406_v10, 0.0  ;;  %v733_v28 = vsel %vm692_vm5, %v405_v11, 0.0  ;;  %v1105_v34 = vor.u32 %v1103_v25, %v5887_v24  ;;  %v5405_v10 = vld [vmem:[%s5710_s24 + $0x80] sm:$0xff]   ;;  %v5066_v25 = vld [vmem:[%s7042_s1 + $0x138] sm:$0xff]  ;;  %v737_v33 = vsel %vm696_vm9, %v409_v19, 0.0 }
  0x9b   : > { %v5204_v30 = vpack.c.bf16 %v735_v26, %v734_v27  ;;  %v5896_v31 = vpack.c.bf16 %v733_v28, %v732_v9  ;;  %v3849_v9 = vld [vmem:[%s7044_s3 + $0x93] sm:$0xff]  ;;  %v419_v27 = vmax.f32 %v378_v2, 0.0  ;;  %v389_v42 = vadd.f32 %v5746_v21, %v346_v17  ;;  %2400 = vmatpush.bf16.msrb.mxu0 %v5066_v25 }
  0x9c   : > { %v5910_v38 = vld [vmem:[#allocation2 + $0x30] sm:$0xff]  ;;  %v1110_v40 = vsel %vm1018_vm2, %v1105_v34, %v5905_v35  ;;  %v1111_v2 = vshrl.u32 %v5861_v62, 16  ;;  %v5015_v62 = vld [vmem:[%s7042_s1 + $0x28] sm:$0xff]  ;;  %vm721_vm14 = vcmp.eq.s32.totalorder %v5924_v50, 1 }
  0x9d   : > { %5409 = vst [vmem:[#allocation2 + $0x8] sm:$0xff] %v5204_v30   ;;  %v1067_v46 = vshll.u32 %v5910_v38, 16  ;;  %1291 = vmatmul.bf16.vlgmr.msra.gmra.mxu2 %v1110_v40  ;;  %v1022_v55 = vshll.u32 %v5896_v31, 16  ;;  %v5016_v26 = vld [vmem:[%s7042_s1 + $0x30] sm:$0xff]  ;;  %v1020_v28 = vshrl.u32 %v5896_v31, 16  ;;  %v746_v30 = vsel %vm705_vm8, %v418_v4, 0.0 }
  0x9e   : > { %5200 = vst [vmem:[#allocation2] sm:$0xff] %v5896_v31   ;;  %3941 = vperm.xlu1 %5484, %v3847_v32   ;;  %3936 = vperm.xlu0 %5483, %v3846_v0   ;;  %v5178_v32 = vunpack.c.l.bf16 %v5936_v5  ;;  %v5183_v0 = vunpack.c.h.bf16 %v5405_v10  ;;  %v351_v5 = vmul.f32 %v5727_v13, %v5179_v48  ;;  %v1113_v19 = vor.u32 %v1111_v2, %v5905_v35 }
  0x9f   : > { %3946 = vperm.xlu2 %5485, %v3848_v37   ;;  %v5927_v54 = vrot.slane %v1067_v46, 1  ;;  %v1024_v15 = vrot.slane %v1022_v55, 1  ;;  %1399 = vmatpush.bf16.msrb.mxu1 %v5016_v26 }
  0xa0   : > { %v645_v52 = vpop.permute.xlu1 %644  ;;  %v642_v53 = vpop.permute.xlu0 %641  ;;  %v350_v49 = vmul.f32 %v5727_v13, %v5178_v32  ;;  %v353_v55 = vmul.f32 %v5727_v13, %v5183_v0  ;;  %v394_v35 = vadd.f32 %v5746_v21, %v351_v5 }
  0xa1   : > { %vm716_vm6 = vcmp.eq.s32.totalorder %v645_v52, 1  ;;  %vm715_vm7 = vcmp.eq.s32.totalorder %v642_v53, 1  ;;  %v1070_v1 = vsel %vm1018_vm2, %v1065_v51, %v5927_v54  ;;  %v1025_v39 = vor.u32 %v1024_v15, %v1020_v28  ;;  %v5974_v31 = vpop.permute.xlu2 %668  ;;  %v3852_v53 = vld [vmem:[%s7044_s3 + $0xab] sm:$0xff] }
  0xa2   : > { %v757_v61 = vsel %vm716_vm6, %v429_v43, 0.0  ;;  %v756_v63 = vsel %vm715_vm7, %v428_v44, 0.0  ;;  %1266 = vmatmul.bf16.vlgmr.msra.gmra.mxu1 %v1070_v1  ;;  %v5182_v43 = vunpack.c.l.bf16 %v5405_v10  ;;  %v430_v1 = vmax.f32 %v389_v42, 0.0  ;;  %v6017_v28 = vld [vmem:[%s5710_s24 + $0x70] sm:$0xff]  }
  0xa3   : > { %v5259_v7 = vpack.c.bf16 %v757_v61, %v756_v63  ;;  %v431_v61 = vmax.f32 %v390_v41, 0.0  ;;  %v5151_v10 = vunpack.c.h.bf16 %v5397_v59  ;;  %v396_v15 = vadd.f32 %v5746_v21, %v353_v55  ;;  %1400 = vmatpush.bf16.msrb.mxu1 %v5015_v62 }
  0xa4   : > { %v5949_v14 = vld [vmem:[#allocation2 + $0x8] sm:$0xff]  ;;  %v352_v63 = vmul.f32 %v5727_v13, %v5182_v43  ;;  %vm724_vm15 = vcmp.eq.s32.totalorder %v5974_v31, 1  ;;  %v1071_v55 = vshrl.u32 %v5910_v38, 16 }
  0xa5   : > { %5420 = vst [vmem:[#allocation2 + $0x60] sm:$0xff] %v5259_v7   ;;  %v1027_v29 = vshll.u32 %v5949_v14, 16  ;;  %v5031_v7 = vld [vmem:[%s7042_s1 + $0xa8] sm:$0xff]  ;;  %v437_v42 = vmax.f32 %v396_v15, 0.0 }
  0xa6   : > { %3956 = vperm.xlu1 %5484, %v3850_v8   ;;  %3951 = vperm.xlu0 %5483, %v3849_v9   ;;  %v5065_v8 = vld [vmem:[%s7042_s1 + $0x130] sm:$0xff]  ;;  %v393_v9 = vadd.f32 %v5746_v21, %v350_v49  ;;  %v395_v25 = vadd.f32 %v5746_v21, %v352_v63  ;;  %v5030_v49 = vld [vmem:[%s7042_s1 + $0xa0] sm:$0xff]  ;;  %v1073_v50 = vor.u32 %v1071_v55, %v5927_v54 }
  0xa7   : > { %3961 = vperm.xlu2 %5485, %v3851_v12   ;;  %v5968_v40 = vrot.slane %v1027_v29, 1  ;;  %v5150_v12 = vunpack.c.l.bf16 %v5397_v59  ;;  %1624 = vmatpush.bf16.msrb.mxu2 %v5031_v7 }
  0xa8   : > { %v582_v34 = vpop.permute.xlu1 %581  ;;  %v615_v37 = vpop.permute.xlu0 %614  ;;  %2401 = vmatpush.bf16.msrb.mxu0 %v5065_v8  ;;  %v5174_v8 = vunpack.c.l.bf16 %v6017_v28 }
  0xa9   : > { %vm695_vm10 = vcmp.eq.s32.totalorder %v582_v34, 1  ;;  %vm706_vm11 = vcmp.eq.s32.totalorder %v615_v37, 1  ;;  %v1030_v47 = vsel %vm1018_vm2, %v1025_v39, %v5968_v40  ;;  %v6022_v32 = vpop.permute.xlu2 %587  ;;  %v3856_v34 = vld [vmem:[%s7044_s3 + $0xcb] sm:$0xff]  ;;  %v3855_v37 = vld [vmem:[%s7044_s3 + $0xc3] sm:$0xff]  ;;  %v337_v39 = vmul.f32 %v5727_v13, %v5151_v10 }
  0xaa   : > { %v736_v44 = vsel %vm695_vm10, %v408_v20, 0.0  ;;  %v747_v46 = vsel %vm706_vm11, %v419_v27, 0.0  ;;  %1241 = vmatmul.bf16.vlgmr.msra.gmra.mxu0 %v1030_v47  ;;  %v336_v41 = vmul.f32 %v5727_v13, %v5150_v12  ;;  %v436_v47 = vmax.f32 %v395_v25, 0.0  ;;  %v6090_v25 = vld [vmem:[%s5710_s24 + $0x48] sm:$0xff]  }
  0xab   : > { %v5209_v51 = vpack.c.bf16 %v737_v33, %v736_v44  ;;  %v5234_v52 = vpack.c.bf16 %v747_v46, %v746_v30  ;;  %v434_v30 = vmax.f32 %v393_v9, 0.0  ;;  %v3857_v33 = vld [vmem:[%s7044_s3 + $0xd3] sm:$0xff]  ;;  %v326_v44 = vmul.f32 %v5727_v13, %v5130_v23  ;;  %1625 = vmatpush.bf16.msrb.mxu2 %v5030_v49 }
  0xac   : > { %v5990_v58 = vld [vmem:[#allocation2 + $0x60] sm:$0xff]  ;;  %v5175_v46 = vunpack.c.h.bf16 %v6017_v28  ;;  %v6059_v63 = vadd.f32 %v5746_v21, %v336_v41  ;;  %v5131_v12 = vunpack.c.h.bf16 %v5994_v60  ;;  %v3860_v60 = vld [vmem:[%s7044_s3 + $0xeb] sm:$0xff]  ;;  %v348_v28 = vmul.f32 %v5727_v13, %v5174_v8 }
  0xad   : > { %5410 = vst [vmem:[#allocation2 + $0x10] sm:$0xff] %v5209_v51   ;;  %v1115_v4 = vshll.u32 %v5990_v58, 16  ;;  %v5064_v51 = vld [vmem:[%s7042_s1 + $0x128] sm:$0xff]  ;;  %v6109_v41 = vadd.f32 %v5746_v21, %v326_v44  ;;  %v5057_v44 = vld [vmem:[%s7042_s1 + $0xf0] sm:$0xff]  ;;  %vm697_vm7 = vcmp.eq.s32.totalorder %v6022_v32, 1 }
  0xae   : > { %5415 = vst [vmem:[#allocation2 + $0x38] sm:$0xff] %v5234_v52   ;;  %3971 = vperm.xlu1 %5484, %v3853_v6   ;;  %3966 = vperm.xlu0 %5483, %v3852_v53   ;;  %v435_v52 = vmax.f32 %v394_v35, 0.0  ;;  %v1031_v6 = vshrl.u32 %v5949_v14, 16  ;;  %v1119_v35 = vshrl.u32 %v5990_v58, 16 }
  0xaf   : > { %3976 = vperm.xlu2 %5485, %v3854_v56   ;;  %v6012_v20 = vrot.slane %v1115_v4, 1  ;;  %v762_v56 = vsel %vm721_vm14, %v434_v30, 0.0  ;;  %2402 = vmatpush.bf16.msrb.mxu0 %v5064_v51 }
  0xb0   : > { %v651_v16 = vpop.permute.xlu1 %650  ;;  %v648_v17 = vpop.permute.xlu0 %647  ;;  %v1033_v38 = vor.u32 %v1031_v6, %v5968_v40  ;;  %v349_v40 = vmul.f32 %v5727_v13, %v5175_v46  ;;  %v5154_v6 = vunpack.c.l.bf16 %v6090_v25 }
  0xb1   : > { %vm718_vm12 = vcmp.eq.s32.totalorder %v651_v16, 1  ;;  %vm717_vm13 = vcmp.eq.s32.totalorder %v648_v17, 1  ;;  %v1118_v29 = vsel %vm1018_vm2, %v1113_v19, %v6012_v20  ;;  %v3859_v16 = vld [vmem:[%s7044_s3 + $0xe3] sm:$0xff]  ;;  %v3858_v17 = vld [vmem:[%s7044_s3 + $0xdb] sm:$0xff]  ;;  %v6087_v23 = vpop.permute.xlu2 %656 }
  0xb2   : > { %v759_v26 = vsel %vm718_vm12, %v431_v61, 0.0  ;;  %v758_v27 = vsel %vm717_vm13, %v430_v1, 0.0  ;;  %1296 = vmatmul.bf16.gmra.mxu2 %v1118_v29  ;;  %v6056_v61 = vadd.f32 %v5746_v21, %v337_v39  ;;  %v765_v1 = vsel %vm724_vm15, %v437_v42, 0.0  ;;  %v5406_v29 = vld [vmem:[%s5710_s24 + $0x88] sm:$0xff]   ;;  %v5029_v39 = vld [vmem:[%s7042_s1 + $0x98] sm:$0xff]  ;;  %v5063_v42 = vld [vmem:[%s7042_s1 + $0x120] sm:$0xff] }
  0xb3   : > { %v5264_v0 = vpack.c.bf16 %v759_v26, %v758_v27  ;;  %v420_v27 = vmax.f32 %v6059_v63, 0.0  ;;  %v6112_v58 = vadd.f32 %v5746_v21, %v349_v40  ;;  %v5187_v51 = vunpack.c.h.bf16 %v5406_v29  ;;  %1626 = vmatpush.bf16.msrb.mxu2 %v5029_v39  ;;  %2403 = vmatpush.bf16.msrb.mxu0 %v5063_v42  ;;  %v5393_v63 = vld [vmem:[%s5710_s24 + $0x20] sm:$0xff]   ;;  %v5056_v40 = vld [vmem:[%s7042_s1 + $0xe8] sm:$0xff] }
  0xb4   : > { %v6036_v43 = vld [vmem:[#allocation2 + $0x10] sm:$0xff]  ;;  %v421_v26 = vmax.f32 %v6056_v61, 0.0  ;;  %vm720_vm8 = vcmp.eq.s32.totalorder %v6087_v23, 1  ;;  %v3866_v23 = vld [vmem:[%s7044_s3 + $0x11b] sm:$0xff] }
  0xb5   : > { %5421 = vst [vmem:[#allocation2 + $0x68] sm:$0xff] %v5264_v0   ;;  %v6041_v48 = vld [vmem:[#allocation2 + $0x38] sm:$0xff]  ;;  %v1035_v53 = vshll.u32 %v6036_v43, 16  ;;  %v327_v0 = vmul.f32 %v5727_v13, %v5131_v12 }
  0xb6   : > { %3986 = vperm.xlu1 %5484, %v3856_v34   ;;  %3981 = vperm.xlu0 %5483, %v3855_v37   ;;  %v1075_v59 = vshll.u32 %v6041_v48, 16  ;;  %v5014_v34 = vld [vmem:[%s7042_s1 + $0x20] sm:$0xff]  ;;  %v5058_v37 = vld [vmem:[%s7042_s1 + $0xf8] sm:$0xff] }
  0xb7   : > { %3991 = vperm.xlu2 %5485, %v3857_v33   ;;  %v6064_v5 = vrot.slane %v1035_v53, 1  ;;  %1401 = vmatpush.bf16.msrb.mxu1 %v5014_v34  ;;  %v391_v53 = vadd.f32 %v5746_v21, %v348_v28  ;;  %v5013_v12 = vld [vmem:[%s7042_s1 + $0x18] sm:$0xff] }
  0xb8   : > { %v666_v2 = vpop.permute.xlu1 %665  ;;  %v663_v4 = vpop.permute.xlu0 %662  ;;  %v6067_v7 = vrot.slane %v1075_v59, 1  ;;  %2007 = vmatpush.bf16.msrb.mxu3 %v5058_v37  ;;  %v370_v59 = vadd.f32 %v5746_v21, %v327_v0  ;;  %v5155_v0 = vunpack.c.h.bf16 %v6090_v25  ;;  %v3865_v25 = vld [vmem:[%s7044_s3 + $0x113] sm:$0xff] }
  0xb9   : > { %vm723_vm0 = vcmp.eq.s32.totalorder %v666_v2, 1  ;;  %vm722_vm3 = vcmp.eq.s32.totalorder %v663_v4, 1  ;;  %v1038_v31 = vsel %vm1018_vm2, %v1033_v38, %v6064_v5  ;;  %v3861_v2 = vld [vmem:[%s7044_s3 + $0xf3] sm:$0xff]  ;;  %v3863_v4 = vld [vmem:[%s7044_s3 + $0x103] sm:$0xff] }
  0xba   : > { %v764_v9 = vsel %vm723_vm0, %v436_v47, 0.0  ;;  %v763_v10 = vsel %vm722_vm3, %v435_v52, 0.0  ;;  %1246 = vmatmul.bf16.gmra.mxu0 %v1038_v31  ;;  %v1078_v15 = vsel %vm1018_vm2, %v1073_v50, %v6067_v7  ;;  %v1121_v47 = vor.u32 %v1119_v35, %v6012_v20 }
  0xbb   : > { %v5279_v62 = vpack.c.bf16 %v765_v1, %v764_v9  ;;  %v5274_v54 = vpack.c.bf16 %v763_v10, %v762_v56  ;;  %1271 = vmatmul.bf16.gmra.mxu1 %v1078_v15  ;;  %v5186_v52 = vunpack.c.l.bf16 %v5406_v29  ;;  %v3862_v1 = vld [vmem:[%s7044_s3 + $0xfb] sm:$0xff]  ;;  %v355_v50 = vmul.f32 %v5727_v13, %v5187_v51 }
  0xbc   : > { %v6085_v19 = vld [vmem:[#allocation2 + $0x68] sm:$0xff]  ;;  %2008 = vmatpush.bf16.msrb.mxu3 %v5057_v44  ;;  %v410_v9 = vmax.f32 %v6109_v41, 0.0  ;;  %v433_v10 = vmax.f32 %v6112_v58, 0.0  ;;  %v432_v15 = vmax.f32 %v391_v53, 0.0  ;;  %1402 = vmatpush.bf16.msrb.mxu1 %v5013_v12  ;;  %v5407_v53 = vld [vmem:[%s5710_s24 + $0x90] sm:$0xff]  }
  0xbd   : > { %5424 = vst [vmem:[#allocation2 + $0x80] sm:$0xff] %v5279_v62   ;;  %v1123_v30 = vshll.u32 %v6085_v19, 16  ;;  %v354_v8 = vmul.f32 %v5727_v13, %v5186_v52  ;;  %v338_v62 = vmul.f32 %v5727_v13, %v5154_v6  ;;  %v398_v29 = vadd.f32 %v5746_v21, %v355_v50 }
  0xbe   : > { %5423 = vst [vmem:[#allocation2 + $0x78] sm:$0xff] %v5274_v54   ;;  %4001 = vperm.xlu1 %5484, %v3859_v16   ;;  %3996 = vperm.xlu0 %5483, %v3858_v17   ;;  %v5135_v54 = vunpack.c.h.bf16 %v5393_v63  ;;  %v411_v16 = vmax.f32 %v370_v59, 0.0  ;;  %v6153_v17 = vpop.permute.xlu2 %623  ;;  %v738_v39 = vsel %vm697_vm7, %v410_v9, 0.0  ;;  %v761_v41 = vsel %vm720_vm8, %v433_v10, 0.0 }
  0xbf   : > { %4006 = vperm.xlu2 %5485, %v3860_v60   ;;  %v6118_v49 = vrot.slane %v1123_v30, 1  ;;  %v397_v35 = vadd.f32 %v5746_v21, %v354_v8  ;;  %v5134_v30 = vunpack.c.l.bf16 %v5393_v63  ;;  %v439_v44 = vmax.f32 %v398_v29, 0.0  ;;  %v5012_v8 = vld [vmem:[%s7042_s1 + $0x10] sm:$0xff] }
  0xc0   : > { %v621_v33 = vpop.permute.xlu1 %620  ;;  %v618_v46 = vpop.permute.xlu0 %617  ;;  %2009 = vmatpush.bf16.msrb.mxu3 %v5056_v40  ;;  %v329_v32 = vmul.f32 %v5727_v13, %v5135_v54  ;;  %v339_v59 = vmul.f32 %v5727_v13, %v5155_v0  ;;  %v5191_v50 = vunpack.c.h.bf16 %v5407_v53  ;;  %v5190_v54 = vunpack.c.l.bf16 %v5407_v53  ;;  %1403 = vmatpush.bf16.msrb.mxu1 %v5012_v8  ;;  %v3868_v0 = vld [vmem:[%s7044_s3 + $0x12b] sm:$0xff]  ;;  %v276_v53 = vld [vmem:[%s5710_s24 + $0xa0] sm:$0x7] }
  0xc1   : > { %vm708_vm4 = vcmp.eq.s32.totalorder %v621_v33, 1  ;;  %vm707_vm6 = vcmp.eq.s32.totalorder %v618_v46, 1  ;;  %v1126_v56 = vsel %vm1018_vm2, %v1121_v47, %v6118_v49  ;;  %v3864_v47 = vld [vmem:[%s7044_s3 + $0x10b] sm:$0xff]  ;;  %vm709_vm13 = vcmp.eq.s32.totalorder %v6153_v17, 1 }
  0xc2   : > { %v749_v20 = vsel %vm708_vm4, %v421_v26, 0.0  ;;  %v748_v55 = vsel %vm707_vm6, %v420_v27, 0.0  ;;  %1301 = vmatmul.bf16.gmra.mxu2 %v1126_v56  ;;  %v328_v56 = vmul.f32 %v5727_v13, %v5134_v30  ;;  %v381_v13 = vadd.f32 %v5746_v21, %v338_v62 }
  0xc3   : > { %v5239_v61 = vpack.c.bf16 %v749_v20, %v748_v55  ;;  %v438_v55 = vmax.f32 %v397_v35, 0.0  ;;  %v372_v9 = vadd.f32 %v5746_v21, %v329_v32  ;;  %v6218_v35 = vld [vmem:[%s5710_s24 + $0x98] sm:$0xff]  }
  0xc4   : > { %v6138_v38 = vld [vmem:[#allocation2 + $0x80] sm:$0xff]  ;;  %v371_v62 = vadd.f32 %v5746_v21, %v328_v56  ;;  %v422_v29 = vmax.f32 %v381_v13, 0.0  ;;  %v5194_v32 = vunpack.c.l.bf16 %v6218_v35 }
  0xc5   : > { %5416 = vst [vmem:[#allocation2 + $0x40] sm:$0xff] %v5239_v61   ;;  %v5007_v31 = vld [vmem:[#allocation2 + $0x78] sm:$0xff]  ;;  %v1147_v26 = vshll.u32 %v6138_v38, 16  ;;  %v1079_v61 = vshrl.u32 %v6041_v48, 16 }
  0xc6   : > { %4016 = vperm.xlu1 %5484, %v3862_v1   ;;  %4011 = vperm.xlu0 %5483, %v3861_v2   ;;  %v1139_v60 = vshll.u32 %v5007_v31, 16  ;;  %v1143_v37 = vshrl.u32 %v5007_v31, 16  ;;  %v5028_v1 = vld [vmem:[%s7042_s1 + $0x90] sm:$0xff]  ;;  %v5062_v2 = vld [vmem:[%s7042_s1 + $0x118] sm:$0xff]  ;;  %v750_v56 = vsel %vm709_vm13, %v422_v29, 0.0  ;;  %v1151_v29 = vshrl.u32 %v6138_v38, 16 }
  0xc7   : > { %4021 = vperm.xlu2 %5485, %v3863_v4   ;;  %v6172_v52 = vrot.slane %v1147_v26, 1  ;;  %v5055_v4 = vld [vmem:[%s7042_s1 + $0xe0] sm:$0xff]  ;;  %v1081_v12 = vor.u32 %v1079_v61, %v6067_v7  ;;  %1627 = vmatpush.bf16.msrb.mxu2 %v5028_v1  ;;  %v5027_v7 = vld [vmem:[%s7042_s1 + $0x88] sm:$0xff]  ;;  %v597_v26 = vpop.permute.xlu2 %596 }
  0xc8   : > { %v654_v27 = vpop.permute.xlu1 %653  ;;  %v591_v28 = vpop.permute.xlu0 %590  ;;  %v6159_v34 = vrot.slane %v1139_v60, 1  ;;  %2404 = vmatpush.bf16.msrb.mxu0 %v5062_v2  ;;  %2010 = vmatpush.bf16.msrb.mxu3 %v5055_v4  ;;  %v5061_v60 = vld [vmem:[%s7042_s1 + $0x110] sm:$0xff]  ;;  %vm700_vm14 = vcmp.eq.s32.totalorder %v597_v26, 1  ;;  %v5060_v26 = vld [vmem:[%s7042_s1 + $0x108] sm:$0xff]  ;;  %v5051_v38 = vld [vmem:[%s7042_s1 + $0xc0] sm:$0xff] }
  0xc9   : > { %vm719_vm9 = vcmp.eq.s32.totalorder %v654_v27, 1  ;;  %vm698_vm10 = vcmp.eq.s32.totalorder %v591_v28, 1 }
  0xca   : > { %v760_v58 = vsel %vm719_vm9, %v432_v15, 0.0  ;;  %v739_v42 = vsel %vm698_vm10, %v411_v16, 0.0  ;;  %v1145_v51 = vor.u32 %v1143_v37, %v6159_v34  ;;  %v382_v15 = vadd.f32 %v5746_v21, %v339_v59  ;;  %v5054_v16 = vld [vmem:[%s7042_s1 + $0xd8] sm:$0xff]  ;;  %v3867_v37 = vld [vmem:[%s7044_s3 + $0x123] sm:$0xff] }
  0xcb   : > { %v5269_v33 = vpack.c.bf16 %v761_v41, %v760_v58  ;;  %v5214_v46 = vpack.c.bf16 %v739_v42, %v738_v39  ;;  %v5488_v39 = vld [vmem:[%s7043_s2] ss:$0 sm:$0xff]  ;;  %v413_v58 = vmax.f32 %v372_v9, 0.0  ;;  %1628 = vmatpush.bf16.msrb.mxu2 %v5027_v7  ;;  %v317_v9 = vunpack.c.l.bf16 %v276_v53 }
  0xcc   : > { %v6178_v6 = vld [vmem:[#allocation2 + $0x40] sm:$0xff]  ;;  %v1150_v20 = vsel %vm1018_vm2, %v1145_v51, %v6172_v52  ;;  %v357_v41 = vmul.f32 %v5488_v39, %v5191_v50  ;;  %2405 = vmatpush.bf16.msrb.mxu0 %v5061_v60  ;;  %v1039_v51 = vshrl.u32 %v6036_v43, 16  ;;  %2011 = vmatpush.bf16.msrb.mxu3 %v5054_v16  ;;  %v358_v16 = vmul.f32 %v5488_v39, %v5194_v32  ;;  %v5052_v60 = vld [vmem:[%s7042_s1 + $0xc8] sm:$0xff] }
  0xcd   : > { %5422 = vst [vmem:[#allocation2 + $0x70] sm:$0xff] %v5269_v33   ;;  %v1083_v63 = vshll.u32 %v6178_v6, 16  ;;  %1316 = vmatmul.bf16.vlgmr.msra.gmra.mxu3 %v1150_v20  ;;  %v356_v33 = vmul.f32 %v5488_v39, %v5190_v54  ;;  %v5011_v20 = vld [vmem:[%s7042_s1 + $0x8] sm:$0xff]  ;;  %v741_v1 = vsel %vm700_vm14, %v413_v58, 0.0  ;;  %v5195_v54 = vunpack.c.h.bf16 %v6218_v35 }
  0xce   : > { %5411 = vst [vmem:[#allocation2 + $0x18] sm:$0xff] %v5214_v46   ;;  %4031 = vperm.xlu1 %5484, %v3865_v25   ;;  %4026 = vperm.xlu0 %5483, %v3864_v47   ;;  %v412_v46 = vmax.f32 %v371_v62, 0.0  ;;  %v423_v25 = vmax.f32 %v382_v15, 0.0  ;;  %v1041_v59 = vor.u32 %v1039_v51, %v6064_v5  ;;  %v5026_v5 = vld [vmem:[%s7042_s1 + $0x80] sm:$0xff]  ;;  %v1153_v58 = vor.u32 %v1151_v29, %v6172_v52 }
  0xcf   : > { %4036 = vperm.xlu2 %5485, %v3866_v23   ;;  %v6202_v40 = vrot.slane %v1083_v63, 1  ;;  %v1127_v23 = vshrl.u32 %v6085_v19, 16  ;;  %v5489_v19 = vld [vmem:[%s7043_s2 + $0x1] ss:$0 sm:$0xff]  ;;  %1404 = vmatpush.bf16.msrb.mxu1 %v5011_v20  ;;  %vm2556_vm9 = vcmask 1045504   ;;  %vm1518_vm10 = vcmask 1046528  }
  0xd0   : > { %v675_v10 = vpop.permute.xlu1 %674  ;;  %v672_v31 = vpop.permute.xlu0 %671  ;;  %v400_v63 = vadd.f32 %v5489_v19, %v357_v41  ;;  %v399_v8 = vadd.f32 %v5489_v19, %v356_v33  ;;  %1629 = vmatpush.bf16.msrb.mxu2 %v5026_v5  ;;  %2406 = vmatpush.bf16.msrb.mxu0 %v5060_v26 }
  0xd1   : > { %vm726_vm11 = vcmp.eq.s32.totalorder %v675_v10, 1  ;;  %vm725_vm12 = vcmp.eq.s32.totalorder %v672_v31, 1  ;;  %v1086_v21 = vsel %vm1018_vm2, %v1081_v12, %v6202_v40  ;;  %v1129_v13 = vor.u32 %v1127_v23, %v6118_v49 }
  0xd2   : > { %v767_v27 = vsel %vm726_vm11, %v439_v44, 0.0  ;;  %v766_v28 = vsel %vm725_vm12, %v438_v55, 0.0  ;;  %1276 = vmatmul.bf16.gmra.mxu1 %v1086_v21  ;;  %v5053_v55 = vld [vmem:[%s7042_s1 + $0xd0] sm:$0xff]  ;;  %v440_v21 = vmax.f32 %v399_v8, 0.0  ;;  %vm5509_vm11 = vmpackc.low %vm692_vm5, %vm691_vm1  ;;  %vm3201_vm1 = vsmask.f32 5376 }
  0xd3   : > { %v5284_v30 = vpack.c.bf16 %v767_v27, %v766_v28  ;;  %2012 = vmatpush.bf16.msrb.mxu3 %v5053_v55  ;;  %v441_v27 = vmax.f32 %v400_v63, 0.0  ;;  %v360_v28 = vmul.f32 %v5488_v39, %v317_v9  ;;  %vm3594_vm5 = vcmask 1044480  }
  0xd4   : > { %v6230_v42 = vld [vmem:[#allocation2 + $0x70] sm:$0xff] }
  0xd5   : > { %5425 = vst [vmem:[#allocation2 + $0x88] sm:$0xff] %v5284_v30   ;;  %v6232_v47 = vld [vmem:[#allocation2 + $0x18] sm:$0xff]  ;;  %v1131_v44 = vshll.u32 %v6230_v42, 16  ;;  %v359_v30 = vmul.f32 %v5488_v39, %v5195_v54  ;;  %v684_v39 = vpop.permute.xlu2 %683  ;;  %v1135_v55 = vshrl.u32 %v6230_v42, 16 }
  0xd6   : > { %4046 = vperm.xlu1 %5484, %v3868_v0   ;;  %4041 = vperm.xlu0 %5483, %v3867_v37   ;;  %v1043_v61 = vshll.u32 %v6232_v47, 16  ;;  %v401_v0 = vadd.f32 %v5489_v19, %v358_v16  ;;  %vm729_vm6 = vcmp.eq.s32.totalorder %v684_v39, 1  ;;  %v1047_v63 = vshrl.u32 %v6232_v47, 16  ;;  %v5107_v54 = vld [vmem:[%s7042_s1 + $0x1f8] sm:$0xff]  ;;  %v1758_v16 = vld [vmem:[#allocation2 + $0xc] sm:$0xf] }
  0xd7   : > { %v1133_v50 = vrot.slane %v1131_v44, 1  ;;  %2013 = vmatpush.bf16.msrb.mxu3 %v5052_v60  ;;  %v402_v52 = vadd.f32 %v5489_v19, %v359_v30  ;;  %v2535_v60 = vld [vmem:[#allocation2 + $0x8] sm:$0xc] }
  0xd8   : > { %v594_v2 = vpop.permute.xlu1 %593  ;;  %v627_v4 = vpop.permute.xlu0 %626  ;;  %v6257_v17 = vrot.slane %v1043_v61, 1  ;;  %v442_v53 = vmax.f32 %v401_v0, 0.0  ;;  %v5428_v0 = vld [vmem:[#allocation2] sm:$0xf0] }
  0xd9   : > { %vm699_vm15 = vcmp.eq.s32.totalorder %v594_v2, 1  ;;  %vm710_vm0 = vcmp.eq.s32.totalorder %v627_v4, 1  ;;  %v1134_v12 = vsel %vm1018_vm2, %v1129_v13, %v1133_v50  ;;  %v443_v61 = vmax.f32 %v402_v52, 0.0  ;;  %v5059_v2 = vld [vmem:[%s7042_s1 + $0x100] sm:$0xff] }
  0xda   : > { %v740_v10 = vsel %vm699_vm15, %v412_v46, 0.0  ;;  %v751_v31 = vsel %vm710_vm0, %v423_v25, 0.0  ;;  %v1046_v15 = vsel %vm1018_vm2, %v1041_v59, %v6257_v17  ;;  %1306 = vmatmul.bf16.gmra.mxu2 %v1134_v12  ;;  %v403_v46 = vadd.f32 %v5489_v19, %v360_v28  ;;  %v5010_v25 = vld [vmem:[%s7042_s1] sm:$0xff]  ;;  %2407 = vmatpush.bf16.msrb.mxu0 %v5059_v2  ;;  %v5099_v12 = vld [vmem:[%s7042_s1 + $0x1b8] sm:$0xff] }
  0xdb   : > { %v5219_v49 = vpack.c.bf16 %v741_v1, %v740_v10  ;;  %v5244_v62 = vpack.c.bf16 %v751_v31, %v750_v56  ;;  %1251 = vmatmul.bf16.gmra.mxu0 %v1046_v15  ;;  %1405 = vmatpush.bf16.msrb.mxu1 %v5010_v25  ;;  %v1137_v19 = vor.u32 %v1135_v55, %v1133_v50  ;;  %v1087_v4 = vshrl.u32 %v6178_v6, 16  ;;  %v5115_v25 = vld [vmem:[%s7042_s1 + $0x238] sm:$0xff] }
  0xdc   : > { %v6263_v7 = vld [vmem:[#allocation2 + $0x88] sm:$0xff]  ;;  %2014 = vmatpush.bf16.msrb.mxu3 %v5051_v38  ;;  %v444_v56 = vmax.f32 %v403_v46, 0.0  ;;  %v770_v13 = vsel %vm729_vm6, %v442_v53, 0.0  ;;  %v1049_v9 = vor.u32 %v1047_v63, %v6257_v17  ;;  %3045 = vmatpush.bf16.msra.mxu2 %v5099_v12 }
  0xdd   : > { %5412 = vst [vmem:[#allocation2 + $0x20] sm:$0xff] %v5219_v49   ;;  %v1155_v35 = vshll.u32 %v6263_v7, 16  ;;  %v1089_v31 = vor.u32 %v1087_v4, %v6202_v40  ;;  %v1142_v17 = vsel %vm1018_vm2, %v1137_v19, %v6159_v34  ;;  %v2554_v34 = vunpack.c.l.b16 %v2535_v60 }
  0xde   : > { %5417 = vst [vmem:[#allocation2 + $0x48] sm:$0xff] %v5244_v62   ;;  %3698 = vmatpush.bf16.msra.mxu0 %v5115_v25  ;;  %v6376_v25 = vld [vmem:[#allocation2 + $0x60] sm:$0xff] }
  0xdf   : > { %v6274_v33 = vrot.slane %v1155_v35, 1  ;;  %v1849_v35 = vunpack.c.l.b16 %v1758_v16  ;;  %7050 = vst [vmem:[#allocation3_spill] sm:$0xff] %v6376_v25 }
  0xe0   : > { %v681_v37 = vpop.permute.xlu1 %680  ;;  %v678_v41 = vpop.permute.xlu0 %677  ;;  %3438 = vmatpush.bf16.msra.mxu3 %v5107_v54 }
  0xe1   : > { %vm728_vm3 = vcmp.eq.s32.totalorder %v681_v37, 1  ;;  %vm727_vm4 = vcmp.eq.s32.totalorder %v678_v41, 1  ;;  %v1158_v23 = vsel %vm1018_vm2, %v1153_v58, %v6274_v33  ;;  %v5429_v37 = vld [vmem:[#allocation2] sm:$0xe]  ;;  %v6313_v41 = vld [vmem:[#allocation2 + $0x10] sm:$0xff]  ;;  %v1159_v58 = vshrl.u32 %v6263_v7, 16 }
  0xe2   : > { %v769_v51 = vsel %vm728_vm3, %v441_v27, 0.0  ;;  %v768_v32 = vsel %vm727_vm4, %v440_v21, 0.0  ;;  %1321 = vmatmul.bf16.gmra.mxu3 %v1158_v23  ;;  %v5074_v21 = vld [vmem:[%s7042_s1 + $0x178] sm:$0xff]  ;;  %v2555_v38 = vpack.c.b16 %v1849_v35, %v2554_v34  ;;  %v5430_v39 = vor.u32 %v5429_v37, %v5428_v0  ;;  %v5114_v0 = vld [vmem:[%s7042_s1 + $0x230] sm:$0xff] }
  0xe3   : > { %v5289_v44 = vpack.c.bf16 %v769_v51, %v768_v32  ;;  %2660 = vmatpush.bf16.msra.mxu1 %v5074_v21  ;;  %v1161_v51 = vor.u32 %v1159_v58, %v6274_v33  ;;  %v2558_v23 = vrot.slane %v6313_v41, 2  ;;  %v5098_v21 = vld [vmem:[%s7042_s1 + $0x1b0] sm:$0xff]  ;;  %v1524_v34 = vrot.slane %v6232_v47, 1  ;;  %3699 = vmatpush.bf16.msra.mxu0 %v5114_v0 }
  0xe4   : > { %v6284_v20 = vld [vmem:[#allocation2 + $0x20] sm:$0xff]  ;;  %v2557_v53 = vrot.slane %v2555_v38, 2  ;;  %v1519_v55 = vrot.slane %v5430_v39, 1  ;;  %3046 = vmatpush.bf16.msra.mxu2 %v5098_v21  ;;  %v6378_v38 = vld [vmem:[#allocation2 + $0x68] sm:$0xff] }
  0xe5   : > { %5426 = vst [vmem:[#allocation2 + $0x90] sm:$0xff] %v5289_v44   ;;  %v6287_v59 = vld [vmem:[#allocation2 + $0x48] sm:$0xff]  ;;  %v1051_v1 = vshll.u32 %v6284_v20, 16  ;;  %v1055_v44 = vshrl.u32 %v6284_v20, 16 }
  0xe6   : > { %v1091_v42 = vshll.u32 %v6287_v59, 16  ;;  %v1095_v7 = vshrl.u32 %v6287_v59, 16  ;;  %v6327_v33 = vsel %vm2556_vm9, %v2557_v53, %v2558_v23 }
  0xe7   : > { %v1053_v10 = vrot.slane %v1051_v1, 1  ;;  %2661 = vmatpush.bf16.msra.mxu1 %v5073_v36 }
  0xe8   : > { %v690_v8 = vpop.permute.xlu1 %689  ;;  %v687_v5 = vpop.permute.xlu0 %686  ;;  %v1093_v50 = vrot.slane %v1091_v42, 1 }
  0xe9   : > { %vm731_vm7 = vcmp.eq.s32.totalorder %v690_v8, 1  ;;  %vm730_vm8 = vcmp.eq.s32.totalorder %v687_v5, 1  ;;  %v1054_v15 = vsel %vm1018_vm2, %v1049_v9, %v1053_v10  ;;  %v1057_v63 = vor.u32 %v1055_v44, %v1053_v10  ;;  %v6336_v9 = vld [vmem:[#allocation2 + $0x18] sm:$0xff] }
  0xea   : > { %v772_v49 = vsel %vm731_vm7, %v444_v56, 0.0  ;;  %v771_v62 = vsel %vm730_vm8, %v443_v61, 0.0  ;;  %v1094_v27 = vsel %vm1018_vm2, %v1089_v31, %v1093_v50  ;;  %1311 = vmatmul.bf16.gmra.mxu2 %v1142_v17  ;;  %v1520_v56 = vrot.slane %v5949_v14, 1  ;;  %v1757_v61 = vld [vmem:[#allocation2 + $0x8] sm:$0xe] }
  0xeb   : > { %v813_v26 = vpack.c.bf16 %v772_v49, %v772_v49  ;;  %v5294_v40 = vpack.c.bf16 %v771_v62, %v770_v13  ;;  %1256 = vmatmul.bf16.gmra.mxu0 %v1054_v15  ;;  %1281 = vmatmul.bf16.gmra.mxu1 %v1094_v27  ;;  %v1097_v1 = vor.u32 %v1095_v7, %v1093_v50  ;;  %v1848_v19 = vunpack.c.l.b16 %v1757_v61  ;;  %v6385_v7 = vld [vmem:[#allocation2 + $0x80] sm:$0xff] }
  0xec   : > { %v907_v28 = vld [vmem:[#allocation2 + $0x90] sm:$0x1]  ;;  %v1521_v2 = vsel %vm1518_vm10, %v1519_v55, %v1520_v56  ;;  %v1062_v4 = vsel %vm1018_vm2, %v1057_v63, %v5884_v22  ;;  %v2173_v8 = vshrl.u32 %v6313_v41, 16  ;;  %v2176_v5 = vshll.u32 %v6313_v41, 16 }
  0xed   : > { %854 = vst [vmem:[#allocation2 + $0xa0] sm:$0x7] %v813_v26  ;;  %v998_v29 = vunpack.c.l.b16 %v907_v28  ;;  %v1102_v42 = vsel %vm1018_vm2, %v1097_v1, %v5887_v24  ;;  %v1885_v13 = vpack.c.b16 %v1849_v35, %v1848_v19  ;;  %v1905_v10 = vrot.slane %v6313_v41, 1 }
  0xee   : > { %5427 = vst [vmem:[#allocation2 + $0x98] sm:$0xff] %v5294_v40   ;;  %v2175_v54 = vrot.slane %v2173_v8, 1  ;;  %v2178_v22 = vrot.slane %v2176_v5, 2  ;;  %v7048_v49 = vrot.slane %v6336_v9, 2  ;;  %v1522_v17 = vrot.slane %v6036_v43, 1  ;;  %v6404_v8 = vld [vmem:[#allocation2 + $0x70] sm:$0xff] }
  0xef   : > { %v6311_v30 = vpack.c.b16 %v998_v29, %v998_v29  ;;  %v2165_v31 = vshrl.u32 %v1885_v13, 16  ;;  %v2168_v50 = vshll.u32 %v1885_v13, 16  ;;  %v1904_v12 = vrot.slane %v1885_v13, 1  ;;  %v5106_v29 = vld [vmem:[%s7042_s1 + $0x1f0] sm:$0xff]  ;;  %v5037_v5 = vld [vmem:[#allocation2 + $0x28] sm:$0xff] }
  0xf0   : > { %v6345_v16 = vsel %vm2556_vm9, %v2558_v23, %v7048_v49  ;;  %v2179_v60 = vor.u32 %v2178_v22, %v2175_v54  ;;  %v1523_v40 = vsel %vm1518_vm10, %v1520_v56, %v1522_v17  ;;  %v5510_v28 = vpack.c.bf16 %v405_v11, %v404_v45  ;;  %3439 = vmatpush.bf16.msra.mxu3 %v5106_v29  ;;  %v5105_v22 = vld [vmem:[%s7042_s1 + $0x1e8] sm:$0xff]  ;;  %v5095_v49 = vld [vmem:[%s7042_s1 + $0x198] sm:$0xff] }
  0xf1   : > { %v1163_v46 = vshll.u32 %v6311_v30, 16  ;;  %v1906_v24 = vsel %vm1518_vm10, %v1904_v12, %v1905_v10  ;;  %v2167_v62 = vrot.slane %v2165_v31, 1  ;;  %v2170_v15 = vrot.slane %v2168_v50, 2  ;;  %v6433_v29 = vld [vmem:[#allocation2 + $0x28] sm:$0xff] }
  0xf2   : > { %v2182_v3 = vshrl.u32 %v6336_v9, 16  ;;  %v2185_v18 = vshll.u32 %v6336_v9, 16  ;;  %v1907_v45 = vrot.slane %v6336_v9, 1  ;;  %v1525_v41 = vsel %vm1518_vm10, %v1522_v17, %v1524_v34 }
  0xf3   : > { %v1165_v32 = vrot.slane %v1163_v46, 1  ;;  %v2171_v26 = vor.u32 %v2170_v15, %v2167_v62  ;;  %v5036_v46 = vld [vmem:[#allocation2 + $0x20] sm:$0xff]  ;;  %v2580_v23 = vrot.slane %v6378_v38, 2  ;;  %v2586_v63 = vrot.slane %v6385_v7, 2 }
  0xf4   : > { %v2184_v57 = vrot.slane %v2182_v3, 1  ;;  %v2187_v11 = vrot.slane %v2185_v18, 2  ;;  %v1908_v35 = vsel %vm1518_vm10, %v1905_v10, %v1907_v45  ;;  %v2191_v39 = vshrl.u32 %v5036_v46, 16  ;;  %v5097_v10 = vld [vmem:[%s7042_s1 + $0x1a8] sm:$0xff]  ;;  %3440 = vmatpush.bf16.msra.mxu3 %v5105_v22 }
  0xf5   : > { %v1166_v52 = vsel %vm1018_vm2, %v1161_v51, %v1165_v32  ;;  %vm2163_vm2 = vsmask.f32 6400  ;;  %v2194_v51 = vshll.u32 %v5036_v46, 16  ;;  %v7047_v32 = vrot.slane %v6376_v25, 2  ;;  %3047 = vmatpush.bf16.msra.mxu2 %v5097_v10 }
  0xf6   : > { %1326 = vmatmul.bf16.gmra.mxu3 %v1166_v52  ;;  %v2180_v27 = vsel %vm2163_vm2, %v2171_v26, %v2179_v60  ;;  %v2188_v37 = vor.u32 %v2187_v11, %v2184_v57  ;;  %v6383_v52 = vld [vmem:[#allocation2 + $0x78] sm:$0xff]  ;;  %v1909_v44 = vrot.slane %v5036_v46, 1  ;;  %v2193_v55 = vrot.slane %v2191_v39, 1  ;;  %v5113_v57 = vld [vmem:[%s7042_s1 + $0x228] sm:$0xff] }
  0xf7   : > { %v6390_v53 = vsel %vm2556_vm9, %v7047_v32, %v2580_v23  ;;  %v2196_v56 = vrot.slane %v2194_v51, 2  ;;  %v1526_v19 = vrot.slane %v6284_v20, 1  ;;  %v2582_v50 = vrot.slane %v6404_v8, 2  ;;  %3700 = vmatpush.bf16.msra.mxu0 %v5113_v57 }
  0xf8   : > { %v2189_v58 = vsel %vm2163_vm2, %v2179_v60, %v2188_v37  ;;  %7051 = vst [vmem:[#allocation4_spill] sm:$0xff] %v6390_v53  ;;  %v1910_v61 = vsel %vm1518_vm10, %v1907_v45, %v1909_v44  ;;  %v2200_v12 = vshrl.u32 %v5037_v5, 16  ;;  %v2203_v54 = vshll.u32 %v5037_v5, 16  ;;  %v6425_v60 = vld [vmem:[#allocation2 + $0x88] sm:$0xff] }
  0xf9   : > { %v1911_v15 = vrot.slane %v5037_v5, 1  ;;  %v6423_v17 = vsel %vm2556_vm9, %v2580_v23, %v2582_v50  ;;  %v1528_v3 = vrot.slane %v6433_v29, 1  ;;  %v2588_v18 = vrot.slane %v6425_v60, 2 }
  0xfa   : > { %1630 = vmatmul.bf16.vlgmr.msrb.gmra.mxu2 %v1521_v2  ;;  %v2197_v2 = vor.u32 %v2196_v56, %v2193_v55  ;;  %7053 = vst [vmem:[#allocation6_spill] sm:$0xff] %v6423_v17 }
  0xfb   : > { %1261 = vmatmul.bf16.gmra.mxu0 %v1062_v4  ;;  %1286 = vmatmul.bf16.gmra.mxu1 %v1102_v42  ;;  %v1527_v42 = vsel %vm1518_vm10, %v1524_v34, %v1526_v19  ;;  %v1912_v26 = vsel %vm1518_vm10, %v1909_v44, %v1911_v15  ;;  %v1529_v45 = vsel %vm1518_vm10, %v1526_v19, %v1528_v3  ;;  %v6452_v44 = vld [vmem:[#allocation2 + $0x90] sm:$0xff]  ;;  %v2142_v19 = vld [vmem:[#allocation2 + $0x98] sm:$0x3] }
  0xfc   : > { %v2198_v13 = vsel %vm2163_vm2, %v2188_v37, %v2197_v2  ;;  %v6443_v34 = vsel %vm2556_vm9, %v2586_v63, %v2588_v18 }
  0xfd   : > { %7055 = vst [vmem:[#allocation8_spill] sm:$0xff] %v6443_v34  ;;  %v5070_v34 = vld [vmem:[%s7042_s1 + $0x158] sm:$0xff] }
 0x106   : > { %2015 = vmatmul.bf16.vlgmr.msrb.gmra.mxu3 %v1906_v24 }
 0x10a   : > { %1635 = vmatmul.bf16.gmra.mxu2 %v1523_v40  ;;  %v2202_v40 = vrot.slane %v2200_v12, 1 }
 0x10b   : > { %5511 = vmatmul.msk.bf16.vlgmr.msrb.gmra.mxu1 %vm5509_vm11, %v5510_v28  ;;  %2408 = vmatmul.bf16.vlgmr.msrb.gmra.mxu0 %v2180_v27  ;;  %v2205_v27 = vrot.slane %v2203_v54, 2 }
 0x10d   : > { %v2206_v36 = vor.u32 %v2205_v27, %v2202_v40  ;;  %v5096_v27 = vld [vmem:[%s7042_s1 + $0x1a0] sm:$0xff] }
 0x10e   : > { %3048 = vmatpush.bf16.msra.mxu2 %v5096_v27 }
 0x10f   : > { %v2207_v11 = vsel %vm2163_vm2, %v2197_v2, %v2206_v36  ;;  %v2590_v2 = vrot.slane %v6452_v44, 2 }
 0x111   : > { %v6465_v5 = vsel %vm2556_vm9, %v2588_v18, %v2590_v2 }
 0x112   : > { %7056 = vst [vmem:[#allocation9_spill] sm:$0xff] %v6465_v5  ;;  %3049 = vmatpush.bf16.msra.mxu2 %v5095_v49 }
 0x116   : > { %2020 = vmatmul.bf16.gmra.mxu3 %v1908_v35  ;;  %v5038_v35 = vld [vmem:[#allocation2 + $0x30] sm:$0xff] }
 0x117   : > { %v1913_v46 = vrot.slane %v5038_v35, 1 }
 0x119   : > { %v1914_v56 = vsel %vm1518_vm10, %v1911_v15, %v1913_v46 }
 0x11a   : > { %1640 = vmatmul.bf16.gmra.mxu2 %v1525_v41  ;;  %v2209_v41 = vshrl.u32 %v5038_v35, 16 }
 0x11b   : > { %1411 = vmatmul.bf16.gmra.mxu1 %v5949_v14  ;;  %2413 = vmatmul.bf16.gmra.mxu0 %v2189_v58  ;;  %v2584_v14 = vrot.slane %v6383_v52, 2  ;;  %v2212_v58 = vshll.u32 %v5038_v35, 16  ;;  %v1532_v35 = vrot.slane %v6041_v48, 1 }
 0x11c   : > { %v2211_v51 = vrot.slane %v2209_v41, 1  ;;  %v5104_v41 = vld [vmem:[%s7042_s1 + $0x1e0] sm:$0xff] }
 0x11d   : > { %v6399_v4 = vsel %vm2556_vm9, %v2584_v14, %v2586_v63  ;;  %v6429_v28 = vsel %vm2556_vm9, %v2582_v50, %v2584_v14  ;;  %v2214_v23 = vrot.slane %v2212_v58, 2  ;;  %v5039_v50 = vld [vmem:[#allocation2 + $0x38] sm:$0xff]  ;;  %v5071_v58 = vld [vmem:[%s7042_s1 + $0x160] sm:$0xff]  ;;  %3441 = vmatpush.bf16.msra.mxu3 %v5104_v41 }
 0x11e   : > { %7052 = vst [vmem:[#allocation5_spill] sm:$0xff] %v6399_v4  ;;  %v2221_v15 = vshll.u32 %v5039_v50, 16  ;;  %v1915_v40 = vrot.slane %v5039_v50, 1 }
 0x11f   : > { %v6418_v24 = vpop.f32.mrf.mxu1  ;;  %7054 = vst [vmem:[#allocation7_spill] sm:$0xff] %v6429_v28  ;;  %v2215_v63 = vor.u32 %v2214_v23, %v2211_v51 }
 0x120   : > { %v6395_v1 = vpop.f32.mrf.mxu2 }
 0x121   : > { %v2216_v10 = vsel %vm2163_vm2, %v2206_v36, %v2215_v63  ;;  %v2223_v36 = vrot.slane %v2221_v15, 2 }
 0x126   : > { %2025 = vmatmul.bf16.gmra.mxu3 %v1910_v61 }
 0x127   : > { %v6420_v62 = vpop.f32.mrf.mxu0  ;;  %v6446_v0 = vpop.f32.mrf.mxu1 }
 0x128   : > { %v6409_v31 = vpop.f32.mrf.mxu2 }
 0x12a   : > { %1645 = vmatmul.bf16.gmra.mxu2 %v1527_v42 }
 0x12b   : > { %1416 = vmatmul.bf16.gmra.mxu1 %v6036_v43  ;;  %2418 = vmatmul.bf16.gmra.mxu0 %v2198_v13  ;;  %v5072_v43 = vld [vmem:[%s7042_s1 + $0x168] sm:$0xff]  ;;  %v2161_v13 = vunpack.c.l.b16 %v2142_v19  ;;  %v5040_v19 = vld [vmem:[#allocation2 + $0x40] sm:$0xff] }
 0x12c   : > { %2662 = vmatpush.bf16.msra.mxu1 %v5072_v43  ;;  %v2218_v43 = vshrl.u32 %v5039_v50, 16 }
 0x12d   : > { %v6471_v54 = vpack.c.b16 %v2161_v13, %v2161_v13  ;;  %v2227_v13 = vshrl.u32 %v5040_v19, 16 }
 0x12e   : > { %v2220_v18 = vrot.slane %v2218_v43, 1 }
 0x12f   : > { %v6448_v37 = vpop.f32.mrf.mxu0  ;;  %v2229_v15 = vrot.slane %v2227_v13, 1 }
 0x130   : > { %v2224_v23 = vor.u32 %v2223_v36, %v2220_v18  ;;  %2663 = vmatpush.bf16.msra.mxu1 %v5071_v58  ;;  %v1534_v18 = vrot.slane %v6178_v6, 1 }
 0x132   : > { %v2225_v48 = vsel %vm2163_vm2, %v2215_v63, %v2224_v23  ;;  %v1917_v63 = vrot.slane %v5040_v19, 1 }
 0x134   : > { %2664 = vmatpush.bf16.msra.mxu1 %v5070_v34 }
 0x135   : > { %v6431_v21 = vpop.f32.mrf.mxu2 }
 0x136   : > { %2030 = vmatmul.bf16.gmra.mxu3 %v1912_v26 }
 0x137   : > { %v6460_v61 = vpop.f32.mrf.mxu0 }
 0x138   : > { %v6454_v55 = vpop.f32.mrf.mxu1 }
 0x13a   : > { %1650 = vmatmul.bf16.gmra.mxu2 %v1529_v45  ;;  %v1916_v45 = vsel %vm1518_vm10, %v1913_v46, %v1915_v40 }
 0x13b   : > { %1421 = vmatmul.bf16.gmra.mxu1 %v6232_v47  ;;  %2423 = vmatmul.bf16.gmra.mxu0 %v2207_v11  ;;  %v6457_v47 = vld [vmem:[#allocation2 + $0x30] sm:$0xff] }
 0x13c   : > { %v1530_v14 = vrot.slane %v6457_v47, 1 }
 0x13d   : > { %v6450_v39 = vpop.f32.mrf.mxu2 }
 0x13e   : > { %v1531_v42 = vsel %vm1518_vm10, %v1528_v3, %v1530_v14  ;;  %v2592_v3 = vrot.slane %v6471_v54, 2 }
 0x13f   : > { %v6475_v26 = vpop.f32.mrf.mxu0 }
 0x140   : > { %v6473_v22 = vpop.f32.mrf.mxu1 }
 0x145   : > { %v6468_v12 = vpop.f32.mrf.mxu2 }
 0x146   : > { %2035 = vmatmul.bf16.gmra.mxu3 %v1914_v56  ;;  %v1533_v56 = vsel %vm1518_vm10, %v1530_v14, %v1532_v35 }
 0x14a   : > { %1655 = vmatmul.bf16.gmra.mxu2 %v1531_v42 }
 0x14b   : > { %1426 = vmatmul.bf16.gmra.mxu1 %v6284_v20  ;;  %2428 = vmatmul.bf16.gmra.mxu0 %v2216_v10  ;;  %v6482_v20 = vsel %vm2556_vm9, %v2590_v2, %v2592_v3  ;;  %v5112_v2 = vld [vmem:[%s7042_s1 + $0x220] sm:$0xff]  ;;  %v2230_v10 = vshll.u32 %v5040_v19, 16  ;;  %v5041_v19 = vld [vmem:[#allocation2 + $0x48] sm:$0xff] }
 0x14c   : > { %7057 = vst [vmem:[#allocation10_spill] sm:$0xff] %v6482_v20  ;;  %3701 = vmatpush.bf16.msra.mxu0 %v5112_v2  ;;  %v2236_v2 = vshrl.u32 %v5041_v19, 16  ;;  %v2239_v13 = vshll.u32 %v5041_v19, 16 }
 0x14d   : > { %v6485_v57 = vpop.f32.mrf.mxu2  ;;  %v2232_v27 = vrot.slane %v2230_v10, 2 }
 0x14e   : > { %v2238_v32 = vrot.slane %v2236_v2, 1 }
 0x14f   : > { %v6496_v51 = vpop.f32.mrf.mxu1  ;;  %v2233_v36 = vor.u32 %v2232_v27, %v2229_v15  ;;  %v1919_v27 = vrot.slane %v5041_v19, 1 }
 0x150   : > { %v6487_v11 = vpop.f32.mrf.mxu3 }
 0x151   : > { %7058 = vst [vmem:[#allocation11_spill] sm:$0xff] %v6487_v11 }
 0x156   : > { %2040 = vmatmul.bf16.gmra.mxu3 %v1916_v45 }
 0x157   : > { %v6510_v43 = vpop.f32.mrf.mxu1 }
 0x158   : > { %v6498_v46 = vpop.f32.mrf.mxu0  ;;  %v6508_v50 = vpop.f32.mrf.mxu3 }
 0x159   : > { %7060 = vst [vmem:[#allocation13_spill] sm:$0xff] %v6508_v50 }
 0x15a   : > { %1660 = vmatmul.bf16.gmra.mxu2 %v1533_v56  ;;  %v1535_v56 = vsel %vm1518_vm10, %v1532_v35, %v1534_v18  ;;  %v2241_v35 = vrot.slane %v2239_v13, 2  ;;  %v5492_v13 = vld [vmem:[#allocation2 + $0x38] sm:$0xff] }
 0x15b   : > { %1431 = vmatmul.bf16.gmra.mxu1 %v6433_v29  ;;  %2433 = vmatmul.bf16.gmra.mxu0 %v2225_v48  ;;  %v1918_v29 = vsel %vm1518_vm10, %v1915_v40, %v1917_v63  ;;  %v2234_v48 = vsel %vm2163_vm2, %v2224_v23, %v2233_v36 }
 0x15d   : > { %v6506_v42 = vpop.f32.mrf.mxu2 }
 0x15e   : > { %7059 = vst [vmem:[#allocation12_spill] sm:$0xff] %v6506_v42 }
 0x160   : > { %v6512_v14 = vpop.f32.mrf.mxu0 }
 0x165   : > { %v6515_v3 = vpop.f32.mrf.mxu2  ;;  %v6518_v45 = vpop.f32.mrf.mxu3 }
 0x166   : > { %2045 = vmatmul.bf16.gmra.mxu3 %v1918_v29  ;;  %7061 = vst [vmem:[#allocation14_spill] sm:$0xff] %v6515_v3 }
 0x167   : > { %7062 = vst [vmem:[#allocation15_spill] sm:$0xff] %v6518_v45  ;;  %v5111_v45 = vld [vmem:[%s7042_s1 + $0x218] sm:$0xff] }
 0x168   : > { %v6520_v41 = vpop.f32.mrf.mxu0  ;;  %v6522_v58 = vpop.f32.mrf.mxu1  ;;  %3702 = vmatpush.bf16.msra.mxu0 %v5111_v45 }
 0x16a   : > { %1665 = vmatmul.bf16.gmra.mxu2 %v1535_v56  ;;  %v1920_v56 = vsel %vm1518_vm10, %v1917_v63, %v1919_v27 }
 0x16b   : > { %1436 = vmatmul.bf16.gmra.mxu1 %v6457_v47  ;;  %2438 = vmatmul.bf16.gmra.mxu0 %v2234_v48  ;;  %v1536_v47 = vrot.slane %v6287_v59, 1  ;;  %v2242_v48 = vor.u32 %v2241_v35, %v2238_v32  ;;  %v5042_v32 = vld [vmem:[#allocation2 + $0x50] sm:$0xff] }
 0x16c   : > { %v2245_v49 = vshrl.u32 %v5042_v32, 16 }
 0x16d   : > { %v6527_v40 = vpop.f32.mrf.mxu2  ;;  %v6533_v29 = vpop.f32.mrf.mxu3  ;;  %v1537_v2 = vsel %vm1518_vm10, %v1534_v18, %v1536_v47  ;;  %v2243_v63 = vsel %vm2163_vm2, %v2233_v36, %v2242_v48 }
 0x16e   : > { %7063 = vst [vmem:[#allocation16_spill] sm:$0xff] %v6527_v40  ;;  %v2247_v28 = vrot.slane %v2245_v49, 1  ;;  %v5043_v49 = vld [vmem:[#allocation2 + $0x58] sm:$0xff] }
 0x16f   : > { %7064 = vst [vmem:[#allocation17_spill] sm:$0xff] %v6533_v29  ;;  %v2254_v40 = vshrl.u32 %v5043_v49, 16  ;;  %v2257_v3 = vshll.u32 %v5043_v49, 16 }
 0x170   : > { %v6529_v10 = vpop.f32.mrf.mxu0  ;;  %v6531_v15 = vpop.f32.mrf.mxu1 }
 0x175   : > { %v6536_v23 = vpop.f32.mrf.mxu2 }
 0x176   : > { %2050 = vmatmul.bf16.gmra.mxu3 %v1920_v56  ;;  %7065 = vst [vmem:[#allocation18_spill] sm:$0xff] %v6536_v23  ;;  %v5103_v56 = vld [vmem:[%s7042_s1 + $0x1d8] sm:$0xff] }
 0x177   : > { %3442 = vmatpush.bf16.msra.mxu3 %v5103_v56 }
 0x178   : > { %v6542_v20 = vpop.f32.mrf.mxu0  ;;  %v6544_v5 = vpop.f32.mrf.mxu1 }
 0x179   : > { %v6546_v19 = vpop.f32.mrf.mxu3 }
 0x17a   : > { %7066 = vst [vmem:[#allocation19_spill] sm:$0xff] %v6546_v19  ;;  %1670 = vmatmul.bf16.gmra.mxu2 %v1537_v2  ;;  %v2248_v2 = vshll.u32 %v5042_v32, 16  ;;  %v6563_v19 = vld [vmem:[#allocation2 + $0x50] sm:$0xff] }
 0x17b   : > { %1441 = vmatmul.bf16.gmra.mxu1 %v5492_v13  ;;  %2443 = vmatmul.bf16.gmra.mxu0 %v2243_v63  ;;  %v1921_v63 = vrot.slane %v5042_v32, 1  ;;  %v1538_v29 = vrot.slane %v6563_v19, 1 }
 0x17c   : > { %v2250_v17 = vrot.slane %v2248_v2, 2 }
 0x17d   : > { %v1631_v35 = vpop.f32.mrf.mxu2  ;;  %v1922_v13 = vsel %vm1518_vm10, %v1919_v27, %v1921_v63  ;;  %v1539_v27 = vsel %vm1518_vm10, %v1536_v47, %v1538_v29  ;;  %v2256_v47 = vrot.slane %v2254_v40, 1 }
 0x180   : > { %v6556_v4 = vpop.f32.mrf.mxu0  ;;  %v6558_v18 = vpop.f32.mrf.mxu1 }
 0x181   : > { %v6560_v36 = vpop.f32.mrf.mxu3 }
 0x182   : > { %7067 = vst [vmem:[#allocation20_spill] sm:$0xff] %v6560_v36  ;;  %v2251_v36 = vor.u32 %v2250_v17, %v2247_v28  ;;  %v1923_v28 = vrot.slane %v5043_v49, 1 }
 0x184   : > { %v2252_v56 = vsel %vm2163_vm2, %v2242_v48, %v2251_v36 }
 0x185   : > { %v1633_v53 = vpop.f32.mrf.mxu2 }
 0x186   : > { %2055 = vmatmul.bf16.gmra.mxu3 %v1922_v13 }
 0x188   : > { %v1407_v50 = vpop.f32.mrf.mxu1  ;;  %v2409_v11 = vpop.f32.mrf.mxu0 }
 0x189   : > { %v1408_v34 = vadd.f32 %v1407_v50, %v6420_v62  ;;  %v2016_v32 = vpop.f32.mrf.mxu3 }
 0x18a   : > { %1675 = vmatmul.bf16.gmra.mxu2 %v1539_v27  ;;  %v2259_v27 = vrot.slane %v2257_v3, 2 }
 0x18b   : > { %v1721_v2 = vadd.f32 %v1631_v35, %v1408_v34  ;;  %1446 = vmatmul.bf16.gmra.mxu1 %v6178_v6  ;;  %2448 = vmatmul.bf16.gmra.mxu0 %v2252_v56  ;;  %v1924_v35 = vsel %vm1518_vm10, %v1921_v63, %v1923_v28 }
 0x18d   : > { %v2106_v13 = vadd.f32 %v2016_v32, %v1721_v2  ;;  %v1636_v23 = vpop.f32.mrf.mxu2  ;;  %v6577_v32 = vld [vmem:[#allocation2 + $0x58] sm:$0xff] }
 0x18e   : > { %v1540_v56 = vrot.slane %v6577_v32, 1 }
 0x18f   : > { %v6573_v42 = vadd.f32 %v2409_v11, %v2106_v13  ;;  %v2260_v11 = vor.u32 %v2259_v27, %v2256_v47  ;;  %v1925_v27 = vrot.slane %v6376_v25, 1 }
 0x190   : > { %v1409_v17 = vpop.f32.mrf.mxu1  ;;  %v2411_v62 = vpop.f32.mrf.mxu0  ;;  %v1541_v3 = vsel %vm1518_vm10, %v1538_v29, %v1540_v56  ;;  %v5102_v29 = vld [vmem:[%s7042_s1 + $0x1d0] sm:$0xff] }
 0x191   : > { %v1410_v50 = vadd.f32 %v1409_v17, %v6448_v37  ;;  %v2018_v45 = vpop.f32.mrf.mxu3  ;;  %3443 = vmatpush.bf16.msra.mxu3 %v5102_v29 }
 0x193   : > { %v1722_v48 = vadd.f32 %v1633_v53, %v1410_v50  ;;  %v2261_v53 = vsel %vm2163_vm2, %v2251_v36, %v2260_v11 }
 0x195   : > { %v2107_v34 = vadd.f32 %v2018_v45, %v1722_v48  ;;  %v1638_v6 = vpop.f32.mrf.mxu2  ;;  %v2263_v45 = vshrl.u32 %v6376_v25, 16 }
 0x196   : > { %2060 = vmatmul.bf16.gmra.mxu3 %v1924_v35 }
 0x197   : > { %v6580_v2 = vadd.f32 %v2411_v62, %v2107_v34  ;;  %v2266_v62 = vshll.u32 %v6376_v25, 16  ;;  %v2265_v34 = vrot.slane %v2263_v45, 1 }
 0x198   : > { %v1412_v13 = vpop.f32.mrf.mxu1  ;;  %v2414_v49 = vpop.f32.mrf.mxu0 }
 0x199   : > { %v1413_v37 = vadd.f32 %v1412_v13, %v6460_v61  ;;  %v2021_v17 = vpop.f32.mrf.mxu3  ;;  %v5094_v61 = vld [vmem:[%s7042_s1 + $0x190] sm:$0xff]  ;;  %v2268_v13 = vrot.slane %v2266_v62, 2 }
 0x19a   : > { %1680 = vmatmul.bf16.gmra.mxu2 %v1541_v3 }
 0x19b   : > { %v1723_v40 = vadd.f32 %v1636_v23, %v1413_v37  ;;  %1451 = vmatmul.bf16.gmra.mxu1 %v6287_v59  ;;  %2453 = vmatmul.bf16.gmra.mxu0 %v2261_v53  ;;  %v5069_v59 = vld [vmem:[%s7042_s1 + $0x150] sm:$0xff]  ;;  %v1926_v37 = vsel %vm1518_vm10, %v1923_v28, %v1925_v27  ;;  %v6602_v53 = vld [vmem:[#allocation2 + $0x60] sm:$0xff] }
 0x19c   : > { %3050 = vmatpush.bf16.msra.mxu2 %v5094_v61  ;;  %2665 = vmatpush.bf16.msra.mxu1 %v5069_v59 }
 0x19d   : > { %v2108_v63 = vadd.f32 %v2021_v17, %v1723_v40  ;;  %v1641_v50 = vpop.f32.mrf.mxu2  ;;  %v1542_v40 = vrot.slane %v6602_v53, 1 }
 0x19f   : > { %v6588_v47 = vadd.f32 %v2414_v49, %v2108_v63  ;;  %v2269_v63 = vor.u32 %v2268_v13, %v2265_v34  ;;  %v1543_v28 = vsel %vm1518_vm10, %v1540_v56, %v1542_v40  ;;  %v1927_v56 = vrot.slane %v6378_v38, 1 }
 0x1a0   : > { %v1414_v23 = vpop.f32.mrf.mxu1  ;;  %v2416_v36 = vpop.f32.mrf.mxu0 }
 0x1a1   : > { %v1415_v48 = vadd.f32 %v1414_v23, %v6475_v26  ;;  %v2023_v35 = vpop.f32.mrf.mxu3  ;;  %v5110_v26 = vld [vmem:[%s7042_s1 + $0x210] sm:$0xff]  ;;  %v2270_v29 = vsel %vm2163_vm2, %v2260_v11, %v2269_v63 }
 0x1a2   : > { %3703 = vmatpush.bf16.msra.mxu0 %v5110_v26 }
 0x1a3   : > { %v1724_v49 = vadd.f32 %v1638_v6, %v1415_v48  ;;  %v2272_v48 = vshrl.u32 %v6378_v38, 16 }
 0x1a5   : > { %v2109_v17 = vadd.f32 %v2023_v35, %v1724_v49  ;;  %v1643_v3 = vpop.f32.mrf.mxu2  ;;  %v2275_v35 = vshll.u32 %v6378_v38, 16  ;;  %v2274_v11 = vrot.slane %v2272_v48, 1 }
 0x1a6   : > { %2065 = vmatmul.bf16.gmra.mxu3 %v1926_v37 }
 0x1a7   : > { %v6605_v25 = vadd.f32 %v2416_v36, %v2109_v17 }
 0x1a8   : > { %v1417_v45 = vpop.f32.mrf.mxu1  ;;  %v2419_v62 = vpop.f32.mrf.mxu0 }
 0x1a9   : > { %v1418_v6 = vadd.f32 %v1417_v45, %v6498_v46  ;;  %v2026_v61 = vpop.f32.mrf.mxu3 }
 0x1aa   : > { %1685 = vmatmul.bf16.gmra.mxu2 %v1543_v28 }
 0x1ab   : > { %v1725_v59 = vadd.f32 %v1641_v50, %v1418_v6  ;;  %1456 = vmatmul.bf16.gmra.mxu1 %v6563_v19  ;;  %2458 = vmatmul.bf16.gmra.mxu0 %v2270_v29  ;;  %v2277_v50 = vrot.slane %v2275_v35, 2  ;;  %v1928_v19 = vsel %vm1518_vm10, %v1925_v27, %v1927_v56  ;;  %v6621_v6 = vld [vmem:[#allocation2 + $0x68] sm:$0xff] }
 0x1ad   : > { %v2110_v23 = vadd.f32 %v2026_v61, %v1725_v59  ;;  %v1646_v36 = vpop.f32.mrf.mxu2  ;;  %v2278_v61 = vor.u32 %v2277_v50, %v2274_v11 }
 0x1af   : > { %v6616_v34 = vadd.f32 %v2419_v62, %v2110_v23  ;;  %v1544_v62 = vrot.slane %v6621_v6, 1  ;;  %v2279_v27 = vsel %vm2163_vm2, %v2269_v63, %v2278_v61  ;;  %v1929_v63 = vrot.slane %v6404_v8, 1 }
 0x1b0   : > { %v1419_v46 = vpop.f32.mrf.mxu1  ;;  %v2421_v13 = vpop.f32.mrf.mxu0 }
 0x1b1   : > { %v1420_v49 = vadd.f32 %v1419_v46, %v6512_v14  ;;  %v2028_v37 = vpop.f32.mrf.mxu3  ;;  %v1545_v23 = vsel %vm1518_vm10, %v1542_v40, %v1544_v62  ;;  %v2281_v46 = vshrl.u32 %v6404_v8, 16 }
 0x1b3   : > { %v1726_v17 = vadd.f32 %v1643_v3, %v1420_v49  ;;  %v2283_v11 = vrot.slane %v2281_v46, 1 }
 0x1b5   : > { %v2111_v26 = vadd.f32 %v2028_v37, %v1726_v17  ;;  %v1648_v45 = vpop.f32.mrf.mxu2 }
 0x1b6   : > { %2070 = vmatmul.bf16.gmra.mxu3 %v1928_v19  ;;  %v1930_v19 = vsel %vm1518_vm10, %v1927_v56, %v1929_v63 }
 0x1b7   : > { %v6624_v28 = vadd.f32 %v2421_v13, %v2111_v26  ;;  %v2284_v13 = vshll.u32 %v6404_v8, 16  ;;  %v5101_v8 = vld [vmem:[%s7042_s1 + $0x1c8] sm:$0xff] }
 0x1b8   : > { %v1422_v29 = vpop.f32.mrf.mxu1  ;;  %v2424_v38 = vpop.f32.mrf.mxu0  ;;  %3444 = vmatpush.bf16.msra.mxu3 %v5101_v8 }
 0x1b9   : > { %v1423_v14 = vadd.f32 %v1422_v29, %v6520_v41  ;;  %v2031_v59 = vpop.f32.mrf.mxu3  ;;  %v5093_v41 = vld [vmem:[%s7042_s1 + $0x188] sm:$0xff]  ;;  %v2286_v50 = vrot.slane %v2284_v13, 2 }
 0x1ba   : > { %1690 = vmatmul.bf16.gmra.mxu2 %v1545_v23 }
 0x1bb   : > { %v1727_v3 = vadd.f32 %v1646_v36, %v1423_v14  ;;  %1461 = vmatmul.bf16.gmra.mxu1 %v6577_v32  ;;  %2463 = vmatmul.bf16.gmra.mxu0 %v2279_v27 }
 0x1bc   : > { %3051 = vmatpush.bf16.msra.mxu2 %v5093_v41 }
 0x1bd   : > { %v2112_v48 = vadd.f32 %v2031_v59, %v1727_v3  ;;  %v1651_v35 = vpop.f32.mrf.mxu2  ;;  %v2287_v59 = vor.u32 %v2286_v50, %v2283_v11  ;;  %v2293_v11 = vshll.u32 %v6383_v52, 16 }
 0x1bf   : > { %v6632_v49 = vadd.f32 %v2424_v38, %v2112_v48  ;;  %v6640_v38 = vld [vmem:[#allocation2 + $0x70] sm:$0xff]  ;;  %v2288_v46 = vsel %vm2163_vm2, %v2278_v61, %v2287_v59 }
 0x1c0   : > { %v1424_v40 = vpop.f32.mrf.mxu1  ;;  %v2426_v37 = vpop.f32.mrf.mxu0  ;;  %v1546_v14 = vrot.slane %v6640_v38, 1 }
 0x1c1   : > { %v1425_v36 = vadd.f32 %v1424_v40, %v6529_v10  ;;  %v2033_v32 = vpop.f32.mrf.mxu3  ;;  %v5068_v10 = vld [vmem:[%s7042_s1 + $0x148] sm:$0xff] }
 0x1c2   : > { %v1547_v48 = vsel %vm1518_vm10, %v1544_v62, %v1546_v14  ;;  %2666 = vmatpush.bf16.msra.mxu1 %v5068_v10  ;;  %v2290_v62 = vshrl.u32 %v6383_v52, 16 }
 0x1c3   : > { %v1728_v17 = vadd.f32 %v1648_v45, %v1425_v36 }
 0x1c5   : > { %v2113_v26 = vadd.f32 %v2033_v32, %v1728_v17  ;;  %v1653_v29 = vpop.f32.mrf.mxu2 }
 0x1c6   : > { %2075 = vmatmul.bf16.gmra.mxu3 %v1930_v19  ;;  %v2292_v19 = vrot.slane %v2290_v62, 1 }
 0x1c7   : > { %v6643_v23 = vadd.f32 %v2426_v37, %v2113_v26  ;;  %v2295_v26 = vrot.slane %v2293_v11, 2 }
 0x1c8   : > { %v1427_v45 = vpop.f32.mrf.mxu1  ;;  %v2429_v56 = vpop.f32.mrf.mxu0 }
 0x1c9   : > { %v1428_v27 = vadd.f32 %v1427_v45, %v6542_v20  ;;  %v2036_v3 = vpop.f32.mrf.mxu3  ;;  %v5109_v20 = vld [vmem:[%s7042_s1 + $0x208] sm:$0xff] }
 0x1ca   : > { %1695 = vmatmul.bf16.gmra.mxu2 %v1547_v48  ;;  %3704 = vmatpush.bf16.msra.mxu0 %v5109_v20  ;;  %v2296_v48 = vor.u32 %v2295_v26, %v2292_v19  ;;  %v6681_v26 = vld [vmem:[#allocation2 + $0x80] sm:$0xff] }
 0x1cb   : > { %v1729_v13 = vadd.f32 %v1651_v35, %v1428_v27  ;;  %1466 = vmatmul.bf16.gmra.mxu1 %v6602_v53  ;;  %2468 = vmatmul.bf16.gmra.mxu0 %v2288_v46  ;;  %v1931_v53 = vrot.slane %v6383_v52, 1 }
 0x1cd   : > { %v2114_v41 = vadd.f32 %v2036_v3, %v1729_v13  ;;  %v1656_v40 = vpop.f32.mrf.mxu2  ;;  %v1932_v17 = vsel %vm1518_vm10, %v1929_v63, %v1931_v53  ;;  %v2297_v63 = vsel %vm2163_vm2, %v2287_v59, %v2296_v48 }
 0x1cf   : > { %v6655_v37 = vadd.f32 %v2429_v56, %v2114_v41  ;;  %v6667_v56 = vld [vmem:[#allocation2 + $0x78] sm:$0xff] }
 0x1d0   : > { %v1429_v36 = vpop.f32.mrf.mxu1  ;;  %v2431_v32 = vpop.f32.mrf.mxu0  ;;  %v1548_v27 = vrot.slane %v6667_v56, 1 }
 0x1d1   : > { %v1430_v61 = vadd.f32 %v1429_v36, %v6556_v4  ;;  %v2038_v35 = vpop.f32.mrf.mxu3  ;;  %v2299_v36 = vshrl.u32 %v6385_v7, 16 }
 0x1d3   : > { %v1730_v50 = vadd.f32 %v1653_v29, %v1430_v61  ;;  %v1549_v29 = vsel %vm1518_vm10, %v1546_v14, %v1548_v27  ;;  %v1933_v61 = vrot.slane %v6385_v7, 1  ;;  %v2301_v59 = vrot.slane %v2299_v36, 1 }
 0x1d5   : > { %v2115_v8 = vadd.f32 %v2038_v35, %v1730_v50  ;;  %v1658_v10 = vpop.f32.mrf.mxu2 }
 0x1d6   : > { %2080 = vmatmul.bf16.gmra.mxu3 %v1932_v17 }
 0x1d7   : > { %v6665_v45 = vadd.f32 %v2431_v32, %v2115_v8  ;;  %v2302_v32 = vshll.u32 %v6385_v7, 16  ;;  %v1550_v8 = vrot.slane %v6681_v26, 1  ;;  %v5092_v7 = vld [vmem:[%s7042_s1 + $0x180] sm:$0xff] }
 0x1d8   : > { %v1432_v3 = vpop.f32.mrf.mxu1  ;;  %v2434_v4 = vpop.f32.mrf.mxu0  ;;  %3052 = vmatpush.bf16.msra.mxu2 %v5092_v7 }
 0x1d9   : > { %v1433_v46 = vadd.f32 %v1432_v3, %v6418_v24  ;;  %v2041_v52 = vpop.f32.mrf.mxu3 }
 0x1da   : > { %1700 = vmatmul.bf16.gmra.mxu2 %v1549_v29 }
 0x1db   : > { %v1731_v13 = vadd.f32 %v1656_v40, %v1433_v46  ;;  %1471 = vmatmul.bf16.gmra.mxu1 %v6621_v6  ;;  %2473 = vmatmul.bf16.gmra.mxu0 %v2297_v63  ;;  %v2304_v40 = vrot.slane %v2302_v32, 2  ;;  %v1934_v6 = vsel %vm1518_vm10, %v1931_v53, %v1933_v61  ;;  %v5067_v53 = vld [vmem:[%s7042_s1 + $0x140] sm:$0xff]  ;;  %v1551_v63 = vsel %vm1518_vm10, %v1548_v27, %v1550_v8 }
 0x1dc   : > { %2667 = vmatpush.bf16.msra.mxu1 %v5067_v53  ;;  %v5108_v27 = vld [vmem:[%s7042_s1 + $0x200] sm:$0xff] }
 0x1dd   : > { %v2116_v41 = vadd.f32 %v2041_v52, %v1731_v13  ;;  %v1661_v20 = vpop.f32.mrf.mxu2  ;;  %v2305_v3 = vor.u32 %v2304_v40, %v2301_v59  ;;  %3705 = vmatpush.bf16.msra.mxu0 %v5108_v27 }
 0x1df   : > { %v6676_v62 = vadd.f32 %v2434_v4, %v2116_v41  ;;  %v2306_v13 = vsel %vm2163_vm2, %v2296_v48, %v2305_v3  ;;  %v1935_v48 = vrot.slane %v6425_v60, 1 }
 0x1e0   : > { %v1434_v11 = vpop.f32.mrf.mxu1  ;;  %v2436_v24 = vpop.f32.mrf.mxu0 }
 0x1e1   : > { %v1435_v14 = vadd.f32 %v1434_v11, %v6446_v0  ;;  %v2043_v35 = vpop.f32.mrf.mxu3  ;;  %v5100_v0 = vld [vmem:[%s7042_s1 + $0x1c0] sm:$0xff]  ;;  %v2308_v11 = vshrl.u32 %v6425_v60, 16 }
 0x1e2   : > { %3445 = vmatpush.bf16.msra.mxu3 %v5100_v0  ;;  %v6709_v0 = vld [vmem:[#allocation2 + $0x88] sm:$0xff] }
 0x1e3   : > { %v1732_v50 = vadd.f32 %v1658_v10, %v1435_v14  ;;  %v2310_v59 = vrot.slane %v2308_v11, 1  ;;  %v1552_v53 = vrot.slane %v6709_v0, 1  ;;  %v2320_v11 = vshll.u32 %v6452_v44, 16 }
 0x1e5   : > { %v2117_v17 = vadd.f32 %v2043_v35, %v1732_v50  ;;  %v1663_v19 = vpop.f32.mrf.mxu2 }
 0x1e6   : > { %2085 = vmatmul.bf16.gmra.mxu3 %v1934_v6  ;;  %v1936_v6 = vsel %vm1518_vm10, %v1933_v61, %v1935_v48 }
 0x1e7   : > { %v6684_v4 = vadd.f32 %v2436_v24, %v2117_v17  ;;  %v2311_v24 = vshll.u32 %v6425_v60, 16 }
 0x1e8   : > { %v1437_v10 = vpop.f32.mrf.mxu1  ;;  %v2439_v46 = vpop.f32.mrf.mxu0 }
 0x1e9   : > { %v1438_v52 = vadd.f32 %v1437_v10, %v6454_v55  ;;  %v2046_v29 = vpop.f32.mrf.mxu3  ;;  %v2313_v40 = vrot.slane %v2311_v24, 2 }
 0x1ea   : > { %1705 = vmatmul.bf16.gmra.mxu2 %v1551_v63  ;;  %v1553_v63 = vsel %vm1518_vm10, %v1550_v8, %v1552_v53 }
 0x1eb   : > { %v1733_v41 = vadd.f32 %v1661_v20, %v1438_v52  ;;  %1476 = vmatmul.bf16.gmra.mxu1 %v6640_v38  ;;  %2478 = vmatmul.bf16.gmra.mxu0 %v2306_v13  ;;  %v2314_v10 = vor.u32 %v2313_v40, %v2310_v59  ;;  %v1554_v40 = vrot.slane %v6311_v30, 1 }
 0x1ed   : > { %v2118_v36 = vadd.f32 %v2046_v29, %v1733_v41  ;;  %v1666_v32 = vpop.f32.mrf.mxu2  ;;  %v2315_v61 = vsel %vm2163_vm2, %v2305_v3, %v2314_v10 }
 0x1ef   : > { %v6701_v55 = vadd.f32 %v2439_v46, %v2118_v36  ;;  %v2317_v36 = vshrl.u32 %v6452_v44, 16 }
 0x1f0   : > { %v1439_v14 = vpop.f32.mrf.mxu1  ;;  %v2441_v35 = vpop.f32.mrf.mxu0 }
 0x1f1   : > { %v1440_v20 = vadd.f32 %v1439_v14, %v6473_v22  ;;  %v2048_v38 = vpop.f32.mrf.mxu3  ;;  %v1937_v14 = vrot.slane %v6452_v44, 1  ;;  %v2319_v3 = vrot.slane %v2317_v36, 1  ;;  %v2326_v36 = vshrl.u32 %v6471_v54, 16 }
 0x1f3   : > { %v1734_v50 = vadd.f32 %v1663_v19, %v1440_v20 }
 0x1f5   : > { %v2119_v17 = vadd.f32 %v2048_v38, %v1734_v50  ;;  %v1668_v7 = vpop.f32.mrf.mxu2  ;;  %v1793_v50 = vld [vmem:[#allocation2 + $0x98] sm:$0x1] }
 0x1f6   : > { %2090 = vmatmul.bf16.gmra.mxu3 %v1936_v6  ;;  %v1884_v44 = vunpack.c.l.b16 %v1793_v50 }
 0x1f7   : > { %v6712_v46 = vadd.f32 %v2441_v35, %v2119_v17 }
 0x1f8   : > { %v1442_v60 = vpop.f32.mrf.mxu1  ;;  %v2444_v52 = vpop.f32.mrf.mxu0  ;;  %v1903_v30 = vpack.c.b16 %v1884_v44, %v1884_v44 }
 0x1f9   : > { %v1443_v22 = vadd.f32 %v1442_v60, %v6496_v51  ;;  %v2051_v29 = vpop.f32.mrf.mxu3 }
 0x1fa   : > { %1710 = vmatmul.bf16.gmra.mxu2 %v1553_v63  ;;  %v2795_v63 = vld [vmem:[#allocation2 + $0x10] sm:$0xc] }
 0x1fb   : > { %v1735_v19 = vadd.f32 %v1666_v32, %v1443_v22  ;;  %1481 = vmatmul.bf16.gmra.mxu1 %v6667_v56  ;;  %2483 = vmatmul.bf16.gmra.mxu0 %v2315_v61  ;;  %v2322_v32 = vrot.slane %v2320_v11, 2  ;;  %v1938_v56 = vsel %vm1518_vm10, %v1935_v48, %v1937_v14  ;;  %v2796_v61 = vld [vmem:[#allocation2 + $0x14] sm:$0xf]  ;;  %v2329_v11 = vshll.u32 %v6471_v54, 16 }
 0x1fd   : > { %v2120_v13 = vadd.f32 %v2051_v29, %v1735_v19  ;;  %v1671_v41 = vpop.f32.mrf.mxu2  ;;  %v2323_v6 = vor.u32 %v2322_v32, %v2319_v3  ;;  %v1555_v29 = vsel %vm1518_vm10, %v1552_v53, %v1554_v40  ;;  %v2887_v53 = vunpack.c.l.b16 %v2796_v61 }
 0x1fe   : > { %v2328_v3 = vrot.slane %v2326_v36, 1  ;;  %v2331_v32 = vrot.slane %v2329_v11, 2 }
 0x1ff   : > { %v6720_v24 = vadd.f32 %v2444_v52, %v2120_v13  ;;  %v2324_v48 = vsel %vm2163_vm2, %v2314_v10, %v2323_v6  ;;  %v1939_v10 = vrot.slane %v1903_v30, 1 }
 0x200   : > { %v1444_v27 = vpop.f32.mrf.mxu1  ;;  %v2446_v51 = vpop.f32.mrf.mxu0 }
 0x201   : > { %v1445_v8 = vadd.f32 %v1444_v27, %v6510_v43  ;;  %v2053_v35 = vpop.f32.mrf.mxu3  ;;  %v2886_v27 = vunpack.c.l.b16 %v2795_v63 }
 0x203   : > { %v1736_v20 = vadd.f32 %v1668_v7, %v1445_v8 }
 0x205   : > { %v2121_v38 = vadd.f32 %v2053_v35, %v1736_v20  ;;  %v1673_v59 = vpop.f32.mrf.mxu2  ;;  %v6737_v35 = vld [vmem:[#allocation2 + $0x18] sm:$0xff] }
 0x206   : > { %2095 = vmatmul.bf16.gmra.mxu3 %v1938_v56  ;;  %v2923_v56 = vpack.c.b16 %v2887_v53, %v2886_v27  ;;  %v2943_v50 = vrot.slane %v6737_v35, 2 }
 0x207   : > { %v6726_v17 = vadd.f32 %v2446_v51, %v2121_v38  ;;  %v1940_v38 = vsel %vm1518_vm10, %v1937_v14, %v1939_v10 }
 0x208   : > { %v1447_v60 = vpop.f32.mrf.mxu1  ;;  %v2449_v52 = vpop.f32.mrf.mxu0  ;;  %v2942_v44 = vrot.slane %v2923_v56, 2  ;;  %v3203_v30 = vshrl.u32 %v2923_v56, 16  ;;  %v3206_v63 = vshll.u32 %v2923_v56, 16 }
 0x209   : > { %v1448_v43 = vadd.f32 %v1447_v60, %v6522_v58  ;;  %v2056_v22 = vpop.f32.mrf.mxu3  ;;  %v2332_v60 = vor.u32 %v2331_v32, %v2328_v3 }
 0x20a   : > { %1715 = vmatmul.bf16.gmra.mxu2 %v1555_v29  ;;  %v3214_v29 = vshll.u32 %v6737_v35, 16  ;;  %v2944_v14 = vsel %vm2556_vm9, %v2942_v44, %v2943_v50  ;;  %v3208_v10 = vrot.slane %v3206_v63, 3 }
 0x20b   : > { %v1737_v7 = vadd.f32 %v1671_v41, %v1448_v43  ;;  %1486 = vmatmul.bf16.gmra.mxu1 %v6681_v26  ;;  %2488 = vmatmul.bf16.gmra.mxu0 %v2324_v48 }
 0x20c   : > { %v3216_v36 = vrot.slane %v3214_v29, 3 }
 0x20d   : > { %v2122_v19 = vadd.f32 %v2056_v22, %v1737_v7  ;;  %v1676_v13 = vpop.f32.mrf.mxu2  ;;  %v3211_v22 = vshrl.u32 %v6737_v35, 16  ;;  %v2333_v7 = vsel %vm2163_vm2, %v2323_v6, %v2332_v60 }
 0x20f   : > { %v6734_v58 = vadd.f32 %v2449_v52, %v2122_v19  ;;  %v3213_v19 = vrot.slane %v3211_v22, 2 }
 0x210   : > { %v1449_v51 = vpop.f32.mrf.mxu1  ;;  %v2451_v8 = vpop.f32.mrf.mxu0 }
 0x211   : > { %v1450_v41 = vadd.f32 %v1449_v51, %v6531_v15  ;;  %v2058_v26 = vpop.f32.mrf.mxu3  ;;  %v3573_v51 = vld [vmem:[#allocation2 + $0x10] sm:$0x8]  ;;  %v3217_v3 = vor.u32 %v3216_v36, %v3213_v19 }
 0x212   : > { %v3592_v6 = vunpack.c.l.b16 %v3573_v51 }
 0x213   : > { %v1738_v20 = vadd.f32 %v1673_v59, %v1450_v41 }
 0x215   : > { %v2123_v40 = vadd.f32 %v2058_v26, %v1738_v20  ;;  %v1678_v54 = vpop.f32.mrf.mxu2 }
 0x216   : > { %2100 = vmatmul.bf16.gmra.mxu3 %v1940_v38 }
 0x217   : > { %v6741_v52 = vadd.f32 %v2451_v8, %v2123_v40  ;;  %v3205_v8 = vrot.slane %v3203_v30, 2  ;;  %v3593_v40 = vpack.c.b16 %v2887_v53, %v3592_v6 }
 0x218   : > { %v1452_v43 = vpop.f32.mrf.mxu1  ;;  %v2454_v15 = vpop.f32.mrf.mxu0 }
 0x219   : > { %v1453_v59 = vadd.f32 %v1452_v43, %v6544_v5  ;;  %v2061_v48 = vpop.f32.mrf.mxu3 }
 0x21a   : > { %3053 = vmatmul.bf16.vlgmr.msra.gmra.mxu2 %v2944_v14 }
 0x21b   : > { %v1739_v61 = vadd.f32 %v1676_v13, %v1453_v59  ;;  %1491 = vmatmul.bf16.gmra.mxu1 %v6709_v0  ;;  %2493 = vmatmul.bf16.gmra.mxu0 %v2333_v7  ;;  %v6752_v13 = vld [vmem:[#allocation2 + $0x20] sm:$0xff]  ;;  %v3209_v0 = vor.u32 %v3208_v10, %v3205_v8  ;;  %v3595_v59 = vrot.slane %v3593_v40, 3 }
 0x21c   : > { %v2945_v43 = vrot.slane %v6752_v13, 2 }
 0x21d   : > { %v2124_v11 = vadd.f32 %v2061_v48, %v1739_v61  ;;  %v1681_v27 = vpop.f32.mrf.mxu2  ;;  %v3218_v38 = vsel %vm3201_vm1, %v3209_v0, %v3217_v3  ;;  %v3220_v48 = vshrl.u32 %v6752_v13, 16 }
 0x21e   : > { %v2946_v53 = vsel %vm2556_vm9, %v2943_v50, %v2945_v43 }
 0x21f   : > { %v6749_v5 = vadd.f32 %v2454_v15, %v2124_v11  ;;  %v3596_v15 = vrot.slane %v6737_v35, 3  ;;  %v3222_v35 = vrot.slane %v3220_v48, 2 }
 0x220   : > { %v1454_v41 = vpop.f32.mrf.mxu1  ;;  %v2456_v26 = vpop.f32.mrf.mxu0 }
 0x221   : > { %v1455_v32 = vadd.f32 %v1454_v41, %v6558_v18  ;;  %v2063_v20 = vpop.f32.mrf.mxu3  ;;  %v3597_v30 = vsel %vm3594_vm5, %v3595_v59, %v3596_v15 }
 0x223   : > { %v1740_v56 = vadd.f32 %v1678_v54, %v1455_v32  ;;  %v3223_v54 = vshll.u32 %v6752_v13, 16  ;;  %v3598_v32 = vrot.slane %v6752_v13, 3 }
 0x225   : > { %v2125_v60 = vadd.f32 %v2063_v20, %v1740_v56  ;;  %v1683_v44 = vpop.f32.mrf.mxu2  ;;  %v3225_v61 = vrot.slane %v3223_v54, 3 }
 0x226   : > { %3446 = vmatmul.bf16.vlgmr.msra.gmra.mxu3 %v3218_v38 }
 0x227   : > { %v6757_v22 = vadd.f32 %v2456_v26, %v2125_v60  ;;  %v6768_v26 = vld [vmem:[#allocation2 + $0x28] sm:$0xff] }
 0x228   : > { %v1457_v29 = vpop.f32.mrf.mxu1  ;;  %v2459_v18 = vpop.f32.mrf.mxu0  ;;  %v2947_v0 = vrot.slane %v6768_v26, 2 }
 0x229   : > { %v1458_v14 = vadd.f32 %v1457_v29, %v6395_v1  ;;  %v2066_v7 = vpop.f32.mrf.mxu3  ;;  %v3226_v1 = vor.u32 %v3225_v61, %v3222_v35  ;;  %v3232_v29 = vshll.u32 %v6768_v26, 16 }
 0x22a   : > { %3058 = vmatmul.bf16.gmra.mxu2 %v2946_v53  ;;  %v2948_v60 = vsel %vm2556_vm9, %v2945_v43, %v2947_v0 }
 0x22b   : > { %v1741_v63 = vadd.f32 %v1681_v27, %v1458_v14  ;;  %2668 = vmatmul.bf16.vlgmr.msra.gmra.mxu1 %v6327_v33  ;;  %3706 = vmatmul.bf16.vlgmr.msra.gmra.mxu0 %v3597_v30  ;;  %v3227_v27 = vsel %vm3201_vm1, %v3217_v3, %v3226_v1  ;;  %v3229_v3 = vshrl.u32 %v6768_v26, 16  ;;  %v3234_v54 = vrot.slane %v3232_v29, 3 }
 0x22d   : > { %v2126_v19 = vadd.f32 %v2066_v7, %v1741_v63  ;;  %v1686_v36 = vpop.f32.mrf.mxu2  ;;  %v3231_v48 = vrot.slane %v3229_v3, 2 }
 0x22f   : > { %v6765_v11 = vadd.f32 %v2459_v18, %v2126_v19  ;;  %v3235_v30 = vor.u32 %v3234_v54, %v3231_v48  ;;  %v6802_v48 = vld [vmem:[#allocation2 + $0x38] sm:$0xff] }
 0x230   : > { %v1459_v51 = vpop.f32.mrf.mxu1  ;;  %v2461_v8 = vpop.f32.mrf.mxu0 }
 0x231   : > { %v1460_v10 = vadd.f32 %v1459_v51, %v6409_v31  ;;  %v2068_v50 = vpop.f32.mrf.mxu3  ;;  %v3236_v35 = vsel %vm3201_vm1, %v3226_v1, %v3235_v30 }
 0x233   : > { %v1742_v41 = vadd.f32 %v1683_v44, %v1460_v10  ;;  %v3599_v44 = vsel %vm3594_vm5, %v3596_v15, %v3598_v32  ;;  %v6784_v15 = vld [vmem:[#allocation2 + $0x30] sm:$0xff] }
 0x234   : > { %v2949_v19 = vrot.slane %v6784_v15, 2 }
 0x235   : > { %v2127_v6 = vadd.f32 %v2068_v50, %v1742_v41  ;;  %v1688_v33 = vpop.f32.mrf.mxu2  ;;  %v3238_v41 = vshrl.u32 %v6784_v15, 16 }
 0x236   : > { %3451 = vmatmul.bf16.gmra.mxu3 %v3227_v27  ;;  %v3241_v27 = vshll.u32 %v6784_v15, 16 }
 0x237   : > { %v6772_v20 = vadd.f32 %v2461_v8, %v2127_v6 }
 0x238   : > { %v1462_v56 = vpop.f32.mrf.mxu1  ;;  %v2464_v38 = vpop.f32.mrf.mxu0 }
 0x239   : > { %v1463_v40 = vadd.f32 %v1462_v56, %v6431_v21  ;;  %v2071_v31 = vpop.f32.mrf.mxu3  ;;  %v7068_v56 = vrot.slane %v6336_v9, 2 }
 0x23a   : > { %3063 = vmatmul.bf16.gmra.mxu2 %v2948_v60  ;;  %v3243_v60 = vrot.slane %v3241_v27, 3 }
 0x23b   : > { %v1743_v18 = vadd.f32 %v1686_v36, %v1463_v40  ;;  %2673 = vmatmul.bf16.gmra.mxu1 %v6345_v16  ;;  %3711 = vmatmul.bf16.gmra.mxu0 %v3599_v44  ;;  %v5501_v36 = vld [vmem:[#allocation2 + $0x20] sm:$0xff] }
 0x23c   : > { %v2562_v51 = vrot.slane %v5501_v36, 2 }
 0x23d   : > { %v2128_v13 = vadd.f32 %v2071_v31, %v1743_v18  ;;  %v1691_v59 = vpop.f32.mrf.mxu2 }
 0x23f   : > { %v6781_v14 = vadd.f32 %v2464_v38, %v2128_v13  ;;  %v2563_v38 = vsel %vm2556_vm9, %v7068_v56, %v2562_v51 }
 0x240   : > { %v1464_v21 = vpop.f32.mrf.mxu1  ;;  %v2466_v7 = vpop.f32.mrf.mxu0 }
 0x241   : > { %v1465_v43 = vadd.f32 %v1464_v21, %v6450_v39  ;;  %v2073_v53 = vpop.f32.mrf.mxu3  ;;  %v3600_v39 = vrot.slane %v6768_v26, 3  ;;  %v3240_v26 = vrot.slane %v3238_v41, 2 }
 0x243   : > { %v1744_v63 = vadd.f32 %v1688_v33, %v1465_v43  ;;  %v2950_v33 = vsel %vm2556_vm9, %v2947_v0, %v2949_v19  ;;  %v3601_v40 = vsel %vm3594_vm5, %v3598_v32, %v3600_v39  ;;  %v3244_v13 = vor.u32 %v3243_v60, %v3240_v26 }
 0x244   : > { %v3602_v43 = vrot.slane %v6784_v15, 3 }
 0x245   : > { %v2129_v61 = vadd.f32 %v2073_v53, %v1744_v63  ;;  %v1693_v16 = vpop.f32.mrf.mxu2  ;;  %v3245_v32 = vsel %vm3201_vm1, %v3235_v30, %v3244_v13 }
 0x246   : > { %3456 = vmatmul.bf16.gmra.mxu3 %v3236_v35  ;;  %v3603_v15 = vsel %vm3594_vm5, %v3600_v39, %v3602_v43 }
 0x247   : > { %v6788_v8 = vadd.f32 %v2466_v7, %v2129_v61  ;;  %v2951_v7 = vrot.slane %v6802_v48, 2  ;;  %v5502_v61 = vld [vmem:[#allocation2 + $0x28] sm:$0xff] }
 0x248   : > { %v1467_v10 = vpop.f32.mrf.mxu1  ;;  %v2469_v50 = vpop.f32.mrf.mxu0  ;;  %v2564_v36 = vrot.slane %v5502_v61, 2 }
 0x249   : > { %v1468_v6 = vadd.f32 %v1467_v10, %v6468_v12  ;;  %v2076_v1 = vpop.f32.mrf.mxu3  ;;  %v3250_v10 = vshll.u32 %v6802_v48, 16  ;;  %v2952_v41 = vsel %vm2556_vm9, %v2949_v19, %v2951_v7 }
 0x24a   : > { %3068 = vmatmul.bf16.gmra.mxu2 %v2950_v33  ;;  %v2565_v27 = vsel %vm2556_vm9, %v2562_v51, %v2564_v36 }
 0x24b   : > { %v1745_v31 = vadd.f32 %v1691_v59, %v1468_v6  ;;  %2678 = vmatmul.bf16.gmra.mxu1 %v2563_v38  ;;  %3716 = vmatmul.bf16.gmra.mxu0 %v3601_v40  ;;  %v3252_v33 = vrot.slane %v3250_v10, 3 }
 0x24d   : > { %v2130_v44 = vadd.f32 %v2076_v1, %v1745_v31  ;;  %v1696_v3 = vpop.f32.mrf.mxu2 }
 0x24f   : > { %v6799_v29 = vadd.f32 %v2469_v50, %v2130_v44  ;;  %v7070_v44 = vld [vmem:[#allocation14_spill] sm:$0xff] }
 0x250   : > { %v1469_v12 = vpop.f32.mrf.mxu1  ;;  %v2471_v18 = vpop.f32.mrf.mxu0 }
 0x251   : > { %v1470_v0 = vadd.f32 %v1469_v12, %v6485_v57  ;;  %v2078_v9 = vpop.f32.mrf.mxu3  ;;  %v3247_v57 = vshrl.u32 %v6802_v48, 16 }
 0x253   : > { %v1746_v54 = vadd.f32 %v1693_v16, %v1470_v0  ;;  %v7069_v16 = vld [vmem:[#allocation12_spill] sm:$0xff]  ;;  %v3249_v1 = vrot.slane %v3247_v57, 2 }
 0x255   : > { %v2131_v59 = vadd.f32 %v2078_v9, %v1746_v54  ;;  %v1698_v21 = vpop.f32.mrf.mxu2  ;;  %v3253_v60 = vor.u32 %v3252_v33, %v3249_v1  ;;  %v5503_v54 = vld [vmem:[#allocation2 + $0x30] sm:$0xff] }
 0x256   : > { %3461 = vmatmul.bf16.gmra.mxu3 %v3245_v32  ;;  %v2566_v32 = vrot.slane %v5503_v54, 2 }
 0x257   : > { %v6807_v53 = vadd.f32 %v2471_v18, %v2131_v59  ;;  %v6818_v18 = vld [vmem:[#allocation2 + $0x40] sm:$0xff]  ;;  %v3254_v39 = vsel %vm3201_vm1, %v3244_v13, %v3253_v60  ;;  %v3604_v59 = vrot.slane %v6802_v48, 3 }
 0x258   : > { %v1472_v63 = vpop.f32.mrf.mxu1  ;;  %v2474_v35 = vpop.f32.mrf.mxu0  ;;  %v2953_v9 = vrot.slane %v6818_v18, 2  ;;  %v3256_v57 = vshrl.u32 %v6818_v18, 16  ;;  %v3259_v10 = vshll.u32 %v6818_v18, 16 }
 0x259   : > { %v1473_v50 = vadd.f32 %v1472_v63, %v7069_v16  ;;  %v2081_v30 = vpop.f32.mrf.mxu3 }
 0x25a   : > { %3073 = vmatmul.bf16.gmra.mxu2 %v2952_v41  ;;  %v3605_v41 = vsel %vm3594_vm5, %v3602_v43, %v3604_v59  ;;  %v3258_v48 = vrot.slane %v3256_v57, 2 }
 0x25b   : > { %v1747_v6 = vadd.f32 %v1696_v3, %v1473_v50  ;;  %2683 = vmatmul.bf16.gmra.mxu1 %v2565_v27  ;;  %3721 = vmatmul.bf16.gmra.mxu0 %v3603_v15  ;;  %v2954_v50 = vsel %vm2556_vm9, %v2951_v7, %v2953_v9  ;;  %v3261_v15 = vrot.slane %v3259_v10, 3 }
 0x25d   : > { %v2132_v56 = vadd.f32 %v2081_v30, %v1747_v6  ;;  %v1701_v38 = vpop.f32.mrf.mxu2  ;;  %v2567_v30 = vsel %vm2556_vm9, %v2564_v36, %v2566_v32 }
 0x25f   : > { %v6815_v40 = vadd.f32 %v2474_v35, %v2132_v56 }
 0x260   : > { %v1474_v31 = vpop.f32.mrf.mxu1  ;;  %v2476_v26 = vpop.f32.mrf.mxu0 }
 0x261   : > { %v1475_v12 = vadd.f32 %v1474_v31, %v7070_v44  ;;  %v2083_v19 = vpop.f32.mrf.mxu3  ;;  %v7072_v44 = vld [vmem:[#allocation18_spill] sm:$0xff] }
 0x263   : > { %v1748_v51 = vadd.f32 %v1698_v21, %v1475_v12  ;;  %v7071_v21 = vld [vmem:[#allocation16_spill] sm:$0xff] }
 0x265   : > { %v2133_v3 = vadd.f32 %v2083_v19, %v1748_v51  ;;  %v1703_v0 = vpop.f32.mrf.mxu2  ;;  %v6834_v19 = vld [vmem:[#allocation2 + $0x48] sm:$0xff] }
 0x266   : > { %3466 = vmatmul.bf16.gmra.mxu3 %v3254_v39  ;;  %v2955_v39 = vrot.slane %v6834_v19, 2 }
 0x267   : > { %v6823_v63 = vadd.f32 %v2476_v26, %v2133_v3  ;;  %v3262_v26 = vor.u32 %v3261_v15, %v3258_v48  ;;  %v5504_v3 = vld [vmem:[#allocation2 + $0x38] sm:$0xff] }
 0x268   : > { %v1477_v35 = vpop.f32.mrf.mxu1  ;;  %v2479_v61 = vpop.f32.mrf.mxu0  ;;  %v2568_v54 = vrot.slane %v5504_v3, 2  ;;  %v5505_v3 = vld [vmem:[#allocation2 + $0x40] sm:$0xff] }
 0x269   : > { %v1478_v16 = vadd.f32 %v1477_v35, %v7071_v21  ;;  %v2086_v13 = vpop.f32.mrf.mxu3  ;;  %v3263_v43 = vsel %vm3201_vm1, %v3253_v60, %v3262_v26  ;;  %v3606_v35 = vrot.slane %v6818_v18, 3  ;;  %v3265_v21 = vshrl.u32 %v6834_v19, 16 }
 0x26a   : > { %3078 = vmatmul.bf16.gmra.mxu2 %v2954_v50  ;;  %v2956_v50 = vsel %vm2556_vm9, %v2953_v9, %v2955_v39 }
 0x26b   : > { %v1749_v27 = vadd.f32 %v1701_v38, %v1478_v16  ;;  %2688 = vmatmul.bf16.gmra.mxu1 %v2567_v30  ;;  %3726 = vmatmul.bf16.gmra.mxu0 %v3605_v41  ;;  %v3268_v16 = vshll.u32 %v6834_v19, 16  ;;  %v2569_v30 = vsel %vm2556_vm9, %v2566_v32, %v2568_v54  ;;  %v3607_v41 = vsel %vm3594_vm5, %v3604_v59, %v3606_v35  ;;  %v6850_v32 = vld [vmem:[#allocation2 + $0x50] sm:$0xff] }
 0x26c   : > { %v3267_v18 = vrot.slane %v3265_v21, 2  ;;  %v3608_v21 = vrot.slane %v6834_v19, 3  ;;  %v3277_v19 = vshll.u32 %v6850_v32, 16 }
 0x26d   : > { %v2134_v6 = vadd.f32 %v2086_v13, %v1749_v27  ;;  %v1706_v1 = vpop.f32.mrf.mxu2  ;;  %v3270_v48 = vrot.slane %v3268_v16, 3  ;;  %v2957_v16 = vrot.slane %v6850_v32, 2 }
 0x26f   : > { %v6831_v33 = vadd.f32 %v2479_v61, %v2134_v6 }
 0x270   : > { %v1479_v56 = vpop.f32.mrf.mxu1  ;;  %v2481_v31 = vpop.f32.mrf.mxu0 }
 0x271   : > { %v1480_v12 = vadd.f32 %v1479_v56, %v7072_v44  ;;  %v2088_v7 = vpop.f32.mrf.mxu3 }
 0x273   : > { %v1750_v36 = vadd.f32 %v1703_v0, %v1480_v12  ;;  %v7073_v0 = vld [vmem:[#allocation11_spill] sm:$0xff]  ;;  %v3271_v12 = vor.u32 %v3270_v48, %v3267_v18 }
 0x275   : > { %v2135_v38 = vadd.f32 %v2088_v7, %v1750_v36  ;;  %v1708_v51 = vpop.f32.mrf.mxu2  ;;  %v7074_v7 = vld [vmem:[#allocation13_spill] sm:$0xff]  ;;  %v3272_v59 = vsel %vm3201_vm1, %v3262_v26, %v3271_v12 }
 0x276   : > { %3471 = vmatmul.bf16.gmra.mxu3 %v3263_v43 }
 0x277   : > { %v6839_v61 = vadd.f32 %v2481_v31, %v2135_v38 }
 0x278   : > { %v1482_v57 = vpop.f32.mrf.mxu1  ;;  %v2484_v10 = vpop.f32.mrf.mxu0 }
 0x279   : > { %v1483_v13 = vadd.f32 %v1482_v57, %v7073_v0  ;;  %v2091_v60 = vpop.f32.mrf.mxu3  ;;  %v2570_v57 = vrot.slane %v5505_v3, 2 }
 0x27a   : > { %3083 = vmatmul.bf16.gmra.mxu2 %v2956_v50 }
 0x27b   : > { %v1751_v27 = vadd.f32 %v1706_v1, %v1483_v13  ;;  %2693 = vmatmul.bf16.gmra.mxu1 %v2569_v30  ;;  %3731 = vmatmul.bf16.gmra.mxu0 %v3607_v41  ;;  %v2958_v30 = vsel %vm2556_vm9, %v2955_v39, %v2957_v16  ;;  %v2571_v26 = vsel %vm2556_vm9, %v2568_v54, %v2570_v57 }
 0x27c   : > { %v3609_v41 = vsel %vm3594_vm5, %v3606_v35, %v3608_v21 }
 0x27d   : > { %v2136_v15 = vadd.f32 %v2091_v60, %v1751_v27  ;;  %v1711_v6 = vpop.f32.mrf.mxu2  ;;  %v7075_v60 = vld [vmem:[#allocation15_spill] sm:$0xff]  ;;  %v3274_v27 = vshrl.u32 %v6850_v32, 16 }
 0x27f   : > { %v6847_v56 = vadd.f32 %v2484_v10, %v2136_v15 }
 0x280   : > { %v1484_v31 = vpop.f32.mrf.mxu1  ;;  %v2486_v44 = vpop.f32.mrf.mxu0 }
 0x281   : > { %v1485_v36 = vadd.f32 %v1484_v31, %v7074_v7  ;;  %v2093_v9 = vpop.f32.mrf.mxu3  ;;  %v3276_v31 = vrot.slane %v3274_v27, 2 }
 0x283   : > { %v1752_v43 = vadd.f32 %v1708_v51, %v1485_v36 }
 0x285   : > { %v2137_v1 = vadd.f32 %v2093_v9, %v1752_v43  ;;  %v1713_v38 = vpop.f32.mrf.mxu2  ;;  %v7077_v9 = vld [vmem:[#allocation17_spill] sm:$0xff] }
 0x286   : > { %3476 = vmatmul.bf16.gmra.mxu3 %v3272_v59  ;;  %v6866_v59 = vld [vmem:[#allocation2 + $0x58] sm:$0xff] }
 0x287   : > { %v6854_v10 = vadd.f32 %v2486_v44, %v2137_v1  ;;  %v3279_v44 = vrot.slane %v3277_v19, 3  ;;  %v3283_v27 = vshrl.u32 %v6866_v59, 16  ;;  %v3286_v19 = vshll.u32 %v6866_v59, 16 }
 0x288   : > { %v1487_v0 = vpop.f32.mrf.mxu1  ;;  %v2489_v13 = vpop.f32.mrf.mxu0 }
 0x289   : > { %v1488_v50 = vadd.f32 %v1487_v0, %v7075_v60  ;;  %v2096_v51 = vpop.f32.mrf.mxu3  ;;  %v3280_v35 = vor.u32 %v3279_v44, %v3276_v31  ;;  %v2959_v60 = vrot.slane %v6866_v59, 2 }
 0x28a   : > { %3088 = vmatmul.bf16.gmra.mxu2 %v2958_v30 }
 0x28b   : > { %v1753_v18 = vadd.f32 %v1711_v6, %v1488_v50  ;;  %2698 = vmatmul.bf16.gmra.mxu1 %v2571_v26  ;;  %3736 = vmatmul.bf16.gmra.mxu0 %v3609_v41  ;;  %v3281_v3 = vsel %vm3201_vm1, %v3271_v12, %v3280_v35  ;;  %v5506_v50 = vld [vmem:[#allocation2 + $0x48] sm:$0xff]  ;;  %v3610_v41 = vrot.slane %v6850_v32, 3 }
 0x28d   : > { %v2138_v48 = vadd.f32 %v2096_v51, %v1753_v18  ;;  %v1716_v15 = vpop.f32.mrf.mxu2  ;;  %v2572_v51 = vrot.slane %v5506_v50, 2  ;;  %v3611_v44 = vsel %vm3594_vm5, %v3608_v21, %v3610_v41  ;;  %v7081_v50 = vld [vmem:[#allocation20_spill] sm:$0xff] }
 0x28f   : > { %v6863_v7 = vadd.f32 %v2489_v13, %v2138_v48  ;;  %v2960_v48 = vsel %vm2556_vm9, %v2957_v16, %v2959_v60  ;;  %v2573_v31 = vsel %vm2556_vm9, %v2570_v57, %v2572_v51 }
 0x290   : > { %v1489_v36 = vpop.f32.mrf.mxu1  ;;  %v2491_v39 = vpop.f32.mrf.mxu0 }
 0x291   : > { %7076 = vst [vmem:[#allocation12_spill] sm:$0xff] %v6863_v7  ;;  %v1490_v54 = vadd.f32 %v1489_v36, %v7077_v9  ;;  %v2098_v43 = vpop.f32.mrf.mxu3  ;;  %v3288_v9 = vrot.slane %v3286_v19, 3  ;;  %v3612_v19 = vrot.slane %v6866_v59, 3  ;;  %v6915_v7 = vld [vmem:[#allocation2 + $0x70] sm:$0xff] }
 0x293   : > { %v1754_v1 = vadd.f32 %v1713_v38, %v1490_v54  ;;  %v7079_v38 = vld [vmem:[#allocation19_spill] sm:$0xff]  ;;  %v3613_v59 = vsel %vm3594_vm5, %v3610_v41, %v3612_v19 }
 0x295   : > { %v2139_v6 = vadd.f32 %v2098_v43, %v1754_v1  ;;  %v1718_v0 = vpop.f32.mrf.mxu2 }
 0x296   : > { %3481 = vmatmul.bf16.gmra.mxu3 %v3281_v3 }
 0x297   : > { %v6870_v13 = vadd.f32 %v2491_v39, %v2139_v6  ;;  %v3285_v39 = vrot.slane %v3283_v27, 2 }
 0x298   : > { %v1492_v30 = vpop.f32.mrf.mxu1  ;;  %v2494_v26 = vpop.f32.mrf.mxu0 }
 0x299   : > { %7078 = vst [vmem:[#allocation14_spill] sm:$0xff] %v6870_v13  ;;  %v1493_v18 = vadd.f32 %v1492_v30, %v7079_v38  ;;  %v2101_v12 = vpop.f32.mrf.mxu3  ;;  %v3289_v6 = vor.u32 %v3288_v9, %v3285_v39  ;;  %v6882_v38 = vld [vmem:[#allocation2 + $0x60] sm:$0xff] }
 0x29a   : > { %3093 = vmatmul.bf16.gmra.mxu2 %v2960_v48  ;;  %v2961_v27 = vrot.slane %v6882_v38, 2  ;;  %v3295_v39 = vshll.u32 %v6882_v38, 16 }
 0x29b   : > { %v1755_v36 = vadd.f32 %v1716_v15, %v1493_v18  ;;  %2703 = vmatmul.bf16.gmra.mxu1 %v2573_v31  ;;  %3741 = vmatmul.bf16.gmra.mxu0 %v3611_v44  ;;  %v3290_v21 = vsel %vm3201_vm1, %v3280_v35, %v3289_v6  ;;  %v5507_v31 = vld [vmem:[#allocation2 + $0x50] sm:$0xff] }
 0x29c   : > { %v2574_v44 = vrot.slane %v5507_v31, 2  ;;  %v2962_v9 = vsel %vm2556_vm9, %v2959_v60, %v2961_v27  ;;  %v6896_v60 = vld [vmem:[#allocation2 + $0x68] sm:$0xff] }
 0x29d   : > { %v2140_v32 = vadd.f32 %v2101_v12, %v1755_v36  ;;  %v3054_v54 = vpop.f32.mrf.mxu2  ;;  %v3292_v36 = vshrl.u32 %v6882_v38, 16 }
 0x29f   : > { %v6879_v43 = vadd.f32 %v2494_v26, %v2140_v32  ;;  %v2575_v32 = vsel %vm2556_vm9, %v2572_v51, %v2574_v44 }
 0x2a0   : > { %v1494_v1 = vpop.f32.mrf.mxu1  ;;  %v2496_v3 = vpop.f32.mrf.mxu0 }
 0x2a1   : > { %7080 = vst [vmem:[#allocation16_spill] sm:$0xff] %v6879_v43  ;;  %v1495_v30 = vadd.f32 %v1494_v1, %v7081_v50  ;;  %v2103_v16 = vpop.f32.mrf.mxu3  ;;  %v3297_v50 = vrot.slane %v3295_v39, 3  ;;  %v2963_v39 = vrot.slane %v6896_v60, 2 }
 0x2a3   : > { %v1756_v57 = vadd.f32 %v1718_v0, %v1495_v30 }
 0x2a5   : > { %v2141_v15 = vadd.f32 %v2103_v16, %v1756_v57  ;;  %v3056_v18 = vpop.f32.mrf.mxu2 }
 0x2a6   : > { %3486 = vmatmul.bf16.gmra.mxu3 %v3290_v21 }
 0x2a7   : > { %v6887_v26 = vadd.f32 %v2496_v3, %v2141_v15  ;;  %v3294_v3 = vrot.slane %v3292_v36, 2 }
 0x2a8   : > { %v2669_v12 = vpop.f32.mrf.mxu1  ;;  %v3707_v48 = vpop.f32.mrf.mxu0 }
 0x2a9   : > { %7082 = vst [vmem:[#allocation18_spill] sm:$0xff] %v6887_v26  ;;  %v2759_v0 = vadd.f32 %v2669_v12, %v6573_v42  ;;  %v3447_v35 = vpop.f32.mrf.mxu3  ;;  %v3298_v15 = vor.u32 %v3297_v50, %v3294_v3 }
 0x2aa   : > { %3098 = vmatmul.bf16.gmra.mxu2 %v2962_v9  ;;  %v5508_v9 = vld [vmem:[#allocation2 + $0x58] sm:$0xff] }
 0x2ab   : > { %v3144_v1 = vadd.f32 %v3054_v54, %v2759_v0  ;;  %2708 = vmatmul.bf16.gmra.mxu1 %v2575_v32  ;;  %3746 = vmatmul.bf16.gmra.mxu0 %v3613_v59  ;;  %v3299_v41 = vsel %vm3201_vm1, %v3289_v6, %v3298_v15  ;;  %v3872_v54 = vpop.permute.xlu2 %3871  ;;  %v2576_v32 = vrot.slane %v5508_v9, 2  ;;  %v3614_v59 = vrot.slane %v6882_v38, 3 }
 0x2ac   : > { %v3304_v6 = vshll.u32 %v6896_v60, 16 }
 0x2ad   : > { %v3059_v30 = vpop.f32.mrf.mxu2  ;;  %v3537_v16 = vadd.f32 %v3447_v35, %v3144_v1  ;;  %v2577_v38 = vsel %vm2556_vm9, %v2574_v44, %v2576_v32 }
 0x2af   : > { %v3797_v51 = vadd.f32 %v3707_v48, %v3537_v16 }
 0x2b0   : > { %v2671_v57 = vpop.f32.mrf.mxu1  ;;  %v3709_v21 = vpop.f32.mrf.mxu0 }
 0x2b1   : > { %v2760_v42 = vadd.f32 %v2671_v57, %v6580_v2  ;;  %v3449_v12 = vpop.f32.mrf.mxu3  ;;  %v4049_v35 = vmul.f32 %v3872_v54, %v3797_v51  ;;  %v3877_v2 = vpop.permute.xlu0 %3876 }
 0x2b3   : > { %v3145_v31 = vadd.f32 %v3056_v18, %v2760_v42  ;;  %v3301_v18 = vshrl.u32 %v6896_v60, 16  ;;  %v2964_v42 = vsel %vm2556_vm9, %v2961_v27, %v2963_v39  ;;  %v3306_v27 = vrot.slane %v3304_v6, 3 }
 0x2b5   : > { %v3538_v0 = vadd.f32 %v3449_v12, %v3145_v31  ;;  %v3061_v36 = vpop.f32.mrf.mxu2  ;;  %v4127_v12 = vmul.f32 %v4049_v35, %v4049_v35 }
 0x2b6   : > { %3491 = vmatmul.bf16.gmra.mxu3 %v3299_v41 }
 0x2b7   : > { %v3798_v1 = vadd.f32 %v3709_v21, %v3538_v0  ;;  %v3615_v21 = vsel %vm3594_vm5, %v3612_v19, %v3614_v59 }
 0x2b8   : > { %v2674_v3 = vpop.f32.mrf.mxu1  ;;  %v3712_v50 = vpop.f32.mrf.mxu0 }
 0x2b9   : > { %v4050_v48 = vmul.f32 %v3877_v2, %v3798_v1  ;;  %v2761_v16 = vadd.f32 %v2674_v3, %v6588_v47  ;;  %v3452_v57 = vpop.f32.mrf.mxu3  ;;  %v3303_v47 = vrot.slane %v3301_v18, 2  ;;  %v3882_v1 = vpop.permute.xlu1 %3881 }
 0x2ba   : > { %3103 = vmatmul.bf16.gmra.mxu2 %v2964_v42 }
 0x2bb   : > { %v4085_v51 = vadd.f32 %v4050_v48, %v4049_v35  ;;  %v4128_v31 = vmul.f32 %v4050_v48, %v4050_v48  ;;  %v5303_v41 = vpack.c.bf16 %v4050_v48, %v4049_v35  ;;  %v3146_v54 = vadd.f32 %v3059_v30, %v2761_v16  ;;  %2713 = vmatmul.bf16.gmra.mxu1 %v2577_v38  ;;  %v3887_v38 = vpop.permute.xlu2 %3886 }
 0x2bc   : > { %3751 = vmatmul.bf16.gmra.mxu0 %v3615_v21  ;;  %v3307_v44 = vor.u32 %v3306_v27, %v3303_v47 }
 0x2bd   : > { %v4163_v0 = vadd.f32 %v4128_v31, %v4127_v12  ;;  %5304 = vst [vmem:[%s6909_s15] sm:$0xff] %v5303_v41   ;;  %v3539_v9 = vadd.f32 %v3452_v57, %v3146_v54  ;;  %v3064_v2 = vpop.f32.mrf.mxu2  ;;  %v3616_v12 = vrot.slane %v6896_v60, 3  ;;  %v7083_v54 = vld [vmem:[#allocation3_spill] sm:$0xff] }
 0x2be   : > { %v3308_v18 = vsel %vm3201_vm1, %v3298_v15, %v3307_v44  ;;  %v7084_v47 = vrot.slane %v7083_v54, 2 }
 0x2bf   : > { %v3799_v3 = vadd.f32 %v3712_v50, %v3539_v9  ;;  %v2965_v50 = vrot.slane %v6915_v7, 2 }
 0x2c0   : > { %v2676_v26 = vpop.f32.mrf.mxu1  ;;  %v3714_v43 = vpop.f32.mrf.mxu0  ;;  %v2579_v27 = vsel %vm2556_vm9, %v2576_v32, %v7084_v47 }
 0x2c1   : > { %v4051_v42 = vmul.f32 %v3882_v1, %v3799_v3  ;;  %v2762_v19 = vadd.f32 %v2676_v26, %v6605_v25  ;;  %v3454_v13 = vpop.f32.mrf.mxu3  ;;  %v3310_v26 = vshrl.u32 %v6915_v7, 16 }
 0x2c3   : > { %v4086_v30 = vadd.f32 %v4085_v51, %v4051_v42  ;;  %v4129_v35 = vmul.f32 %v4051_v42, %v4051_v42  ;;  %v3147_v48 = vadd.f32 %v3061_v36, %v2762_v19  ;;  %v3313_v51 = vshll.u32 %v6915_v7, 16 }
 0x2c4   : > { %v3312_v3 = vrot.slane %v3310_v26, 2 }
 0x2c5   : > { %v4164_v6 = vadd.f32 %v4163_v0, %v4129_v35  ;;  %v3540_v16 = vadd.f32 %v3454_v13, %v3147_v48  ;;  %v3066_v57 = vpop.f32.mrf.mxu2  ;;  %v2966_v13 = vsel %vm2556_vm9, %v2963_v39, %v2965_v50  ;;  %v3315_v19 = vrot.slane %v3313_v51, 3  ;;  %v3892_v39 = vpop.permute.xlu0 %3891 }
 0x2c6   : > { %3496 = vmatmul.bf16.gmra.mxu3 %v3308_v18 }
 0x2c7   : > { %v3800_v21 = vadd.f32 %v3714_v43, %v3540_v16  ;;  %v3617_v43 = vsel %vm3594_vm5, %v3614_v59, %v3616_v12  ;;  %v3316_v32 = vor.u32 %v3315_v19, %v3312_v3 }
 0x2c8   : > { %v2679_v31 = vpop.f32.mrf.mxu1  ;;  %v3717_v25 = vpop.f32.mrf.mxu0 }
 0x2c9   : > { %v4052_v41 = vmul.f32 %v3887_v38, %v3800_v21  ;;  %v2763_v15 = vadd.f32 %v2679_v31, %v6616_v34  ;;  %v3457_v36 = vpop.f32.mrf.mxu3  ;;  %v3317_v26 = vsel %vm3201_vm1, %v3307_v44, %v3316_v32 }
 0x2ca   : > { %3108 = vmatmul.bf16.gmra.mxu2 %v2966_v13 }
 0x2cb   : > { %v4087_v60 = vadd.f32 %v4086_v30, %v4052_v41  ;;  %v4130_v0 = vmul.f32 %v4052_v41, %v4052_v41  ;;  %v5308_v9 = vpack.c.bf16 %v4052_v41, %v4051_v42  ;;  %v3148_v1 = vadd.f32 %v3064_v2, %v2763_v15  ;;  %2718 = vmatmul.bf16.gmra.mxu1 %v2579_v27  ;;  %v6930_v41 = vld [vmem:[#allocation2 + $0x78] sm:$0xff] }
 0x2cc   : > { %3756 = vmatmul.bf16.gmra.mxu0 %v3617_v43  ;;  %v2967_v54 = vrot.slane %v6930_v41, 2 }
 0x2cd   : > { %v4165_v35 = vadd.f32 %v4164_v6, %v4130_v0  ;;  %5431 = vst [vmem:[%s6909_s15 + $0x8] sm:$0xff] %v5308_v9   ;;  %v3541_v34 = vadd.f32 %v3457_v36, %v3148_v1  ;;  %v3069_v48 = vpop.f32.mrf.mxu2  ;;  %v3897_v36 = vpop.permute.xlu1 %3896  ;;  %v3319_v0 = vshrl.u32 %v6930_v41, 16 }
 0x2cf   : > { %v3801_v18 = vadd.f32 %v3717_v25, %v3541_v34  ;;  %v3618_v25 = vrot.slane %v6915_v7, 3  ;;  %v3322_v7 = vshll.u32 %v6930_v41, 16 }
 0x2d0   : > { %v2681_v16 = vpop.f32.mrf.mxu1  ;;  %v3719_v38 = vpop.f32.mrf.mxu0 }
 0x2d1   : > { %v4053_v21 = vmul.f32 %v3892_v39, %v3801_v18  ;;  %v2764_v59 = vadd.f32 %v2681_v16, %v6624_v28  ;;  %v3459_v30 = vpop.f32.mrf.mxu3  ;;  %v3619_v44 = vsel %vm3594_vm5, %v3616_v12, %v3618_v25  ;;  %v3321_v18 = vrot.slane %v3319_v0, 2  ;;  %v3902_v16 = vpop.permute.xlu2 %3901 }
 0x2d3   : > { %v4088_v31 = vadd.f32 %v4087_v60, %v4053_v21  ;;  %v4131_v42 = vmul.f32 %v4053_v21, %v4053_v21  ;;  %v3149_v2 = vadd.f32 %v3066_v57, %v2764_v59  ;;  %v2968_v60 = vsel %vm2556_vm9, %v2965_v50, %v2967_v54 }
 0x2d4   : > { %v3324_v50 = vrot.slane %v3322_v7, 3 }
 0x2d5   : > { %v4166_v6 = vadd.f32 %v4165_v35, %v4131_v42  ;;  %v3542_v51 = vadd.f32 %v3459_v30, %v3149_v2  ;;  %v3071_v15 = vpop.f32.mrf.mxu2  ;;  %v7085_v35 = vld [vmem:[#allocation4_spill] sm:$0xff]  ;;  %v6943_v2 = vld [vmem:[#allocation2 + $0x80] sm:$0xff] }
 0x2d6   : > { %3501 = vmatmul.bf16.gmra.mxu3 %v3317_v26  ;;  %v3331_v0 = vshll.u32 %v6943_v2, 16 }
 0x2d7   : > { %v3802_v13 = vadd.f32 %v3719_v38, %v3542_v51 }
 0x2d8   : > { %v2684_v47 = vpop.f32.mrf.mxu1  ;;  %v3722_v28 = vpop.f32.mrf.mxu0 }
 0x2d9   : > { %v4054_v27 = vmul.f32 %v3897_v36, %v3802_v13  ;;  %v2765_v57 = vadd.f32 %v2684_v47, %v6632_v49  ;;  %v3462_v43 = vpop.f32.mrf.mxu3 }
 0x2da   : > { %3113 = vmatmul.bf16.gmra.mxu2 %v2968_v60 }
 0x2db   : > { %v4089_v9 = vadd.f32 %v4088_v31, %v4054_v27  ;;  %v4132_v1 = vmul.f32 %v4054_v27, %v4054_v27  ;;  %v5313_v3 = vpack.c.bf16 %v4054_v27, %v4053_v21  ;;  %v3150_v19 = vadd.f32 %v3069_v48, %v2765_v57  ;;  %2723 = vmatmul.bf16.gmra.mxu1 %v7085_v35  ;;  %v3907_v27 = vpop.permute.xlu0 %3906 }
 0x2dc   : > { %3761 = vmatmul.bf16.gmra.mxu0 %v3619_v44  ;;  %v3325_v48 = vor.u32 %v3324_v50, %v3321_v18  ;;  %v3328_v44 = vshrl.u32 %v6943_v2, 16  ;;  %v3333_v18 = vrot.slane %v3331_v0, 3 }
 0x2dd   : > { %v4167_v34 = vadd.f32 %v4166_v6, %v4132_v1  ;;  %5432 = vst [vmem:[%s6909_s15 + $0x10] sm:$0xff] %v5313_v3   ;;  %v3543_v49 = vadd.f32 %v3462_v43, %v3150_v19  ;;  %v3074_v39 = vpop.f32.mrf.mxu2 }
 0x2de   : > { %v3326_v6 = vsel %vm3201_vm1, %v3316_v32, %v3325_v48 }
 0x2df   : > { %v3803_v38 = vadd.f32 %v3722_v28, %v3543_v49  ;;  %v2969_v28 = vrot.slane %v6943_v2, 2  ;;  %v7086_v49 = vld [vmem:[#allocation6_spill] sm:$0xff] }
 0x2e0   : > { %v2686_v12 = vpop.f32.mrf.mxu1  ;;  %v3724_v59 = vpop.f32.mrf.mxu0 }
 0x2e1   : > { %v4055_v30 = vmul.f32 %v3902_v16, %v3803_v38  ;;  %v2766_v42 = vadd.f32 %v2686_v12, %v6643_v23  ;;  %v3464_v31 = vpop.f32.mrf.mxu3  ;;  %v3620_v23 = vrot.slane %v6930_v41, 3  ;;  %v3330_v41 = vrot.slane %v3328_v44, 2 }
 0x2e3   : > { %v4090_v21 = vadd.f32 %v4089_v9, %v4055_v30  ;;  %v4133_v26 = vmul.f32 %v4055_v30, %v4055_v30  ;;  %v3151_v51 = vadd.f32 %v3071_v15, %v2766_v42  ;;  %v2970_v9 = vsel %vm2556_vm9, %v2967_v54, %v2969_v28 }
 0x2e4   : > { %v3621_v1 = vsel %vm3594_vm5, %v3618_v25, %v3620_v23  ;;  %v3334_v42 = vor.u32 %v3333_v18, %v3330_v41 }
 0x2e5   : > { %v4168_v36 = vadd.f32 %v4167_v34, %v4133_v26  ;;  %v3544_v13 = vadd.f32 %v3464_v31, %v3151_v51  ;;  %v3076_v47 = vpop.f32.mrf.mxu2 }
 0x2e6   : > { %3506 = vmatmul.bf16.gmra.mxu3 %v3326_v6  ;;  %v3335_v6 = vsel %vm3201_vm1, %v3325_v48, %v3334_v42 }
 0x2e7   : > { %v3804_v57 = vadd.f32 %v3724_v59, %v3544_v13 }
 0x2e8   : > { %v2689_v43 = vpop.f32.mrf.mxu1  ;;  %v3727_v60 = vpop.f32.mrf.mxu0 }
 0x2e9   : > { %v4056_v15 = vmul.f32 %v3907_v27, %v3804_v57  ;;  %v2767_v32 = vadd.f32 %v2689_v43, %v6655_v37  ;;  %v3467_v7 = vpop.f32.mrf.mxu3  ;;  %v3912_v37 = vpop.permute.xlu1 %3911  ;;  %v3622_v43 = vrot.slane %v6943_v2, 3 }
 0x2ea   : > { %3118 = vmatmul.bf16.gmra.mxu2 %v2970_v9 }
 0x2eb   : > { %v4091_v3 = vadd.f32 %v4090_v21, %v4056_v15  ;;  %v4134_v19 = vmul.f32 %v4056_v15, %v4056_v15  ;;  %v5318_v35 = vpack.c.bf16 %v4056_v15, %v4055_v30  ;;  %v3152_v34 = vadd.f32 %v3074_v39, %v2767_v32  ;;  %2728 = vmatmul.bf16.gmra.mxu1 %v7086_v49  ;;  %v6956_v30 = vld [vmem:[#allocation2 + $0x88] sm:$0xff] }
 0x2ec   : > { %3766 = vmatmul.bf16.gmra.mxu0 %v3621_v1  ;;  %v2971_v57 = vrot.slane %v6956_v30, 2  ;;  %v3337_v15 = vshrl.u32 %v6956_v30, 16  ;;  %v3340_v32 = vshll.u32 %v6956_v30, 16  ;;  %v3623_v1 = vsel %vm3594_vm5, %v3620_v23, %v3622_v43 }
 0x2ed   : > { %v4169_v50 = vadd.f32 %v4168_v36, %v4134_v19  ;;  %5433 = vst [vmem:[%s6909_s15 + $0x18] sm:$0xff] %v5318_v35   ;;  %v3545_v16 = vadd.f32 %v3467_v7, %v3152_v34  ;;  %v3079_v38 = vpop.f32.mrf.mxu2  ;;  %v7087_v34 = vld [vmem:[#allocation7_spill] sm:$0xff] }
 0x2ee   : > { %v2972_v9 = vsel %vm2556_vm9, %v2969_v28, %v2971_v57  ;;  %v3339_v49 = vrot.slane %v3337_v15, 2  ;;  %v3342_v41 = vrot.slane %v3340_v32, 3 }
 0x2ef   : > { %v3805_v12 = vadd.f32 %v3727_v60, %v3545_v16  ;;  %v3917_v60 = vpop.permute.xlu2 %3916 }
 0x2f0   : > { %v2691_v59 = vpop.f32.mrf.mxu1  ;;  %v3729_v54 = vpop.f32.mrf.mxu0 }
 0x2f1   : > { %v4057_v31 = vmul.f32 %v3912_v37, %v3805_v12  ;;  %v2768_v25 = vadd.f32 %v2691_v59, %v6665_v45  ;;  %v3469_v21 = vpop.f32.mrf.mxu3  ;;  %v3343_v59 = vor.u32 %v3342_v41, %v3339_v49 }
 0x2f3   : > { %v4092_v39 = vadd.f32 %v4091_v3, %v4057_v31  ;;  %v4135_v26 = vmul.f32 %v4057_v31, %v4057_v31  ;;  %v3153_v51 = vadd.f32 %v3076_v47, %v2768_v25 }
 0x2f5   : > { %v4170_v36 = vadd.f32 %v4169_v50, %v4135_v26  ;;  %v3546_v13 = vadd.f32 %v3469_v21, %v3153_v51  ;;  %v3081_v27 = vpop.f32.mrf.mxu2  ;;  %v3344_v26 = vsel %vm3201_vm1, %v3334_v42, %v3343_v59 }
 0x2f6   : > { %3511 = vmatmul.bf16.gmra.mxu3 %v3335_v6 }
 0x2f7   : > { %v3806_v44 = vadd.f32 %v3729_v54, %v3546_v13 }
 0x2f8   : > { %v2694_v0 = vpop.f32.mrf.mxu1  ;;  %v3732_v45 = vpop.f32.mrf.mxu0 }
 0x2f9   : > { %v4058_v47 = vmul.f32 %v3917_v60, %v3806_v44  ;;  %v2769_v48 = vadd.f32 %v2694_v0, %v6676_v62  ;;  %v3472_v7 = vpop.f32.mrf.mxu3  ;;  %v3922_v62 = vpop.permute.xlu0 %3921  ;;  %v3624_v60 = vrot.slane %v6956_v30, 3 }
 0x2fa   : > { %3123 = vmatmul.bf16.gmra.mxu2 %v2972_v9  ;;  %v3927_v44 = vpop.permute.xlu1 %3926 }
 0x2fb   : > { %v4093_v3 = vadd.f32 %v4092_v39, %v4058_v47  ;;  %v4136_v2 = vmul.f32 %v4058_v47, %v4058_v47  ;;  %v5323_v19 = vpack.c.bf16 %v4058_v47, %v4057_v31  ;;  %v3154_v35 = vadd.f32 %v3079_v38, %v2769_v48  ;;  %2733 = vmatmul.bf16.gmra.mxu1 %v7087_v34  ;;  %v6969_v31 = vld [vmem:[#allocation2 + $0x90] sm:$0xff] }
 0x2fc   : > { %3771 = vmatmul.bf16.gmra.mxu0 %v3623_v1  ;;  %v2973_v13 = vrot.slane %v6969_v31, 2  ;;  %v3346_v15 = vshrl.u32 %v6969_v31, 16  ;;  %v3349_v32 = vshll.u32 %v6969_v31, 16 }
 0x2fd   : > { %v4171_v18 = vadd.f32 %v4170_v36, %v4136_v2  ;;  %5434 = vst [vmem:[%s6909_s15 + $0x20] sm:$0xff] %v5323_v19   ;;  %v3547_v50 = vadd.f32 %v3472_v7, %v3154_v35  ;;  %v3084_v16 = vpop.f32.mrf.mxu2  ;;  %v3625_v7 = vsel %vm3594_vm5, %v3622_v43, %v3624_v60  ;;  %v7088_v2 = vld [vmem:[#allocation5_spill] sm:$0xff] }
 0x2fe   : > { %v2974_v48 = vsel %vm2556_vm9, %v2971_v57, %v2973_v13  ;;  %v3348_v19 = vrot.slane %v3346_v15, 2  ;;  %v3351_v35 = vrot.slane %v3349_v32, 3 }
 0x2ff   : > { %v3807_v37 = vadd.f32 %v3732_v45, %v3547_v50 }
 0x300   : > { %v2696_v12 = vpop.f32.mrf.mxu1  ;;  %v3734_v28 = vpop.f32.mrf.mxu0 }
 0x301   : > { %v4059_v54 = vmul.f32 %v3922_v62, %v3807_v37  ;;  %v2770_v23 = vadd.f32 %v2696_v12, %v6684_v4  ;;  %v3474_v25 = vpop.f32.mrf.mxu3  ;;  %v3352_v62 = vor.u32 %v3351_v35, %v3348_v19  ;;  %v3180_v35 = vld [vmem:[#allocation2 + $0xa0] sm:$0x7] }
 0x303   : > { %v4094_v38 = vadd.f32 %v4093_v3, %v4059_v54  ;;  %v4137_v21 = vmul.f32 %v4059_v54, %v4059_v54  ;;  %v3155_v39 = vadd.f32 %v3081_v27, %v2770_v23 }
 0x305   : > { %v4172_v51 = vadd.f32 %v4171_v18, %v4137_v21  ;;  %v3548_v6 = vadd.f32 %v3474_v25, %v3155_v39  ;;  %v3086_v36 = vpop.f32.mrf.mxu2  ;;  %v3353_v25 = vsel %vm3201_vm1, %v3343_v59, %v3352_v62 }
 0x306   : > { %3516 = vmatmul.bf16.gmra.mxu3 %v3344_v26 }
 0x307   : > { %v3808_v0 = vadd.f32 %v3734_v28, %v3548_v6  ;;  %v6982_v28 = vld [vmem:[#allocation2 + $0x98] sm:$0xff]  ;;  %v3937_v6 = vpop.permute.xlu0 %3936 }
 0x308   : > { %v2699_v45 = vpop.f32.mrf.mxu1  ;;  %v3737_v4 = vpop.f32.mrf.mxu0  ;;  %v2975_v26 = vrot.slane %v6982_v28, 2 }
 0x309   : > { %v4060_v27 = vmul.f32 %v3927_v44, %v3808_v0  ;;  %v2771_v42 = vadd.f32 %v2699_v45, %v6701_v55  ;;  %v3477_v47 = vpop.f32.mrf.mxu3  ;;  %v3932_v55 = vpop.permute.xlu2 %3931  ;;  %v3355_v45 = vshrl.u32 %v6982_v28, 16 }
 0x30a   : > { %3128 = vmatmul.bf16.gmra.mxu2 %v2974_v48  ;;  %v2976_v32 = vsel %vm2556_vm9, %v2973_v13, %v2975_v26  ;;  %v3942_v13 = vpop.permute.xlu1 %3941 }
 0x30b   : > { %v4095_v9 = vadd.f32 %v4094_v38, %v4060_v27  ;;  %v4138_v30 = vmul.f32 %v4060_v27, %v4060_v27  ;;  %v5328_v1 = vpack.c.bf16 %v4060_v27, %v4059_v54  ;;  %v3156_v3 = vadd.f32 %v3084_v16, %v2771_v42  ;;  %2738 = vmatmul.bf16.gmra.mxu1 %v7088_v2  ;;  %v2831_v42 = vld [vmem:[#allocation2 + $0xa0] sm:$0x3] }
 0x30c   : > { %3776 = vmatmul.bf16.gmra.mxu0 %v3625_v7  ;;  %v2922_v19 = vunpack.c.l.b16 %v2831_v42 }
 0x30d   : > { %v4173_v34 = vadd.f32 %v4172_v51, %v4138_v30  ;;  %5435 = vst [vmem:[%s6909_s15 + $0x28] sm:$0xff] %v5328_v1   ;;  %v3549_v49 = vadd.f32 %v3477_v47, %v3156_v3  ;;  %v3089_v41 = vpop.f32.mrf.mxu2  ;;  %v3626_v51 = vrot.slane %v6969_v31, 3  ;;  %v3357_v30 = vrot.slane %v3355_v45, 2 }
 0x30f   : > { %v3809_v18 = vadd.f32 %v3737_v4, %v3549_v49  ;;  %v3358_v4 = vshll.u32 %v6982_v28, 16  ;;  %v3627_v27 = vsel %vm3594_vm5, %v3624_v60, %v3626_v51 }
 0x310   : > { %v2701_v50 = vpop.f32.mrf.mxu1  ;;  %v3739_v57 = vpop.f32.mrf.mxu0 }
 0x311   : > { %v4061_v37 = vmul.f32 %v3932_v55, %v3809_v18  ;;  %v2772_v43 = vadd.f32 %v2701_v50, %v6712_v46  ;;  %v3479_v12 = vpop.f32.mrf.mxu3  ;;  %v3360_v1 = vrot.slane %v3358_v4, 3  ;;  %v3199_v18 = vunpack.c.l.b16 %v3180_v35 }
 0x313   : > { %v4096_v16 = vadd.f32 %v4095_v9, %v4061_v37  ;;  %v4139_v54 = vmul.f32 %v4061_v37, %v4061_v37  ;;  %v3157_v23 = vadd.f32 %v3086_v36, %v2772_v43  ;;  %v7089_v9 = vld [vmem:[#allocation8_spill] sm:$0xff]  ;;  %v3361_v55 = vor.u32 %v3360_v1, %v3357_v30 }
 0x315   : > { %v4174_v38 = vadd.f32 %v4173_v34, %v4139_v54  ;;  %v3550_v21 = vadd.f32 %v3479_v12, %v3157_v23  ;;  %v3091_v39 = vpop.f32.mrf.mxu2  ;;  %v3362_v54 = vsel %vm3201_vm1, %v3352_v62, %v3361_v55  ;;  %v3200_v23 = vpack.c.b16 %v3199_v18, %v3199_v18 }
 0x316   : > { %3521 = vmatmul.bf16.gmra.mxu3 %v3353_v25 }
 0x317   : > { %v3810_v44 = vadd.f32 %v3739_v57, %v3550_v21 }
 0x318   : > { %v2704_v0 = vpop.f32.mrf.mxu1  ;;  %v3742_v46 = vpop.f32.mrf.mxu0 }
 0x319   : > { %v4062_v15 = vmul.f32 %v3937_v6, %v3810_v44  ;;  %v2773_v59 = vadd.f32 %v2704_v0, %v6720_v24  ;;  %v3482_v36 = vpop.f32.mrf.mxu3  ;;  %v3628_v44 = vrot.slane %v6982_v28, 3  ;;  %v3947_v0 = vpop.permute.xlu2 %3946 }
 0x31a   : > { %3133 = vmatmul.bf16.gmra.mxu2 %v2976_v32 }
 0x31b   : > { %v4097_v31 = vadd.f32 %v4096_v16, %v4062_v15  ;;  %v4140_v47 = vmul.f32 %v4062_v15, %v4062_v15  ;;  %v5333_v48 = vpack.c.bf16 %v4062_v15, %v4061_v37  ;;  %v3158_v7 = vadd.f32 %v3089_v41, %v2773_v59  ;;  %2743 = vmatmul.bf16.gmra.mxu1 %v7089_v9 }
 0x31c   : > { %3781 = vmatmul.bf16.gmra.mxu0 %v3627_v27  ;;  %v2941_v37 = vpack.c.b16 %v2922_v19, %v2922_v19  ;;  %v3367_v15 = vshll.u32 %v3200_v23, 16  ;;  %v3629_v32 = vsel %vm3594_vm5, %v3626_v51, %v3628_v44 }
 0x31d   : > { %v4175_v3 = vadd.f32 %v4174_v38, %v4140_v47  ;;  %5436 = vst [vmem:[%s6909_s15 + $0x30] sm:$0xff] %v5333_v48   ;;  %v3551_v2 = vadd.f32 %v3482_v36, %v3158_v7  ;;  %v3094_v24 = vpop.f32.mrf.mxu2  ;;  %v7090_v47 = vld [vmem:[#allocation9_spill] sm:$0xff] }
 0x31e   : > { %v2977_v6 = vrot.slane %v2941_v37, 2  ;;  %v3369_v7 = vrot.slane %v3367_v15, 3 }
 0x31f   : > { %v3811_v34 = vadd.f32 %v3742_v46, %v3551_v2 }
 0x320   : > { %v2706_v49 = vpop.f32.mrf.mxu1  ;;  %v3744_v60 = vpop.f32.mrf.mxu0  ;;  %v2978_v62 = vsel %vm2556_vm9, %v2975_v26, %v2977_v6 }
 0x321   : > { %v4063_v50 = vmul.f32 %v3942_v13, %v3811_v34  ;;  %v2774_v41 = vadd.f32 %v2706_v49, %v6726_v17  ;;  %v3484_v57 = vpop.f32.mrf.mxu3  ;;  %v3364_v17 = vshrl.u32 %v3200_v23, 16  ;;  %v3962_v15 = vpop.permute.xlu2 %3961 }
 0x323   : > { %v4098_v43 = vadd.f32 %v4097_v31, %v4063_v50  ;;  %v4141_v12 = vmul.f32 %v4063_v50, %v4063_v50  ;;  %v3159_v16 = vadd.f32 %v3091_v39, %v2774_v41  ;;  %v3366_v48 = vrot.slane %v3364_v17, 2 }
 0x325   : > { %v4176_v25 = vadd.f32 %v4175_v3, %v4141_v12  ;;  %v3552_v38 = vadd.f32 %v3484_v57, %v3159_v16  ;;  %v3096_v21 = vpop.f32.mrf.mxu2  ;;  %v3370_v19 = vor.u32 %v3369_v7, %v3366_v48  ;;  %v3630_v57 = vrot.slane %v3200_v23, 3 }
 0x326   : > { %3526 = vmatmul.bf16.gmra.mxu3 %v3362_v54 }
 0x327   : > { %v3812_v46 = vadd.f32 %v3744_v60, %v3552_v38  ;;  %v3371_v60 = vsel %vm3201_vm1, %v3361_v55, %v3370_v19  ;;  %v3631_v38 = vsel %vm3594_vm5, %v3628_v44, %v3630_v57 }
 0x328   : > { %v2709_v45 = vpop.f32.mrf.mxu1  ;;  %v3747_v4 = vpop.f32.mrf.mxu0 }
 0x329   : > { %v4064_v59 = vmul.f32 %v3947_v0, %v3812_v46  ;;  %v2775_v39 = vadd.f32 %v2709_v45, %v6734_v58  ;;  %v3487_v36 = vpop.f32.mrf.mxu3  ;;  %v3952_v58 = vpop.permute.xlu0 %3951  ;;  %v7091_v46 = vld [vmem:[#allocation10_spill] sm:$0xff] }
 0x32a   : > { %3138 = vmatmul.bf16.gmra.mxu2 %v2978_v62 }
 0x32b   : > { %v4099_v27 = vadd.f32 %v4098_v43, %v4064_v59  ;;  %v4142_v42 = vmul.f32 %v4064_v59, %v4064_v59  ;;  %v5338_v31 = vpack.c.bf16 %v4064_v59, %v4063_v50  ;;  %v3160_v28 = vadd.f32 %v3094_v24, %v2775_v39  ;;  %2748 = vmatmul.bf16.gmra.mxu1 %v7090_v47  ;;  %v3957_v43 = vpop.permute.xlu1 %3956 }
 0x32c   : > { %3786 = vmatmul.bf16.gmra.mxu0 %v3629_v32 }
 0x32d   : > { %v4177_v9 = vadd.f32 %v4176_v25, %v4142_v42  ;;  %5437 = vst [vmem:[%s6909_s15 + $0x38] sm:$0xff] %v5338_v31   ;;  %v3553_v30 = vadd.f32 %v3487_v36, %v3160_v28  ;;  %v3099_v1 = vpop.f32.mrf.mxu2 }
 0x32f   : > { %v3813_v3 = vadd.f32 %v3747_v4, %v3553_v30 }
 0x330   : > { %v2711_v2 = vpop.f32.mrf.mxu1  ;;  %v3749_v26 = vpop.f32.mrf.mxu0 }
 0x331   : > { %v4065_v35 = vmul.f32 %v3952_v58, %v3813_v3  ;;  %v2776_v51 = vadd.f32 %v2711_v2, %v6741_v52  ;;  %v3489_v13 = vpop.f32.mrf.mxu3  ;;  %v3967_v48 = vpop.permute.xlu0 %3966 }
 0x333   : > { %v4100_v34 = vadd.f32 %v4099_v27, %v4065_v35  ;;  %v4143_v24 = vmul.f32 %v4065_v35, %v4065_v35  ;;  %v3161_v49 = vadd.f32 %v3096_v21, %v2776_v51 }
 0x335   : > { %v4178_v18 = vadd.f32 %v4177_v9, %v4143_v24  ;;  %v3554_v50 = vadd.f32 %v3489_v13, %v3161_v49  ;;  %v3101_v41 = vpop.f32.mrf.mxu2 }
 0x336   : > { %3531 = vmatmul.bf16.gmra.mxu3 %v3371_v60 }
 0x337   : > { %v3814_v37 = vadd.f32 %v3749_v26, %v3554_v50 }
 0x338   : > { %v2714_v12 = vpop.f32.mrf.mxu1 }
 0x339   : > { %v4066_v16 = vmul.f32 %v3957_v43, %v3814_v37  ;;  %v2777_v54 = vadd.f32 %v2714_v12, %v6749_v5  ;;  %v3492_v25 = vpop.f32.mrf.mxu3  ;;  %v3752_v52 = vpop.f32.mrf.mxu0 }
 0x33b   : > { %v4101_v6 = vadd.f32 %v4100_v34, %v4066_v16  ;;  %v4144_v21 = vmul.f32 %v4066_v16, %v4066_v16  ;;  %v5343_v0 = vpack.c.bf16 %v4066_v16, %v4065_v35  ;;  %v3162_v55 = vadd.f32 %v3099_v1, %v2777_v54  ;;  %2753 = vmatmul.bf16.gmra.mxu1 %v7091_v46  ;;  %v3972_v34 = vpop.permute.xlu1 %3971  ;;  %v3977_v54 = vpop.permute.xlu2 %3976 }
 0x33c   : > { %3791 = vmatmul.bf16.gmra.mxu0 %v3631_v38 }
 0x33d   : > { %v4179_v45 = vadd.f32 %v4178_v18, %v4144_v21  ;;  %5438 = vst [vmem:[%s6909_s15 + $0x40] sm:$0xff] %v5343_v0   ;;  %v3555_v23 = vadd.f32 %v3492_v25, %v3162_v55  ;;  %v3104_v4 = vpop.f32.mrf.mxu2 }
 0x33f   : > { %v3815_v17 = vadd.f32 %v3752_v52, %v3555_v23 }
 0x340   : > { %v2716_v59 = vpop.f32.mrf.mxu1 }
 0x341   : > { %v4067_v39 = vmul.f32 %v3962_v15, %v3815_v17  ;;  %v2778_v5 = vadd.f32 %v2716_v59, %v6757_v22  ;;  %v3494_v36 = vpop.f32.mrf.mxu3  ;;  %v3754_v62 = vpop.f32.mrf.mxu0 }
 0x342   : > { %v3982_v15 = vpop.permute.xlu0 %3981 }
 0x343   : > { %v4102_v44 = vadd.f32 %v4101_v6, %v4067_v39  ;;  %v4145_v32 = vmul.f32 %v4067_v39, %v4067_v39  ;;  %v3163_v27 = vadd.f32 %v3101_v41, %v2778_v5 }
 0x345   : > { %v4180_v42 = vadd.f32 %v4179_v45, %v4145_v32  ;;  %v3556_v31 = vadd.f32 %v3494_v36, %v3163_v27  ;;  %v3106_v28 = vpop.f32.mrf.mxu2 }
 0x347   : > { %v3816_v47 = vadd.f32 %v3754_v62, %v3556_v31 }
 0x348   : > { %v2719_v7 = vpop.f32.mrf.mxu1 }
 0x349   : > { %v4068_v9 = vmul.f32 %v3967_v48, %v3816_v47  ;;  %v2779_v30 = vadd.f32 %v2719_v7, %v6765_v11  ;;  %v3497_v1 = vpop.f32.mrf.mxu3  ;;  %v3757_v58 = vpop.f32.mrf.mxu0 }
 0x34a   : > { %v3987_v47 = vpop.permute.xlu1 %3986 }
 0x34b   : > { %v4103_v3 = vadd.f32 %v4102_v44, %v4068_v9  ;;  %v4146_v2 = vmul.f32 %v4068_v9, %v4068_v9  ;;  %v5348_v22 = vpack.c.bf16 %v4068_v9, %v4067_v39  ;;  %v3164_v26 = vadd.f32 %v3104_v4, %v2779_v30 }
 0x34d   : > { %v4181_v19 = vadd.f32 %v4180_v42, %v4146_v2  ;;  %5439 = vst [vmem:[%s6909_s15 + $0x48] sm:$0xff] %v5348_v22   ;;  %v3557_v35 = vadd.f32 %v3497_v1, %v3164_v26  ;;  %v3109_v51 = vpop.f32.mrf.mxu2 }
 0x34f   : > { %v3817_v13 = vadd.f32 %v3757_v58, %v3557_v35 }
 0x350   : > { %v2721_v24 = vpop.f32.mrf.mxu1 }
 0x351   : > { %v4069_v49 = vmul.f32 %v3972_v34, %v3817_v13  ;;  %v2780_v60 = vadd.f32 %v2721_v24, %v6772_v20  ;;  %v3499_v18 = vpop.f32.mrf.mxu3  ;;  %v3759_v50 = vpop.f32.mrf.mxu0 }
 0x353   : > { %v4104_v41 = vadd.f32 %v4103_v3, %v4069_v49  ;;  %v4147_v11 = vmul.f32 %v4069_v49, %v4069_v49  ;;  %v3165_v57 = vadd.f32 %v3106_v28, %v2780_v60 }
 0x355   : > { %v4182_v37 = vadd.f32 %v4181_v19, %v4147_v11  ;;  %v3558_v43 = vadd.f32 %v3499_v18, %v3165_v57  ;;  %v3111_v12 = vpop.f32.mrf.mxu2 }
 0x357   : > { %v3818_v16 = vadd.f32 %v3759_v50, %v3558_v43  ;;  %v3997_v43 = vpop.permute.xlu0 %3996 }
 0x358   : > { %v2724_v25 = vpop.f32.mrf.mxu1 }
 0x359   : > { %v4070_v52 = vmul.f32 %v3977_v54, %v3818_v16  ;;  %v2781_v38 = vadd.f32 %v2724_v25, %v6781_v14  ;;  %v3502_v6 = vpop.f32.mrf.mxu3  ;;  %v3762_v21 = vpop.f32.mrf.mxu0 }
 0x35b   : > { %v4105_v0 = vadd.f32 %v4104_v41, %v4070_v52  ;;  %v4148_v55 = vmul.f32 %v4070_v52, %v4070_v52  ;;  %v5353_v20 = vpack.c.bf16 %v4070_v52, %v4069_v49  ;;  %v3166_v46 = vadd.f32 %v3109_v51, %v2781_v38  ;;  %v3992_v51 = vpop.permute.xlu2 %3991 }
 0x35d   : > { %v4183_v45 = vadd.f32 %v4182_v37, %v4148_v55  ;;  %5440 = vst [vmem:[%s6909_s15 + $0x50] sm:$0xff] %v5353_v20   ;;  %v3559_v23 = vadd.f32 %v3502_v6, %v3166_v46  ;;  %v3114_v4 = vpop.f32.mrf.mxu2 }
 0x35f   : > { %v3819_v17 = vadd.f32 %v3762_v21, %v3559_v23 }
 0x360   : > { %v2726_v59 = vpop.f32.mrf.mxu1 }
 0x361   : > { %v4071_v39 = vmul.f32 %v3982_v15, %v3819_v17  ;;  %v2782_v5 = vadd.f32 %v2726_v59, %v6788_v8  ;;  %v3504_v36 = vpop.f32.mrf.mxu3  ;;  %v3764_v62 = vpop.f32.mrf.mxu0 }
 0x363   : > { %v4106_v44 = vadd.f32 %v4105_v0, %v4071_v39  ;;  %v4149_v14 = vmul.f32 %v4071_v39, %v4071_v39  ;;  %v3167_v32 = vadd.f32 %v3111_v12, %v2782_v5 }
 0x365   : > { %v4184_v27 = vadd.f32 %v4183_v45, %v4149_v14  ;;  %v3560_v42 = vadd.f32 %v3504_v36, %v3167_v32  ;;  %v3116_v31 = vpop.f32.mrf.mxu2  ;;  %v4002_v45 = vpop.permute.xlu1 %4001 }
 0x366   : > { %v4007_v32 = vpop.permute.xlu2 %4006 }
 0x367   : > { %v3820_v28 = vadd.f32 %v3764_v62, %v3560_v42 }
 0x368   : > { %v2729_v48 = vpop.f32.mrf.mxu1 }
 0x369   : > { %v4072_v7 = vmul.f32 %v3987_v47, %v3820_v28  ;;  %v2783_v9 = vadd.f32 %v2729_v48, %v6799_v29  ;;  %v3507_v30 = vpop.f32.mrf.mxu3  ;;  %v3767_v1 = vpop.f32.mrf.mxu0 }
 0x36b   : > { %v4107_v58 = vadd.f32 %v4106_v44, %v4072_v7  ;;  %v4150_v3 = vmul.f32 %v4072_v7, %v4072_v7  ;;  %v5358_v8 = vpack.c.bf16 %v4072_v7, %v4071_v39  ;;  %v3168_v2 = vadd.f32 %v3114_v4, %v2783_v9 }
 0x36d   : > { %v4185_v22 = vadd.f32 %v4184_v27, %v4150_v3  ;;  %5441 = vst [vmem:[%s6909_s15 + $0x58] sm:$0xff] %v5358_v8   ;;  %v3561_v26 = vadd.f32 %v3507_v30, %v3168_v2  ;;  %v3119_v19 = vpop.f32.mrf.mxu2 }
 0x36f   : > { %v3821_v35 = vadd.f32 %v3767_v1, %v3561_v26 }
 0x370   : > { %v2731_v13 = vpop.f32.mrf.mxu1 }
 0x371   : > { %v4073_v34 = vmul.f32 %v3992_v51, %v3821_v35  ;;  %v2784_v24 = vadd.f32 %v2731_v13, %v6807_v53  ;;  %v3509_v49 = vpop.f32.mrf.mxu3  ;;  %v3769_v60 = vpop.f32.mrf.mxu0 }
 0x373   : > { %v4108_v18 = vadd.f32 %v4107_v58, %v4073_v34  ;;  %v4151_v29 = vmul.f32 %v4073_v34, %v4073_v34  ;;  %v3169_v50 = vadd.f32 %v3116_v31, %v2784_v24  ;;  %v4012_v58 = vpop.permute.xlu0 %4011 }
 0x375   : > { %v4186_v41 = vadd.f32 %v4185_v22, %v4151_v29  ;;  %v3562_v11 = vadd.f32 %v3509_v49, %v3169_v50  ;;  %v3121_v57 = vpop.f32.mrf.mxu2 }
 0x377   : > { %v3822_v37 = vadd.f32 %v3769_v60, %v3562_v11  ;;  %v4017_v60 = vpop.permute.xlu1 %4016 }
 0x378   : > { %v2734_v12 = vpop.f32.mrf.mxu1 }
 0x379   : > { %v4074_v16 = vmul.f32 %v3997_v43, %v3822_v37  ;;  %v2785_v54 = vadd.f32 %v2734_v12, %v6815_v40  ;;  %v3512_v25 = vpop.f32.mrf.mxu3  ;;  %v3772_v52 = vpop.f32.mrf.mxu0 }
 0x37b   : > { %v4109_v38 = vadd.f32 %v4108_v18, %v4074_v16  ;;  %v4152_v6 = vmul.f32 %v4074_v16, %v4074_v16  ;;  %v5363_v53 = vpack.c.bf16 %v4074_v16, %v4073_v34  ;;  %v3170_v21 = vadd.f32 %v3119_v19, %v2785_v54 }
 0x37d   : > { %v4187_v0 = vadd.f32 %v4186_v41, %v4152_v6  ;;  %5442 = vst [vmem:[%s6909_s15 + $0x60] sm:$0xff] %v5363_v53   ;;  %v3563_v55 = vadd.f32 %v3512_v25, %v3170_v21  ;;  %v3124_v20 = vpop.f32.mrf.mxu2 }
 0x37f   : > { %v3823_v46 = vadd.f32 %v3772_v52, %v3563_v55  ;;  %v4022_v52 = vpop.permute.xlu2 %4021 }
 0x380   : > { %v2736_v23 = vpop.f32.mrf.mxu1 }
 0x381   : > { %v4075_v4 = vmul.f32 %v4002_v45, %v3823_v46  ;;  %v2786_v17 = vadd.f32 %v2736_v23, %v6823_v63  ;;  %v3514_v15 = vpop.f32.mrf.mxu3  ;;  %v3774_v59 = vpop.f32.mrf.mxu0 }
 0x383   : > { %v4110_v39 = vadd.f32 %v4109_v38, %v4075_v4  ;;  %v4153_v40 = vmul.f32 %v4075_v4, %v4075_v4  ;;  %v3171_v5 = vadd.f32 %v3121_v57, %v2786_v17  ;;  %v4027_v17 = vpop.permute.xlu0 %4026 }
 0x385   : > { %v4188_v36 = vadd.f32 %v4187_v0, %v4153_v40  ;;  %v3564_v62 = vadd.f32 %v3514_v15, %v3171_v5  ;;  %v3126_v44 = vpop.f32.mrf.mxu2 }
 0x387   : > { %v3824_v14 = vadd.f32 %v3774_v59, %v3564_v62 }
 0x388   : > { %v2739_v27 = vpop.f32.mrf.mxu1 }
 0x389   : > { %v4076_v42 = vmul.f32 %v4007_v32, %v3824_v14  ;;  %v2787_v31 = vadd.f32 %v2739_v27, %v6831_v33  ;;  %v3517_v28 = vpop.f32.mrf.mxu3  ;;  %v3777_v47 = vpop.f32.mrf.mxu0 }
 0x38b   : > { %v4111_v48 = vadd.f32 %v4110_v39, %v4076_v42  ;;  %v4154_v7 = vmul.f32 %v4076_v42, %v4076_v42  ;;  %v5368_v63 = vpack.c.bf16 %v4076_v42, %v4075_v4  ;;  %v3172_v9 = vadd.f32 %v3124_v20, %v2787_v31  ;;  %v7092_v39 = vld [vmem:[#allocation12_spill] sm:$0xff] }
 0x38d   : > { %v4189_v30 = vadd.f32 %v4188_v36, %v4154_v7  ;;  %5443 = vst [vmem:[%s6909_s15 + $0x68] sm:$0xff] %v5368_v63   ;;  %v3565_v1 = vadd.f32 %v3517_v28, %v3172_v9  ;;  %v3129_v8 = vpop.f32.mrf.mxu2  ;;  %v4032_v28 = vpop.permute.xlu1 %4031  ;;  %v7093_v7 = vld [vmem:[#allocation14_spill] sm:$0xff] }
 0x38f   : > { %v3825_v3 = vadd.f32 %v3777_v47, %v3565_v1 }
 0x390   : > { %v2741_v2 = vpop.f32.mrf.mxu1 }
 0x391   : > { %v4077_v22 = vmul.f32 %v4012_v58, %v3825_v3  ;;  %v2788_v26 = vadd.f32 %v2741_v2, %v6839_v61  ;;  %v3519_v19 = vpop.f32.mrf.mxu3  ;;  %v3779_v35 = vpop.f32.mrf.mxu0 }
 0x393   : > { %v4112_v51 = vadd.f32 %v4111_v48, %v4077_v22  ;;  %v4155_v33 = vmul.f32 %v4077_v22, %v4077_v22  ;;  %v3173_v13 = vadd.f32 %v3126_v44, %v2788_v26 }
 0x395   : > { %v4190_v34 = vadd.f32 %v4189_v30, %v4155_v33  ;;  %v3566_v24 = vadd.f32 %v3519_v19, %v3173_v13  ;;  %v3131_v57 = vpop.f32.mrf.mxu2  ;;  %v7094_v33 = vld [vmem:[#allocation16_spill] sm:$0xff] }
 0x397   : > { %v3826_v49 = vadd.f32 %v3779_v35, %v3566_v24 }
 0x398   : > { %v2744_v18 = vpop.f32.mrf.mxu1 }
 0x399   : > { %v4078_v29 = vmul.f32 %v4017_v60, %v3826_v49  ;;  %v2789_v50 = vadd.f32 %v2744_v18, %v6847_v56  ;;  %v3522_v41 = vpop.f32.mrf.mxu3  ;;  %v3782_v11 = vpop.f32.mrf.mxu0 }
 0x39b   : > { %v4113_v37 = vadd.f32 %v4112_v51, %v4078_v29  ;;  %v4156_v43 = vmul.f32 %v4078_v29, %v4078_v29  ;;  %v5373_v61 = vpack.c.bf16 %v4078_v29, %v4077_v22  ;;  %v3174_v12 = vadd.f32 %v3129_v8, %v2789_v50  ;;  %v4037_v22 = vpop.permute.xlu2 %4036 }
 0x39d   : > { %v4191_v16 = vadd.f32 %v4190_v34, %v4156_v43  ;;  %5444 = vst [vmem:[%s6909_s15 + $0x70] sm:$0xff] %v5373_v61   ;;  %v3567_v54 = vadd.f32 %v3522_v41, %v3174_v12  ;;  %v3134_v46 = vpop.f32.mrf.mxu2  ;;  %v7095_v61 = vld [vmem:[#allocation18_spill] sm:$0xff] }
 0x39f   : > { %v3827_v25 = vadd.f32 %v3782_v11, %v3567_v54 }
 0x3a0   : > { %v2746_v38 = vpop.f32.mrf.mxu1 }
 0x3a1   : > { %v4079_v6 = vmul.f32 %v4022_v52, %v3827_v25  ;;  %v2790_v53 = vadd.f32 %v2746_v38, %v6854_v10  ;;  %v3524_v21 = vpop.f32.mrf.mxu3  ;;  %v3784_v0 = vpop.f32.mrf.mxu0 }
 0x3a3   : > { %v4114_v55 = vadd.f32 %v4113_v37, %v4079_v6  ;;  %v4157_v56 = vmul.f32 %v4079_v6, %v4079_v6  ;;  %v3175_v20 = vadd.f32 %v3131_v57, %v2790_v53  ;;  %v4042_v57 = vpop.permute.xlu0 %4041 }
 0x3a5   : > { %v4192_v45 = vadd.f32 %v4191_v16, %v4157_v56  ;;  %v3568_v23 = vadd.f32 %v3524_v21, %v3175_v20  ;;  %v3136_v42 = vpop.f32.mrf.mxu2 }
 0x3a7   : > { %v3828_v4 = vadd.f32 %v3784_v0, %v3568_v23 }
 0x3a8   : > { %v2749_v15 = vpop.f32.mrf.mxu1 }
 0x3a9   : > { %v4080_v59 = vmul.f32 %v4027_v17, %v3828_v4  ;;  %v2791_v40 = vadd.f32 %v2749_v15, %v7092_v39  ;;  %v3527_v5 = vpop.f32.mrf.mxu3  ;;  %v3787_v36 = vpop.f32.mrf.mxu0 }
 0x3ab   : > { %v4115_v62 = vadd.f32 %v4114_v55, %v4080_v59  ;;  %v4158_v44 = vmul.f32 %v4080_v59, %v4080_v59  ;;  %v5378_v10 = vpack.c.bf16 %v4080_v59, %v4079_v6  ;;  %v3176_v14 = vadd.f32 %v3134_v46, %v2791_v40  ;;  %v4047_v55 = vpop.permute.xlu1 %4046 }
 0x3ad   : > { %v4193_v32 = vadd.f32 %v4192_v45, %v4158_v44  ;;  %5445 = vst [vmem:[%s6909_s15 + $0x78] sm:$0xff] %v5378_v10   ;;  %v3569_v27 = vadd.f32 %v3527_v5, %v3176_v14  ;;  %v3139_v19 = vpop.f32.mrf.mxu2 }
 0x3af   : > { %v3829_v31 = vadd.f32 %v3787_v36, %v3569_v27 }
 0x3b0   : > { %v2751_v47 = vpop.f32.mrf.mxu1 }
 0x3b1   : > { %v4081_v48 = vmul.f32 %v4032_v28, %v3829_v31  ;;  %v2792_v63 = vadd.f32 %v2751_v47, %v7093_v7  ;;  %v3529_v9 = vpop.f32.mrf.mxu3  ;;  %v3789_v30 = vpop.f32.mrf.mxu0 }
 0x3b3   : > { %v4116_v1 = vadd.f32 %v4115_v62, %v4081_v48  ;;  %v4159_v58 = vmul.f32 %v4081_v48, %v4081_v48  ;;  %v3177_v3 = vadd.f32 %v3136_v42, %v2792_v63 }
 0x3b5   : > { %v4194_v8 = vadd.f32 %v4193_v32, %v4159_v58  ;;  %v3570_v2 = vadd.f32 %v3529_v9, %v3177_v3  ;;  %v3141_v16 = vpop.f32.mrf.mxu2 }
 0x3b7   : > { %v3830_v26 = vadd.f32 %v3789_v30, %v3570_v2 }
 0x3b8   : > { %v2754_v35 = vpop.f32.mrf.mxu1 }
 0x3b9   : > { %v4082_v51 = vmul.f32 %v4037_v22, %v3830_v26  ;;  %v2793_v13 = vadd.f32 %v2754_v35, %v7094_v33  ;;  %v3532_v34 = vpop.f32.mrf.mxu3  ;;  %v3792_v29 = vpop.f32.mrf.mxu0 }
 0x3bb   : > { %v4117_v24 = vadd.f32 %v4116_v1, %v4082_v51  ;;  %v4160_v49 = vmul.f32 %v4082_v51, %v4082_v51  ;;  %v5383_v60 = vpack.c.bf16 %v4082_v51, %v4081_v48  ;;  %v3178_v18 = vadd.f32 %v3139_v19, %v2793_v13 }
 0x3bd   : > { %v4195_v50 = vadd.f32 %v4194_v8, %v4160_v49  ;;  %5446 = vst [vmem:[%s6909_s15 + $0x80] sm:$0xff] %v5383_v60   ;;  %v3571_v41 = vadd.f32 %v3532_v34, %v3178_v18 }
 0x3bf   : > { %v3831_v11 = vadd.f32 %v3792_v29, %v3571_v41 }
 0x3c0   : > { %v2756_v37 = vpop.f32.mrf.mxu1 }
 0x3c1   : > { %v4083_v43 = vmul.f32 %v4042_v57, %v3831_v11  ;;  %v2794_v12 = vadd.f32 %v2756_v37, %v7095_v61  ;;  %v3534_v38 = vpop.f32.mrf.mxu3  ;;  %v3794_v21 = vpop.f32.mrf.mxu0 }
 0x3c3   : > { %v4118_v54 = vadd.f32 %v4117_v24, %v4083_v43  ;;  %v4161_v25 = vmul.f32 %v4083_v43, %v4083_v43  ;;  %v3179_v52 = vadd.f32 %v3141_v16, %v2794_v12 }
 0x3c5   : > { %v4196_v6 = vadd.f32 %v4195_v50, %v4161_v25  ;;  %v3572_v53 = vadd.f32 %v3534_v38, %v3179_v52 }
 0x3c7   : > { %v3832_v0 = vadd.f32 %v3794_v21, %v3572_v53 }
 0x3c9   : > { %v4084_v56 = vmul.f32 %v4047_v55, %v3832_v0 }
 0x3cb   : > { %v4119_v20 = vadd.f32 %v4118_v54, %v4084_v56  ;;  %v4162_v46 = vmul.f32 %v4084_v56, %v4084_v56  ;;  %v5388_v45 = vpack.c.bf16 %v4084_v56, %v4083_v43 }
 0x3cd   : > { %v4120_v23 = vrot.slane %v4119_v20, 4  ;;  %v4197_v4 = vadd.f32 %v4196_v6, %v4162_v46  ;;  %5447 = vst [vmem:[%s6909_s15 + $0x88] sm:$0xff] %v5388_v45  }
 0x3cf   : > { %v4121_v17 = vadd.f32 %v4120_v23, %v4119_v20  ;;  %v4198_v15 = vrot.slane %v4197_v4, 4 }
 0x3d1   : > { %v4122_v59 = vrot.slane %v4121_v17, 2  ;;  %v4199_v39 = vadd.f32 %v4198_v15, %v4197_v4 }
 0x3d3   : > { %v4123_v40 = vadd.f32 %v4122_v59, %v4121_v17  ;;  %v4200_v5 = vrot.slane %v4199_v39, 2 }
 0x3d5   : > { %v4124_v36 = vrot.slane %v4123_v40, 1  ;;  %v4201_v62 = vadd.f32 %v4200_v5, %v4199_v39 }
 0x3d7   : > { %v4125_v44 = vadd.f32 %v4124_v36, %v4123_v40  ;;  %v4202_v10 = vrot.slane %v4201_v62, 1 }
 0x3d9   : > { %4126 = vst [vmem:[%s235_s21] sm:$0x1] %v4125_v44  ;;  %v4203_v14 = vadd.f32 %v4202_v10, %v4201_v62 }
 0x3db   : > { %4204 = vst [vmem:[%s235_s21 + $0x1] sm:$0x1] %v4203_v14 }
 0x3dc PF: > { %s16_s18 = sadd.s32 1, %s5518_s18  }
 0x3dd   : > { %p13_p4 = scmp.ge.s32.totalorder %s16_s18, 4  }
 0x3df   :  { %15 = sbr.rel (!%p13_p4) target bundleno = 1 (0x1), region = 86 }

</bundles_post_ra>
